<compile_context>
chip_gen: v7x
topology: tpu7x:2x2x1
jax: 0.10.0
libtpu: 0.0.40
codegen_flags: <defaults>
</compile_context>

<pallas_src>
import functools

import jax
import jax.numpy as jnp
from jax.experimental import pallas as pl
from jax.experimental.pallas import tpu as pltpu


# ----------------------------------------------------------------------------
# Pallas kernel: the whole iterative-refinement loop for TB batch elements.
# Inputs per grid step i:
#   q_ref    : [TB, 1, D]   query representations
#   sup_ref  : [TB, S, D]   concatenated support (actives ++ inactives)
#   wsr/wsl  : [D, 4D]      LSTM-S weights: (wih_top + whh) fused, wih_bottom
#   b_s      : [1, 4D]      LSTM-S combined bias (b_ih + b_hh), gate order i,f,g,o
#   wqr/wql/b_q : LSTM-Q params (same shapes)
# Outputs:
#   q_out_ref : [TB, 1, D]  query + q_refine
#   s_out_ref : [TB, S, D]  support + s_refine
# ----------------------------------------------------------------------------
def _iter_ref_kernel(q_ref, sup_ref,
                     wsr_ref, wsl_ref, b_s_ref,
                     wqr_ref, wql_ref, b_q_ref,
                     q_out_ref, s_out_ref,
                     *, n_iter, approx_recip):
    TB, S, D = sup_ref.shape
    mm = wsr_ref.dtype            # matmul operand dtype (f32 or bf16)
    eps = jnp.float32(1e-8)

    def recip(x):
        # EUP reciprocal frees the VPU (which carries all the gate math).
        return pl.reciprocal(x, approx=approx_recip)

    def normalize(x):             # torch semantics: x / (||x||_2 + eps), last dim
        n = jnp.sqrt(jnp.sum(x * x, axis=-1, keepdims=True))
        return x * recip(n + eps)

    def softmax(s):               # over last dim, f32 in/out
        e = jnp.exp(s - jnp.max(s, axis=-1, keepdims=True))
        return e * recip(jnp.sum(e, axis=-1, keepdims=True))

    def gates_to_hc(gates, c):    # PyTorch LSTM cell, gate order (i, f, g, o)
        # Gate nonlinearities kept in f32 for cross-chip (v5e) compatibility;
        # on v6e/v7x these could run in bf16 on the EUP/VPU.
        i = jax.nn.sigmoid(gates[:, 0 * D:1 * D])
        f = jax.nn.sigmoid(gates[:, 1 * D:2 * D])
        g = jnp.tanh(gates[:, 2 * D:3 * D])
        o = jax.nn.sigmoid(gates[:, 3 * D:4 * D])
        c_new = f * c + i * g
        return o * jnp.tanh(c_new), c_new

    q = q_ref[...].astype(jnp.float32)        # [TB, 1, D]
    sup = sup_ref[...].astype(jnp.float32)    # [TB, S, D]

    # Support set never changes -> normalize it ONCE (hoisted out of the loop).
    sup_hat = normalize(sup).astype(mm)
    sup_mm = sup.astype(mm)

    w_s_rec = wsr_ref[...]
    w_s_lin = wsl_ref[...]
    w_q_rec = wqr_ref[...]
    w_q_lin = wql_ref[...]
    # Hoisted bias broadcasts (JAX does not CSE broadcast_in_dim, so implicit
    # broadcasting would emit one per unrolled iteration).
    b_s = jnp.broadcast_to(b_s_ref[...], (TB * S, 4 * D))
    b_q = jnp.broadcast_to(b_q_ref[...], (TB, 4 * D))

    s_refine = jnp.zeros((TB, S, D), jnp.float32)   # == h_s at all times
    q_refine = jnp.zeros((TB, 1, D), jnp.float32)   # == h_q at all times
    c_s = jnp.zeros((TB * S, D), jnp.float32)
    c_q = jnp.zeros((TB, D), jnp.float32)
    z = sup

    # number_iteration_steps is small (3) -> static unroll is fine.
    # TODO(synk): switch to a lax.fori_loop carry if n_iter ever grows past ~4
    # (a Python unroll does not bound vreg live ranges).
    for _ in range(n_iter):
        # --- support-side attention: softmax(cos(z + s_refine, sup)) @ sup ---
        xs_hat = normalize(z + s_refine).astype(mm)
        sim_s = jnp.einsum('btd,bsd->bts', xs_hat, sup_hat,
                           preferred_element_type=jnp.float32)     # [TB,S,S]
        attn_s = softmax(sim_s).astype(mm)
        lin_s = jnp.einsum('bts,bsd->btd', attn_s, sup_mm,
                           preferred_element_type=jnp.float32)     # [TB,S,D]

        # --- query-side attention: softmax(cos(q + q_refine, z)) @ z ---------
        xq_hat = normalize(q + q_refine).astype(mm)
        z_hat = normalize(z).astype(mm)
        sim_q = jnp.einsum('bqd,bsd->bqs', xq_hat, z_hat,
                           preferred_element_type=jnp.float32)     # [TB,1,S]
        attn_q = softmax(sim_q).astype(mm)
        lin_q = jnp.einsum('bqs,bsd->bqd', attn_q, z.astype(mm),
                           preferred_element_type=jnp.float32)     # [TB,1,D]

        # --- LSTM-S single step (batch folded into the matmul row axis). -----
        # No lane-axis concat: wih is pre-split into refine / linear halves,
        # and the refine half is fused with whh because the 1-step LSTM output
        # (s_refine) IS the hidden state h_s.
        gates_s = (jnp.dot(s_refine.reshape(TB * S, D).astype(mm), w_s_rec,
                           preferred_element_type=jnp.float32)
                   + jnp.dot(lin_s.reshape(TB * S, D).astype(mm), w_s_lin,
                             preferred_element_type=jnp.float32)
                   + b_s)
        h_s, c_s = gates_to_hc(gates_s, c_s)
        s_refine = h_s.reshape(TB, S, D)

        # --- LSTM-Q single step. ----------------------------------------------
        gates_q = (jnp.dot(q_refine.reshape(TB, D).astype(mm), w_q_rec,
                           preferred_element_type=jnp.float32)
                   + jnp.dot(lin_q.reshape(TB, D).astype(mm), w_q_lin,
                             preferred_element_type=jnp.float32)
                   + b_q)
        h_q, c_q = gates_to_hc(gates_q, c_q)
        q_refine = h_q.reshape(TB, 1, D)

        z = lin_s

    q_out_ref[...] = (q + q_refine).astype(q_out_ref.dtype)
    s_out_ref[...] = (sup + s_refine).astype(s_out_ref.dtype)


def iter_ref_embedding(query, sup_act, sup_inact, params, *, n_iter,
                       batch_tile=None, compute_dtype=jnp.float32,
                       approx_recip=True):
    """query: [B,1,D], sup_act/sup_inact: [B,N,D]. Returns (q_upd, s_act, s_inact).

    `batch_tile` batch elements are processed per grid step (keep B % TB == 0
    and B // TB even so both v7x TensorCores get grid work).  `compute_dtype`
    is the MXU operand dtype (bf16 recommended on v5e, also ~2x on v6e/v7x);
    accumulation is always f32.
    """
    B, _, D = query.shape
    N = sup_act.shape[1]
    S = 2 * N
    TB = B if batch_tile is None else batch_tile
    assert B % TB == 0, "batch must be divisible by batch_tile"
    support = jnp.concatenate([sup_act, sup_inact], axis=1)     # [B, S, D]

    wih_s, whh_s, b_s, wih_q, whh_q, b_q = params
    # Split wih into the half that multiplies the previous refinement and the
    # half that multiplies the attention readout; fuse the former with whh
    # (exact: the LSTM one-step output equals its hidden state).
    w_s_rec = (wih_s[:D] + whh_s).astype(compute_dtype)
    w_s_lin = wih_s[D:].astype(compute_dtype)
    w_q_rec = (wih_q[:D] + whh_q).astype(compute_dtype)
    w_q_lin = wih_q[D:].astype(compute_dtype)
    b_s = b_s.astype(jnp.float32)
    b_q = b_q.astype(jnp.float32)

    kernel = functools.partial(_iter_ref_kernel, n_iter=n_iter,
                               approx_recip=approx_recip)

    def full2d(arr):
        return pl.BlockSpec(arr.shape, lambda i: (0, 0))

    q_upd, s_upd = pl.pallas_call(
        kernel,
        grid=(B // TB,),
        in_specs=[
            pl.BlockSpec((TB, 1, D), lambda i: (i, 0, 0)),
            pl.BlockSpec((TB, S, D), lambda i: (i, 0, 0)),
            full2d(w_s_rec), full2d(w_s_lin), full2d(b_s),
            full2d(w_q_rec), full2d(w_q_lin), full2d(b_q),
        ],
        out_specs=(
            pl.BlockSpec((TB, 1, D), lambda i: (i, 0, 0)),
            pl.BlockSpec((TB, S, D), lambda i: (i, 0, 0)),
        ),
        out_shape=(
            jax.ShapeDtypeStruct((B, 1, D), jnp.float32),
            jax.ShapeDtypeStruct((B, S, D), jnp.float32),
        ),
        compiler_params=pltpu.CompilerParams(
            dimension_semantics=("parallel",),
            # Size TB so 2x(in+out tiles) + double-buffered weights fit the
            # v7x 64 MiB VMEM; 64 MiB limit is safe on v5e/v6e/v7x.
            vmem_limit_bytes=64 * 1024 * 1024),
    )(query, support, w_s_rec, w_s_lin, b_s, w_q_rec, w_q_lin, b_q)

    return q_upd, s_upd[:, :N, :], s_upd[:, N:, :]


# ----------------------------------------------------------------------------
# Pure-JAX reference (vmapped over batch), using the ORIGINAL (unsplit/unfused)
# parameters, exact divides, and f32 everywhere -> semantic ground truth.
# ----------------------------------------------------------------------------
def _reference_single(q, sup, params, n_iter, D):
    wih_s, whh_s, b_s, wih_q, whh_q, b_q = params
    eps = 1e-8

    def cosine(x, y):
        xh = x / (jnp.linalg.norm(x, axis=-1, keepdims=True) + eps)
        yh = y / (jnp.linalg.norm(y, axis=-1, keepdims=True) + eps)
        return xh @ yh.T

    def lstm(x, h, c, wih, whh, b):
        g = x @ wih + h @ whh + b
        i = jax.nn.sigmoid(g[:, :D]); f = jax.nn.sigmoid(g[:, D:2 * D])
        gg = jnp.tanh(g[:, 2 * D:3 * D]); o = jax.nn.sigmoid(g[:, 3 * D:])
        c = f * c + i * gg
        return o * jnp.tanh(c), c

    S = sup.shape[0]
    q_refine = jnp.zeros_like(q); s_refine = jnp.zeros_like(sup); z = sup
    h_s = jnp.zeros((S, D)); c_s = jnp.zeros((S, D))
    h_q = jnp.zeros((1, D)); c_q = jnp.zeros((1, D))
    for _ in range(n_iter):
        a_s = jax.nn.softmax(cosine(z + s_refine, sup), axis=-1)
        lin_s = a_s @ sup
        a_q = jax.nn.softmax(cosine(q + q_refine, z), axis=-1)
        lin_q = a_q @ z
        h_s, c_s = lstm(jnp.concatenate([s_refine, lin_s], -1), h_s, c_s,
                        wih_s, whh_s, b_s)
        s_refine = h_s
        h_q, c_q = lstm(jnp.concatenate([q_refine, lin_q], -1), h_q, c_q,
                        wih_q, whh_q, b_q)
        q_refine = h_q
        z = lin_s
    return q + q_refine, sup + s_refine


if __name__ == "__main__":
    # Small stand-ins for (batch, 128 actives/inactives, associationSpace_dim).
    # D = 128 keeps gate slices / stores lane-aligned; grid = B // TB = 2 (even).
    B, N_ACT, D = 8, 8, 128
    N_ITER = 3                    # config.model.number_iteration_steps
    TB = 4                        # batch tile per grid step
    S = 2 * N_ACT

    key = jax.random.PRNGKey(0)
    ks = jax.random.split(key, 9)
    scale = 1.0 / jnp.sqrt(D)

    query = jax.random.normal(ks[0], (B, 1, D), jnp.float32)
    sup_act = jax.random.normal(ks[1], (B, N_ACT, D), jnp.float32)
    sup_inact = jax.random.normal(ks[2], (B, N_ACT, D), jnp.float32)

    # Deterministic LSTM parameters (gate order i,f,g,o), transposed for x @ W.
    wih_s = scale * jax.random.normal(ks[3], (2 * D, 4 * D), jnp.float32)
    whh_s = scale * jax.random.normal(ks[4], (D, 4 * D), jnp.float32)
    b_s = scale * jax.random.normal(ks[5], (1, 4 * D), jnp.float32)  # b_ih + b_hh
    wih_q = scale * jax.random.normal(ks[6], (2 * D, 4 * D), jnp.float32)
    whh_q = scale * jax.random.normal(ks[7], (D, 4 * D), jnp.float32)
    b_q = scale * jax.random.normal(ks[8], (1, 4 * D), jnp.float32)
    params = (wih_s, whh_s, b_s, wih_q, whh_q, b_q)

    # Exact mode: f32 MXU operands + exact reciprocals -> matches module tightly.
    out_exact = iter_ref_embedding(query, sup_act, sup_inact, params,
                                   n_iter=N_ITER, batch_tile=TB,
                                   compute_dtype=jnp.float32,
                                   approx_recip=False)
    jax.block_until_ready(out_exact)

    # Fast mode: bf16 MXU operands + EUP approx reciprocals (perf-review config).
    out_fast = iter_ref_embedding(query, sup_act, sup_inact, params,
                                  n_iter=N_ITER, batch_tile=TB,
                                  compute_dtype=jnp.bfloat16,
                                  approx_recip=True)
    jax.block_until_ready(out_fast)

    # Verify against the pure-JAX reference.
    support = jnp.concatenate([sup_act, sup_inact], axis=1)
    ref_q, ref_s = jax.vmap(
        lambda q, s: _reference_single(q, s, params, N_ITER, D))(query, support)
    ref = (ref_q, ref_s[:, :N_ACT, :], ref_s[:, N_ACT:, :])

    for got, want in zip(out_exact, ref):
        assert jnp.allclose(got, want, atol=1e-4, rtol=1e-4), "exact-mode mismatch"
    # bf16 operands + approx reciprocal trade a little precision for speed.
    for got, want in zip(out_fast, ref):
        assert jnp.allclose(got, want, atol=5e-2, rtol=5e-2), "fast-mode mismatch"

    print("KERNEL_OK")
</pallas_src>

<mosaic_0001>
module attributes {stable_mosaic.version = 11 : i64} {
  func.func @_iter_ref_kernel(%arg0: i32, %arg1: memref<4x1x128xf32, #tpu.memory_space<vmem>>, %arg2: memref<4x16x128xf32, #tpu.memory_space<vmem>>, %arg3: memref<128x512xf32, #tpu.memory_space<vmem>>, %arg4: memref<128x512xf32, #tpu.memory_space<vmem>>, %arg5: memref<1x512xf32, #tpu.memory_space<vmem>>, %arg6: memref<128x512xf32, #tpu.memory_space<vmem>>, %arg7: memref<128x512xf32, #tpu.memory_space<vmem>>, %arg8: memref<1x512xf32, #tpu.memory_space<vmem>>, %arg9: memref<4x1x128xf32, #tpu.memory_space<vmem>>, %arg10: memref<4x16x128xf32, #tpu.memory_space<vmem>>) attributes {dimension_semantics = [#tpu.dimension_semantics<parallel>], iteration_bounds = array<i64: 2>, scalar_prefetch = 0 : i64, scratch_operands = 0 : i64, tpu.core_type = #tpu.core_type<tc>, window_params = [{transform_indices = @transform_0, window_bounds = array<i64: 4, 1, 128>}, {transform_indices = @transform_1, window_bounds = array<i64: 4, 16, 128>}, {pipeline_mode = #tpu.pipeline_mode<synchronous>, transform_indices = @transform_2, window_bounds = array<i64: 128, 512>}, {pipeline_mode = #tpu.pipeline_mode<synchronous>, transform_indices = @transform_3, window_bounds = array<i64: 128, 512>}, {pipeline_mode = #tpu.pipeline_mode<synchronous>, transform_indices = @transform_4, window_bounds = array<i64: 1, 512>}, {pipeline_mode = #tpu.pipeline_mode<synchronous>, transform_indices = @transform_5, window_bounds = array<i64: 128, 512>}, {pipeline_mode = #tpu.pipeline_mode<synchronous>, transform_indices = @transform_6, window_bounds = array<i64: 128, 512>}, {pipeline_mode = #tpu.pipeline_mode<synchronous>, transform_indices = @transform_7, window_bounds = array<i64: 1, 512>}, {transform_indices = @transform_8, window_bounds = array<i64: 4, 1, 128>}, {transform_indices = @transform_9, window_bounds = array<i64: 4, 16, 128>}]} {
    %c0 = arith.constant 0 : index
    %c0_0 = arith.constant 0 : index
    %c0_1 = arith.constant 0 : index
    %0 = vector.load %arg1[%c0, %c0_0, %c0_1] : memref<4x1x128xf32, #tpu.memory_space<vmem>>, vector<4x1x128xf32>
    %c0_2 = arith.constant 0 : index
    %c0_3 = arith.constant 0 : index
    %c0_4 = arith.constant 0 : index
    %1 = vector.load %arg2[%c0_2, %c0_3, %c0_4] : memref<4x16x128xf32, #tpu.memory_space<vmem>>, vector<4x16x128xf32>
    %2 = arith.mulf %1, %1 : vector<4x16x128xf32>
    %cst = arith.constant dense<0.000000e+00> : vector<4x16xf32>
    %3 = vector.multi_reduction <add>, %2, %cst [2] : vector<4x16x128xf32> to vector<4x16xf32>
    %4 = vector.shape_cast %3 : vector<4x16xf32> to vector<4x16x1xf32>
    %5 = math.sqrt %4 : vector<4x16x1xf32>
    %cst_5 = arith.constant 9.99999993E-9 : f32
    %6 = vector.broadcast %cst_5 : f32 to vector<4x16x1xf32>
    %7 = arith.addf %5, %6 : vector<4x16x1xf32>
    %8 = tpu.reciprocal %7 : vector<4x16x1xf32> -> vector<4x16x1xf32>
    %9 = vector.broadcast %8 : vector<4x16x1xf32> to vector<4x16x128xf32>
    %10 = arith.mulf %1, %9 : vector<4x16x128xf32>
    %c0_6 = arith.constant 0 : index
    %c0_7 = arith.constant 0 : index
    %11 = vector.load %arg3[%c0_6, %c0_7] : memref<128x512xf32, #tpu.memory_space<vmem>>, vector<128x512xf32>
    %c0_8 = arith.constant 0 : index
    %c0_9 = arith.constant 0 : index
    %12 = vector.load %arg4[%c0_8, %c0_9] : memref<128x512xf32, #tpu.memory_space<vmem>>, vector<128x512xf32>
    %c0_10 = arith.constant 0 : index
    %c0_11 = arith.constant 0 : index
    %13 = vector.load %arg6[%c0_10, %c0_11] : memref<128x512xf32, #tpu.memory_space<vmem>>, vector<128x512xf32>
    %c0_12 = arith.constant 0 : index
    %c0_13 = arith.constant 0 : index
    %14 = vector.load %arg7[%c0_12, %c0_13] : memref<128x512xf32, #tpu.memory_space<vmem>>, vector<128x512xf32>
    %c0_14 = arith.constant 0 : index
    %c0_15 = arith.constant 0 : index
    %15 = vector.load %arg5[%c0_14, %c0_15] : memref<1x512xf32, #tpu.memory_space<vmem>>, vector<1x512xf32>
    %16 = vector.shape_cast %15 : vector<1x512xf32> to vector<1x512xf32>
    %17 = vector.broadcast %16 : vector<1x512xf32> to vector<64x512xf32>
    %c0_16 = arith.constant 0 : index
    %c0_17 = arith.constant 0 : index
    %18 = vector.load %arg8[%c0_16, %c0_17] : memref<1x512xf32, #tpu.memory_space<vmem>>, vector<1x512xf32>
    %19 = vector.shape_cast %18 : vector<1x512xf32> to vector<1x512xf32>
    %20 = vector.broadcast %19 : vector<1x512xf32> to vector<4x512xf32>
    %cst_18 = arith.constant 0.000000e+00 : f32
    %21 = vector.broadcast %cst_18 : f32 to vector<4x16x128xf32>
    %cst_19 = arith.constant 0.000000e+00 : f32
    %22 = vector.broadcast %cst_19 : f32 to vector<4x1x128xf32>
    %cst_20 = arith.constant 0.000000e+00 : f32
    %23 = vector.broadcast %cst_20 : f32 to vector<64x128xf32>
    %cst_21 = arith.constant 0.000000e+00 : f32
    %24 = vector.broadcast %cst_21 : f32 to vector<4x128xf32>
    %25 = arith.addf %1, %21 : vector<4x16x128xf32>
    %26 = arith.mulf %25, %25 : vector<4x16x128xf32>
    %cst_22 = arith.constant dense<0.000000e+00> : vector<4x16xf32>
    %27 = vector.multi_reduction <add>, %26, %cst_22 [2] : vector<4x16x128xf32> to vector<4x16xf32>
    %28 = vector.shape_cast %27 : vector<4x16xf32> to vector<4x16x1xf32>
    %29 = math.sqrt %28 : vector<4x16x1xf32>
    %cst_23 = arith.constant 9.99999993E-9 : f32
    %30 = vector.broadcast %cst_23 : f32 to vector<4x16x1xf32>
    %31 = arith.addf %29, %30 : vector<4x16x1xf32>
    %32 = tpu.reciprocal %31 : vector<4x16x1xf32> -> vector<4x16x1xf32>
    %33 = vector.broadcast %32 : vector<4x16x1xf32> to vector<4x16x128xf32>
    %34 = arith.mulf %25, %33 : vector<4x16x128xf32>
    "tpu.trace_start"() <{level = 10 : i32, message = "btd,bsd->bts"}> : () -> ()
    %cst_24 = arith.constant dense<0.000000e+00> : vector<4x16x16xf32>
    %35 = tpu.matmul %34, %10, %cst_24 {dimension_numbers = #tpu.dot_dimension_numbers<[2], [2], [1], [1], [0, 0, 0, 1, 1, 1], [0], [0]>} : vector<4x16x128xf32>, vector<4x16x128xf32>, vector<4x16x16xf32> -> vector<4x16x16xf32>
    "tpu.trace_stop"() : () -> ()
    %cst_25 = arith.constant dense<0xFF800000> : vector<4x16xf32>
    %36 = vector.multi_reduction <maximumf>, %35, %cst_25 [2] : vector<4x16x16xf32> to vector<4x16xf32>
    %37 = vector.shape_cast %36 : vector<4x16xf32> to vector<4x16x1xf32>
    %38 = vector.broadcast %37 : vector<4x16x1xf32> to vector<4x16x16xf32>
    %39 = arith.subf %35, %38 : vector<4x16x16xf32>
    %40 = math.exp %39 : vector<4x16x16xf32>
    %cst_26 = arith.constant dense<0.000000e+00> : vector<4x16xf32>
    %41 = vector.multi_reduction <add>, %40, %cst_26 [2] : vector<4x16x16xf32> to vector<4x16xf32>
    %42 = vector.shape_cast %41 : vector<4x16xf32> to vector<4x16x1xf32>
    %43 = tpu.reciprocal %42 : vector<4x16x1xf32> -> vector<4x16x1xf32>
    %44 = vector.broadcast %43 : vector<4x16x1xf32> to vector<4x16x16xf32>
    %45 = arith.mulf %40, %44 : vector<4x16x16xf32>
    "tpu.trace_start"() <{level = 10 : i32, message = "bts,bsd->btd"}> : () -> ()
    %cst_27 = arith.constant dense<0.000000e+00> : vector<4x16x128xf32>
    %46 = tpu.matmul %45, %1, %cst_27 {dimension_numbers = #tpu.dot_dimension_numbers<[2], [1], [1], [2], [0, 0, 0, 1, 1, 2], [0], [0]>} : vector<4x16x16xf32>, vector<4x16x128xf32>, vector<4x16x128xf32> -> vector<4x16x128xf32>
    "tpu.trace_stop"() : () -> ()
    %47 = arith.addf %0, %22 : vector<4x1x128xf32>
    %48 = arith.mulf %47, %47 : vector<4x1x128xf32>
    %cst_28 = arith.constant dense<0.000000e+00> : vector<4x1xf32>
    %49 = vector.multi_reduction <add>, %48, %cst_28 [2] : vector<4x1x128xf32> to vector<4x1xf32>
    %50 = vector.shape_cast %49 : vector<4x1xf32> to vector<4x1x1xf32>
    %51 = math.sqrt %50 : vector<4x1x1xf32>
    %cst_29 = arith.constant 9.99999993E-9 : f32
    %52 = vector.broadcast %cst_29 : f32 to vector<4x1x1xf32>
    %53 = arith.addf %51, %52 : vector<4x1x1xf32>
    %54 = tpu.reciprocal %53 : vector<4x1x1xf32> -> vector<4x1x1xf32>
    %55 = vector.broadcast %54 : vector<4x1x1xf32> to vector<4x1x128xf32>
    %56 = arith.mulf %47, %55 : vector<4x1x128xf32>
    %57 = arith.mulf %1, %1 : vector<4x16x128xf32>
    %cst_30 = arith.constant dense<0.000000e+00> : vector<4x16xf32>
    %58 = vector.multi_reduction <add>, %57, %cst_30 [2] : vector<4x16x128xf32> to vector<4x16xf32>
    %59 = vector.shape_cast %58 : vector<4x16xf32> to vector<4x16x1xf32>
    %60 = math.sqrt %59 : vector<4x16x1xf32>
    %cst_31 = arith.constant 9.99999993E-9 : f32
    %61 = vector.broadcast %cst_31 : f32 to vector<4x16x1xf32>
    %62 = arith.addf %60, %61 : vector<4x16x1xf32>
    %63 = tpu.reciprocal %62 : vector<4x16x1xf32> -> vector<4x16x1xf32>
    %64 = vector.broadcast %63 : vector<4x16x1xf32> to vector<4x16x128xf32>
    %65 = arith.mulf %1, %64 : vector<4x16x128xf32>
    "tpu.trace_start"() <{level = 10 : i32, message = "bqd,bsd->bqs"}> : () -> ()
    %cst_32 = arith.constant dense<0.000000e+00> : vector<4x1x16xf32>
    %66 = tpu.matmul %56, %65, %cst_32 {dimension_numbers = #tpu.dot_dimension_numbers<[2], [2], [1], [1], [0, 0, 0, 1, 1, 1], [0], [0]>} : vector<4x1x128xf32>, vector<4x16x128xf32>, vector<4x1x16xf32> -> vector<4x1x16xf32>
    "tpu.trace_stop"() : () -> ()
    %cst_33 = arith.constant dense<0xFF800000> : vector<4x1xf32>
    %67 = vector.multi_reduction <maximumf>, %66, %cst_33 [2] : vector<4x1x16xf32> to vector<4x1xf32>
    %68 = vector.shape_cast %67 : vector<4x1xf32> to vector<4x1x1xf32>
    %69 = vector.broadcast %68 : vector<4x1x1xf32> to vector<4x1x16xf32>
    %70 = arith.subf %66, %69 : vector<4x1x16xf32>
    %71 = math.exp %70 : vector<4x1x16xf32>
    %cst_34 = arith.constant dense<0.000000e+00> : vector<4x1xf32>
    %72 = vector.multi_reduction <add>, %71, %cst_34 [2] : vector<4x1x16xf32> to vector<4x1xf32>
    %73 = vector.shape_cast %72 : vector<4x1xf32> to vector<4x1x1xf32>
    %74 = tpu.reciprocal %73 : vector<4x1x1xf32> -> vector<4x1x1xf32>
    %75 = vector.broadcast %74 : vector<4x1x1xf32> to vector<4x1x16xf32>
    %76 = arith.mulf %71, %75 : vector<4x1x16xf32>
    "tpu.trace_start"() <{level = 10 : i32, message = "bqs,bsd->bqd"}> : () -> ()
    %cst_35 = arith.constant dense<0.000000e+00> : vector<4x1x128xf32>
    %77 = tpu.matmul %76, %1, %cst_35 {dimension_numbers = #tpu.dot_dimension_numbers<[2], [1], [1], [2], [0, 0, 0, 1, 1, 2], [0], [0]>} : vector<4x1x16xf32>, vector<4x16x128xf32>, vector<4x1x128xf32> -> vector<4x1x128xf32>
    "tpu.trace_stop"() : () -> ()
    %78 = vector.shape_cast %21 : vector<4x16x128xf32> to vector<64x128xf32>
    %cst_36 = arith.constant dense<0.000000e+00> : vector<64x512xf32>
    %79 = tpu.matmul %78, %11, %cst_36 {dimension_numbers = #tpu.dot_dimension_numbers<[1], [0], [0], [1], [0, 0, 1, 1], [], []>} : vector<64x128xf32>, vector<128x512xf32>, vector<64x512xf32> -> vector<64x512xf32>
    %80 = vector.shape_cast %46 : vector<4x16x128xf32> to vector<64x128xf32>
    %cst_37 = arith.constant dense<0.000000e+00> : vector<64x512xf32>
    %81 = tpu.matmul %80, %12, %cst_37 {dimension_numbers = #tpu.dot_dimension_numbers<[1], [0], [0], [1], [0, 0, 1, 1], [], []>} : vector<64x128xf32>, vector<128x512xf32>, vector<64x512xf32> -> vector<64x512xf32>
    %82 = arith.addf %79, %81 : vector<64x512xf32>
    %83 = arith.addf %82, %17 : vector<64x512xf32>
    %84 = vector.extract_strided_slice %83 {offsets = [0, 0], sizes = [64, 128], strides = [1, 1]} : vector<64x512xf32> to vector<64x128xf32>
    %85 = arith.negf %84 : vector<64x128xf32>
    %86 = math.exp %85 : vector<64x128xf32>
    %cst_38 = arith.constant 1.000000e+00 : f32
    %87 = vector.broadcast %cst_38 : f32 to vector<64x128xf32>
    %88 = arith.addf %87, %86 : vector<64x128xf32>
    %89 = arith.divf %87, %88 : vector<64x128xf32>
    %90 = vector.extract_strided_slice %83 {offsets = [0, 128], sizes = [64, 128], strides = [1, 1]} : vector<64x512xf32> to vector<64x128xf32>
    %91 = arith.negf %90 : vector<64x128xf32>
    %92 = math.exp %91 : vector<64x128xf32>
    %cst_39 = arith.constant 1.000000e+00 : f32
    %93 = vector.broadcast %cst_39 : f32 to vector<64x128xf32>
    %94 = arith.addf %93, %92 : vector<64x128xf32>
    %95 = arith.divf %93, %94 : vector<64x128xf32>
    %96 = vector.extract_strided_slice %83 {offsets = [0, 256], sizes = [64, 128], strides = [1, 1]} : vector<64x512xf32> to vector<64x128xf32>
    %97 = math.tanh %96 : vector<64x128xf32>
    %98 = vector.extract_strided_slice %83 {offsets = [0, 384], sizes = [64, 128], strides = [1, 1]} : vector<64x512xf32> to vector<64x128xf32>
    %99 = arith.negf %98 : vector<64x128xf32>
    %100 = math.exp %99 : vector<64x128xf32>
    %cst_40 = arith.constant 1.000000e+00 : f32
    %101 = vector.broadcast %cst_40 : f32 to vector<64x128xf32>
    %102 = arith.addf %101, %100 : vector<64x128xf32>
    %103 = arith.divf %101, %102 : vector<64x128xf32>
    %104 = arith.mulf %95, %23 : vector<64x128xf32>
    %105 = arith.mulf %89, %97 : vector<64x128xf32>
    %106 = arith.addf %104, %105 : vector<64x128xf32>
    %107 = math.tanh %106 : vector<64x128xf32>
    %108 = arith.mulf %103, %107 : vector<64x128xf32>
    %109 = vector.shape_cast %108 : vector<64x128xf32> to vector<4x16x128xf32>
    %110 = vector.shape_cast %22 : vector<4x1x128xf32> to vector<4x128xf32>
    %cst_41 = arith.constant dense<0.000000e+00> : vector<4x512xf32>
    %111 = tpu.matmul %110, %13, %cst_41 {dimension_numbers = #tpu.dot_dimension_numbers<[1], [0], [0], [1], [0, 0, 1, 1], [], []>} : vector<4x128xf32>, vector<128x512xf32>, vector<4x512xf32> -> vector<4x512xf32>
    %112 = vector.shape_cast %77 : vector<4x1x128xf32> to vector<4x128xf32>
    %cst_42 = arith.constant dense<0.000000e+00> : vector<4x512xf32>
    %113 = tpu.matmul %112, %14, %cst_42 {dimension_numbers = #tpu.dot_dimension_numbers<[1], [0], [0], [1], [0, 0, 1, 1], [], []>} : vector<4x128xf32>, vector<128x512xf32>, vector<4x512xf32> -> vector<4x512xf32>
    %114 = arith.addf %111, %113 : vector<4x512xf32>
    %115 = arith.addf %114, %20 : vector<4x512xf32>
    %116 = vector.extract_strided_slice %115 {offsets = [0, 0], sizes = [4, 128], strides = [1, 1]} : vector<4x512xf32> to vector<4x128xf32>
    %117 = arith.negf %116 : vector<4x128xf32>
    %118 = math.exp %117 : vector<4x128xf32>
    %cst_43 = arith.constant 1.000000e+00 : f32
    %119 = vector.broadcast %cst_43 : f32 to vector<4x128xf32>
    %120 = arith.addf %119, %118 : vector<4x128xf32>
    %121 = arith.divf %119, %120 : vector<4x128xf32>
    %122 = vector.extract_strided_slice %115 {offsets = [0, 128], sizes = [4, 128], strides = [1, 1]} : vector<4x512xf32> to vector<4x128xf32>
    %123 = arith.negf %122 : vector<4x128xf32>
    %124 = math.exp %123 : vector<4x128xf32>
    %cst_44 = arith.constant 1.000000e+00 : f32
    %125 = vector.broadcast %cst_44 : f32 to vector<4x128xf32>
    %126 = arith.addf %125, %124 : vector<4x128xf32>
    %127 = arith.divf %125, %126 : vector<4x128xf32>
    %128 = vector.extract_strided_slice %115 {offsets = [0, 256], sizes = [4, 128], strides = [1, 1]} : vector<4x512xf32> to vector<4x128xf32>
    %129 = math.tanh %128 : vector<4x128xf32>
    %130 = vector.extract_strided_slice %115 {offsets = [0, 384], sizes = [4, 128], strides = [1, 1]} : vector<4x512xf32> to vector<4x128xf32>
    %131 = arith.negf %130 : vector<4x128xf32>
    %132 = math.exp %131 : vector<4x128xf32>
    %cst_45 = arith.constant 1.000000e+00 : f32
    %133 = vector.broadcast %cst_45 : f32 to vector<4x128xf32>
    %134 = arith.addf %133, %132 : vector<4x128xf32>
    %135 = arith.divf %133, %134 : vector<4x128xf32>
    %136 = arith.mulf %127, %24 : vector<4x128xf32>
    %137 = arith.mulf %121, %129 : vector<4x128xf32>
    %138 = arith.addf %136, %137 : vector<4x128xf32>
    %139 = math.tanh %138 : vector<4x128xf32>
    %140 = arith.mulf %135, %139 : vector<4x128xf32>
    %141 = vector.shape_cast %140 : vector<4x128xf32> to vector<4x1x128xf32>
    %142 = arith.addf %46, %109 : vector<4x16x128xf32>
    %143 = arith.mulf %142, %142 : vector<4x16x128xf32>
    %cst_46 = arith.constant dense<0.000000e+00> : vector<4x16xf32>
    %144 = vector.multi_reduction <add>, %143, %cst_46 [2] : vector<4x16x128xf32> to vector<4x16xf32>
    %145 = vector.shape_cast %144 : vector<4x16xf32> to vector<4x16x1xf32>
    %146 = math.sqrt %145 : vector<4x16x1xf32>
    %cst_47 = arith.constant 9.99999993E-9 : f32
    %147 = vector.broadcast %cst_47 : f32 to vector<4x16x1xf32>
    %148 = arith.addf %146, %147 : vector<4x16x1xf32>
    %149 = tpu.reciprocal %148 : vector<4x16x1xf32> -> vector<4x16x1xf32>
    %150 = vector.broadcast %149 : vector<4x16x1xf32> to vector<4x16x128xf32>
    %151 = arith.mulf %142, %150 : vector<4x16x128xf32>
    "tpu.trace_start"() <{level = 10 : i32, message = "btd,bsd->bts"}> : () -> ()
    %cst_48 = arith.constant dense<0.000000e+00> : vector<4x16x16xf32>
    %152 = tpu.matmul %151, %10, %cst_48 {dimension_numbers = #tpu.dot_dimension_numbers<[2], [2], [1], [1], [0, 0, 0, 1, 1, 1], [0], [0]>} : vector<4x16x128xf32>, vector<4x16x128xf32>, vector<4x16x16xf32> -> vector<4x16x16xf32>
    "tpu.trace_stop"() : () -> ()
    %cst_49 = arith.constant dense<0xFF800000> : vector<4x16xf32>
    %153 = vector.multi_reduction <maximumf>, %152, %cst_49 [2] : vector<4x16x16xf32> to vector<4x16xf32>
    %154 = vector.shape_cast %153 : vector<4x16xf32> to vector<4x16x1xf32>
    %155 = vector.broadcast %154 : vector<4x16x1xf32> to vector<4x16x16xf32>
    %156 = arith.subf %152, %155 : vector<4x16x16xf32>
    %157 = math.exp %156 : vector<4x16x16xf32>
    %cst_50 = arith.constant dense<0.000000e+00> : vector<4x16xf32>
    %158 = vector.multi_reduction <add>, %157, %cst_50 [2] : vector<4x16x16xf32> to vector<4x16xf32>
    %159 = vector.shape_cast %158 : vector<4x16xf32> to vector<4x16x1xf32>
    %160 = tpu.reciprocal %159 : vector<4x16x1xf32> -> vector<4x16x1xf32>
    %161 = vector.broadcast %160 : vector<4x16x1xf32> to vector<4x16x16xf32>
    %162 = arith.mulf %157, %161 : vector<4x16x16xf32>
    "tpu.trace_start"() <{level = 10 : i32, message = "bts,bsd->btd"}> : () -> ()
    %cst_51 = arith.constant dense<0.000000e+00> : vector<4x16x128xf32>
    %163 = tpu.matmul %162, %1, %cst_51 {dimension_numbers = #tpu.dot_dimension_numbers<[2], [1], [1], [2], [0, 0, 0, 1, 1, 2], [0], [0]>} : vector<4x16x16xf32>, vector<4x16x128xf32>, vector<4x16x128xf32> -> vector<4x16x128xf32>
    "tpu.trace_stop"() : () -> ()
    %164 = arith.addf %0, %141 : vector<4x1x128xf32>
    %165 = arith.mulf %164, %164 : vector<4x1x128xf32>
    %cst_52 = arith.constant dense<0.000000e+00> : vector<4x1xf32>
    %166 = vector.multi_reduction <add>, %165, %cst_52 [2] : vector<4x1x128xf32> to vector<4x1xf32>
    %167 = vector.shape_cast %166 : vector<4x1xf32> to vector<4x1x1xf32>
    %168 = math.sqrt %167 : vector<4x1x1xf32>
    %cst_53 = arith.constant 9.99999993E-9 : f32
    %169 = vector.broadcast %cst_53 : f32 to vector<4x1x1xf32>
    %170 = arith.addf %168, %169 : vector<4x1x1xf32>
    %171 = tpu.reciprocal %170 : vector<4x1x1xf32> -> vector<4x1x1xf32>
    %172 = vector.broadcast %171 : vector<4x1x1xf32> to vector<4x1x128xf32>
    %173 = arith.mulf %164, %172 : vector<4x1x128xf32>
    %174 = arith.mulf %46, %46 : vector<4x16x128xf32>
    %cst_54 = arith.constant dense<0.000000e+00> : vector<4x16xf32>
    %175 = vector.multi_reduction <add>, %174, %cst_54 [2] : vector<4x16x128xf32> to vector<4x16xf32>
    %176 = vector.shape_cast %175 : vector<4x16xf32> to vector<4x16x1xf32>
    %177 = math.sqrt %176 : vector<4x16x1xf32>
    %cst_55 = arith.constant 9.99999993E-9 : f32
    %178 = vector.broadcast %cst_55 : f32 to vector<4x16x1xf32>
    %179 = arith.addf %177, %178 : vector<4x16x1xf32>
    %180 = tpu.reciprocal %179 : vector<4x16x1xf32> -> vector<4x16x1xf32>
    %181 = vector.broadcast %180 : vector<4x16x1xf32> to vector<4x16x128xf32>
    %182 = arith.mulf %46, %181 : vector<4x16x128xf32>
    "tpu.trace_start"() <{level = 10 : i32, message = "bqd,bsd->bqs"}> : () -> ()
    %cst_56 = arith.constant dense<0.000000e+00> : vector<4x1x16xf32>
    %183 = tpu.matmul %173, %182, %cst_56 {dimension_numbers = #tpu.dot_dimension_numbers<[2], [2], [1], [1], [0, 0, 0, 1, 1, 1], [0], [0]>} : vector<4x1x128xf32>, vector<4x16x128xf32>, vector<4x1x16xf32> -> vector<4x1x16xf32>
    "tpu.trace_stop"() : () -> ()
    %cst_57 = arith.constant dense<0xFF800000> : vector<4x1xf32>
    %184 = vector.multi_reduction <maximumf>, %183, %cst_57 [2] : vector<4x1x16xf32> to vector<4x1xf32>
    %185 = vector.shape_cast %184 : vector<4x1xf32> to vector<4x1x1xf32>
    %186 = vector.broadcast %185 : vector<4x1x1xf32> to vector<4x1x16xf32>
    %187 = arith.subf %183, %186 : vector<4x1x16xf32>
    %188 = math.exp %187 : vector<4x1x16xf32>
    %cst_58 = arith.constant dense<0.000000e+00> : vector<4x1xf32>
    %189 = vector.multi_reduction <add>, %188, %cst_58 [2] : vector<4x1x16xf32> to vector<4x1xf32>
    %190 = vector.shape_cast %189 : vector<4x1xf32> to vector<4x1x1xf32>
    %191 = tpu.reciprocal %190 : vector<4x1x1xf32> -> vector<4x1x1xf32>
    %192 = vector.broadcast %191 : vector<4x1x1xf32> to vector<4x1x16xf32>
    %193 = arith.mulf %188, %192 : vector<4x1x16xf32>
    "tpu.trace_start"() <{level = 10 : i32, message = "bqs,bsd->bqd"}> : () -> ()
    %cst_59 = arith.constant dense<0.000000e+00> : vector<4x1x128xf32>
    %194 = tpu.matmul %193, %46, %cst_59 {dimension_numbers = #tpu.dot_dimension_numbers<[2], [1], [1], [2], [0, 0, 0, 1, 1, 2], [0], [0]>} : vector<4x1x16xf32>, vector<4x16x128xf32>, vector<4x1x128xf32> -> vector<4x1x128xf32>
    "tpu.trace_stop"() : () -> ()
    %195 = vector.shape_cast %109 : vector<4x16x128xf32> to vector<64x128xf32>
    %cst_60 = arith.constant dense<0.000000e+00> : vector<64x512xf32>
    %196 = tpu.matmul %195, %11, %cst_60 {dimension_numbers = #tpu.dot_dimension_numbers<[1], [0], [0], [1], [0, 0, 1, 1], [], []>} : vector<64x128xf32>, vector<128x512xf32>, vector<64x512xf32> -> vector<64x512xf32>
    %197 = vector.shape_cast %163 : vector<4x16x128xf32> to vector<64x128xf32>
    %cst_61 = arith.constant dense<0.000000e+00> : vector<64x512xf32>
    %198 = tpu.matmul %197, %12, %cst_61 {dimension_numbers = #tpu.dot_dimension_numbers<[1], [0], [0], [1], [0, 0, 1, 1], [], []>} : vector<64x128xf32>, vector<128x512xf32>, vector<64x512xf32> -> vector<64x512xf32>
    %199 = arith.addf %196, %198 : vector<64x512xf32>
    %200 = arith.addf %199, %17 : vector<64x512xf32>
    %201 = vector.extract_strided_slice %200 {offsets = [0, 0], sizes = [64, 128], strides = [1, 1]} : vector<64x512xf32> to vector<64x128xf32>
    %202 = arith.negf %201 : vector<64x128xf32>
    %203 = math.exp %202 : vector<64x128xf32>
    %cst_62 = arith.constant 1.000000e+00 : f32
    %204 = vector.broadcast %cst_62 : f32 to vector<64x128xf32>
    %205 = arith.addf %204, %203 : vector<64x128xf32>
    %206 = arith.divf %204, %205 : vector<64x128xf32>
    %207 = vector.extract_strided_slice %200 {offsets = [0, 128], sizes = [64, 128], strides = [1, 1]} : vector<64x512xf32> to vector<64x128xf32>
    %208 = arith.negf %207 : vector<64x128xf32>
    %209 = math.exp %208 : vector<64x128xf32>
    %cst_63 = arith.constant 1.000000e+00 : f32
    %210 = vector.broadcast %cst_63 : f32 to vector<64x128xf32>
    %211 = arith.addf %210, %209 : vector<64x128xf32>
    %212 = arith.divf %210, %211 : vector<64x128xf32>
    %213 = vector.extract_strided_slice %200 {offsets = [0, 256], sizes = [64, 128], strides = [1, 1]} : vector<64x512xf32> to vector<64x128xf32>
    %214 = math.tanh %213 : vector<64x128xf32>
    %215 = vector.extract_strided_slice %200 {offsets = [0, 384], sizes = [64, 128], strides = [1, 1]} : vector<64x512xf32> to vector<64x128xf32>
    %216 = arith.negf %215 : vector<64x128xf32>
    %217 = math.exp %216 : vector<64x128xf32>
    %cst_64 = arith.constant 1.000000e+00 : f32
    %218 = vector.broadcast %cst_64 : f32 to vector<64x128xf32>
    %219 = arith.addf %218, %217 : vector<64x128xf32>
    %220 = arith.divf %218, %219 : vector<64x128xf32>
    %221 = arith.mulf %212, %106 : vector<64x128xf32>
    %222 = arith.mulf %206, %214 : vector<64x128xf32>
    %223 = arith.addf %221, %222 : vector<64x128xf32>
    %224 = math.tanh %223 : vector<64x128xf32>
    %225 = arith.mulf %220, %224 : vector<64x128xf32>
    %226 = vector.shape_cast %225 : vector<64x128xf32> to vector<4x16x128xf32>
    %227 = vector.shape_cast %141 : vector<4x1x128xf32> to vector<4x128xf32>
    %cst_65 = arith.constant dense<0.000000e+00> : vector<4x512xf32>
    %228 = tpu.matmul %227, %13, %cst_65 {dimension_numbers = #tpu.dot_dimension_numbers<[1], [0], [0], [1], [0, 0, 1, 1], [], []>} : vector<4x128xf32>, vector<128x512xf32>, vector<4x512xf32> -> vector<4x512xf32>
    %229 = vector.shape_cast %194 : vector<4x1x128xf32> to vector<4x128xf32>
    %cst_66 = arith.constant dense<0.000000e+00> : vector<4x512xf32>
    %230 = tpu.matmul %229, %14, %cst_66 {dimension_numbers = #tpu.dot_dimension_numbers<[1], [0], [0], [1], [0, 0, 1, 1], [], []>} : vector<4x128xf32>, vector<128x512xf32>, vector<4x512xf32> -> vector<4x512xf32>
    %231 = arith.addf %228, %230 : vector<4x512xf32>
    %232 = arith.addf %231, %20 : vector<4x512xf32>
    %233 = vector.extract_strided_slice %232 {offsets = [0, 0], sizes = [4, 128], strides = [1, 1]} : vector<4x512xf32> to vector<4x128xf32>
    %234 = arith.negf %233 : vector<4x128xf32>
    %235 = math.exp %234 : vector<4x128xf32>
    %cst_67 = arith.constant 1.000000e+00 : f32
    %236 = vector.broadcast %cst_67 : f32 to vector<4x128xf32>
    %237 = arith.addf %236, %235 : vector<4x128xf32>
    %238 = arith.divf %236, %237 : vector<4x128xf32>
    %239 = vector.extract_strided_slice %232 {offsets = [0, 128], sizes = [4, 128], strides = [1, 1]} : vector<4x512xf32> to vector<4x128xf32>
    %240 = arith.negf %239 : vector<4x128xf32>
    %241 = math.exp %240 : vector<4x128xf32>
    %cst_68 = arith.constant 1.000000e+00 : f32
    %242 = vector.broadcast %cst_68 : f32 to vector<4x128xf32>
    %243 = arith.addf %242, %241 : vector<4x128xf32>
    %244 = arith.divf %242, %243 : vector<4x128xf32>
    %245 = vector.extract_strided_slice %232 {offsets = [0, 256], sizes = [4, 128], strides = [1, 1]} : vector<4x512xf32> to vector<4x128xf32>
    %246 = math.tanh %245 : vector<4x128xf32>
    %247 = vector.extract_strided_slice %232 {offsets = [0, 384], sizes = [4, 128], strides = [1, 1]} : vector<4x512xf32> to vector<4x128xf32>
    %248 = arith.negf %247 : vector<4x128xf32>
    %249 = math.exp %248 : vector<4x128xf32>
    %cst_69 = arith.constant 1.000000e+00 : f32
    %250 = vector.broadcast %cst_69 : f32 to vector<4x128xf32>
    %251 = arith.addf %250, %249 : vector<4x128xf32>
    %252 = arith.divf %250, %251 : vector<4x128xf32>
    %253 = arith.mulf %244, %138 : vector<4x128xf32>
    %254 = arith.mulf %238, %246 : vector<4x128xf32>
    %255 = arith.addf %253, %254 : vector<4x128xf32>
    %256 = math.tanh %255 : vector<4x128xf32>
    %257 = arith.mulf %252, %256 : vector<4x128xf32>
    %258 = vector.shape_cast %257 : vector<4x128xf32> to vector<4x1x128xf32>
    %259 = arith.addf %163, %226 : vector<4x16x128xf32>
    %260 = arith.mulf %259, %259 : vector<4x16x128xf32>
    %cst_70 = arith.constant dense<0.000000e+00> : vector<4x16xf32>
    %261 = vector.multi_reduction <add>, %260, %cst_70 [2] : vector<4x16x128xf32> to vector<4x16xf32>
    %262 = vector.shape_cast %261 : vector<4x16xf32> to vector<4x16x1xf32>
    %263 = math.sqrt %262 : vector<4x16x1xf32>
    %cst_71 = arith.constant 9.99999993E-9 : f32
    %264 = vector.broadcast %cst_71 : f32 to vector<4x16x1xf32>
    %265 = arith.addf %263, %264 : vector<4x16x1xf32>
    %266 = tpu.reciprocal %265 : vector<4x16x1xf32> -> vector<4x16x1xf32>
    %267 = vector.broadcast %266 : vector<4x16x1xf32> to vector<4x16x128xf32>
    %268 = arith.mulf %259, %267 : vector<4x16x128xf32>
    "tpu.trace_start"() <{level = 10 : i32, message = "btd,bsd->bts"}> : () -> ()
    %cst_72 = arith.constant dense<0.000000e+00> : vector<4x16x16xf32>
    %269 = tpu.matmul %268, %10, %cst_72 {dimension_numbers = #tpu.dot_dimension_numbers<[2], [2], [1], [1], [0, 0, 0, 1, 1, 1], [0], [0]>} : vector<4x16x128xf32>, vector<4x16x128xf32>, vector<4x16x16xf32> -> vector<4x16x16xf32>
    "tpu.trace_stop"() : () -> ()
    %cst_73 = arith.constant dense<0xFF800000> : vector<4x16xf32>
    %270 = vector.multi_reduction <maximumf>, %269, %cst_73 [2] : vector<4x16x16xf32> to vector<4x16xf32>
    %271 = vector.shape_cast %270 : vector<4x16xf32> to vector<4x16x1xf32>
    %272 = vector.broadcast %271 : vector<4x16x1xf32> to vector<4x16x16xf32>
    %273 = arith.subf %269, %272 : vector<4x16x16xf32>
    %274 = math.exp %273 : vector<4x16x16xf32>
    %cst_74 = arith.constant dense<0.000000e+00> : vector<4x16xf32>
    %275 = vector.multi_reduction <add>, %274, %cst_74 [2] : vector<4x16x16xf32> to vector<4x16xf32>
    %276 = vector.shape_cast %275 : vector<4x16xf32> to vector<4x16x1xf32>
    %277 = tpu.reciprocal %276 : vector<4x16x1xf32> -> vector<4x16x1xf32>
    %278 = vector.broadcast %277 : vector<4x16x1xf32> to vector<4x16x16xf32>
    %279 = arith.mulf %274, %278 : vector<4x16x16xf32>
    "tpu.trace_start"() <{level = 10 : i32, message = "bts,bsd->btd"}> : () -> ()
    %cst_75 = arith.constant dense<0.000000e+00> : vector<4x16x128xf32>
    %280 = tpu.matmul %279, %1, %cst_75 {dimension_numbers = #tpu.dot_dimension_numbers<[2], [1], [1], [2], [0, 0, 0, 1, 1, 2], [0], [0]>} : vector<4x16x16xf32>, vector<4x16x128xf32>, vector<4x16x128xf32> -> vector<4x16x128xf32>
    "tpu.trace_stop"() : () -> ()
    %281 = arith.addf %0, %258 : vector<4x1x128xf32>
    %282 = arith.mulf %281, %281 : vector<4x1x128xf32>
    %cst_76 = arith.constant dense<0.000000e+00> : vector<4x1xf32>
    %283 = vector.multi_reduction <add>, %282, %cst_76 [2] : vector<4x1x128xf32> to vector<4x1xf32>
    %284 = vector.shape_cast %283 : vector<4x1xf32> to vector<4x1x1xf32>
    %285 = math.sqrt %284 : vector<4x1x1xf32>
    %cst_77 = arith.constant 9.99999993E-9 : f32
    %286 = vector.broadcast %cst_77 : f32 to vector<4x1x1xf32>
    %287 = arith.addf %285, %286 : vector<4x1x1xf32>
    %288 = tpu.reciprocal %287 : vector<4x1x1xf32> -> vector<4x1x1xf32>
    %289 = vector.broadcast %288 : vector<4x1x1xf32> to vector<4x1x128xf32>
    %290 = arith.mulf %281, %289 : vector<4x1x128xf32>
    %291 = arith.mulf %163, %163 : vector<4x16x128xf32>
    %cst_78 = arith.constant dense<0.000000e+00> : vector<4x16xf32>
    %292 = vector.multi_reduction <add>, %291, %cst_78 [2] : vector<4x16x128xf32> to vector<4x16xf32>
    %293 = vector.shape_cast %292 : vector<4x16xf32> to vector<4x16x1xf32>
    %294 = math.sqrt %293 : vector<4x16x1xf32>
    %cst_79 = arith.constant 9.99999993E-9 : f32
    %295 = vector.broadcast %cst_79 : f32 to vector<4x16x1xf32>
    %296 = arith.addf %294, %295 : vector<4x16x1xf32>
    %297 = tpu.reciprocal %296 : vector<4x16x1xf32> -> vector<4x16x1xf32>
    %298 = vector.broadcast %297 : vector<4x16x1xf32> to vector<4x16x128xf32>
    %299 = arith.mulf %163, %298 : vector<4x16x128xf32>
    "tpu.trace_start"() <{level = 10 : i32, message = "bqd,bsd->bqs"}> : () -> ()
    %cst_80 = arith.constant dense<0.000000e+00> : vector<4x1x16xf32>
    %300 = tpu.matmul %290, %299, %cst_80 {dimension_numbers = #tpu.dot_dimension_numbers<[2], [2], [1], [1], [0, 0, 0, 1, 1, 1], [0], [0]>} : vector<4x1x128xf32>, vector<4x16x128xf32>, vector<4x1x16xf32> -> vector<4x1x16xf32>
    "tpu.trace_stop"() : () -> ()
    %cst_81 = arith.constant dense<0xFF800000> : vector<4x1xf32>
    %301 = vector.multi_reduction <maximumf>, %300, %cst_81 [2] : vector<4x1x16xf32> to vector<4x1xf32>
    %302 = vector.shape_cast %301 : vector<4x1xf32> to vector<4x1x1xf32>
    %303 = vector.broadcast %302 : vector<4x1x1xf32> to vector<4x1x16xf32>
    %304 = arith.subf %300, %303 : vector<4x1x16xf32>
    %305 = math.exp %304 : vector<4x1x16xf32>
    %cst_82 = arith.constant dense<0.000000e+00> : vector<4x1xf32>
    %306 = vector.multi_reduction <add>, %305, %cst_82 [2] : vector<4x1x16xf32> to vector<4x1xf32>
    %307 = vector.shape_cast %306 : vector<4x1xf32> to vector<4x1x1xf32>
    %308 = tpu.reciprocal %307 : vector<4x1x1xf32> -> vector<4x1x1xf32>
    %309 = vector.broadcast %308 : vector<4x1x1xf32> to vector<4x1x16xf32>
    %310 = arith.mulf %305, %309 : vector<4x1x16xf32>
    "tpu.trace_start"() <{level = 10 : i32, message = "bqs,bsd->bqd"}> : () -> ()
    %cst_83 = arith.constant dense<0.000000e+00> : vector<4x1x128xf32>
    %311 = tpu.matmul %310, %163, %cst_83 {dimension_numbers = #tpu.dot_dimension_numbers<[2], [1], [1], [2], [0, 0, 0, 1, 1, 2], [0], [0]>} : vector<4x1x16xf32>, vector<4x16x128xf32>, vector<4x1x128xf32> -> vector<4x1x128xf32>
    "tpu.trace_stop"() : () -> ()
    %312 = vector.shape_cast %226 : vector<4x16x128xf32> to vector<64x128xf32>
    %cst_84 = arith.constant dense<0.000000e+00> : vector<64x512xf32>
    %313 = tpu.matmul %312, %11, %cst_84 {dimension_numbers = #tpu.dot_dimension_numbers<[1], [0], [0], [1], [0, 0, 1, 1], [], []>} : vector<64x128xf32>, vector<128x512xf32>, vector<64x512xf32> -> vector<64x512xf32>
    %314 = vector.shape_cast %280 : vector<4x16x128xf32> to vector<64x128xf32>
    %cst_85 = arith.constant dense<0.000000e+00> : vector<64x512xf32>
    %315 = tpu.matmul %314, %12, %cst_85 {dimension_numbers = #tpu.dot_dimension_numbers<[1], [0], [0], [1], [0, 0, 1, 1], [], []>} : vector<64x128xf32>, vector<128x512xf32>, vector<64x512xf32> -> vector<64x512xf32>
    %316 = arith.addf %313, %315 : vector<64x512xf32>
    %317 = arith.addf %316, %17 : vector<64x512xf32>
    %318 = vector.extract_strided_slice %317 {offsets = [0, 0], sizes = [64, 128], strides = [1, 1]} : vector<64x512xf32> to vector<64x128xf32>
    %319 = arith.negf %318 : vector<64x128xf32>
    %320 = math.exp %319 : vector<64x128xf32>
    %cst_86 = arith.constant 1.000000e+00 : f32
    %321 = vector.broadcast %cst_86 : f32 to vector<64x128xf32>
    %322 = arith.addf %321, %320 : vector<64x128xf32>
    %323 = arith.divf %321, %322 : vector<64x128xf32>
    %324 = vector.extract_strided_slice %317 {offsets = [0, 128], sizes = [64, 128], strides = [1, 1]} : vector<64x512xf32> to vector<64x128xf32>
    %325 = arith.negf %324 : vector<64x128xf32>
    %326 = math.exp %325 : vector<64x128xf32>
    %cst_87 = arith.constant 1.000000e+00 : f32
    %327 = vector.broadcast %cst_87 : f32 to vector<64x128xf32>
    %328 = arith.addf %327, %326 : vector<64x128xf32>
    %329 = arith.divf %327, %328 : vector<64x128xf32>
    %330 = vector.extract_strided_slice %317 {offsets = [0, 256], sizes = [64, 128], strides = [1, 1]} : vector<64x512xf32> to vector<64x128xf32>
    %331 = math.tanh %330 : vector<64x128xf32>
    %332 = vector.extract_strided_slice %317 {offsets = [0, 384], sizes = [64, 128], strides = [1, 1]} : vector<64x512xf32> to vector<64x128xf32>
    %333 = arith.negf %332 : vector<64x128xf32>
    %334 = math.exp %333 : vector<64x128xf32>
    %cst_88 = arith.constant 1.000000e+00 : f32
    %335 = vector.broadcast %cst_88 : f32 to vector<64x128xf32>
    %336 = arith.addf %335, %334 : vector<64x128xf32>
    %337 = arith.divf %335, %336 : vector<64x128xf32>
    %338 = arith.mulf %329, %223 : vector<64x128xf32>
    %339 = arith.mulf %323, %331 : vector<64x128xf32>
    %340 = arith.addf %338, %339 : vector<64x128xf32>
    %341 = math.tanh %340 : vector<64x128xf32>
    %342 = arith.mulf %337, %341 : vector<64x128xf32>
    %343 = vector.shape_cast %342 : vector<64x128xf32> to vector<4x16x128xf32>
    %344 = vector.shape_cast %258 : vector<4x1x128xf32> to vector<4x128xf32>
    %cst_89 = arith.constant dense<0.000000e+00> : vector<4x512xf32>
    %345 = tpu.matmul %344, %13, %cst_89 {dimension_numbers = #tpu.dot_dimension_numbers<[1], [0], [0], [1], [0, 0, 1, 1], [], []>} : vector<4x128xf32>, vector<128x512xf32>, vector<4x512xf32> -> vector<4x512xf32>
    %346 = vector.shape_cast %311 : vector<4x1x128xf32> to vector<4x128xf32>
    %cst_90 = arith.constant dense<0.000000e+00> : vector<4x512xf32>
    %347 = tpu.matmul %346, %14, %cst_90 {dimension_numbers = #tpu.dot_dimension_numbers<[1], [0], [0], [1], [0, 0, 1, 1], [], []>} : vector<4x128xf32>, vector<128x512xf32>, vector<4x512xf32> -> vector<4x512xf32>
    %348 = arith.addf %345, %347 : vector<4x512xf32>
    %349 = arith.addf %348, %20 : vector<4x512xf32>
    %350 = vector.extract_strided_slice %349 {offsets = [0, 0], sizes = [4, 128], strides = [1, 1]} : vector<4x512xf32> to vector<4x128xf32>
    %351 = arith.negf %350 : vector<4x128xf32>
    %352 = math.exp %351 : vector<4x128xf32>
    %cst_91 = arith.constant 1.000000e+00 : f32
    %353 = vector.broadcast %cst_91 : f32 to vector<4x128xf32>
    %354 = arith.addf %353, %352 : vector<4x128xf32>
    %355 = arith.divf %353, %354 : vector<4x128xf32>
    %356 = vector.extract_strided_slice %349 {offsets = [0, 128], sizes = [4, 128], strides = [1, 1]} : vector<4x512xf32> to vector<4x128xf32>
    %357 = arith.negf %356 : vector<4x128xf32>
    %358 = math.exp %357 : vector<4x128xf32>
    %cst_92 = arith.constant 1.000000e+00 : f32
    %359 = vector.broadcast %cst_92 : f32 to vector<4x128xf32>
    %360 = arith.addf %359, %358 : vector<4x128xf32>
    %361 = arith.divf %359, %360 : vector<4x128xf32>
    %362 = vector.extract_strided_slice %349 {offsets = [0, 256], sizes = [4, 128], strides = [1, 1]} : vector<4x512xf32> to vector<4x128xf32>
    %363 = math.tanh %362 : vector<4x128xf32>
    %364 = vector.extract_strided_slice %349 {offsets = [0, 384], sizes = [4, 128], strides = [1, 1]} : vector<4x512xf32> to vector<4x128xf32>
    %365 = arith.negf %364 : vector<4x128xf32>
    %366 = math.exp %365 : vector<4x128xf32>
    %cst_93 = arith.constant 1.000000e+00 : f32
    %367 = vector.broadcast %cst_93 : f32 to vector<4x128xf32>
    %368 = arith.addf %367, %366 : vector<4x128xf32>
    %369 = arith.divf %367, %368 : vector<4x128xf32>
    %370 = arith.mulf %361, %255 : vector<4x128xf32>
    %371 = arith.mulf %355, %363 : vector<4x128xf32>
    %372 = arith.addf %370, %371 : vector<4x128xf32>
    %373 = math.tanh %372 : vector<4x128xf32>
    %374 = arith.mulf %369, %373 : vector<4x128xf32>
    %375 = vector.shape_cast %374 : vector<4x128xf32> to vector<4x1x128xf32>
    %376 = arith.addf %0, %375 : vector<4x1x128xf32>
    %c0_94 = arith.constant 0 : index
    %c0_95 = arith.constant 0 : index
    %c0_96 = arith.constant 0 : index
    %377 = vector.load %arg9[%c0_94, %c0_95, %c0_96] : memref<4x1x128xf32, #tpu.memory_space<vmem>>, vector<4x1x128xf32>
    tpu.vector_store %arg9[%c0_94, %c0_95, %c0_96], %376 {strides = array<i32>} : memref<4x1x128xf32, #tpu.memory_space<vmem>>, vector<4x1x128xf32>,
    %378 = arith.addf %1, %343 : vector<4x16x128xf32>
    %c0_97 = arith.constant 0 : index
    %c0_98 = arith.constant 0 : index
    %c0_99 = arith.constant 0 : index
    %379 = vector.load %arg10[%c0_97, %c0_98, %c0_99] : memref<4x16x128xf32, #tpu.memory_space<vmem>>, vector<4x16x128xf32>
    tpu.vector_store %arg10[%c0_97, %c0_98, %c0_99], %378 {strides = array<i32>} : memref<4x16x128xf32, #tpu.memory_space<vmem>>, vector<4x16x128xf32>,
    return
  }
  func.func @transform_0(%arg0: i32) -> (i32, i32, i32) {
    %c0_i32 = arith.constant 0 : i32
    %c0_i32_0 = arith.constant 0 : i32
    %c0_i32_1 = arith.constant 0 : i32
    return %arg0, %c0_i32, %c0_i32_0 : i32, i32, i32
  }
  func.func @transform_1(%arg0: i32) -> (i32, i32, i32) {
    %c0_i32 = arith.constant 0 : i32
    %c0_i32_0 = arith.constant 0 : i32
    %c0_i32_1 = arith.constant 0 : i32
    return %arg0, %c0_i32, %c0_i32_0 : i32, i32, i32
  }
  func.func @transform_2(%arg0: i32) -> (i32, i32) {
    %c0_i32 = arith.constant 0 : i32
    %c0_i32_0 = arith.constant 0 : i32
    %c0_i32_1 = arith.constant 0 : i32
    return %c0_i32, %c0_i32_0 : i32, i32
  }
  func.func @transform_3(%arg0: i32) -> (i32, i32) {
    %c0_i32 = arith.constant 0 : i32
    %c0_i32_0 = arith.constant 0 : i32
    %c0_i32_1 = arith.constant 0 : i32
    return %c0_i32, %c0_i32_0 : i32, i32
  }
  func.func @transform_4(%arg0: i32) -> (i32, i32) {
    %c0_i32 = arith.constant 0 : i32
    %c0_i32_0 = arith.constant 0 : i32
    %c0_i32_1 = arith.constant 0 : i32
    return %c0_i32, %c0_i32_0 : i32, i32
  }
  func.func @transform_5(%arg0: i32) -> (i32, i32) {
    %c0_i32 = arith.constant 0 : i32
    %c0_i32_0 = arith.constant 0 : i32
    %c0_i32_1 = arith.constant 0 : i32
    return %c0_i32, %c0_i32_0 : i32, i32
  }
  func.func @transform_6(%arg0: i32) -> (i32, i32) {
    %c0_i32 = arith.constant 0 : i32
    %c0_i32_0 = arith.constant 0 : i32
    %c0_i32_1 = arith.constant 0 : i32
    return %c0_i32, %c0_i32_0 : i32, i32
  }
  func.func @transform_7(%arg0: i32) -> (i32, i32) {
    %c0_i32 = arith.constant 0 : i32
    %c0_i32_0 = arith.constant 0 : i32
    %c0_i32_1 = arith.constant 0 : i32
    return %c0_i32, %c0_i32_0 : i32, i32
  }
  func.func @transform_8(%arg0: i32) -> (i32, i32, i32) {
    %c0_i32 = arith.constant 0 : i32
    %c0_i32_0 = arith.constant 0 : i32
    %c0_i32_1 = arith.constant 0 : i32
    return %arg0, %c0_i32, %c0_i32_0 : i32, i32, i32
  }
  func.func @transform_9(%arg0: i32) -> (i32, i32, i32) {
    %c0_i32 = arith.constant 0 : i32
    %c0_i32_0 = arith.constant 0 : i32
    %c0_i32_1 = arith.constant 0 : i32
    return %arg0, %c0_i32, %c0_i32_0 : i32, i32, i32
  }
}

</mosaic_0001>

<bundles_post_ra>
// kernel: tpu_custom_call.1
= control target key start
LH: loop header
LB: loop body
LE: loop exit
PB: predicated region body
PF: predicated region fallthrough
CT: control target
= control target key end

     0   :  { %s14820_s0 = inlined_call_operand.hbm [shape: f32[8,1,128], index: 0, kind: input, shape index: {}]   ;;  %s14821_s1 = inlined_call_operand.hbm [shape: f32[8,16,128], index: 1, kind: input, shape index: {}]   ;;  %s14822_s2 = inlined_call_operand.hbm [shape: f32[128,512], index: 2, kind: input, shape index: {}]   ;;  %s14823_s3 = inlined_call_operand.hbm [shape: f32[128,512], index: 3, kind: input, shape index: {}]   ;;  %s14824_s4 = inlined_call_operand.hbm [shape: f32[1,512], index: 4, kind: input, shape index: {}]   ;;  %s14825_s5 = inlined_call_operand.hbm [shape: f32[128,512], index: 5, kind: input, shape index: {}]   ;;  %s14826_s6 = inlined_call_operand.hbm [shape: f32[128,512], index: 6, kind: input, shape index: {}]   ;;  %s14827_s7 = inlined_call_operand.hbm [shape: f32[1,512], index: 7, kind: input, shape index: {}]   ;;  %s14828_s8 = inlined_call_operand.hbm [shape: f32[8,1,128], index: 8, kind: output, shape index: {0}]   ;;  %s14829_s9 = inlined_call_operand.hbm [shape: f32[8,16,128], index: 9, kind: output, shape index: {1}]  }
   0x1   :  { %15158 = sst [smem:[#allocation175_spill]] %s14820_s0 }
   0x2   :  { %15159 = sst [smem:[#allocation176_spill]] %s14822_s2 }
   0x3   :  { %15160 = sst [smem:[#allocation177_spill]] %s14823_s3 }
   0x4   :  { %15161 = sst [smem:[#allocation178_spill]] %s14824_s4 }
   0x5   :  { %15162 = sst [smem:[#allocation179_spill]] %s14825_s5 }
   0x6   :  { %15163 = sst [smem:[#allocation180_spill]] %s14826_s6 }
   0x7   :  { %15164 = sst [smem:[#allocation181_spill]] %s14828_s8 }
   0x8   :  { %15 = vsyncpa [#allocation3], 0 }
   0x9   :  { %17 = vsyncpa [#allocation3 + $0x1], 0 }
   0xa   :  { %18 = vsyncpa [#allocation6], 0 }
   0xb   :  { %20 = vsyncpa [#allocation6 + $0x1], 0 }
   0xc   :  { %21 = vsyncpa [#allocation9], 0 }
   0xd   :  { %22 = vsyncpa [#allocation12], 0 }
   0xe   :  { %23 = vsyncpa [#allocation15], 0 }
   0xf   :  { %24 = vsyncpa [#allocation4], 0 }
  0x10   :  { %26 = vsyncpa [#allocation4 + $0x1], 0 }
  0x11   :  { %27 = vsyncpa [#allocation18], 0 }
  0x12   :  { %29 = vsyncpa [#allocation18 + $0x1], 0  ;;  %s12045_s30 = smov 0   ;;  %s12047_s10 = smov 0  }
  0x13   :  { %s12049_s11 = smov 0   ;;  %s12051_s12 = smov 0  }
  0x14 LB: > { %s11971_s13 = smov [#allocation7]   ;;  %s12066_s15 = sadd.s32 4294967295, %s11969_s12   ;;  %s11969_s12 = sphi %s12051_s12, %s15670_s12   ;;  %s11965_s11 = sphi %s12049_s11, %s15669_s11   ;;  %s11961_s10 = sphi %s12047_s10, %s15668_s10   ;;  %s11957_s30 = sphi %s12045_s30, %s15667_s30  }
  0x15   : > { %s282_s14 = sshll.u32 %s11971_s13, 4  ;;  %p8950_p0 = scmp.ge.s32.totalorder %s11969_s12, 1  ;;  %s12071_s14 = int_to_ptr.vmem [resolvable:$true] %s282_s14 }
  0x16   : > { %p14831_p1 = scmp.eq.s32.totalorder %s12066_s15, 0  ;;  %p270_p2 = scmp.lt.s32.totalorder %s11969_s12, 3 }
  0x17   : > { %s11972_s17 = smov [#allocation8]   ;;  %s11973_s20 = smov [#allocation11]  }
  0x18   : > { %p12073_p3 = pnand %p8950_p0, %p270_p2  ;;  %s295_s18 = sshll.u32 %s11972_s17, 4  ;;  %s12086_s18 = int_to_ptr.vmem [resolvable:$true] %s295_s18 }
  0x19   : > { %s319_s21 = sshll.u32 %s11973_s20, 4  ;;  %s15167_s2 = sld [smem:[#allocation176_spill]]  ;;  %s12088_s21 = int_to_ptr.vmem [resolvable:$true] %s319_s21 }
  0x1a   : > { %s15165_s16 = scalar_select %p12073_p3, 1, 0 }
  0x1b   : > { %p10688_p5 = pneg %p12073_p3 }
  0x1d   : > { %p12082_p6 = pnand %p10688_p5, %p14831_p1 }
  0x1f   : > { %s11623_s24 = scalar_lea.hbm %s15167_s2, 8192  ;;  %p12098_p8 = pneg %p12082_p6 }
  0x20   : > { %p11624_p7 = scmp.ne.s32.totalorder %s15167_s2, %s11623_s24  ;;  %p11630_p11 = scmp.lt.u32.totalorder %s11623_s24, %s15167_s2 }
  0x22   : > { %p11626_p9 = pnand %p12098_p8, %p11624_p7 }
  0x24   : > { %p11627_p10 = pneg %p11626_p9 }
  0x26   : > { %p11632_p12 = pnand %p11630_p11, %p11627_p10 }
  0x28   : > { %11635 = shalt.err (!%p11632_p12)
}
  0x29   : > { %s11636_s13 = scalar_lea.vmem %s12071_s14, 8192  ;;  %p11644_p5 = scmp.lt.s32.totalorder %s12071_s14, %s12071_s14 }
  0x2a   : > { %p11637_p13 = scmp.ne.s32.totalorder %s12071_s14, %s11636_s13  ;;  %p11645_p4 = scmp.lt.s32.totalorder %s11636_s13, %s11636_s13 }
  0x2c   : > { %p11639_p0 = pnand %p11637_p13, %p12098_p8  ;;  %p11646_p7 = por %p11645_p4, %p11644_p5 }
  0x2e   : > { %p11640_p2 = pneg %p11639_p0 }
  0x30   : > { %p11647_p9 = pnand %p11646_p7, %p11640_p2 }
  0x32   : > { %11650 = shalt.err (!%p11647_p9)
}
  0x33   : > { %s11974_s17 = smov 512   ;;  %s11975_s20 = smov 32  }
  0x34   : > { %10691 = dma.hbm_to_vmem [thread:$0]  (!%p12082_p6), %s15167_s2, 8192, %s12071_s14, [#allocation6], %s11974_s17, %s11974_s17, %s11975_s20  }
  0x35   : > { %s15169_s3 = sld [smem:[#allocation177_spill]] }
  0x3b   : > { %s11651_s26 = scalar_lea.hbm %s15169_s3, 8192 }
  0x3c   : > { %p11652_p4 = scmp.ne.s32.totalorder %s15169_s3, %s11651_s26  ;;  %p11658_p12 = scmp.lt.u32.totalorder %s11651_s26, %s15169_s3 }
  0x3e   : > { %p11654_p10 = pnand %p11652_p4, %p12098_p8 }
  0x40   : > { %p11655_p11 = pneg %p11654_p10 }
  0x42   : > { %p11660_p13 = pnand %p11658_p12, %p11655_p11 }
  0x44   : > { %11663 = shalt.err (!%p11660_p13)
}
  0x45   : > { %s11664_s14 = scalar_lea.vmem %s12086_s18, 8192  ;;  %p11672_p7 = scmp.lt.s32.totalorder %s12086_s18, %s12086_s18 }
  0x46   : > { %p11665_p0 = scmp.ne.s32.totalorder %s12086_s18, %s11664_s14  ;;  %p11673_p9 = scmp.lt.s32.totalorder %s11664_s14, %s11664_s14 }
  0x48   : > { %p11667_p2 = pnand %p11665_p0, %p12098_p8  ;;  %p11674_p4 = por %p11673_p9, %p11672_p7 }
  0x4a   : > { %p11668_p5 = pneg %p11667_p2 }
  0x4c   : > { %p11675_p10 = pnand %p11674_p4, %p11668_p5 }
  0x4e   : > { %11678 = shalt.err (!%p11675_p10)
}
  0x4f   : > { %10694 = dma.hbm_to_vmem [thread:$0]  (!%p12082_p6), %s15169_s3, 8192, %s12086_s18, [#allocation9], %s11974_s17, %s11974_s17, %s11975_s20  }
  0x50   : > { %s15170_s5 = sld [smem:[#allocation179_spill]] }
  0x56   : > { %s11679_s25 = scalar_lea.hbm %s15170_s5, 8192 }
  0x57   : > { %p11680_p11 = scmp.ne.s32.totalorder %s15170_s5, %s11679_s25  ;;  %p11686_p0 = scmp.lt.u32.totalorder %s11679_s25, %s15170_s5 }
  0x59   : > { %p11682_p12 = pnand %p11680_p11, %p12098_p8 }
  0x5b   : > { %p11683_p13 = pneg %p11682_p12 }
  0x5d   : > { %p11688_p2 = pnand %p11686_p0, %p11683_p13 }
  0x5f   : > { %11691 = shalt.err (!%p11688_p2)
}
  0x60   : > { %s11692_s18 = scalar_lea.vmem %s12088_s21, 8192  ;;  %p11700_p4 = scmp.lt.s32.totalorder %s12088_s21, %s12088_s21 }
  0x61   : > { %p11693_p5 = scmp.ne.s32.totalorder %s12088_s21, %s11692_s18  ;;  %p11701_p10 = scmp.lt.s32.totalorder %s11692_s18, %s11692_s18 }
  0x63   : > { %p11695_p7 = pnand %p11693_p5, %p12098_p8  ;;  %p11702_p11 = por %p11701_p10, %p11700_p4 }
  0x65   : > { %p11696_p9 = pneg %p11695_p7 }
  0x67   : > { %p11703_p12 = pnand %p11702_p11, %p11696_p9 }
  0x69   : > { %11706 = shalt.err (!%p11703_p12)
}
  0x6a   : > { %10700 = dma.hbm_to_vmem [thread:$0]  (!%p12082_p6), %s15170_s5, 8192, %s12088_s21, [#allocation12], %s11974_s17, %s11974_s17, %s11975_s20  }
  0x6b   : > { %s11976_s22 = smov [#allocation10]   ;;  %s11977_s24 = smov [#allocation13]  }
  0x6c   : > { %s309_s23 = sshll.u32 %s11976_s22, 4  ;;  %s332_s25 = sshll.u32 %s11977_s24, 4  ;;  %s310_s23 = int_to_ptr.vmem [resolvable:$true] %s309_s23  ;;  %s333_s25 = int_to_ptr.vmem [resolvable:$true] %s332_s25 }
  0x6d   : > { %s15171_s4 = sld [smem:[#allocation178_spill]] }
  0x73   : > { %s11707_s29 = scalar_lea.hbm %s15171_s4, 64 }
  0x74   : > { %p11708_p13 = scmp.ne.s32.totalorder %s15171_s4, %s11707_s29  ;;  %p11714_p5 = scmp.lt.u32.totalorder %s11707_s29, %s15171_s4 }
  0x76   : > { %p11710_p0 = pnand %p11708_p13, %p12098_p8 }
  0x78   : > { %p11711_p2 = pneg %p11710_p0 }
  0x7a   : > { %p11716_p7 = pnand %p11714_p5, %p11711_p2 }
  0x7c   : > { %11719 = shalt.err (!%p11716_p7)
}
  0x7d   : > { %s11720_s21 = scalar_lea.vmem %s310_s23, 64  ;;  %p11728_p11 = scmp.lt.s32.totalorder %s310_s23, %s310_s23 }
  0x7e   : > { %p11721_p9 = scmp.ne.s32.totalorder %s310_s23, %s11720_s21  ;;  %p11729_p12 = scmp.lt.s32.totalorder %s11720_s21, %s11720_s21 }
  0x80   : > { %p11723_p4 = pnand %p11721_p9, %p12098_p8  ;;  %p11730_p1 = por %p11729_p12, %p11728_p11 }
  0x82   : > { %p11724_p10 = pneg %p11723_p4 }
  0x84   : > { %p11731_p3 = pnand %p11730_p1, %p11724_p10 }
  0x86   : > { %11734 = shalt.err (!%p11731_p3)
}
  0x87   : > { %10697 = dma.hbm_to_vmem [thread:$0]  (!%p12082_p6), %s15171_s4, 64, %s310_s23, [#allocation9]  }
  0x88   : > { %s15172_s6 = sld [smem:[#allocation180_spill]] }
  0x8e   : > { %s11735_s26 = scalar_lea.hbm %s15172_s6, 8192 }
  0x8f   : > { %p11736_p13 = scmp.ne.s32.totalorder %s15172_s6, %s11735_s26  ;;  %p11742_p3 = scmp.lt.u32.totalorder %s11735_s26, %s15172_s6 }
  0x91   : > { %p11738_p0 = pnand %p11736_p13, %p12098_p8 }
  0x93   : > { %p11739_p1 = pneg %p11738_p0 }
  0x95   : > { %p11744_p2 = pnand %p11742_p3, %p11739_p1 }
  0x97   : > { %11747 = shalt.err (!%p11744_p2)
}
  0x98   : > { %s11748_s14 = scalar_lea.vmem %s333_s25, 8192  ;;  %p11756_p4 = scmp.lt.s32.totalorder %s333_s25, %s333_s25 }
  0x99   : > { %p11749_p5 = scmp.ne.s32.totalorder %s333_s25, %s11748_s14  ;;  %p11757_p10 = scmp.lt.s32.totalorder %s11748_s14, %s11748_s14 }
  0x9b   : > { %p11751_p7 = pnand %p11749_p5, %p12098_p8  ;;  %p11758_p11 = por %p11757_p10, %p11756_p4 }
  0x9d   : > { %p11752_p9 = pneg %p11751_p7 }
  0x9f   : > { %p11759_p12 = pnand %p11758_p11, %p11752_p9 }
  0xa1   : > { %11762 = shalt.err (!%p11759_p12)
}
  0xa2   : > { %10703 = dma.hbm_to_vmem [thread:$0]  (!%p12082_p6), %s15172_s6, 8192, %s333_s25, [#allocation12], %s11974_s17, %s11974_s17, %s11975_s20  }
  0xa3   : > { %s11978_s8 = smov [#allocation14]   ;;  %s11763_s26 = scalar_lea.hbm %s14827_s7, 64 }
  0xa4   : > { %s346_s22 = sshll.u32 %s11978_s8, 4  ;;  %p11764_p13 = scmp.ne.s32.totalorder %s14827_s7, %s11763_s26  ;;  %s347_s22 = int_to_ptr.vmem [resolvable:$true] %s346_s22 }
  0xa5   : > { %p11770_p3 = scmp.lt.u32.totalorder %s11763_s26, %s14827_s7 }
  0xa6   : > { %p11766_p0 = pnand %p11764_p13, %p12098_p8 }
  0xa8   : > { %p11767_p1 = pneg %p11766_p0 }
  0xaa   : > { %p11772_p2 = pnand %p11770_p3, %p11767_p1 }
  0xac   : > { %11775 = shalt.err (!%p11772_p2)
}
  0xad   : > { %s11776_s17 = scalar_lea.vmem %s347_s22, 64  ;;  %p11784_p4 = scmp.lt.s32.totalorder %s347_s22, %s347_s22 }
  0xae   : > { %p11777_p5 = scmp.ne.s32.totalorder %s347_s22, %s11776_s17  ;;  %p11785_p10 = scmp.lt.s32.totalorder %s11776_s17, %s11776_s17 }
  0xb0   : > { %p11779_p7 = pnand %p11777_p5, %p12098_p8  ;;  %p11786_p11 = por %p11785_p10, %p11784_p4 }
  0xb2   : > { %p11780_p9 = pneg %p11779_p7 }
  0xb4   : > { %p11787_p12 = pnand %p11786_p11, %p11780_p9 }
  0xb6   : > { %11790 = shalt.err (!%p11787_p12)
}
  0xb7   : > { %10706 = dma.hbm_to_vmem [thread:$0]  (!%p12082_p6), %s14827_s7, 64, %s347_s22, [#allocation15]  }
  0xb8   : > { %s8949_s27 = sadd.s32 4294967294, %s11969_s12   ;;  %s12233_s19 = sadd.s32 1, %s11969_s12  }
  0xb9   : > { %s39_s14 = ssub.s32 %s11969_s12, %s12233_s19  ;;  %s42_s23 = sadd.s32 1, %s11965_s11 }
  0xba   : > { %p40_p8 = scmp.eq.s32.totalorder %s39_s14, 0  ;;  %p49_p13 = scmp.ne.s32.totalorder %s11965_s11, %s11961_s10 }
  0xbb   : > { %p50_p0 = scmp.eq.s32.totalorder %s11969_s12, 0  ;;  %p55_p1 = scmp.ne.s32.totalorder %s11961_s10, %s11957_s30 }
  0xbc   : > { %s12244_s21 = scalar_select %p40_p8, %s11965_s11, %s42_s23  }
  0xbd   : > { %p12246_p3 = por %p50_p0, %p49_p13  ;;  %p15174_p2 = scmp.eq.s32.totalorder %s12066_s15, 0 }
  0xbe   : > { %p231_p5 = scmp.eq.s32.totalorder %s12066_s15, 1  ;;  %p237_p7 = scmp.eq.s32.totalorder %s8949_s27, 1 }
  0xbf   : > { %p12252_p6 = por %p15174_p2, %p55_p1  ;;  %p10727_p9 = scmp.lt.s32.totalorder %s11969_s12, 2 }
  0xc0   : > { %s12259_s2 = sand.u32 1, %s11965_s11   ;;  %p12261_p4 = por %p231_p5, %p49_p13 }
  0xc1   : > { %p12265_p10 = por %p237_p7, %p55_p1  ;;  %s8958_s28 = sshll.u32 %s12259_s2, 2 }
  0xc2   : > { %s15176_s24 = scalar_select %p12261_p4, 1, 0 }
  0xc3   : > { %s15177_s26 = scalar_select %p12265_p10, 1, 0 }
  0xc4   : > { %s9102_s29 = sshll.u32 %s11969_s12, 6  ;;  %s15178_s0 = sld [smem:[#allocation175_spill]] }
  0xc5   : > { %s361_s20 = scalar_lea.vmem [#allocation2], %s8958_s28  ;;  %p12280_p11 = pnand %p10727_p9, %p12246_p3 }
  0xc6   : > { %s368_s25 = sshll.u32 %s361_s20, 4  ;;  %s358_s23 = scalar_lea.sflag [#allocation3], %s12259_s2  ;;  %s12276_s25 = int_to_ptr.vmem [resolvable:$true] %s368_s25 }
  0xc7   : > { %p11793_p8 = pneg %p12280_p11 }
  0xca   : > { %s12274_s17 = scalar_lea.hbm %s15178_s0, %s9102_s29  ;;  %s11796_s8 = scalar_lea.hbm %s15178_s0, 128 }
  0xcb   : > { %s11791_s13 = scalar_lea.hbm %s12274_s17, 64  ;;  %p11797_p1 = scmp.lt.u32.totalorder %s12274_s17, %s15178_s0 }
  0xcc   : > { %p11792_p12 = scmp.ne.s32.totalorder %s12274_s17, %s11791_s13  ;;  %p11798_p3 = scmp.lt.u32.totalorder %s11796_s8, %s11791_s13 }
  0xcd   : > { %p11800_p5 = scmp.lt.u32.totalorder %s11791_s13, %s12274_s17 }
  0xce   : > { %p11794_p13 = pnand %p11793_p8, %p11792_p12  ;;  %p11799_p2 = por %p11798_p3, %p11797_p1 }
  0xd0   : > { %p11795_p0 = pneg %p11794_p13  ;;  %p11801_p7 = por %p11800_p5, %p11799_p2 }
  0xd2   : > { %p11802_p9 = pnand %p11801_p7, %p11795_p0 }
  0xd4   : > { %11805 = shalt.err (!%p11802_p9)
}
  0xd5   : > { %s11806_s14 = scalar_lea.vmem %s12276_s25, 64  ;;  %s11979_s28 = smov [#allocation2]  }
  0xd6   : > { %p11807_p12 = scmp.ne.s32.totalorder %s12276_s25, %s11806_s14  ;;  %s11811_s29 = sshll.u32 %s11979_s28, 4  ;;  %s11812_s29 = int_to_ptr.vmem [resolvable:$false] %s11811_s29 }
  0xd7   : > { %s11813_s18 = scalar_lea.vmem %s11812_s29, 128  ;;  %p11814_p4 = scmp.lt.s32.totalorder %s12276_s25, %s11812_s29 }
  0xd8   : > { %p11809_p13 = pnand %p11807_p12, %p11793_p8  ;;  %p11815_p1 = scmp.lt.s32.totalorder %s11813_s18, %s11806_s14 }
  0xda   : > { %p11810_p10 = pneg %p11809_p13  ;;  %p11816_p3 = por %p11815_p1, %p11814_p4 }
  0xdc   : > { %p11817_p2 = pnand %p11816_p3, %p11810_p10 }
  0xde   : > { %11820 = shalt.err (!%p11817_p2)
}
  0xdf   : > { %s11980_s13 = smov 16   ;;  %s11981_s8 = smov 1  }
  0xe0   : > { %10710 = dma.hbm_to_vmem [thread:$0]  (!%p12280_p11), %s12274_s17, 64, %s12276_s25, %s358_s23, %s11980_s13, %s11980_s13, %s11981_s8  }
  0xe1   : > { %s8961_s20 = sshll.u32 %s12259_s2, 6  ;;  %s9104_s28 = sshll.u32 %s11969_s12, 10 }
  0xe2   : > { %s12318_s18 = scalar_lea.hbm %s14821_s1, %s9104_s28  ;;  %s382_s0 = scalar_lea.vmem [#allocation5], %s8961_s20 }
  0xe3   : > { %s390_s3 = sshll.u32 %s382_s0, 4  ;;  %s15180_s4 = sand.u32 1, %s11969_s12   ;;  %s12320_s3 = int_to_ptr.vmem [resolvable:$true] %s390_s3 }
  0xe4   : > { %s12324_s5 = scalar_lea.sflag [#allocation6], %s15180_s4  ;;  %s11821_s6 = scalar_lea.hbm %s12318_s18, 1024 }
  0xe5   : > { %p11822_p4 = scmp.ne.s32.totalorder %s12318_s18, %s11821_s6  ;;  %s11826_s25 = scalar_lea.hbm %s14821_s1, 2048 }
  0xe6   : > { %p11827_p5 = scmp.lt.u32.totalorder %s12318_s18, %s14821_s1  ;;  %p11828_p7 = scmp.lt.u32.totalorder %s11826_s25, %s11821_s6 }
  0xe7   : > { %p11824_p10 = pnand %p11822_p4, %p11793_p8  ;;  %p11830_p12 = scmp.lt.u32.totalorder %s11821_s6, %s12318_s18 }
  0xe8   : > { %p11829_p9 = por %p11828_p7, %p11827_p5 }
  0xe9   : > { %p11825_p0 = pneg %p11824_p10 }
  0xea   : > { %p11831_p13 = por %p11830_p12, %p11829_p9 }
  0xec   : > { %p11832_p1 = pnand %p11831_p13, %p11825_p0 }
  0xee   : > { %11835 = shalt.err (!%p11832_p1)
}
  0xef   : > { %s11836_s0 = scalar_lea.vmem %s12320_s3, 1024  ;;  %s11982_s4 = smov [#allocation5]  }
  0xf0   : > { %p11837_p3 = scmp.ne.s32.totalorder %s12320_s3, %s11836_s0  ;;  %s11841_s8 = sshll.u32 %s11982_s4, 4  ;;  %s11842_s8 = int_to_ptr.vmem [resolvable:$false] %s11841_s8 }
  0xf1   : > { %s11843_s20 = scalar_lea.vmem %s11842_s8, 2048  ;;  %p11844_p10 = scmp.lt.s32.totalorder %s12320_s3, %s11842_s8 }
  0xf2   : > { %p11839_p2 = pnand %p11837_p3, %p11793_p8  ;;  %p11845_p5 = scmp.lt.s32.totalorder %s11843_s20, %s11836_s0 }
  0xf4   : > { %p11840_p4 = pneg %p11839_p2  ;;  %p11846_p7 = por %p11845_p5, %p11844_p10 }
  0xf6   : > { %p11847_p9 = pnand %p11846_p7, %p11840_p4 }
  0xf8   : > { %11850 = shalt.err (!%p11847_p9)
}
  0xf9   : > { %s11983_s6 = smov 128   ;;  %s11984_s28 = smov 8  }
  0xfa   : > { %10713 = dma.hbm_to_vmem [thread:$0]  (!%p12280_p11), %s12318_s18, 1024, %s12320_s3, %s12324_s5, %s11983_s6, %s11983_s6, %s11984_s28  }
  0xfb   : > { %p15181_p8 = scmp.ne.s32.totalorder %s15165_s16, 0 }
  0xfd   : > { %402 = sbr.rel (%p15181_p8) target bundleno = 5310 (0x14be), region = 52 }
 0x104   : > { %s12353_s29 = sand.u32 1, %s11961_s10  }
 0x105   : > { %s8966_s14 = sshll.u32 %s12353_s29, 2  ;;  %s405_s2 = scalar_lea.sflag [#allocation3], %s12353_s29 }
 0x106   : > { %s12359_s17 = scalar_lea.vmem [#allocation2], %s8966_s14 }
 0x107   : > { %11924 = dma.done.wait (%p12252_p6), %s405_s2, 64  }
 0x108   : > { %11926 = vsyncadd (%p12252_p6), %s405_s2, 4294967232  ;;  %s413_s3 = sand.u32 1, %s12066_s15   ;;  %s8967_s5 = sshll.u32 %s12353_s29, 6 }
 0x109   : > { %s414_s16 = scalar_lea.sflag [#allocation6], %s413_s3  ;;  %s12369_s27 = scalar_lea.vmem [#allocation5], %s8967_s5 }
 0x10a   : > { %11928 = dma.done.wait (%p12252_p6), %s414_s16, 1024  }
 0x10b   : > { %11930 = vsyncadd (%p12252_p6), %s414_s16, 4294966272  ;;  %p15182_p11 = scmp.eq.s32.totalorder %s12066_s15, 0 }
 0x10d   : > { %11932 = dma.done.wait (%p15182_p11), [#allocation6], 8192   ;;  %p15183_p0 = pmov %p15182_p11 }
 0x10f   : > { %11934 = vsyncadd (%p15183_p0), [#allocation6], 4294959104  ;;  %p15184_p12 = pmov %p15183_p0 }
 0x110   : > { %p15185_p13 = pmov %p15183_p0 }
 0x111   : > { %11936 = dma.done.wait (%p15184_p12), [#allocation9], 8256  }
 0x112   : > { %11938 = vsyncadd (%p15185_p13), [#allocation9], 4294959040  ;;  %p15186_p1 = pmov %p15183_p0 }
 0x113   : > { %p15187_p3 = pmov %p15183_p0 }
 0x114   : > { %11940 = dma.done.wait (%p15186_p1), [#allocation12], 16384  }
 0x115   : > { %11942 = vsyncadd (%p15187_p3), [#allocation12], 4294950912  ;;  %p15188_p6 = pmov %p15183_p0 }
 0x116   : > { %p15189_p2 = pmov %p15183_p0 }
 0x117   : > { %11944 = dma.done.wait (%p15188_p6), [#allocation15], 64  }
 0x118   : > { %11946 = vsyncadd (%p15189_p2), [#allocation15], 4294967232  ;;  %v12392_v0 = vld [vmem:[%s12369_s27 + $0x20] sm:$0xff]  ;;  %v12398_v2 = vld [vmem:[%s12369_s27 + $0x28] sm:$0xff]  ;;  %s14696_s22 = scalar_lea.vmem [#allocation17], %s8967_s5  ;;  %s9107_s18 = sshll.u32 %s12066_s15, 10 }
 0x119   : > { %v12395_v1 = vld [vmem:[%s12369_s27] sm:$0xff]  ;;  %v506_v3 = vmul.f32 %v12392_v0, %v12392_v0  ;;  %v12405_v5 = vld [vmem:[%s12369_s27 + $0x8] sm:$0xff]  ;;  %v507_v6 = vmul.f32 %v12398_v2, %v12398_v2  ;;  %v12412_v8 = vld [vmem:[%s12369_s27 + $0x18] sm:$0xff]  ;;  %s8764_s25 = sshll.u32 %s14696_s22, 4  ;;  %s14728_s0 = scalar_lea.hbm %s14829_s9, %s9107_s18  ;;  %s14730_s25 = int_to_ptr.vmem [resolvable:$true] %s8764_s25 }
 0x11a   : > { %v502_v4 = vmul.f32 %v12395_v1, %v12395_v1  ;;  %v503_v7 = vmul.f32 %v12405_v5, %v12405_v5  ;;  %v12415_v9 = vld [vmem:[%s12369_s27 + $0x10] sm:$0xff]  ;;  %v505_v10 = vmul.f32 %v12412_v8, %v12412_v8  ;;  %v12422_v12 = vld [vmem:[%s12369_s27 + $0x38] sm:$0xff]  ;;  %s8734_s4 = scalar_lea.sflag [#allocation18], %s12353_s29  ;;  %s11851_s8 = scalar_lea.vmem %s14730_s25, 1024 }
 0x11b   : > { %518 = vadd.xlane.f32.xlu1 %v506_v3  ;;  %v504_v11 = vmul.f32 %v12415_v9, %v12415_v9  ;;  %v12425_v13 = vld [vmem:[%s12369_s27 + $0x30] sm:$0xff]  ;;  %v509_v14 = vmul.f32 %v12422_v12, %v12422_v12  ;;  %p11852_p4 = scmp.ne.s32.totalorder %s14730_s25, %s11851_s8  ;;  %p15657_p10 = scmp.ne.s32.totalorder %s15176_s24, 0 }
 0x11c   : > { %510 = vadd.xlane.f32.xlu0 %v502_v4  ;;  %v508_v15 = vmul.f32 %v12425_v13, %v12425_v13  ;;  %s11989_s20 = smov [#allocation17]  }
 0x11d   : > { %p11853_p5 = pnand %p11852_p4, %p15657_p10  ;;  %s11855_s6 = sshll.u32 %s11989_s20, 4  ;;  %s11856_s6 = int_to_ptr.vmem [resolvable:$false] %s11855_s6 }
 0x11e   : > { %s11857_s28 = scalar_lea.vmem %s11856_s6, 2048  ;;  %p11858_p9 = scmp.lt.s32.totalorder %s14730_s25, %s11856_s6 }
 0x11f   : > { %520 = vadd.xlane.f32.xlu1 %v507_v6  ;;  %p11854_p7 = pneg %p11853_p5  ;;  %p11859_p8 = scmp.lt.s32.totalorder %s11857_s28, %s11851_s8 }
 0x120   : > { %512 = vadd.xlane.f32.xlu0 %v503_v7 }
 0x121   : > { %p11860_p11 = por %p11859_p8, %p11858_p9 }
 0x123   : > { %924 = vadd.xlane.f32.xlu1 %v503_v7  ;;  %p11861_p0 = pnand %p11860_p11, %p11854_p7 }
 0x124   : > { %922 = vadd.xlane.f32.xlu0 %v502_v4 }
 0x127   : > { %516 = vadd.xlane.f32.xlu1 %v505_v10 }
 0x128   : > { %514 = vadd.xlane.f32.xlu0 %v504_v11 }
 0x12b   : > { %932 = vadd.xlane.f32.xlu1 %v507_v6 }
 0x12c   : > { %930 = vadd.xlane.f32.xlu0 %v506_v3 }
 0x12f   : > { %524 = vadd.xlane.f32.xlu1 %v509_v14 }
 0x130   : > { %522 = vadd.xlane.f32.xlu0 %v508_v15 }
 0x133   : > { %928 = vadd.xlane.f32.xlu1 %v505_v10 }
 0x134   : > { %926 = vadd.xlane.f32.xlu0 %v504_v11 }
 0x137   : > { %936 = vadd.xlane.f32.xlu1 %v509_v14 }
 0x138   : > { %934 = vadd.xlane.f32.xlu0 %v508_v15 }
 0x1a8   : > { %v519_v16 = vpop.xlane.xlu1 %518 }
 0x1a9   : > { %v511_v17 = vpop.xlane.xlu0 %510  ;;  %10787 = vrsqrt.f32 %v519_v16  ;;  %vm556_vm0 = vcmp.eq.f32.partialorder %v519_v16, inf  ;;  %vm558_vm1 = vcmp.eq.f32.partialorder %v519_v16, 0.0  ;;  %v559_v25 = vand.u32 2147483648, %v519_v16 }
 0x1aa   : > { %10789 = vrsqrt.f32 %v511_v17  ;;  %vm528_vm2 = vcmp.eq.f32.partialorder %v511_v17, inf  ;;  %vm530_vm3 = vcmp.eq.f32.partialorder %v511_v17, 0.0  ;;  %v531_v29 = vand.u32 2147483648, %v511_v17 }
 0x1ac   : > { %v521_v18 = vpop.xlane.xlu1 %520 }
 0x1ad   : > { %v513_v19 = vpop.xlane.xlu0 %512  ;;  %10791 = vrsqrt.f32 %v521_v18  ;;  %vm563_vm4 = vcmp.eq.f32.partialorder %v521_v18, inf  ;;  %vm565_vm5 = vcmp.eq.f32.partialorder %v521_v18, 0.0  ;;  %v566_v34 = vand.u32 2147483648, %v521_v18 }
 0x1ae   : > { %10793 = vrsqrt.f32 %v513_v19  ;;  %vm535_vm6 = vcmp.eq.f32.partialorder %v513_v19, inf  ;;  %vm537_vm7 = vcmp.eq.f32.partialorder %v513_v19, 0.0  ;;  %v538_v43 = vand.u32 2147483648, %v513_v19 }
 0x1b0   : > { %v12431_v20 = vpop.xlane.xlu1 %924 }
 0x1b1   : > { %v12433_v21 = vpop.xlane.xlu0 %922  ;;  %10795 = vrsqrt.f32 %v12431_v20  ;;  %vm947_vm8 = vcmp.eq.f32.partialorder %v12431_v20, inf  ;;  %v950_v45 = vand.u32 2147483648, %v12431_v20 }
 0x1b2   : > { %10797 = vrsqrt.f32 %v12433_v21  ;;  %vm940_vm9 = vcmp.eq.f32.partialorder %v12433_v21, inf  ;;  %v943_v49 = vand.u32 2147483648, %v12433_v21  ;;  %vm942_vm12 = vcmp.eq.f32.partialorder %v12433_v21, 0.0 }
 0x1b3   : > { %v10788_v22 = vpop.eup %10787 }
 0x1b4   : > { %v10790_v23 = vpop.eup %10789  ;;  %v555_v24 = vmul.f32 %v10788_v22, %v519_v16  ;;  %v12437_v26 = vpop.xlane.xlu1 %516 }
 0x1b5   : > { %v12439_v27 = vpop.xlane.xlu0 %514  ;;  %v527_v28 = vmul.f32 %v10790_v23, %v511_v17  ;;  %10799 = vrsqrt.f32 %v12437_v26  ;;  %vm549_vm10 = vcmp.eq.f32.partialorder %v12437_v26, inf  ;;  %vm551_vm11 = vcmp.eq.f32.partialorder %v12437_v26, 0.0 }
 0x1b6   : > { %v557_v30 = vsel %vm556_vm0, %v519_v16, %v555_v24  ;;  %10801 = vrsqrt.f32 %v12439_v27  ;;  %v552_v56 = vand.u32 2147483648, %v12437_v26  ;;  %vm542_vm13 = vcmp.eq.f32.partialorder %v12439_v27, inf }
 0x1b7   : > { %v10792_v31 = vpop.eup %10791  ;;  %v560_v32 = vsel %vm558_vm1, %v559_v25, %v557_v30  ;;  %v529_v33 = vsel %vm528_vm2, %v511_v17, %v527_v28  ;;  %vm544_vm14 = vcmp.eq.f32.partialorder %v12439_v27, 0.0  ;;  %v545_v60 = vand.u32 2147483648, %v12439_v27 }
 0x1b8   : > { %v10794_v35 = vpop.eup %10793  ;;  %v586_v36 = vadd.f32 1e-08, %v560_v32  ;;  %v532_v37 = vsel %vm530_vm3, %v531_v29, %v529_v33  ;;  %v562_v38 = vmul.f32 %v10792_v31, %v521_v18  ;;  %v12443_v39 = vpop.xlane.xlu1 %932  ;;  %vm949_vm1 = vcmp.eq.f32.partialorder %v12431_v20, 0.0 }
 0x1b9   : > { %v12445_v40 = vpop.xlane.xlu0 %930  ;;  %v582_v41 = vadd.f32 1e-08, %v532_v37  ;;  %v534_v42 = vmul.f32 %v10794_v35, %v513_v19  ;;  %10803 = vrsqrt.f32 %v12443_v39  ;;  %vm975_vm15 = vcmp.eq.f32.partialorder %v12443_v39, inf }
 0x1ba   : > { %v564_v44 = vsel %vm563_vm4, %v521_v18, %v562_v38  ;;  %10805 = vrcp.f32 %v586_v36  ;;  %vm977_vm0 = vcmp.eq.f32.partialorder %v12443_v39, 0.0  ;;  %v978_v63 = vand.u32 2147483648, %v12443_v39 }
 0x1bb   : > { %v10796_v46 = vpop.eup %10795  ;;  %v567_v47 = vsel %vm565_vm5, %v566_v34, %v564_v44  ;;  %v536_v48 = vsel %vm535_vm6, %v513_v19, %v534_v42  ;;  %10807 = vrsqrt.f32 %v12445_v40  ;;  %vm968_vm2 = vcmp.eq.f32.partialorder %v12445_v40, inf }
 0x1bc   : > { %v10798_v50 = vpop.eup %10797  ;;  %v587_v51 = vadd.f32 1e-08, %v567_v47  ;;  %v539_v52 = vsel %vm537_vm7, %v538_v43, %v536_v48  ;;  %v12458_v53 = vpop.xlane.xlu1 %524  ;;  %10809 = vrcp.f32 %v582_v41  ;;  %v946_v57 = vmul.f32 %v10796_v46, %v12431_v20 }
 0x1bd   : > { %v12460_v54 = vpop.xlane.xlu0 %522  ;;  %v583_v55 = vadd.f32 1e-08, %v539_v52  ;;  %v939_v59 = vmul.f32 %v10798_v50, %v12433_v21  ;;  %vm970_vm3 = vcmp.eq.f32.partialorder %v12445_v40, 0.0  ;;  %v971_v11 = vand.u32 2147483648, %v12445_v40 }
 0x1be   : > { %10811 = vrcp.f32 %v587_v51  ;;  %v948_v7 = vsel %vm947_vm8, %v12431_v20, %v946_v57  ;;  %vm577_vm4 = vcmp.eq.f32.partialorder %v12458_v53, inf  ;;  %v580_v23 = vand.u32 2147483648, %v12458_v53 }
 0x1bf   : > { %v10800_v58 = vpop.eup %10799  ;;  %10813 = vrcp.f32 %v583_v55  ;;  %v941_v17 = vsel %vm940_vm9, %v12433_v21, %v939_v59  ;;  %vm579_vm5 = vcmp.eq.f32.partialorder %v12458_v53, 0.0  ;;  %vm570_vm6 = vcmp.eq.f32.partialorder %v12460_v54, inf }
 0x1c0   : > { %v10802_v61 = vpop.eup %10801  ;;  %v548_v62 = vmul.f32 %v10800_v58, %v12437_v26  ;;  %10815 = vrsqrt.f32 %v12458_v53  ;;  %v12475_v3 = vpop.xlane.xlu1 %928  ;;  %v573_v28 = vand.u32 2147483648, %v12460_v54  ;;  %vm572_vm7 = vcmp.eq.f32.partialorder %v12460_v54, 0.0 }
 0x1c1   : > { %v12477_v4 = vpop.xlane.xlu0 %926  ;;  %v541_v6 = vmul.f32 %v10802_v61, %v12439_v27  ;;  %10817 = vrsqrt.f32 %v12460_v54  ;;  %vm961_vm8 = vcmp.eq.f32.partialorder %v12475_v3, inf  ;;  %v964_v31 = vand.u32 2147483648, %v12475_v3 }
 0x1c2   : > { %v550_v10 = vsel %vm549_vm10, %v12437_v26, %v548_v62  ;;  %10819 = vrsqrt.f32 %v12475_v3  ;;  %v944_v32 = vsel %vm942_vm12, %v943_v49, %v941_v17  ;;  %vm963_vm9 = vcmp.eq.f32.partialorder %v12475_v3, 0.0 }
 0x1c3   : > { %v10804_v14 = vpop.eup %10803  ;;  %v553_v15 = vsel %vm551_vm11, %v552_v56, %v550_v10  ;;  %v543_v16 = vsel %vm542_vm13, %v12439_v27, %v541_v6  ;;  %10821 = vrsqrt.f32 %v12477_v4  ;;  %vm954_vm10 = vcmp.eq.f32.partialorder %v12477_v4, inf }
 0x1c4   : > { %v585_v18 = vadd.f32 1e-08, %v553_v15  ;;  %v546_v19 = vsel %vm544_vm14, %v545_v60, %v543_v16  ;;  %v974_v22 = vmul.f32 %v10804_v14, %v12443_v39  ;;  %v12506_v24 = vpop.xlane.xlu1 %936  ;;  %v10806_v25 = vpop.eup %10805  ;;  %v957_v36 = vand.u32 2147483648, %v12477_v4 }
 0x1c5   : > { %v584_v26 = vadd.f32 1e-08, %v546_v19  ;;  %10823 = vrsqrt.f32 %v12506_v24  ;;  %v12512_v27 = vpop.xlane.xlu0 %934  ;;  %v10808_v29 = vpop.eup %10807  ;;  %vm989_vm11 = vcmp.eq.f32.partialorder %v12506_v24, inf  ;;  %v992_v21 = vand.u32 2147483648, %v12506_v24 }
 0x1c6   : > { %10825 = vrcp.f32 %v585_v18  ;;  %v976_v30 = vsel %vm975_vm15, %v12443_v39, %v974_v22  ;;  %v10810_v33 = vpop.eup %10809  ;;  %v967_v35 = vmul.f32 %v10808_v29, %v12445_v40  ;;  %vm991_vm12 = vcmp.eq.f32.partialorder %v12506_v24, 0.0 }
 0x1c7   : > { %10827 = vrcp.f32 %v584_v26  ;;  %v979_v34 = vsel %vm977_vm0, %v978_v63, %v976_v30  ;;  %v985_v42 = vand.u32 2147483648, %v12512_v27  ;;  %v994_v43 = vadd.f32 1e-08, %v944_v32 }
 0x1c8   : > { %v10812_v37 = vpop.eup %10811  ;;  %v999_v38 = vadd.f32 1e-08, %v979_v34  ;;  %10829 = vrsqrt.f32 %v12512_v27  ;;  %v969_v39 = vsel %vm968_vm2, %v12445_v40, %v967_v35  ;;  %vm982_vm13 = vcmp.eq.f32.partialorder %v12512_v27, inf }
 0x1c9   : > { %v10814_v41 = vpop.eup %10813  ;;  %v603_v44 = vmul.f32 %v10812_v37, %v12398_v2  ;;  %v598_v47 = vmul.f32 %v10810_v33, %v12395_v1  ;;  %v951_v49 = vsel %vm949_vm1, %v950_v45, %v948_v7  ;;  %v972_v50 = vsel %vm970_vm3, %v971_v11, %v969_v39 }
 0x1ca   : > { %v10816_v46 = vpop.eup %10815  ;;  %v599_v48 = vmul.f32 %v10814_v41, %v12405_v5  ;;  %10831 = vrcp.f32 %v994_v43  ;;  %v602_v55 = vmul.f32 %v10806_v25, %v12392_v0  ;;  %v995_v56 = vadd.f32 1e-08, %v951_v49 }
 0x1cb   : > { %v10818_v51 = vpop.eup %10817  ;;  %v576_v52 = vmul.f32 %v10816_v46, %v12458_v53  ;;  %v998_v60 = vadd.f32 1e-08, %v972_v50  ;;  %10833 = vrcp.f32 %v999_v38  ;;  %vm956_vm14 = vcmp.eq.f32.partialorder %v12477_v4, 0.0 }
 0x1cc   : > { %v10820_v57 = vpop.eup %10819  ;;  %v569_v58 = vmul.f32 %v10818_v51, %v12460_v54  ;;  %v12551_v59 = vpack.c.bf16 %v599_v48, %v598_v47  ;;  %v12557_v45 = vpack.c.bf16 %v603_v44, %v602_v55  ;;  %10835 = vrcp.f32 %v995_v56 }
 0x1cd   : > { %v10822_v61 = vpop.eup %10821  ;;  %v578_v20 = vsel %vm577_vm4, %v12458_v53, %v576_v52  ;;  %v960_v40 = vmul.f32 %v10820_v57, %v12475_v3  ;;  %10837 = vrcp.f32 %v998_v60  ;;  %vm984_vm15 = vcmp.eq.f32.partialorder %v12512_v27, 0.0 }
 0x1ce   : > { %15190 = vst [vmem:[#allocation27_spill] sm:$0xff] %v12551_v59  ;;  %15191 = vst [vmem:[#allocation28_spill] sm:$0xff] %v12557_v45  ;;  %v581_v62 = vsel %vm579_vm5, %v580_v23, %v578_v20  ;;  %v571_v63 = vsel %vm570_vm6, %v12460_v54, %v569_v58  ;;  %v953_v6 = vmul.f32 %v10822_v61, %v12477_v4  ;;  %9613 = vmatprep.subr.bf16.mxu0 %v12551_v59  ;;  %vm1318_vm0 = vcmask 130048  }
 0x1cf   : > { %v10824_v7 = vpop.eup %10823  ;;  %v589_v10 = vadd.f32 1e-08, %v581_v62  ;;  %v574_v11 = vsel %vm572_vm7, %v573_v28, %v571_v63  ;;  %v962_v14 = vsel %vm961_vm8, %v12475_v3, %v960_v40  ;;  %9615 = vmatpush3.bf16.xpose.msra.mxu0 %v12551_v59  ;;  %v12615_v49 = vpack.c.bf16 %v12398_v2, %v12392_v0 }
 0x1d0   : > { %v10826_v53 = vpop.eup %10825  ;;  %v588_v15 = vadd.f32 1e-08, %v574_v11  ;;  %v988_v16 = vmul.f32 %v10824_v7, %v12506_v24  ;;  %9621 = vmatprep.subr.bf16.mxu0 %v12557_v45  ;;  %v955_v17 = vsel %vm954_vm10, %v12477_v4, %v953_v6  ;;  %v965_v54 = vsel %vm963_vm9, %v964_v31, %v962_v14 }
 0x1d1   : > { %v10828_v18 = vpop.eup %10827  ;;  %10839 = vrcp.f32 %v589_v10  ;;  %v601_v19 = vmul.f32 %v10826_v53, %v12412_v8  ;;  %v958_v22 = vsel %vm956_vm14, %v957_v36, %v955_v17  ;;  %v997_v23 = vadd.f32 1e-08, %v965_v54 }
 0x1d2   : > { %v10830_v25 = vpop.eup %10829  ;;  %10841 = vrcp.f32 %v588_v15  ;;  %v990_v26 = vsel %vm989_vm11, %v12506_v24, %v988_v16  ;;  %v600_v28 = vmul.f32 %v10828_v18, %v12415_v9  ;;  %v996_v29 = vadd.f32 1e-08, %v958_v22 }
 0x1d3   : > { %v981_v4 = vmul.f32 %v10830_v25, %v12512_v27  ;;  %10843 = vrcp.f32 %v997_v23  ;;  %v993_v3 = vsel %vm991_vm12, %v992_v21, %v990_v26  ;;  %v12601_v21 = vpack.c.bf16 %v12405_v5, %v12395_v1  ;;  %v12644_v26 = vld [vmem:[%s12359_s17 + $0x2] sm:$0x1] }
 0x1d4   : > { %v12589_v30 = vpack.c.bf16 %v601_v19, %v600_v28  ;;  %10845 = vrcp.f32 %v996_v29  ;;  %v10832_v31 = vpop.eup %10831  ;;  %v1001_v37 = vadd.f32 1e-08, %v993_v3  ;;  %v12619_v50 = vpack.c.bf16 %v12412_v8, %v12415_v9 }
 0x1d5   : > { %v983_v32 = vsel %vm982_vm13, %v12512_v27, %v981_v4  ;;  %v10834_v33 = vpop.eup %10833  ;;  %v1010_v34 = vmul.f32 %v10832_v31, %v12395_v1  ;;  %15193 = vst [vmem:[#allocation30_spill] sm:$0xff] %v12601_v21  ;;  %v12647_v4 = vld [vmem:[%s12359_s17] sm:$0x1]  ;;  %vm1739_vm1 = vcmask 1040384   ;;  %vm11986_vm6 = vmmov 0  }
 0x1d6   : > { %15192 = vst [vmem:[#allocation29_spill] sm:$0xff] %v12589_v30  ;;  %9617 = vmatprep.subr.bf16.mxu1 %v12589_v30  ;;  %v986_v35 = vsel %vm984_vm15, %v985_v42, %v983_v32  ;;  %v10836_v36 = vpop.eup %10835  ;;  %15195 = vst [vmem:[#allocation32_spill] sm:$0xff] %v12619_v50  ;;  %v1015_v51 = vmul.f32 %v10834_v33, %v12398_v2  ;;  %v12630_v2 = vpack.c.bf16 %v12422_v12, %v12425_v13  ;;  %vm2072_vm11 = vcmask 122880  }
 0x1d7   : > { %9619 = vmatpush3.bf16.xpose.msra.mxu1 %v12589_v30  ;;  %v1000_v24 = vadd.f32 1e-08, %v986_v35  ;;  %v10838_v38 = vpop.eup %10837  ;;  %9280 = vmatprep.mubr.f32.mxu0 %v1010_v34  ;;  %v1011_v41 = vmul.f32 %v10836_v36, %v12405_v5  ;;  %v1737_v33 = vmul.f32 %v12644_v26, %v12644_v26  ;;  %v1735_v36 = vmul.f32 %v12647_v4, %v12647_v4 }
 0x1d8   : > { %v1014_v39 = vmul.f32 %v10838_v38, %v12392_v0  ;;  %vm3090_vm12 = vcmask 1041409   ;;  %vm3093_vm13 = vcmask 1042434   ;;  %vm3096_vm14 = vcmask 1043459  }
 0x1d9   : > { %10847 = vrcp.f32 %v1000_v24  ;;  %9281 = vmatmul.mubr.f32.vlgmr.msra.gmra.mrb[0].mxu0 %v1011_v41 }
 0x1da   : > { %9623 = vmatpush3.bf16.xpose.msra.mxu0 %v12557_v45  ;;  %9294 = vmatprep.mubr.f32.mxu0 %v1014_v39  ;;  %10849 = vrcp.f32 %v1001_v37 }
 0x1db   : > { %v10840_v43 = vpop.eup %10839  ;;  %9629 = vmatprep.subr.bf16.mxu0 %v12601_v21 }
 0x1dc   : > { %v10842_v27 = vpop.eup %10841  ;;  %v605_v42 = vmul.f32 %v10840_v43, %v12422_v12 }
 0x1dd   : > { %v10844_v44 = vpop.eup %10843  ;;  %v604_v1 = vmul.f32 %v10842_v27, %v12425_v13 }
 0x1de   : > { %v10846_v46 = vpop.eup %10845  ;;  %v1013_v5 = vmul.f32 %v10844_v44, %v12412_v8  ;;  %v1746_v44 = vsel %vm1739_vm1, %v1737_v33, 0.0 }
 0x1df   : > { %v12610_v47 = vpack.c.bf16 %v605_v42, %v604_v1  ;;  %v1012_v48 = vmul.f32 %v10846_v46, %v12415_v9  ;;  %v1740_v46 = vsel %vm1739_vm1, %v1735_v36, 0.0 }
 0x1e1   : > { %15194 = vst [vmem:[#allocation31_spill] sm:$0xff] %v12610_v47  ;;  %9625 = vmatprep.subr.bf16.mxu1 %v12610_v47  ;;  %9287 = vmatprep.mubr.f32.mxu1 %v1012_v48 }
 0x1e2   : > { %9295 = vmatmul.mubr.f32.vlgmr.msra.gmra.mrb[2].mxu0 %v1015_v51  ;;  %9288 = vmatmul.mubr.f32.vlgmr.msra.gmra.mrb[0].mxu1 %v1013_v5  ;;  %v12666_v51 = vld [vmem:[%s12359_s17 + $0x3] sm:$0x1] }
 0x1e3   : > { %v10848_v52 = vpop.eup %10847  ;;  %9627 = vmatpush3.bf16.xpose.msra.mxu1 %v12610_v47  ;;  %9631 = vmatpush3.bf16.msra.mxu0 %v12601_v21 }
 0x1e4   : > { %v1016_v55 = vmul.f32 %v10848_v52, %v12425_v13  ;;  %9637 = vmatprep.subr.bf16.mxu0 %v12615_v49  ;;  %9633 = vmatprep.subr.bf16.mxu1 %v12619_v50  ;;  %v10850_v0 = vpop.eup %10849 }
 0x1e5   : > { %v1017_v8 = vmul.f32 %v10850_v0, %v12422_v12  ;;  %v12673_v0 = vld [vmem:[%s12359_s17 + $0x1] sm:$0x1] }
 0x1e6   : > { %9301 = vmatprep.mubr.f32.mxu1 %v1016_v55 }
 0x1ea   : > { %9302 = vmatmul.mubr.f32.vlgmr.msra.gmra.mrb[2].mxu1 %v1017_v8 }
 0x1eb   : > { %9635 = vmatpush3.bf16.msra.mxu1 %v12619_v50 }
 0x1ec   : > { %9641 = vmatprep.subr.bf16.mxu1 %v12630_v2 }
 0x2ac   : > { %v9282_v9 = vpop.f32.mrb[0].mxu0 }
 0x2ad   : > { %v1084_v56 = vpop.f32.mrb[1].mxu0  ;;  %v1322_v57 = vsel %vm1318_vm0, %v9282_v9, -inf }
 0x2ae   : > { %1323 = vmax.xlane.f32.xlu1 %v1322_v57  ;;  %v1319_v58 = vsel %vm1318_vm0, %v1084_v56, -inf  ;;  %v1736_v57 = vmul.f32 %v12673_v0, %v12673_v0 }
 0x2af   : > { %1320 = vmax.xlane.f32.xlu0 %v1319_v58 }
 0x2b5   : > { %v9296_v60 = vpop.f32.mrb[2].mxu0  ;;  %v9289_v61 = vpop.f32.mrb[0].mxu1 }
 0x2b6   : > { %v1234_v13 = vpop.f32.mrb[3].mxu0  ;;  %v1334_v20 = vsel %vm1318_vm0, %v9296_v60, -inf  ;;  %v1159_v12 = vpop.f32.mrb[1].mxu1  ;;  %v1328_v62 = vsel %vm1318_vm0, %v9289_v61, -inf }
 0x2b7   : > { %1335 = vmax.xlane.f32.xlu1 %v1334_v20  ;;  %v1331_v40 = vsel %vm1318_vm0, %v1234_v13, -inf  ;;  %v1325_v63 = vsel %vm1318_vm0, %v1159_v12, -inf  ;;  %v1743_v20 = vsel %vm1739_vm1, %v1736_v57, 0.0 }
 0x2b8   : > { %1332 = vmax.xlane.f32.xlu0 %v1331_v40 }
 0x2bb   : > { %1329 = vmax.xlane.f32.xlu1 %v1328_v62 }
 0x2bc   : > { %1326 = vmax.xlane.f32.xlu0 %v1325_v63 }
 0x2bd   : > { %v9303_v6 = vpop.f32.mrb[2].mxu1 }
 0x2be   : > { %v1309_v7 = vpop.f32.mrb[3].mxu1  ;;  %v1340_v10 = vsel %vm1318_vm0, %v9303_v6, -inf }
 0x2bf   : > { %1341 = vmax.xlane.f32.xlu1 %v1340_v10  ;;  %v1337_v11 = vsel %vm1318_vm0, %v1309_v7, -inf }
 0x2c0   : > { %1338 = vmax.xlane.f32.xlu0 %v1337_v11 }
 0x33b   : > { %v1324_v14 = vpop.xlane.xlu1 %1323 }
 0x33c   : > { %v1344_v53 = vsub.f32 %v9282_v9, %v1324_v14  ;;  %v1321_v15 = vpop.xlane.xlu0 %1320  ;;  %v1738_v9 = vmul.f32 %v12666_v51, %v12666_v51 }
 0x33d   : > { %v1343_v16 = vsub.f32 %v1084_v56, %v1321_v15 }
 0x33e   : > { %v1353_v17 = vmul.f32 1.442695, %v1344_v53 }
 0x33f   : > { %v1351_v54 = vmul.f32 1.442695, %v1343_v16 }
 0x340   : > { %10851 = vpow2.f32 %v1353_v17 }
 0x341   : > { %10853 = vpow2.f32 %v1351_v54 }
 0x344   : > { %v1336_v18 = vpop.xlane.xlu1 %1335 }
 0x345   : > { %v1348_v19 = vsub.f32 %v9296_v60, %v1336_v18  ;;  %v1333_v22 = vpop.xlane.xlu0 %1332 }
 0x346   : > { %v1347_v23 = vsub.f32 %v1234_v13, %v1333_v22  ;;  %v1749_v13 = vsel %vm1739_vm1, %v1738_v9, 0.0 }
 0x347   : > { %v1361_v25 = vmul.f32 1.442695, %v1348_v19 }
 0x348   : > { %v1359_v28 = vmul.f32 1.442695, %v1347_v23  ;;  %v1330_v29 = vpop.xlane.xlu1 %1329 }
 0x349   : > { %10855 = vpow2.f32 %v1361_v25  ;;  %v1346_v3 = vsub.f32 %v9289_v61, %v1330_v29  ;;  %v1327_v31 = vpop.xlane.xlu0 %1326 }
 0x34a   : > { %10857 = vpow2.f32 %v1359_v28  ;;  %v1345_v32 = vsub.f32 %v1159_v12, %v1327_v31  ;;  %v12651_v34 = vpop.eup %10851 }
 0x34b   : > { %v1357_v35 = vmul.f32 1.442695, %v1346_v3  ;;  %v12655_v37 = vpop.eup %10853  ;;  %v1370_v38 = vsel %vm1318_vm0, %v12651_v34, 0.0 }
 0x34c   : > { %v1355_v24 = vmul.f32 1.442695, %v1345_v32  ;;  %v1342_v41 = vpop.xlane.xlu1 %1341  ;;  %1371 = vadd.xlane.f32.xlu1 %v1370_v38  ;;  %v1367_v43 = vsel %vm1318_vm0, %v12655_v37, 0.0  ;;  %v14834_v32 = vmov 0.0|0.0  }
 0x34d   : > { %10859 = vpow2.f32 %v1357_v35  ;;  %v1350_v39 = vsub.f32 %v9303_v6, %v1342_v41  ;;  %v1339_v27 = vpop.xlane.xlu0 %1338  ;;  %1368 = vadd.xlane.f32.xlu0 %v1367_v43 }
 0x34e   : > { %10861 = vpow2.f32 %v1355_v24  ;;  %v1349_v42 = vsub.f32 %v1309_v7, %v1339_v27 }
 0x34f   : > { %v1365_v1 = vmul.f32 1.442695, %v1350_v39 }
 0x350   : > { %v1363_v5 = vmul.f32 1.442695, %v1349_v42  ;;  %1747 = vadd.xlane.f32.xlu1 %v1746_v44 }
 0x351   : > { %1741 = vadd.xlane.f32.xlu0 %v1740_v46  ;;  %10863 = vpow2.f32 %v1365_v1 }
 0x352   : > { %10865 = vpow2.f32 %v1363_v5 }
 0x353   : > { %v12663_v48 = vpop.eup %10855 }
 0x354   : > { %v12668_v52 = vpop.eup %10857  ;;  %v1382_v55 = vsel %vm1318_vm0, %v12663_v48, 0.0 }
 0x355   : > { %1383 = vadd.xlane.f32.xlu1 %v1382_v55  ;;  %v1379_v8 = vsel %vm1318_vm0, %v12668_v52, 0.0  ;;  %v14856_v55 = vmov 0.0  }
 0x356   : > { %1380 = vadd.xlane.f32.xlu0 %v1379_v8 }
 0x357   : > { %v12679_v56 = vpop.eup %10859 }
 0x358   : > { %v12683_v58 = vpop.eup %10861  ;;  %v1376_v60 = vsel %vm1318_vm0, %v12679_v56, 0.0 }
 0x359   : > { %1377 = vadd.xlane.f32.xlu1 %v1376_v60  ;;  %v1373_v61 = vsel %vm1318_vm0, %v12683_v58, 0.0 }
 0x35a   : > { %1374 = vadd.xlane.f32.xlu0 %v1373_v61 }
 0x35b   : > { %v12691_v12 = vpop.eup %10863 }
 0x35c   : > { %v12693_v40 = vpop.eup %10865  ;;  %v1388_v62 = vsel %vm1318_vm0, %v12691_v12, 0.0 }
 0x35d   : > { %1750 = vadd.xlane.f32.xlu1 %v1749_v13  ;;  %v1385_v63 = vsel %vm1318_vm0, %v12693_v40, 0.0 }
 0x35e   : > { %1744 = vadd.xlane.f32.xlu0 %v1743_v20 }
 0x361   : > { %1389 = vadd.xlane.f32.xlu1 %v1388_v62 }
 0x362   : > { %1386 = vadd.xlane.f32.xlu0 %v1385_v63 }
 0x3d9   : > { %v1372_v6 = vpop.xlane.xlu1 %1371 }
 0x3da   : > { %10867 = vrcp.f32 %v1372_v6  ;;  %v1369_v7 = vpop.xlane.xlu0 %1368 }
 0x3db   : > { %10869 = vrcp.f32 %v1369_v7 }
 0x3dd   : > { %v1748_v10 = vpop.xlane.xlu1 %1747 }
 0x3de   : > { %10871 = vrsqrt.f32 %v1748_v10  ;;  %v1742_v11 = vpop.xlane.xlu0 %1741  ;;  %vm1768_vm2 = vcmp.eq.f32.partialorder %v1748_v10, inf  ;;  %vm1770_vm5 = vcmp.eq.f32.partialorder %v1748_v10, 0.0 }
 0x3df   : > { %10873 = vrsqrt.f32 %v1742_v11  ;;  %vm1754_vm3 = vcmp.eq.f32.partialorder %v1742_v11, inf  ;;  %v1757_v31 = vand.u32 2147483648, %v1742_v11  ;;  %vm1756_vm4 = vcmp.eq.f32.partialorder %v1742_v11, 0.0 }
 0x3e2   : > { %v1384_v14 = vpop.xlane.xlu1 %1383 }
 0x3e3   : > { %10875 = vrcp.f32 %v1384_v14  ;;  %v1381_v53 = vpop.xlane.xlu0 %1380 }
 0x3e4   : > { %10877 = vrcp.f32 %v1381_v53  ;;  %v10868_v15 = vpop.eup %10867 }
 0x3e5   : > { %v10870_v16 = vpop.eup %10869  ;;  %v1400_v19 = vmul.f32 %v10868_v15, %v12651_v34 }
 0x3e6   : > { %v1378_v17 = vpop.xlane.xlu1 %1377  ;;  %v1399_v18 = vmul.f32 %v10870_v16, %v12655_v37  ;;  %v1771_v37 = vand.u32 2147483648, %v1748_v10 }
 0x3e7   : > { %10879 = vrcp.f32 %v1378_v17  ;;  %v1375_v54 = vpop.xlane.xlu0 %1374 }
 0x3e8   : > { %10881 = vrcp.f32 %v1375_v54  ;;  %v10872_v22 = vpop.eup %10871  ;;  %9308 = vmatprep.mubr.msk.f32.mxu0 %vm1318_vm0, %v1399_v18  ;;  %v733_v54 = vld [vmem:[#allocation8 + $0x1f8] sm:$0xff] }
 0x3e9   : > { %v10874_v23 = vpop.eup %10873  ;;  %v1767_v25 = vmul.f32 %v10872_v22, %v1748_v10  ;;  %9309 = vmatmul.mubr.msk.f32.vlgmr.msra.gmra.mrb[4].mxu0 %vm1318_vm0, %v1400_v19 }
 0x3ea   : > { %v12703_v28 = vpop.xlane.xlu1 %1750  ;;  %v1753_v29 = vmul.f32 %v10874_v23, %v1742_v11  ;;  %9639 = vmatpush3.bf16.msra.mxu0 %v12615_v49 }
 0x3eb   : > { %10883 = vrsqrt.f32 %v12703_v28  ;;  %v1745_v3 = vpop.xlane.xlu0 %1744  ;;  %9644 = vmatprep.subr.bf16.mxu0 %v14834_v32  ;;  %v1769_v34 = vsel %vm1768_vm2, %v1748_v10, %v1767_v25  ;;  %vm1775_vm7 = vcmp.eq.f32.partialorder %v12703_v28, inf  ;;  %v1778_v20 = vand.u32 2147483648, %v12703_v28  ;;  %v729_v25 = vld [vmem:[#allocation8 + $0x1d8] sm:$0xff] }
 0x3ec   : > { %10885 = vrsqrt.f32 %v1745_v3  ;;  %v1755_v35 = vsel %vm1754_vm3, %v1742_v11, %v1753_v29  ;;  %v1772_v27 = vsel %vm1770_vm5, %v1771_v37, %v1769_v34  ;;  %vm1761_vm8 = vcmp.eq.f32.partialorder %v1745_v3, inf  ;;  %v615_v34 = vld [vmem:[#allocation7 + $0x48] sm:$0xff] }
 0x3ed   : > { %v10876_v33 = vpop.eup %10875  ;;  %v1758_v24 = vsel %vm1756_vm4, %v1757_v31, %v1755_v35  ;;  %v1782_v46 = vadd.f32 1e-08, %v1772_v27  ;;  %vm1763_vm9 = vcmp.eq.f32.partialorder %v1745_v3, 0.0  ;;  %vm1777_vm10 = vcmp.eq.f32.partialorder %v12703_v28, 0.0 }
 0x3ee   : > { %v10878_v36 = vpop.eup %10877  ;;  %v1390_v38 = vpop.xlane.xlu1 %1389  ;;  %v1780_v41 = vadd.f32 1e-08, %v1758_v24  ;;  %v1404_v42 = vmul.f32 %v10876_v33, %v12663_v48 }
 0x3ef   : > { %10887 = vrcp.f32 %v1390_v38  ;;  %v1387_v39 = vpop.xlane.xlu0 %1386  ;;  %v1403_v43 = vmul.f32 %v10878_v36, %v12668_v52 }
 0x3f0   : > { %10889 = vrcp.f32 %v1387_v39 }
 0x3f1   : > { %v10880_v44 = vpop.eup %10879  ;;  %9322 = vmatprep.mubr.msk.f32.mxu0 %vm1318_vm0, %v1403_v43  ;;  %10891 = vrcp.f32 %v1780_v41 }
 0x3f2   : > { %v10882_v1 = vpop.eup %10881  ;;  %9323 = vmatmul.mubr.msk.f32.vlgmr.msra.gmra.mrb[6].mxu0 %vm1318_vm0, %v1404_v42  ;;  %v1402_v52 = vmul.f32 %v10880_v44, %v12679_v56  ;;  %10893 = vrcp.f32 %v1782_v46 }
 0x3f3   : > { %v1401_v5 = vmul.f32 %v10882_v1, %v12683_v58  ;;  %9336 = vmatprep.mubr.msk.f32.mxu0 %vm11986_vm6, %v14856_v55  ;;  %9646 = vmatpush3.bf16.xpose.msra.mxu0 %v12551_v59  ;;  %v1764_v58 = vand.u32 2147483648, %v1745_v3 }
 0x3f4   : > { %9650 = vmatprep.subr.bf16.mxu0 %v14834_v32 }
 0x3f5   : > { %v10884_v48 = vpop.eup %10883  ;;  %9315 = vmatprep.mubr.msk.f32.mxu1 %vm1318_vm0, %v1401_v5 }
 0x3f6   : > { %v10886_v8 = vpop.eup %10885  ;;  %v1774_v9 = vmul.f32 %v10884_v48, %v12703_v28  ;;  %9316 = vmatmul.mubr.msk.f32.vlgmr.msra.gmra.mrb[4].mxu1 %vm1318_vm0, %v1402_v52 }
 0x3f7   : > { %v1760_v57 = vmul.f32 %v10886_v8, %v1745_v3  ;;  %9643 = vmatpush3.bf16.msra.mxu1 %v12630_v2 }
 0x3f8   : > { %9647 = vmatprep.subr.bf16.mxu1 %v14834_v32  ;;  %v1776_v60 = vsel %vm1775_vm7, %v12703_v28, %v1774_v9 }
 0x3f9   : > { %v10888_v56 = vpop.eup %10887  ;;  %v1762_v61 = vsel %vm1761_vm8, %v1745_v3, %v1760_v57  ;;  %v1779_v10 = vsel %vm1777_vm10, %v1778_v20, %v1776_v60 }
 0x3fa   : > { %v10890_v13 = vpop.eup %10889  ;;  %v1765_v62 = vsel %vm1763_vm9, %v1764_v58, %v1762_v61  ;;  %v1406_v11 = vmul.f32 %v10888_v56, %v12691_v12  ;;  %v1783_v53 = vadd.f32 1e-08, %v1779_v10 }
 0x3fb   : > { %v10892_v63 = vpop.eup %10891  ;;  %v1781_v6 = vadd.f32 1e-08, %v1765_v62  ;;  %v1405_v7 = vmul.f32 %v10890_v13, %v12693_v40 }
 0x3fc   : > { %v1788_v14 = vmul.f32 %v10892_v63, %v12647_v4  ;;  %v10894_v12 = vpop.eup %10893 }
 0x3fd   : > { %9329 = vmatprep.mubr.msk.f32.mxu1 %vm1318_vm0, %v1405_v7  ;;  %10895 = vrcp.f32 %v1781_v6  ;;  %v1790_v4 = vmul.f32 %v10894_v12, %v12644_v26 }
 0x3fe   : > { %9330 = vmatmul.mubr.msk.f32.vlgmr.msra.gmra.mrb[6].mxu1 %vm1318_vm0, %v1406_v11  ;;  %9337 = vmatmul.mubr.f32.vlgmr.msra.gmra.mrb[8].mxu0 %v1788_v14  ;;  %10897 = vrcp.f32 %v1783_v53  ;;  %v671_v14 = vld [vmem:[#allocation8 + $0x8] sm:$0xff] }
 0x3ff   : > { %9652 = vmatpush3.bf16.xpose.msra.mxu0 %v12557_v45  ;;  %9350 = vmatprep.mubr.msk.f32.mxu0 %vm11986_vm6, %v14856_v55  ;;  %v675_v53 = vld [vmem:[#allocation8 + $0x28] sm:$0xff] }
 0x400   : > { %9649 = vmatpush3.bf16.xpose.msra.mxu1 %v12589_v30  ;;  %9343 = vmatprep.mubr.msk.f32.mxu1 %vm11986_vm6, %v14856_v55 }
 0x401   : > { %9653 = vmatprep.subr.bf16.mxu1 %v14834_v32  ;;  %9656 = vmatprep.subr.bf16.mxu0 %v14834_v32 }
 0x406   : > { %9351 = vmatmul.mubr.f32.vlgmr.msra.gmra.mrb[10].mxu0 %v1790_v4 }
 0x407   : > { %v10896_v40 = vpop.eup %10895  ;;  %9658 = vmatpush3.bf16.msra.mxu0 %v12601_v21  ;;  %9364 = vmatprep.mubr.msk.f32.mxu0 %vm11986_vm6, %v14856_v55 }
 0x408   : > { %v1789_v15 = vmul.f32 %v10896_v40, %v12673_v0  ;;  %9662 = vmatprep.subr.bf16.mxu0 %v14834_v32  ;;  %v10898_v26 = vpop.eup %10897 }
 0x409   : > { %v1791_v16 = vmul.f32 %v10898_v26, %v12666_v51  ;;  %v670_v26 = vld [vmem:[#allocation8] sm:$0xff]  ;;  %v619_v51 = vld [vmem:[#allocation7 + $0x68] sm:$0xff] }
 0x40a   : > { %9344 = vmatmul.mubr.f32.vlgmr.msra.gmra.mrb[8].mxu1 %v1789_v15  ;;  %v12790_v15 = vpack.c.bf16 %v675_v53, %v671_v14 }
 0x40b   : > { %9655 = vmatpush3.bf16.xpose.msra.mxu1 %v12610_v47  ;;  %9357 = vmatprep.mubr.msk.f32.mxu1 %vm11986_vm6, %v14856_v55 }
 0x40c   : > { %9659 = vmatprep.subr.bf16.mxu1 %v14834_v32 }
 0x412   : > { %9358 = vmatmul.mubr.f32.vlgmr.msra.gmra.mrb[10].mxu1 %v1791_v16  ;;  %v674_v16 = vld [vmem:[#allocation8 + $0x20] sm:$0xff] }
 0x413   : > { %9661 = vmatpush3.bf16.msra.mxu1 %v12619_v50  ;;  %9371 = vmatprep.mubr.msk.f32.mxu1 %vm11986_vm6, %v14856_v55 }
 0x414   : > { %9665 = vmatprep.subr.bf16.mxu1 %v14834_v32  ;;  %v626_v32 = vld [vmem:[#allocation7 + $0xa0] sm:$0xff] }
 0x4bc   : > { %v12755_v0 = vpop.f32.mrb[4].mxu0 }
 0x4bd   : > { %v12757_v17 = vpop.f32.mrb[5].mxu0 }
 0x4c5   : > { %v12761_v18 = vpop.f32.mrb[6].mxu0 }
 0x4c6   : > { %v12763_v19 = vpop.f32.mrb[7].mxu0 }
 0x4c9   : > { %v12767_v22 = vpop.f32.mrb[4].mxu1 }
 0x4ca   : > { %v12769_v23 = vpop.f32.mrb[5].mxu1 }
 0x4d1   : > { %v12773_v28 = vpop.f32.mrb[6].mxu1  ;;  %v1858_v29 = vpop.f32.mrb[8].mxu0 }
 0x4d2   : > { %v12775_v3 = vpop.f32.mrb[7].mxu1  ;;  %v9338_v31 = vpop.f32.mrb[9].mxu0  ;;  %v2073_v33 = vsel %vm2072_vm11, %v1858_v29, -inf }
 0x4d3   : > { %2074 = vmax.xlane.f32.xlu0 %v2073_v33  ;;  %v683_v31 = vld [vmem:[#allocation8 + $0x68] sm:$0xff] }
 0x4d9   : > { %v1998_v35 = vpop.f32.mrb[10].mxu0 }
 0x4da   : > { %v9352_v36 = vpop.f32.mrb[11].mxu0  ;;  %v2079_v37 = vsel %vm2072_vm11, %v1998_v35, -inf }
 0x4db   : > { %2080 = vmax.xlane.f32.xlu1 %v2079_v37 }
 0x4dd   : > { %v1928_v24 = vpop.f32.mrb[8].mxu1 }
 0x4de   : > { %v9345_v38 = vpop.f32.mrb[9].mxu1  ;;  %v2076_v41 = vsel %vm2072_vm11, %v1928_v24, -inf }
 0x4df   : > { %2077 = vmax.xlane.f32.xlu0 %v2076_v41  ;;  %v678_v38 = vld [vmem:[#allocation8 + $0x40] sm:$0xff] }
 0x4e0   : > { %v682_v41 = vld [vmem:[#allocation8 + $0x60] sm:$0xff] }
 0x4e5   : > { %v2068_v39 = vpop.f32.mrb[10].mxu1 }
 0x4e6   : > { %v9359_v43 = vpop.f32.mrb[11].mxu1  ;;  %v2082_v27 = vsel %vm2072_vm11, %v2068_v39, -inf }
 0x4e7   : > { %2083 = vmax.xlane.f32.xlu1 %v2082_v27  ;;  %v691_v43 = vld [vmem:[#allocation8 + $0xa8] sm:$0xff]  ;;  %v673_v27 = vld [vmem:[#allocation8 + $0x18] sm:$0xff] }
 0x560   : > { %v2075_v42 = vpop.xlane.xlu0 %2074 }
 0x561   : > { %v2085_v44 = vsub.f32 %v1858_v29, %v2075_v42  ;;  %v679_v29 = vld [vmem:[#allocation8 + $0x48] sm:$0xff]  ;;  %v677_v42 = vld [vmem:[#allocation8 + $0x38] sm:$0xff] }
 0x563   : > { %v2089_v1 = vmul.f32 1.442695, %v2085_v44 }
 0x565   : > { %10899 = vpow2.f32 %v2089_v1  ;;  %v12803_v1 = vpack.c.bf16 %v682_v41, %v678_v38  ;;  %v693_v38 = vld [vmem:[#allocation8 + $0xb8] sm:$0xff] }
 0x568   : > { %v2081_v46 = vpop.xlane.xlu1 %2080 }
 0x569   : > { %v2087_v5 = vsub.f32 %v1998_v35, %v2081_v46  ;;  %v12797_v35 = vpack.c.bf16 %v674_v16, %v670_v26 }
 0x56b   : > { %v2093_v52 = vmul.f32 1.442695, %v2087_v5 }
 0x56c   : > { %v2078_v48 = vpop.xlane.xlu0 %2077 }
 0x56d   : > { %10901 = vpow2.f32 %v2093_v52  ;;  %v2086_v8 = vsub.f32 %v1928_v24, %v2078_v48  ;;  %v12799_v24 = vpack.c.bf16 %v683_v31, %v679_v29  ;;  %v686_v52 = vld [vmem:[#allocation8 + $0x80] sm:$0xff]  ;;  %v680_v29 = vld [vmem:[#allocation8 + $0x50] sm:$0xff] }
 0x56e   : > { %v690_v48 = vld [vmem:[#allocation8 + $0xa0] sm:$0xff]  ;;  %v684_v31 = vld [vmem:[#allocation8 + $0x70] sm:$0xff] }
 0x56f   : > { %v10900_v9 = vpop.eup %10899  ;;  %v2091_v57 = vmul.f32 1.442695, %v2086_v8  ;;  %v695_v8 = vld [vmem:[#allocation8 + $0xc8] sm:$0xff] }
 0x570   : > { %v2097_v58 = vsel %vm2072_vm11, %v10900_v9, 0.0 }
 0x571   : > { %10903 = vpow2.f32 %v2091_v57  ;;  %2098 = vadd.xlane.f32.xlu0 %v2097_v58  ;;  %v12809_v57 = vpack.c.bf16 %v677_v42, %v673_v27  ;;  %v12814_v58 = vpack.c.bf16 %v690_v48, %v686_v52  ;;  %v719_v52 = vld [vmem:[#allocation8 + $0x188] sm:$0xff] }
 0x572   : > { %v723_v48 = vld [vmem:[#allocation8 + $0x1a8] sm:$0xff] }
 0x574   : > { %v2084_v56 = vpop.xlane.xlu1 %2083 }
 0x575   : > { %v2088_v60 = vsub.f32 %v2068_v39, %v2084_v56  ;;  %v687_v39 = vld [vmem:[#allocation8 + $0x88] sm:$0xff]  ;;  %v694_v56 = vld [vmem:[#allocation8 + $0xc0] sm:$0xff] }
 0x576   : > { %v12807_v5 = vpack.c.bf16 %v691_v43, %v687_v39  ;;  %v710_v39 = vld [vmem:[#allocation8 + $0x140] sm:$0xff] }
 0x577   : > { %v10902_v61 = vpop.eup %10901  ;;  %v2095_v13 = vmul.f32 1.442695, %v2088_v60  ;;  %v698_v60 = vld [vmem:[#allocation8 + $0xe0] sm:$0xff] }
 0x578   : > { %v2103_v20 = vsel %vm2072_vm11, %v10902_v61, 0.0  ;;  %v12823_v14 = vpack.c.bf16 %v698_v60, %v694_v56  ;;  %v714_v43 = vld [vmem:[#allocation8 + $0x160] sm:$0xff] }
 0x579   : > { %10905 = vpow2.f32 %v2095_v13  ;;  %2104 = vadd.xlane.f32.xlu1 %v2103_v20  ;;  %v672_v13 = vld [vmem:[#allocation8 + $0x10] sm:$0xff]  ;;  %v12849_v56 = vpack.c.bf16 %v714_v43, %v710_v39 }
 0x57a   : > { %v676_v20 = vld [vmem:[#allocation8 + $0x30] sm:$0xff]  ;;  %15196 = vst [vmem:[#allocation33_spill] sm:$0xff] %v12823_v14 }
 0x57b   : > { %v10904_v62 = vpop.eup %10903  ;;  %v12825_v53 = vpack.c.bf16 %v676_v20, %v672_v13  ;;  %15202 = vst [vmem:[#allocation39_spill] sm:$0xff] %v12849_v56  ;;  %v718_v13 = vld [vmem:[#allocation8 + $0x180] sm:$0xff]  ;;  %v704_v39 = vld [vmem:[#allocation8 + $0x110] sm:$0xff] }
 0x57c   : > { %v2100_v63 = vsel %vm2072_vm11, %v10904_v62, 0.0  ;;  %v722_v20 = vld [vmem:[#allocation8 + $0x1a0] sm:$0xff]  ;;  %v708_v43 = vld [vmem:[#allocation8 + $0x130] sm:$0xff] }
 0x57d   : > { %2101 = vadd.xlane.f32.xlu0 %v2100_v63  ;;  %v707_v63 = vld [vmem:[#allocation8 + $0x128] sm:$0xff] }
 0x583   : > { %v12786_v6 = vpop.eup %10905 }
 0x584   : > { %v2106_v7 = vsel %vm2072_vm11, %v12786_v6, 0.0 }
 0x585   : > { %2107 = vadd.xlane.f32.xlu1 %v2106_v7  ;;  %v681_v7 = vld [vmem:[#allocation8 + $0x58] sm:$0xff] }
 0x5fe   : > { %v2099_v10 = vpop.xlane.xlu0 %2098 }
 0x5ff   : > { %10907 = vrcp.f32 %v2099_v10  ;;  %v685_v10 = vld [vmem:[#allocation8 + $0x78] sm:$0xff] }
 0x600   : > { %v12831_v16 = vpack.c.bf16 %v685_v10, %v681_v7  ;;  %v696_v7 = vld [vmem:[#allocation8 + $0xd0] sm:$0xff] }
 0x601   : > { %v700_v10 = vld [vmem:[#allocation8 + $0xf0] sm:$0xff] }
 0x606   : > { %v2105_v11 = vpop.xlane.xlu1 %2104 }
 0x607   : > { %10909 = vrcp.f32 %v2105_v11 }
 0x609   : > { %v10908_v12 = vpop.eup %10907 }
 0x60a   : > { %v2113_v4 = vmul.f32 %v10908_v12, %v10900_v9  ;;  %v2102_v40 = vpop.xlane.xlu0 %2101  ;;  %v699_v9 = vld [vmem:[#allocation8 + $0xe8] sm:$0xff]  ;;  %v702_v12 = vld [vmem:[#allocation8 + $0x100] sm:$0xff] }
 0x60b   : > { %10911 = vrcp.f32 %v2102_v40 }
 0x60c   : > { %9365 = vmatmul.mubr.msk.f32.vlgmr.msra.gmra.mrb[12].mxu0 %vm1318_vm0, %v2113_v4  ;;  %v706_v4 = vld [vmem:[#allocation8 + $0x120] sm:$0xff] }
 0x60d   : > { %9664 = vmatpush3.bf16.msra.mxu0 %v12615_v49  ;;  %9378 = vmatprep.mubr.msk.f32.mxu0 %vm11986_vm6, %v14856_v55  ;;  %v12836_v41 = vpack.c.bf16 %v706_v4, %v702_v12  ;;  %v731_v12 = vld [vmem:[#allocation8 + $0x1e8] sm:$0xff]  ;;  %v705_v4 = vld [vmem:[#allocation8 + $0x118] sm:$0xff] }
 0x60e   : > { %9669 = vmatprep.subr.bf16.mxu0 %v12790_v15 }
 0x60f   : > { %15198 = vst [vmem:[#allocation35_spill] sm:$0xff] %v12836_v41 }
 0x611   : > { %v10910_v33 = vpop.eup %10909 }
 0x612   : > { %v2115_v36 = vmul.f32 %v10910_v33, %v10902_v61  ;;  %v2108_v37 = vpop.xlane.xlu1 %2107  ;;  %v12819_v61 = vpack.c.bf16 %v699_v9, %v695_v8  ;;  %v711_v33 = vld [vmem:[#allocation8 + $0x148] sm:$0xff]  ;;  %v697_v8 = vld [vmem:[#allocation8 + $0xd8] sm:$0xff] }
 0x613   : > { %10913 = vrcp.f32 %v2108_v37  ;;  %v689_v37 = vld [vmem:[#allocation8 + $0x98] sm:$0xff] }
 0x614   : > { %9379 = vmatmul.mubr.msk.f32.vlgmr.msra.gmra.mrb[14].mxu0 %vm1318_vm0, %v2115_v36  ;;  %v715_v36 = vld [vmem:[#allocation8 + $0x168] sm:$0xff]  ;;  %v12844_v42 = vpack.c.bf16 %v693_v38, %v689_v37  ;;  %v701_v9 = vld [vmem:[#allocation8 + $0xf8] sm:$0xff] }
 0x615   : > { %v10912_v44 = vpop.eup %10911  ;;  %9671 = vmatpush1.bf16.msra.mxu0 %v12797_v35  ;;  %2473 = vmatprep.mubr.f32.mxu0 %v14856_v55  ;;  %v12842_v27 = vpack.c.bf16 %v715_v36, %v711_v33  ;;  %v726_v33 = vld [vmem:[#allocation8 + $0x1c0] sm:$0xff] }
 0x616   : > { %v2114_v46 = vmul.f32 %v10912_v44, %v10904_v62  ;;  %9673 = vmatprep.subr.bf16.mxu0 %v12799_v24  ;;  %v703_v62 = vld [vmem:[#allocation8 + $0x108] sm:$0xff]  ;;  %15201 = vst [vmem:[#allocation38_spill] sm:$0xff] %v12844_v42  ;;  %v688_v44 = vld [vmem:[#allocation8 + $0x90] sm:$0xff]  ;;  %v730_v36 = vld [vmem:[#allocation8 + $0x1e0] sm:$0xff] }
 0x617   : > { %v12829_v26 = vpack.c.bf16 %v707_v63, %v703_v62  ;;  %15200 = vst [vmem:[#allocation37_spill] sm:$0xff] %v12842_v27  ;;  %v12855_v62 = vpack.c.bf16 %v723_v48, %v719_v52  ;;  %v12857_v63 = vpack.c.bf16 %v701_v9, %v697_v8  ;;  %v607_v52 = vld [vmem:[#allocation7 + $0x8] sm:$0xff]  ;;  %v12873_v8 = vpack.c.bf16 %v730_v36, %v726_v33 }
 0x618   : > { %9372 = vmatmul.mubr.msk.f32.vlgmr.msra.gmra.mrb[12].mxu1 %vm1318_vm0, %v2114_v46  ;;  %v692_v46 = vld [vmem:[#allocation8 + $0xb0] sm:$0xff]  ;;  %v611_v48 = vld [vmem:[#allocation7 + $0x28] sm:$0xff]  ;;  %v12875_v9 = vpack.c.bf16 %v708_v43, %v704_v39 }
 0x619   : > { %9675 = vmatpush1.bf16.msra.mxu0 %v12803_v1  ;;  %9667 = vmatpush3.bf16.msra.mxu1 %v12630_v2  ;;  %15197 = vst [vmem:[#allocation34_spill] sm:$0xff] %v12829_v26  ;;  %v12851_v60 = vpack.c.bf16 %v692_v46, %v688_v44  ;;  %15204 = vst [vmem:[#allocation41_spill] sm:$0xff] %v12855_v62  ;;  %v713_v44 = vld [vmem:[#allocation8 + $0x158] sm:$0xff]  ;;  %v720_v39 = vld [vmem:[#allocation8 + $0x190] sm:$0xff] }
 0x61a   : > { %9677 = vmatprep.subr.bf16.mxu0 %v12807_v5  ;;  %9385 = vmatprep.mubr.msk.f32.mxu1 %vm11986_vm6, %v14856_v55  ;;  %15205 = vst [vmem:[#allocation42_spill] sm:$0xff] %v12857_v63  ;;  %v717_v46 = vld [vmem:[#allocation8 + $0x178] sm:$0xff]  ;;  %15210 = vst [vmem:[#allocation47_spill] sm:$0xff] %v12873_v8 }
 0x61b   : > { %9701 = vmatprep.subr.bf16.mxu1 %v12809_v57  ;;  %15203 = vst [vmem:[#allocation40_spill] sm:$0xff] %v12851_v60  ;;  %15211 = vst [vmem:[#allocation48_spill] sm:$0xff] %v12875_v9 }
 0x61d   : > { %v10914_v11 = vpop.eup %10913  ;;  %9679 = vmatpush1.bf16.msra.mxu0 %v12814_v58 }
 0x61e   : > { %v2116_v40 = vmul.f32 %v10914_v11, %v12786_v6  ;;  %9681 = vmatprep.subr.bf16.mxu0 %v12819_v61  ;;  %v12838_v6 = vpack.c.bf16 %v684_v31, %v680_v29  ;;  %v727_v11 = vld [vmem:[#allocation8 + $0x1c8] sm:$0xff]  ;;  %v12861_v29 = vpack.c.bf16 %v722_v20, %v718_v13  ;;  %v12863_v31 = vpack.c.bf16 %v700_v10, %v696_v7  ;;  %v712_v13 = vld [vmem:[#allocation8 + $0x150] sm:$0xff] }
 0x61f   : > { %v12867_v37 = vpack.c.bf16 %v731_v12, %v727_v11  ;;  %v12879_v20 = vpack.c.bf16 %v717_v46, %v713_v44  ;;  %v12881_v7 = vpack.c.bf16 %v611_v48, %v607_v52  ;;  %v716_v10 = vld [vmem:[#allocation8 + $0x170] sm:$0xff]  ;;  %v606_v11 = vld [vmem:[#allocation7] sm:$0xff]  ;;  %v12893_v48 = vpack.c.bf16 %v619_v51, %v615_v34 }
 0x620   : > { %9386 = vmatmul.mubr.msk.f32.vlgmr.msra.gmra.mrb[14].mxu1 %vm1318_vm0, %v2116_v40  ;;  %15199 = vst [vmem:[#allocation36_spill] sm:$0xff] %v12838_v6  ;;  %v709_v40 = vld [vmem:[#allocation8 + $0x138] sm:$0xff]  ;;  %15206 = vst [vmem:[#allocation43_spill] sm:$0xff] %v12861_v29  ;;  %v610_v12 = vld [vmem:[#allocation7 + $0x20] sm:$0xff]  ;;  %v12885_v33 = vpack.c.bf16 %v716_v10, %v712_v13  ;;  %v12904_v51 = vpack.c.bf16 %v733_v54, %v729_v25 }
 0x621   : > { %9683 = vmatpush1.bf16.msra.mxu0 %v12823_v14  ;;  %9703 = vmatpush1.bf16.msra.mxu1 %v12825_v53  ;;  %15207 = vst [vmem:[#allocation44_spill] sm:$0xff] %v12863_v31  ;;  %15208 = vst [vmem:[#allocation45_spill] sm:$0xff] %v12867_v37  ;;  %v12869_v38 = vpack.c.bf16 %v709_v40, %v705_v4  ;;  %v721_v4 = vld [vmem:[#allocation8 + $0x198] sm:$0xff]  ;;  %v12887_v36 = vpack.c.bf16 %v610_v12, %v606_v11  ;;  %v724_v44 = vld [vmem:[#allocation8 + $0x1b0] sm:$0xff] }
 0x622   : > { %9685 = vmatprep.subr.bf16.mxu0 %v12829_v26  ;;  %9705 = vmatprep.subr.bf16.mxu1 %v12831_v16  ;;  %15212 = vst [vmem:[#allocation49_spill] sm:$0xff] %v12879_v20  ;;  %15213 = vst [vmem:[#allocation50_spill] sm:$0xff] %v12881_v7  ;;  %v725_v40 = vld [vmem:[#allocation8 + $0x1b8] sm:$0xff]  ;;  %v614_v46 = vld [vmem:[#allocation7 + $0x40] sm:$0xff]  ;;  %v12898_v11 = vpack.c.bf16 %v724_v44, %v720_v39 }
 0x623   : > { %2586 = vmatprep.mubr.f32.mxu1 %v14856_v55  ;;  %15209 = vst [vmem:[#allocation46_spill] sm:$0xff] %v12869_v38  ;;  %15214 = vst [vmem:[#allocation51_spill] sm:$0xff] %v12885_v33  ;;  %v12891_v43 = vpack.c.bf16 %v725_v40, %v721_v4  ;;  %v618_v52 = vld [vmem:[#allocation7 + $0x60] sm:$0xff]  ;;  %v623_v13 = vld [vmem:[#allocation7 + $0x88] sm:$0xff] }
 0x624   : > { %15215 = vst [vmem:[#allocation52_spill] sm:$0xff] %v12887_v36  ;;  %15217 = vst [vmem:[#allocation54_spill] sm:$0xff] %v12893_v48  ;;  %v627_v10 = vld [vmem:[#allocation7 + $0xa8] sm:$0xff]  ;;  %v12900_v12 = vpack.c.bf16 %v618_v52, %v614_v46  ;;  %v728_v4 = vld [vmem:[#allocation8 + $0x1d0] sm:$0xff] }
 0x625   : > { %9687 = vmatpush1.bf16.msra.mxu0 %v12836_v41  ;;  %9707 = vmatpush1.bf16.msra.mxu1 %v12838_v6  ;;  %15216 = vst [vmem:[#allocation53_spill] sm:$0xff] %v12891_v43  ;;  %15218 = vst [vmem:[#allocation55_spill] sm:$0xff] %v12898_v11  ;;  %v732_v34 = vld [vmem:[#allocation8 + $0x1f0] sm:$0xff]  ;;  %v622_v40 = vld [vmem:[#allocation7 + $0x80] sm:$0xff] }
 0x626   : > { %9689 = vmatprep.subr.bf16.mxu0 %v12842_v27  ;;  %9709 = vmatprep.subr.bf16.mxu1 %v12844_v42  ;;  %15219 = vst [vmem:[#allocation56_spill] sm:$0xff] %v12900_v12  ;;  %15220 = vst [vmem:[#allocation57_spill] sm:$0xff] %v12904_v51  ;;  %v609_v39 = vld [vmem:[#allocation7 + $0x18] sm:$0xff]  ;;  %v12912_v46 = vpack.c.bf16 %v732_v34, %v728_v4  ;;  %v12914_v54 = vpack.c.bf16 %v626_v32, %v622_v40  ;;  %v630_v25 = vld [vmem:[#allocation7 + $0xc0] sm:$0xff] }
 0x627   : > { %v613_v44 = vld [vmem:[#allocation7 + $0x38] sm:$0xff]  ;;  %v643_v4 = vld [vmem:[#allocation7 + $0x128] sm:$0xff] }
 0x628   : > { %15222 = vst [vmem:[#allocation59_spill] sm:$0xff] %v12912_v46  ;;  %15223 = vst [vmem:[#allocation60_spill] sm:$0xff] %v12914_v54  ;;  %v617_v32 = vld [vmem:[#allocation7 + $0x58] sm:$0xff] }
 0x629   : > { %9691 = vmatpush1.bf16.msra.mxu0 %v12849_v56  ;;  %9711 = vmatpush1.bf16.msra.mxu1 %v12851_v60  ;;  %v621_v34 = vld [vmem:[#allocation7 + $0x78] sm:$0xff] }
 0x62a   : > { %9693 = vmatprep.subr.bf16.mxu0 %v12855_v62  ;;  %9713 = vmatprep.subr.bf16.mxu1 %v12857_v63 }
 0x62d   : > { %9695 = vmatpush1.bf16.msra.mxu0 %v12861_v29  ;;  %9715 = vmatpush1.bf16.msra.mxu1 %v12863_v31  ;;  %v757_v31 = vld [vmem:[#allocation11 + $0xb8] sm:$0xff] }
 0x62e   : > { %9697 = vmatprep.subr.bf16.mxu0 %v12867_v37  ;;  %9717 = vmatprep.subr.bf16.mxu1 %v12869_v38  ;;  %v755_v38 = vld [vmem:[#allocation11 + $0xa8] sm:$0xff] }
 0x631   : > { %9699 = vmatpush1.bf16.msra.mxu0 %v12873_v8  ;;  %9719 = vmatpush1.bf16.msra.mxu1 %v12875_v9  ;;  %v751_v9 = vld [vmem:[#allocation11 + $0x88] sm:$0xff]  ;;  %v753_v8 = vld [vmem:[#allocation11 + $0x98] sm:$0xff] }
 0x632   : > { %9721 = vmatprep.subr.bf16.mxu1 %v12879_v20  ;;  %9733 = vmatprep.subr.bf16.mxu0 %v12881_v7  ;;  %v12907_v20 = vpack.c.bf16 %v627_v10, %v623_v13  ;;  %v634_v13 = vld [vmem:[#allocation7 + $0xe0] sm:$0xff]  ;;  %v608_v10 = vld [vmem:[#allocation7 + $0x10] sm:$0xff] }
 0x633   : > { %v12926_v40 = vpack.c.bf16 %v634_v13, %v630_v25  ;;  %v625_v25 = vld [vmem:[#allocation7 + $0x98] sm:$0xff] }
 0x634   : > { %2474 = vmatmul.mubr.f32.vlgmr.msra.gmra.mrb[16].mxu0 %v12757_v17  ;;  %15221 = vst [vmem:[#allocation58_spill] sm:$0xff] %v12907_v20  ;;  %v629_v13 = vld [vmem:[#allocation7 + $0xb8] sm:$0xff] }
 0x635   : > { %9723 = vmatpush1.bf16.msra.mxu1 %v12885_v33  ;;  %9735 = vmatpush1.bf16.msra.mxu0 %v12887_v36  ;;  %v631_v33 = vld [vmem:[#allocation7 + $0xc8] sm:$0xff]  ;;  %15226 = vst [vmem:[#allocation63_spill] sm:$0xff] %v12926_v40 }
 0x636   : > { %2479 = vmatprep.mubr.f32.mxu0 %v14856_v55  ;;  %9725 = vmatprep.subr.bf16.mxu1 %v12891_v43  ;;  %v635_v36 = vld [vmem:[#allocation7 + $0xe8] sm:$0xff]  ;;  %v612_v43 = vld [vmem:[#allocation7 + $0x30] sm:$0xff] }
 0x637   : > { %9737 = vmatprep.subr.bf16.mxu0 %v12893_v48  ;;  %v12918_v52 = vpack.c.bf16 %v635_v36, %v631_v33  ;;  %v12921_v48 = vpack.c.bf16 %v613_v44, %v609_v39  ;;  %v12928_v33 = vpack.c.bf16 %v612_v43, %v608_v10  ;;  %v638_v36 = vld [vmem:[#allocation7 + $0x100] sm:$0xff]  ;;  %v616_v44 = vld [vmem:[#allocation7 + $0x50] sm:$0xff]  ;;  %v651_v43 = vld [vmem:[#allocation7 + $0x168] sm:$0xff] }
 0x638   : > { %2480 = vmatmul.mubr.f32.gmra.mrb[18].mxu0 %v12755_v0  ;;  %v642_v39 = vld [vmem:[#allocation7 + $0x120] sm:$0xff] }
 0x639   : > { %9727 = vmatpush1.bf16.msra.mxu1 %v12898_v11  ;;  %9739 = vmatpush1.bf16.msra.mxu0 %v12900_v12  ;;  %15224 = vst [vmem:[#allocation61_spill] sm:$0xff] %v12918_v52  ;;  %15225 = vst [vmem:[#allocation62_spill] sm:$0xff] %v12921_v48  ;;  %v639_v11 = vld [vmem:[#allocation7 + $0x108] sm:$0xff]  ;;  %v12935_v12 = vpack.c.bf16 %v621_v34, %v617_v32  ;;  %v12941_v10 = vpack.c.bf16 %v642_v39, %v638_v36  ;;  %v650_v32 = vld [vmem:[#allocation7 + $0x160] sm:$0xff] }
 0x63a   : > { %2485 = vmatprep.mubr.f32.mxu0 %v14856_v55  ;;  %9729 = vmatprep.subr.bf16.mxu1 %v12904_v51  ;;  %15227 = vst [vmem:[#allocation64_spill] sm:$0xff] %v12928_v33  ;;  %v620_v51 = vld [vmem:[#allocation7 + $0x70] sm:$0xff]  ;;  %v655_v36 = vld [vmem:[#allocation7 + $0x188] sm:$0xff]  ;;  %v633_v39 = vld [vmem:[#allocation7 + $0xd8] sm:$0xff] }
 0x63b   : > { %9741 = vmatprep.subr.bf16.mxu0 %v12907_v20  ;;  %v12933_v20 = vpack.c.bf16 %v643_v4, %v639_v11  ;;  %15229 = vst [vmem:[#allocation66_spill] sm:$0xff] %v12935_v12  ;;  %15230 = vst [vmem:[#allocation67_spill] sm:$0xff] %v12941_v10  ;;  %v646_v11 = vld [vmem:[#allocation7 + $0x140] sm:$0xff]  ;;  %v15232_v4 = vmov 0.0   ;;  %v624_v34 = vld [vmem:[#allocation7 + $0x90] sm:$0xff] }
 0x63c   : > { %2486 = vmatmul.mubr.f32.gmra.mrb[20].mxu0 %v12769_v23 }
 0x63d   : > { %9731 = vmatpush1.bf16.msra.mxu1 %v12912_v46  ;;  %9743 = vmatpush1.bf16.msra.mxu0 %v12914_v54  ;;  %15228 = vst [vmem:[#allocation65_spill] sm:$0xff] %v12933_v20  ;;  %v647_v46 = vld [vmem:[#allocation7 + $0x148] sm:$0xff] }
 0x63e   : > { %2491 = vmatprep.mubr.f32.mxu0 %v14856_v55  ;;  %9745 = vmatprep.subr.bf16.mxu0 %v12918_v52  ;;  %v12943_v55 = vpack.c.bf16 %v620_v51, %v616_v44  ;;  %v12949_v52 = vpack.c.bf16 %v651_v43, %v647_v46  ;;  %v659_v51 = vld [vmem:[#allocation7 + $0x1a8] sm:$0xff]  ;;  %v637_v44 = vld [vmem:[#allocation7 + $0xf8] sm:$0xff]  ;;  %v654_v46 = vld [vmem:[#allocation7 + $0x180] sm:$0xff] }
 0x63f   : > { %9765 = vmatprep.subr.bf16.mxu1 %v12921_v48  ;;  %v628_v48 = vld [vmem:[#allocation7 + $0xb0] sm:$0xff]  ;;  %v658_v43 = vld [vmem:[#allocation7 + $0x1a0] sm:$0xff] }
 0x640   : > { %2492 = vmatmul.mubr.f32.gmra.mrb[22].mxu0 %v12767_v22  ;;  %2587 = vmatmul.mubr.f32.vlgmr.msra.gmra.mrb[16].mxu1 %v12757_v17  ;;  %15231 = vst [vmem:[#allocation68_spill] sm:$0xff] %v12943_v55  ;;  %15233 = vst [vmem:[#allocation69_spill] sm:$0xff] %v12949_v52  ;;  %v835_v54 = vld [vmem:[#allocation13 + $0x128] sm:$0xff] }
 0x641   : > { %9747 = vmatpush1.bf16.msra.mxu0 %v12926_v40  ;;  %9767 = vmatpush1.bf16.msra.mxu1 %v12928_v33  ;;  %v12951_v40 = vpack.c.bf16 %v629_v13, %v625_v25  ;;  %v12957_v33 = vpack.c.bf16 %v650_v32, %v646_v11  ;;  %v632_v25 = vld [vmem:[#allocation7 + $0xd0] sm:$0xff]  ;;  %v663_v11 = vld [vmem:[#allocation7 + $0x1c8] sm:$0xff]  ;;  %v641_v32 = vld [vmem:[#allocation7 + $0x118] sm:$0xff] }
 0x642   : > { %2497 = vmatprep.mubr.f32.mxu0 %v15232_v4  ;;  %2592 = vmatprep.mubr.f32.mxu1 %v15232_v4  ;;  %v636_v13 = vld [vmem:[#allocation7 + $0xf0] sm:$0xff] }
 0x643   : > { %9749 = vmatprep.subr.bf16.mxu0 %v12933_v20  ;;  %9769 = vmatprep.subr.bf16.mxu1 %v12935_v12  ;;  %15234 = vst [vmem:[#allocation70_spill] sm:$0xff] %v12951_v40  ;;  %15235 = vst [vmem:[#allocation71_spill] sm:$0xff] %v12957_v33  ;;  %v12959_v20 = vpack.c.bf16 %v628_v48, %v624_v34  ;;  %v12965_v12 = vpack.c.bf16 %v659_v51, %v655_v36  ;;  %v667_v48 = vld [vmem:[#allocation7 + $0x1e8] sm:$0xff]  ;;  %v645_v34 = vld [vmem:[#allocation7 + $0x138] sm:$0xff] }
 0x644   : > { %2498 = vmatmul.mubr.f32.gmra.mrb[24].mxu0 %v12763_v19  ;;  %2593 = vmatmul.mubr.f32.gmra.mrb[18].mxu1 %v12755_v0  ;;  %v662_v36 = vld [vmem:[#allocation7 + $0x1c0] sm:$0xff] }
 0x645   : > { %9751 = vmatpush1.bf16.msra.mxu0 %v12941_v10  ;;  %9771 = vmatpush1.bf16.msra.mxu1 %v12943_v55  ;;  %15236 = vst [vmem:[#allocation72_spill] sm:$0xff] %v12959_v20  ;;  %15237 = vst [vmem:[#allocation73_spill] sm:$0xff] %v12965_v12  ;;  %v12967_v10 = vpack.c.bf16 %v637_v44, %v633_v39  ;;  %v12973_v55 = vpack.c.bf16 %v658_v43, %v654_v46  ;;  %v666_v51 = vld [vmem:[#allocation7 + $0x1e0] sm:$0xff]  ;;  %v640_v39 = vld [vmem:[#allocation7 + $0x110] sm:$0xff] }
 0x646   : > { %2503 = vmatprep.mubr.f32.mxu0 %v15232_v4  ;;  %2598 = vmatprep.mubr.f32.mxu1 %v15232_v4  ;;  %v644_v44 = vld [vmem:[#allocation7 + $0x130] sm:$0xff]  ;;  %v649_v46 = vld [vmem:[#allocation7 + $0x158] sm:$0xff] }
 0x647   : > { %9753 = vmatprep.subr.bf16.mxu0 %v12949_v52  ;;  %9773 = vmatprep.subr.bf16.mxu1 %v12951_v40  ;;  %15238 = vst [vmem:[#allocation74_spill] sm:$0xff] %v12967_v10  ;;  %15239 = vst [vmem:[#allocation75_spill] sm:$0xff] %v12973_v55  ;;  %v12975_v52 = vpack.c.bf16 %v636_v13, %v632_v25  ;;  %v12981_v40 = vpack.c.bf16 %v667_v48, %v663_v11  ;;  %v653_v43 = vld [vmem:[#allocation7 + $0x178] sm:$0xff]  ;;  %v799_v25 = vld [vmem:[#allocation13 + $0x8] sm:$0xff] }
 0x648   : > { %2504 = vmatmul.mubr.f32.gmra.mrb[26].mxu0 %v12761_v18  ;;  %2599 = vmatmul.mubr.f32.gmra.mrb[20].mxu1 %v12769_v23  ;;  %v803_v13 = vld [vmem:[#allocation13 + $0x28] sm:$0xff] }
 0x649   : > { %9755 = vmatpush1.bf16.msra.mxu0 %v12957_v33  ;;  %9775 = vmatpush1.bf16.msra.mxu1 %v12959_v20  ;;  %15240 = vst [vmem:[#allocation76_spill] sm:$0xff] %v12975_v52  ;;  %15241 = vst [vmem:[#allocation77_spill] sm:$0xff] %v12981_v40  ;;  %v12983_v33 = vpack.c.bf16 %v645_v34, %v641_v32  ;;  %v12989_v20 = vpack.c.bf16 %v666_v51, %v662_v36  ;;  %v648_v11 = vld [vmem:[#allocation7 + $0x150] sm:$0xff]  ;;  %v657_v34 = vld [vmem:[#allocation7 + $0x198] sm:$0xff] }
 0x64a   : > { %2509 = vmatprep.mubr.f32.mxu0 %v15232_v4  ;;  %2604 = vmatprep.mubr.f32.mxu1 %v15232_v4  ;;  %v652_v48 = vld [vmem:[#allocation7 + $0x170] sm:$0xff]  ;;  %v12997_v32 = vpack.c.bf16 %v653_v43, %v649_v46  ;;  %v798_v36 = vld [vmem:[#allocation13] sm:$0xff] }
 0x64b   : > { %9757 = vmatprep.subr.bf16.mxu0 %v12965_v12  ;;  %9777 = vmatprep.subr.bf16.mxu1 %v12967_v10  ;;  %15242 = vst [vmem:[#allocation78_spill] sm:$0xff] %v12983_v33  ;;  %15243 = vst [vmem:[#allocation79_spill] sm:$0xff] %v12989_v20  ;;  %v12991_v12 = vpack.c.bf16 %v644_v44, %v640_v39  ;;  %v661_v10 = vld [vmem:[#allocation7 + $0x1b8] sm:$0xff]  ;;  %v802_v51 = vld [vmem:[#allocation13 + $0x20] sm:$0xff]  ;;  %v13005_v39 = vpack.c.bf16 %v652_v48, %v648_v11 }
 0x64c   : > { %2510 = vmatmul.mubr.f32.gmra.mrb[28].mxu0 %v12775_v3  ;;  %2605 = vmatmul.mubr.f32.gmra.mrb[22].mxu1 %v12767_v22  ;;  %15245 = vst [vmem:[#allocation81_spill] sm:$0xff] %v12997_v32  ;;  %v13009_v44 = vpack.c.bf16 %v661_v10, %v657_v34  ;;  %v656_v46 = vld [vmem:[#allocation7 + $0x190] sm:$0xff] }
 0x64d   : > { %9759 = vmatpush1.bf16.msra.mxu0 %v12973_v55  ;;  %9779 = vmatpush1.bf16.msra.mxu1 %v12975_v52  ;;  %15244 = vst [vmem:[#allocation80_spill] sm:$0xff] %v12991_v12  ;;  %v12999_v55 = vpack.c.bf16 %v803_v13, %v799_v25  ;;  %15247 = vst [vmem:[#allocation83_spill] sm:$0xff] %v13005_v39  ;;  %v660_v43 = vld [vmem:[#allocation7 + $0x1b0] sm:$0xff]  ;;  %v665_v25 = vld [vmem:[#allocation7 + $0x1d8] sm:$0xff] }
 0x64e   : > { %2515 = vmatprep.mubr.f32.mxu0 %v15232_v4  ;;  %2610 = vmatprep.mubr.f32.mxu1 %v15232_v4  ;;  %15248 = vst [vmem:[#allocation84_spill] sm:$0xff] %v13009_v44  ;;  %v669_v13 = vld [vmem:[#allocation7 + $0x1f8] sm:$0xff]  ;;  %v807_v11 = vld [vmem:[#allocation13 + $0x48] sm:$0xff]  ;;  %v13019_v10 = vpack.c.bf16 %v660_v43, %v656_v46  ;;  %v806_v46 = vld [vmem:[#allocation13 + $0x40] sm:$0xff] }
 0x64f   : > { %9761 = vmatprep.subr.bf16.mxu0 %v12981_v40  ;;  %9781 = vmatprep.subr.bf16.mxu1 %v12983_v33  ;;  %15246 = vst [vmem:[#allocation82_spill] sm:$0xff] %v12999_v55  ;;  %v13013_v33 = vpack.c.bf16 %v802_v51, %v798_v36  ;;  %v811_v48 = vld [vmem:[#allocation13 + $0x68] sm:$0xff]  ;;  %v13023_v34 = vpack.c.bf16 %v669_v13, %v665_v25  ;;  %v810_v43 = vld [vmem:[#allocation13 + $0x60] sm:$0xff] }
 0x650   : > { %2516 = vmatmul.mubr.f32.gmra.mrb[30].mxu0 %v12773_v28  ;;  %2611 = vmatmul.mubr.f32.gmra.mrb[24].mxu1 %v12763_v19  ;;  %15250 = vst [vmem:[#allocation86_spill] sm:$0xff] %v13019_v10  ;;  %v664_v36 = vld [vmem:[#allocation7 + $0x1d0] sm:$0xff] }
 0x651   : > { %9763 = vmatpush1.bf16.msra.mxu0 %v12989_v20  ;;  %9783 = vmatpush1.bf16.msra.mxu1 %v12991_v12  ;;  %15249 = vst [vmem:[#allocation85_spill] sm:$0xff] %v13013_v33  ;;  %15251 = vst [vmem:[#allocation87_spill] sm:$0xff] %v13023_v34  ;;  %v668_v51 = vld [vmem:[#allocation7 + $0x1f0] sm:$0xff]  ;;  %v805_v12 = vld [vmem:[#allocation13 + $0x38] sm:$0xff] }
 0x652   : > { %2616 = vmatprep.mubr.f32.mxu1 %v15232_v4  ;;  %2699 = vmatprep.mubr.f32.mxu0 %v15232_v4  ;;  %v13032_v25 = vpack.c.bf16 %v668_v51, %v664_v36  ;;  %v819_v20 = vld [vmem:[#allocation13 + $0xa8] sm:$0xff]  ;;  %v813_v36 = vld [vmem:[#allocation13 + $0x78] sm:$0xff]  ;;  %v814_v51 = vld [vmem:[#allocation13 + $0x80] sm:$0xff] }
 0x653   : > { %9785 = vmatprep.subr.bf16.mxu1 %v12997_v32  ;;  %9797 = vmatprep.subr.bf16.mxu0 %v12999_v55  ;;  %v801_v32 = vld [vmem:[#allocation13 + $0x18] sm:$0xff]  ;;  %v13026_v55 = vpack.c.bf16 %v811_v48, %v807_v11  ;;  %v800_v11 = vld [vmem:[#allocation13 + $0x10] sm:$0xff]  ;;  %v823_v40 = vld [vmem:[#allocation13 + $0xc8] sm:$0xff] }
 0x654   : > { %2617 = vmatmul.mubr.f32.gmra.mrb[26].mxu1 %v12761_v18  ;;  %2700 = vmatmul.mubr.f32.vlgmr.msra.gmra.mrb[16].mxu0 %v15232_v4  ;;  %15253 = vst [vmem:[#allocation89_spill] sm:$0xff] %v13032_v25  ;;  %v13036_v13 = vpack.c.bf16 %v805_v12, %v801_v32  ;;  %v804_v48 = vld [vmem:[#allocation13 + $0x30] sm:$0xff] }
 0x655   : > { %9787 = vmatpush1.bf16.msra.mxu1 %v13005_v39  ;;  %2622 = vmatprep.mubr.f32.mxu1 %v15232_v4  ;;  %15252 = vst [vmem:[#allocation88_spill] sm:$0xff] %v13026_v55  ;;  %v13039_v39 = vpack.c.bf16 %v810_v43, %v806_v46  ;;  %v13047_v12 = vpack.c.bf16 %v804_v48, %v800_v11  ;;  %v808_v43 = vld [vmem:[#allocation13 + $0x50] sm:$0xff] }
 0x656   : > { %2705 = vmatprep.mubr.f32.mxu0 %v15232_v4  ;;  %9789 = vmatprep.subr.bf16.mxu1 %v13009_v44  ;;  %15254 = vst [vmem:[#allocation90_spill] sm:$0xff] %v13036_v13  ;;  %v809_v44 = vld [vmem:[#allocation13 + $0x58] sm:$0xff] }
 0x657   : > { %9799 = vmatpush1.bf16.msra.mxu0 %v13013_v33  ;;  %15255 = vst [vmem:[#allocation91_spill] sm:$0xff] %v13039_v39  ;;  %v815_v33 = vld [vmem:[#allocation13 + $0x88] sm:$0xff]  ;;  %15256 = vst [vmem:[#allocation92_spill] sm:$0xff] %v13047_v12  ;;  %v13051_v46 = vpack.c.bf16 %v813_v36, %v809_v44  ;;  %v820_v36 = vld [vmem:[#allocation13 + $0xb0] sm:$0xff] }
 0x658   : > { %2623 = vmatmul.mubr.f32.gmra.mrb[28].mxu1 %v12775_v3  ;;  %2706 = vmatmul.mubr.f32.gmra.mrb[18].mxu0 %v15232_v4  ;;  %v13049_v32 = vpack.c.bf16 %v819_v20, %v815_v33  ;;  %v822_v20 = vld [vmem:[#allocation13 + $0xc0] sm:$0xff] }
 0x659   : > { %9791 = vmatpush1.bf16.msra.mxu1 %v13019_v10  ;;  %2628 = vmatprep.mubr.f32.mxu1 %v15232_v4  ;;  %v818_v10 = vld [vmem:[#allocation13 + $0xa0] sm:$0xff]  ;;  %15258 = vst [vmem:[#allocation94_spill] sm:$0xff] %v13051_v46 }
 0x65a   : > { %2711 = vmatprep.mubr.f32.mxu0 %v15232_v4  ;;  %9793 = vmatprep.subr.bf16.mxu1 %v13023_v34  ;;  %15257 = vst [vmem:[#allocation93_spill] sm:$0xff] %v13049_v32  ;;  %v812_v34 = vld [vmem:[#allocation13 + $0x70] sm:$0xff]  ;;  %v13054_v52 = vpack.c.bf16 %v818_v10, %v814_v51  ;;  %v826_v33 = vld [vmem:[#allocation13 + $0xe0] sm:$0xff] }
 0x65b   : > { %9801 = vmatprep.subr.bf16.mxu0 %v13026_v55  ;;  %v817_v55 = vld [vmem:[#allocation13 + $0x98] sm:$0xff]  ;;  %v13061_v44 = vpack.c.bf16 %v812_v34, %v808_v43  ;;  %v816_v10 = vld [vmem:[#allocation13 + $0x90] sm:$0xff]  ;;  %v13070_v51 = vpack.c.bf16 %v826_v33, %v822_v20 }
 0x65c   : > { %2629 = vmatmul.mubr.f32.gmra.mrb[30].mxu1 %v12773_v28  ;;  %2712 = vmatmul.mubr.f32.gmra.mrb[20].mxu0 %v15232_v4  ;;  %15259 = vst [vmem:[#allocation95_spill] sm:$0xff] %v13054_v52  ;;  %v825_v34 = vld [vmem:[#allocation13 + $0xd8] sm:$0xff]  ;;  %v828_v20 = vld [vmem:[#allocation13 + $0xf0] sm:$0xff] }
 0x65d   : > { %9795 = vmatpush1.bf16.msra.mxu1 %v13032_v25  ;;  %2717 = vmatprep.mubr.f32.mxu0 %v15232_v4  ;;  %v821_v25 = vld [vmem:[#allocation13 + $0xb8] sm:$0xff]  ;;  %15260 = vst [vmem:[#allocation96_spill] sm:$0xff] %v13061_v44  ;;  %15263 = vst [vmem:[#allocation99_spill] sm:$0xff] %v13070_v51 }
 0x65e   : > { %2812 = vmatprep.mubr.f32.mxu1 %v15232_v4  ;;  %9829 = vmatprep.subr.bf16.mxu1 %v13036_v13  ;;  %v827_v13 = vld [vmem:[#allocation13 + $0xe8] sm:$0xff]  ;;  %v13067_v48 = vpack.c.bf16 %v821_v25, %v817_v55  ;;  %v829_v43 = vld [vmem:[#allocation13 + $0xf8] sm:$0xff]  ;;  %v13077_v55 = vpack.c.bf16 %v820_v36, %v816_v10  ;;  %v830_v10 = vld [vmem:[#allocation13 + $0x100] sm:$0xff] }
 0x65f   : > { %9803 = vmatpush1.bf16.msra.mxu0 %v13039_v39  ;;  %v13064_v11 = vpack.c.bf16 %v827_v13, %v823_v40  ;;  %v831_v39 = vld [vmem:[#allocation13 + $0x108] sm:$0xff]  ;;  %v13083_v25 = vpack.c.bf16 %v829_v43, %v825_v34  ;;  %v824_v13 = vld [vmem:[#allocation13 + $0xd0] sm:$0xff]  ;;  %v833_v33 = vld [vmem:[#allocation13 + $0x118] sm:$0xff] }
 0x660   : > { %2718 = vmatmul.mubr.f32.gmra.mrb[22].mxu0 %v15232_v4  ;;  %2813 = vmatmul.mubr.f32.vlgmr.msra.gmra.mrb[16].mxu1 %v15232_v4  ;;  %15262 = vst [vmem:[#allocation98_spill] sm:$0xff] %v13067_v48  ;;  %15264 = vst [vmem:[#allocation100_spill] sm:$0xff] %v13077_v55  ;;  %v13080_v40 = vpack.c.bf16 %v835_v54, %v831_v39  ;;  %v834_v36 = vld [vmem:[#allocation13 + $0x120] sm:$0xff]  ;;  %v839_v39 = vld [vmem:[#allocation13 + $0x148] sm:$0xff]  ;;  %v13093_v43 = vpack.c.bf16 %v828_v20, %v824_v13 }
 0x661   : > { %2723 = vmatprep.mubr.f32.mxu0 %v15232_v4  ;;  %2818 = vmatprep.mubr.f32.mxu1 %v15232_v4  ;;  %15261 = vst [vmem:[#allocation97_spill] sm:$0xff] %v13064_v11  ;;  %15266 = vst [vmem:[#allocation102_spill] sm:$0xff] %v13083_v25  ;;  %v13090_v54 = vpack.c.bf16 %v834_v36, %v830_v10  ;;  %v843_v34 = vld [vmem:[#allocation13 + $0x168] sm:$0xff]  ;;  %v836_v10 = vld [vmem:[#allocation13 + $0x130] sm:$0xff] }
 0x662   : > { %9831 = vmatpush1.bf16.msra.mxu1 %v13047_v12  ;;  %9805 = vmatprep.subr.bf16.mxu0 %v13049_v32  ;;  %15265 = vst [vmem:[#allocation101_spill] sm:$0xff] %v13080_v40  ;;  %15268 = vst [vmem:[#allocation104_spill] sm:$0xff] %v13093_v43  ;;  %v842_v36 = vld [vmem:[#allocation13 + $0x160] sm:$0xff]  ;;  %v841_v13 = vld [vmem:[#allocation13 + $0x158] sm:$0xff] }
 0x663   : > { %9833 = vmatprep.subr.bf16.mxu1 %v13051_v46  ;;  %9807 = vmatpush1.bf16.msra.mxu0 %v13054_v52  ;;  %15267 = vst [vmem:[#allocation103_spill] sm:$0xff] %v13090_v54  ;;  %v838_v46 = vld [vmem:[#allocation13 + $0x140] sm:$0xff]  ;;  %v845_v20 = vld [vmem:[#allocation13 + $0x178] sm:$0xff]  ;;  %v748_v32 = vld [vmem:[#allocation11 + $0x70] sm:$0xff] }
 0x664   : > { %2724 = vmatmul.mubr.f32.gmra.mrb[24].mxu0 %v15232_v4  ;;  %2819 = vmatmul.mubr.f32.gmra.mrb[18].mxu1 %v15232_v4 }
 0x665   : > { %2729 = vmatprep.mubr.f32.mxu0 %v15232_v4  ;;  %2824 = vmatprep.mubr.f32.mxu1 %v15232_v4 }
 0x666   : > { %9835 = vmatpush1.bf16.msra.mxu1 %v13061_v44  ;;  %9809 = vmatprep.subr.bf16.mxu0 %v13064_v11  ;;  %v837_v44 = vld [vmem:[#allocation13 + $0x138] sm:$0xff] }
 0x667   : > { %9837 = vmatprep.subr.bf16.mxu1 %v13067_v48  ;;  %9811 = vmatpush1.bf16.msra.mxu0 %v13070_v51  ;;  %v13096_v48 = vpack.c.bf16 %v843_v34, %v839_v39  ;;  %v13099_v12 = vpack.c.bf16 %v837_v44, %v833_v33  ;;  %v832_v51 = vld [vmem:[#allocation13 + $0x110] sm:$0xff]  ;;  %v847_v39 = vld [vmem:[#allocation13 + $0x188] sm:$0xff] }
 0x668   : > { %2730 = vmatmul.mubr.f32.gmra.mrb[26].mxu0 %v15232_v4  ;;  %2825 = vmatmul.mubr.f32.gmra.mrb[20].mxu1 %v15232_v4  ;;  %v13109_v44 = vpack.c.bf16 %v836_v10, %v832_v51  ;;  %v840_v33 = vld [vmem:[#allocation13 + $0x150] sm:$0xff]  ;;  %v851_v34 = vld [vmem:[#allocation13 + $0x1a8] sm:$0xff]  ;;  %v849_v51 = vld [vmem:[#allocation13 + $0x198] sm:$0xff] }
 0x669   : > { %2735 = vmatprep.mubr.f32.mxu0 %v15232_v4  ;;  %2830 = vmatprep.mubr.f32.mxu1 %v15232_v4  ;;  %15269 = vst [vmem:[#allocation105_spill] sm:$0xff] %v13096_v48  ;;  %15270 = vst [vmem:[#allocation106_spill] sm:$0xff] %v13099_v12  ;;  %v853_v10 = vld [vmem:[#allocation13 + $0x1b8] sm:$0xff] }
 0x66a   : > { %9839 = vmatpush1.bf16.msra.mxu1 %v13077_v55  ;;  %9813 = vmatprep.subr.bf16.mxu0 %v13080_v40  ;;  %v13104_v55 = vpack.c.bf16 %v842_v36, %v838_v46  ;;  %15272 = vst [vmem:[#allocation108_spill] sm:$0xff] %v13109_v44  ;;  %v844_v46 = vld [vmem:[#allocation13 + $0x170] sm:$0xff]  ;;  %v13116_v36 = vpack.c.bf16 %v851_v34, %v847_v39  ;;  %v850_v40 = vld [vmem:[#allocation13 + $0x1a0] sm:$0xff] }
 0x66b   : > { %9841 = vmatprep.subr.bf16.mxu1 %v13083_v25  ;;  %9815 = vmatpush1.bf16.msra.mxu0 %v13090_v54  ;;  %v13113_v25 = vpack.c.bf16 %v845_v20, %v841_v13  ;;  %v846_v54 = vld [vmem:[#allocation13 + $0x180] sm:$0xff]  ;;  %v859_v13 = vld [vmem:[#allocation13 + $0x1e8] sm:$0xff]  ;;  %v13125_v20 = vpack.c.bf16 %v844_v46, %v840_v33  ;;  %v13131_v34 = vpack.c.bf16 %v853_v10, %v849_v51 }
 0x66c   : > { %2736 = vmatmul.mubr.f32.gmra.mrb[28].mxu0 %v15232_v4  ;;  %2831 = vmatmul.mubr.f32.gmra.mrb[22].mxu1 %v15232_v4  ;;  %15271 = vst [vmem:[#allocation107_spill] sm:$0xff] %v13104_v55  ;;  %15274 = vst [vmem:[#allocation110_spill] sm:$0xff] %v13116_v36  ;;  %v858_v33 = vld [vmem:[#allocation13 + $0x1e0] sm:$0xff]  ;;  %v735_v10 = vld [vmem:[#allocation11 + $0x8] sm:$0xff] }
 0x66d   : > { %2741 = vmatprep.mubr.f32.mxu0 %v15232_v4  ;;  %2836 = vmatprep.mubr.f32.mxu1 %v15232_v4  ;;  %15273 = vst [vmem:[#allocation109_spill] sm:$0xff] %v13113_v25  ;;  %15276 = vst [vmem:[#allocation112_spill] sm:$0xff] %v13125_v20 }
 0x66e   : > { %9843 = vmatpush1.bf16.msra.mxu1 %v13093_v43  ;;  %9817 = vmatprep.subr.bf16.mxu0 %v13096_v48  ;;  %v13120_v43 = vpack.c.bf16 %v850_v40, %v846_v54  ;;  %v855_v48 = vld [vmem:[#allocation13 + $0x1c8] sm:$0xff]  ;;  %15278 = vst [vmem:[#allocation114_spill] sm:$0xff] %v13131_v34  ;;  %v848_v40 = vld [vmem:[#allocation13 + $0x190] sm:$0xff] }
 0x66f   : > { %9845 = vmatprep.subr.bf16.mxu1 %v13099_v12  ;;  %9819 = vmatpush1.bf16.msra.mxu0 %v13104_v55  ;;  %v13127_v39 = vpack.c.bf16 %v859_v13, %v855_v48  ;;  %v852_v54 = vld [vmem:[#allocation13 + $0x1b0] sm:$0xff]  ;;  %v857_v12 = vld [vmem:[#allocation13 + $0x1d8] sm:$0xff]  ;;  %v854_v48 = vld [vmem:[#allocation13 + $0x1c0] sm:$0xff] }
 0x670   : > { %2742 = vmatmul.mubr.f32.gmra.mrb[30].mxu0 %v15232_v4  ;;  %2837 = vmatmul.mubr.f32.gmra.mrb[24].mxu1 %v15232_v4  ;;  %15275 = vst [vmem:[#allocation111_spill] sm:$0xff] %v13120_v43  ;;  %v13138_v46 = vpack.c.bf16 %v852_v54, %v848_v40  ;;  %v13140_v51 = vpack.c.bf16 %v858_v33, %v854_v48  ;;  %v739_v13 = vld [vmem:[#allocation11 + $0x28] sm:$0xff]  ;;  %v737_v55 = vld [vmem:[#allocation11 + $0x18] sm:$0xff] }
 0x671   : > { %2842 = vmatprep.mubr.f32.mxu1 %v15232_v4  ;;  %9821 = vmatprep.subr.bf16.mxu0 %v13116_v36  ;;  %15277 = vst [vmem:[#allocation113_spill] sm:$0xff] %v13127_v39  ;;  %v13145_v36 = vpack.c.bf16 %v739_v13, %v735_v10 }
 0x672   : > { %9847 = vmatpush1.bf16.msra.mxu1 %v13109_v44  ;;  %3163 = vmatprep.mubr.f32.mxu0 %v15232_v4  ;;  %v861_v44 = vld [vmem:[#allocation13 + $0x1f8] sm:$0xff]  ;;  %15279 = vst [vmem:[#allocation115_spill] sm:$0xff] %v13138_v46  ;;  %15280 = vst [vmem:[#allocation116_spill] sm:$0xff] %v13140_v51 }
 0x673   : > { %9849 = vmatprep.subr.bf16.mxu1 %v13113_v25  ;;  %9823 = vmatpush1.bf16.msra.mxu0 %v13120_v43  ;;  %v13143_v25 = vpack.c.bf16 %v861_v44, %v857_v12  ;;  %v856_v43 = vld [vmem:[#allocation13 + $0x1d0] sm:$0xff]  ;;  %15282 = vst [vmem:[#allocation118_spill] sm:$0xff] %v13145_v36 }
 0x674   : > { %2843 = vmatmul.mubr.f32.gmra.mrb[26].mxu1 %v15232_v4  ;;  %9825 = vmatprep.subr.bf16.mxu0 %v13127_v39  ;;  %v860_v39 = vld [vmem:[#allocation13 + $0x1f0] sm:$0xff] }
 0x675   : > { %2848 = vmatprep.mubr.f32.mxu1 %v15232_v4  ;;  %15281 = vst [vmem:[#allocation117_spill] sm:$0xff] %v13143_v25  ;;  %v13152_v40 = vpack.c.bf16 %v860_v39, %v856_v43 }
 0x676   : > { %9851 = vmatpush1.bf16.msra.mxu1 %v13125_v20  ;;  %v741_v20 = vld [vmem:[#allocation11 + $0x38] sm:$0xff] }
 0x677   : > { %9853 = vmatprep.subr.bf16.mxu1 %v13131_v34  ;;  %9827 = vmatpush1.bf16.msra.mxu0 %v13140_v51  ;;  %15283 = vst [vmem:[#allocation119_spill] sm:$0xff] %v13152_v40  ;;  %v13155_v12 = vpack.c.bf16 %v741_v20, %v737_v55  ;;  %v736_v34 = vld [vmem:[#allocation11 + $0x10] sm:$0xff]  ;;  %v745_v51 = vld [vmem:[#allocation11 + $0x58] sm:$0xff] }
 0x678   : > { %2849 = vmatmul.mubr.f32.gmra.mrb[28].mxu1 %v15232_v4  ;;  %9861 = vmatprep.subr.bf16.mxu0 %v13145_v36  ;;  %v743_v36 = vld [vmem:[#allocation11 + $0x48] sm:$0xff] }
 0x679   : > { %2854 = vmatprep.mubr.f32.mxu1 %v15232_v4  ;;  %15284 = vst [vmem:[#allocation120_spill] sm:$0xff] %v13155_v12 }
 0x67a   : > { %9855 = vmatpush1.bf16.msra.mxu1 %v13138_v46  ;;  %v738_v46 = vld [vmem:[#allocation11 + $0x20] sm:$0xff] }
 0x67b   : > { %9857 = vmatprep.subr.bf16.mxu1 %v13143_v25  ;;  %v734_v25 = vld [vmem:[#allocation11] sm:$0xff] }
 0x67c   : > { %2855 = vmatmul.mubr.f32.gmra.mrb[30].mxu1 %v15232_v4 }
 0x67d   : > { %3234 = vmatprep.mubr.f32.mxu1 %v15232_v4 }
 0x67e   : > { %9859 = vmatpush1.bf16.msra.mxu1 %v13152_v40  ;;  %v740_v40 = vld [vmem:[#allocation11 + $0x30] sm:$0xff] }
 0x67f   : > { %9893 = vmatprep.subr.bf16.mxu1 %v13155_v12  ;;  %v747_v12 = vld [vmem:[#allocation11 + $0x68] sm:$0xff] }
 0x6df   : > { %v2186_v44 = vpop.f32.mrb[12].mxu0 }
 0x6e0   : > { %v9366_v54 = vpop.f32.mrb[13].mxu0 }
 0x6e1   : > { %v749_v54 = vld [vmem:[#allocation11 + $0x78] sm:$0xff] }
 0x6e7   : > { %v2332_v48 = vpop.f32.mrb[14].mxu0 }
 0x6e8   : > { %v9380_v33 = vpop.f32.mrb[15].mxu0  ;;  %v3092_v13 = vrot.slane %v2332_v48, 6  ;;  %v742_v48 = vld [vmem:[#allocation11 + $0x40] sm:$0xff] }
 0x6eb   : > { %v2259_v10 = vpop.f32.mrb[12].mxu1 }
 0x6ec   : > { %v3089_v43 = vrot.slane %v2259_v10, 7  ;;  %v9373_v39 = vpop.f32.mrb[13].mxu1  ;;  %v13163_v10 = vpack.c.bf16 %v738_v46, %v734_v25  ;;  %v750_v25 = vld [vmem:[#allocation11 + $0x80] sm:$0xff]  ;;  %v13182_v46 = vpack.c.bf16 %v757_v31, %v753_v8 }
 0x6ed   : > { %v13165_v39 = vpack.c.bf16 %v740_v40, %v736_v34  ;;  %v13180_v34 = vpack.c.bf16 %v755_v38, %v751_v9  ;;  %v759_v40 = vld [vmem:[#allocation11 + $0xc8] sm:$0xff]  ;;  %v758_v31 = vld [vmem:[#allocation11 + $0xc0] sm:$0xff] }
 0x6ee   : > { %v3091_v55 = vsel %vm3090_vm12, %v3089_v43, %v2186_v44  ;;  %15285 = vst [vmem:[#allocation121_spill] sm:$0xff] %v13163_v10  ;;  %v746_v44 = vld [vmem:[#allocation11 + $0x60] sm:$0xff]  ;;  %v13167_v43 = vpack.c.bf16 %v747_v12, %v743_v36  ;;  %15292 = vst [vmem:[#allocation128_spill] sm:$0xff] %v13182_v46  ;;  %v763_v12 = vld [vmem:[#allocation11 + $0xe8] sm:$0xff] }
 0x6ef   : > { %v3094_v20 = vsel %vm3093_vm13, %v3092_v13, %v3091_v55  ;;  %15286 = vst [vmem:[#allocation122_spill] sm:$0xff] %v13165_v39  ;;  %v13169_v13 = vpack.c.bf16 %v749_v54, %v745_v51  ;;  %v744_v55 = vld [vmem:[#allocation11 + $0x50] sm:$0xff]  ;;  %v754_v36 = vld [vmem:[#allocation11 + $0xa0] sm:$0xff]  ;;  %15291 = vst [vmem:[#allocation127_spill] sm:$0xff] %v13180_v34  ;;  %v13194_v9 = vpack.c.bf16 %v763_v12, %v759_v40 }
 0x6f0   : > { %15287 = vst [vmem:[#allocation123_spill] sm:$0xff] %v13167_v43  ;;  %v752_v51 = vld [vmem:[#allocation11 + $0x90] sm:$0xff]  ;;  %v765_v54 = vld [vmem:[#allocation11 + $0xf8] sm:$0xff]  ;;  %v762_v8 = vld [vmem:[#allocation11 + $0xe0] sm:$0xff] }
 0x6f1   : > { %15288 = vst [vmem:[#allocation124_spill] sm:$0xff] %v13169_v13  ;;  %15295 = vst [vmem:[#allocation131_spill] sm:$0xff] %v13194_v9 }
 0x6f3   : > { %v2405_v11 = vpop.f32.mrb[14].mxu1 }
 0x6f4   : > { %v3095_v33 = vrot.slane %v2405_v11, 5  ;;  %v9387_v52 = vpop.f32.mrb[15].mxu1  ;;  %v13176_v11 = vpack.c.bf16 %v748_v32, %v744_v55  ;;  %v13188_v32 = vpack.c.bf16 %v754_v36, %v750_v25  ;;  %v767_v55 = vld [vmem:[#allocation11 + $0x108] sm:$0xff]  ;;  %v13200_v25 = vpack.c.bf16 %v762_v8, %v758_v31 }
 0x6f5   : > { %v13174_v52 = vpack.c.bf16 %v746_v44, %v742_v48  ;;  %v760_v48 = vld [vmem:[#allocation11 + $0xd0] sm:$0xff] }
 0x6f6   : > { %v3097_v7 = vsel %vm3096_vm14, %v3095_v33, %v3094_v20  ;;  %15290 = vst [vmem:[#allocation126_spill] sm:$0xff] %v13176_v11  ;;  %v761_v20 = vld [vmem:[#allocation11 + $0xd8] sm:$0xff]  ;;  %15293 = vst [vmem:[#allocation129_spill] sm:$0xff] %v13188_v32  ;;  %v764_v44 = vld [vmem:[#allocation11 + $0xf0] sm:$0xff] }
 0x6f7   : > { %3164 = vmatmul.mubr.f32.vlgmr.msra.gmra.mrb[32].mxu0 %v3097_v7  ;;  %3235 = vmatmul.mubr.f32.vlgmr.msra.gmra.mrb[32].mxu1 %v3097_v7  ;;  %15289 = vst [vmem:[#allocation125_spill] sm:$0xff] %v13174_v52  ;;  %v756_v7 = vld [vmem:[#allocation11 + $0xb0] sm:$0xff]  ;;  %v13196_v33 = vpack.c.bf16 %v765_v54, %v761_v20  ;;  %15297 = vst [vmem:[#allocation133_spill] sm:$0xff] %v13200_v25  ;;  %v13202_v36 = vpack.c.bf16 %v764_v44, %v760_v48  ;;  %v774_v48 = vld [vmem:[#allocation11 + $0x140] sm:$0xff] }
 0x6f8   : > { %9863 = vmatpush1.bf16.msra.mxu0 %v13163_v10  ;;  %9895 = vmatpush1.bf16.msra.mxu1 %v13165_v39  ;;  %v13190_v38 = vpack.c.bf16 %v756_v7, %v752_v51  ;;  %v766_v51 = vld [vmem:[#allocation11 + $0x100] sm:$0xff]  ;;  %v768_v20 = vld [vmem:[#allocation11 + $0x110] sm:$0xff] }
 0x6f9   : > { %9865 = vmatprep.subr.bf16.mxu0 %v13167_v43  ;;  %9897 = vmatprep.subr.bf16.mxu1 %v13169_v13  ;;  %15296 = vst [vmem:[#allocation132_spill] sm:$0xff] %v13196_v33  ;;  %v769_v13 = vld [vmem:[#allocation11 + $0x118] sm:$0xff]  ;;  %15298 = vst [vmem:[#allocation134_spill] sm:$0xff] %v13202_v36  ;;  %v770_v7 = vld [vmem:[#allocation11 + $0x120] sm:$0xff] }
 0x6fa   : > { %3305 = vmatprep.mubr.f32.mxu0 %v15232_v4  ;;  %3376 = vmatprep.mubr.f32.mxu1 %v15232_v4  ;;  %15294 = vst [vmem:[#allocation130_spill] sm:$0xff] %v13190_v38  ;;  %v772_v54 = vld [vmem:[#allocation11 + $0x130] sm:$0xff]  ;;  %v13212_v31 = vpack.c.bf16 %v770_v7, %v766_v51  ;;  %v778_v44 = vld [vmem:[#allocation11 + $0x160] sm:$0xff] }
 0x6fb   : > { %v13214_v8 = vpack.c.bf16 %v772_v54, %v768_v20  ;;  %v13224_v51 = vpack.c.bf16 %v778_v44, %v774_v48  ;;  %v782_v20 = vld [vmem:[#allocation11 + $0x180] sm:$0xff] }
 0x6fc   : > { %9867 = vmatpush1.bf16.msra.mxu0 %v13174_v52  ;;  %9899 = vmatpush1.bf16.msra.mxu1 %v13176_v11  ;;  %v771_v52 = vld [vmem:[#allocation11 + $0x128] sm:$0xff]  ;;  %v773_v11 = vld [vmem:[#allocation11 + $0x138] sm:$0xff]  ;;  %15301 = vst [vmem:[#allocation137_spill] sm:$0xff] %v13212_v31  ;;  %v786_v54 = vld [vmem:[#allocation11 + $0x1a0] sm:$0xff] }
 0x6fd   : > { %9869 = vmatprep.subr.bf16.mxu0 %v13180_v34  ;;  %9901 = vmatprep.subr.bf16.mxu1 %v13182_v46  ;;  %v13206_v40 = vpack.c.bf16 %v771_v52, %v767_v55  ;;  %v13208_v12 = vpack.c.bf16 %v773_v11, %v769_v13  ;;  %v775_v46 = vld [vmem:[#allocation11 + $0x148] sm:$0xff]  ;;  %v777_v34 = vld [vmem:[#allocation11 + $0x158] sm:$0xff]  ;;  %15302 = vst [vmem:[#allocation138_spill] sm:$0xff] %v13214_v8  ;;  %v776_v11 = vld [vmem:[#allocation11 + $0x150] sm:$0xff] }
 0x6fe   : > { %v780_v55 = vld [vmem:[#allocation11 + $0x170] sm:$0xff]  ;;  %15305 = vst [vmem:[#allocation141_spill] sm:$0xff] %v13224_v51  ;;  %v13236_v48 = vpack.c.bf16 %v786_v54, %v782_v20 }
 0x6ff   : > { %15299 = vst [vmem:[#allocation135_spill] sm:$0xff] %v13206_v40  ;;  %15300 = vst [vmem:[#allocation136_spill] sm:$0xff] %v13208_v12  ;;  %v13226_v7 = vpack.c.bf16 %v780_v55, %v776_v11  ;;  %v790_v11 = vld [vmem:[#allocation11 + $0x1c0] sm:$0xff]  ;;  %v796_v55 = vld [vmem:[#allocation11 + $0x1f0] sm:$0xff] }
 0x700   : > { %9871 = vmatpush1.bf16.msra.mxu0 %v13188_v32  ;;  %9903 = vmatpush1.bf16.msra.mxu1 %v13190_v38  ;;  %v779_v32 = vld [vmem:[#allocation11 + $0x168] sm:$0xff]  ;;  %v781_v38 = vld [vmem:[#allocation11 + $0x178] sm:$0xff]  ;;  %15309 = vst [vmem:[#allocation145_spill] sm:$0xff] %v13236_v48 }
 0x701   : > { %9873 = vmatprep.subr.bf16.mxu0 %v13194_v9  ;;  %9905 = vmatprep.subr.bf16.mxu1 %v13196_v33  ;;  %v13218_v13 = vpack.c.bf16 %v779_v32, %v775_v46  ;;  %v13220_v52 = vpack.c.bf16 %v781_v38, %v777_v34  ;;  %v783_v33 = vld [vmem:[#allocation11 + $0x188] sm:$0xff]  ;;  %v785_v9 = vld [vmem:[#allocation11 + $0x198] sm:$0xff]  ;;  %15306 = vst [vmem:[#allocation142_spill] sm:$0xff] %v13226_v7  ;;  %v784_v32 = vld [vmem:[#allocation11 + $0x190] sm:$0xff] }
 0x702   : > { %v788_v38 = vld [vmem:[#allocation11 + $0x1b0] sm:$0xff] }
 0x703   : > { %15303 = vst [vmem:[#allocation139_spill] sm:$0xff] %v13218_v13  ;;  %15304 = vst [vmem:[#allocation140_spill] sm:$0xff] %v13220_v52  ;;  %v13238_v44 = vpack.c.bf16 %v788_v38, %v784_v32 }
 0x704   : > { %9875 = vmatpush1.bf16.msra.mxu0 %v13200_v25  ;;  %9907 = vmatpush1.bf16.msra.mxu1 %v13202_v36  ;;  %v787_v25 = vld [vmem:[#allocation11 + $0x1a8] sm:$0xff]  ;;  %v789_v36 = vld [vmem:[#allocation11 + $0x1b8] sm:$0xff] }
 0x705   : > { %9877 = vmatprep.subr.bf16.mxu0 %v13206_v40  ;;  %9909 = vmatprep.subr.bf16.mxu1 %v13208_v12  ;;  %v13230_v34 = vpack.c.bf16 %v787_v25, %v783_v33  ;;  %v13232_v46 = vpack.c.bf16 %v789_v36, %v785_v9  ;;  %v791_v12 = vld [vmem:[#allocation11 + $0x1c8] sm:$0xff]  ;;  %v793_v40 = vld [vmem:[#allocation11 + $0x1d8] sm:$0xff]  ;;  %15310 = vst [vmem:[#allocation146_spill] sm:$0xff] %v13238_v44  ;;  %v794_v25 = vld [vmem:[#allocation11 + $0x1e0] sm:$0xff] }
 0x706   : > { %v792_v36 = vld [vmem:[#allocation11 + $0x1d0] sm:$0xff]  ;;  %v13248_v20 = vpack.c.bf16 %v794_v25, %v790_v11 }
 0x707   : > { %15307 = vst [vmem:[#allocation143_spill] sm:$0xff] %v13230_v34  ;;  %15308 = vst [vmem:[#allocation144_spill] sm:$0xff] %v13232_v46  ;;  %v13250_v54 = vpack.c.bf16 %v796_v55, %v792_v36 }
 0x708   : > { %9879 = vmatpush1.bf16.msra.mxu0 %v13212_v31  ;;  %9911 = vmatpush1.bf16.msra.mxu1 %v13214_v8  ;;  %v795_v31 = vld [vmem:[#allocation11 + $0x1e8] sm:$0xff]  ;;  %v797_v8 = vld [vmem:[#allocation11 + $0x1f8] sm:$0xff]  ;;  %15313 = vst [vmem:[#allocation149_spill] sm:$0xff] %v13248_v20 }
 0x709   : > { %9881 = vmatprep.subr.bf16.mxu0 %v13218_v13  ;;  %9913 = vmatprep.subr.bf16.mxu1 %v13220_v52  ;;  %v13242_v9 = vpack.c.bf16 %v795_v31, %v791_v12  ;;  %v13244_v33 = vpack.c.bf16 %v797_v8, %v793_v40  ;;  %15314 = vst [vmem:[#allocation150_spill] sm:$0xff] %v13250_v54  ;;  %v864_v40 = vlaneseq  ;;  %v862_v8 = vld [vmem:[#allocation10] sm:$0xf] }
 0x70b   : > { %15311 = vst [vmem:[#allocation147_spill] sm:$0xff] %v13242_v9  ;;  %15312 = vst [vmem:[#allocation148_spill] sm:$0xff] %v13244_v33  ;;  %v13260_v12 = vshrl.u32 %v864_v40, 7 }
 0x70c   : > { %9883 = vmatpush1.bf16.msra.mxu0 %v13224_v51  ;;  %9915 = vmatpush1.bf16.msra.mxu1 %v13226_v7 }
 0x70d   : > { %9885 = vmatprep.subr.bf16.mxu0 %v13230_v34  ;;  %9917 = vmatprep.subr.bf16.mxu1 %v13232_v46  ;;  %v15030_v31 = vsub.s32 0, %v13260_v12  ;;  %v15033_v32 = vsub.s32 1, %v13260_v12 }
 0x70f   : > { %v13270_v38 = vrot.slane %v862_v8, %v15030_v31  ;;  %v13274_v11 = vrot.slane %v862_v8, %v15033_v32  ;;  %v15042_v31 = vsub.s32 2, %v13260_v12  ;;  %v15045_v32 = vsub.s32 3, %v13260_v12 }
 0x710   : > { %9887 = vmatpush1.bf16.msra.mxu0 %v13236_v48  ;;  %9919 = vmatpush1.bf16.msra.mxu1 %v13238_v44 }
 0x711   : > { %9889 = vmatprep.subr.bf16.mxu0 %v13242_v9  ;;  %9921 = vmatprep.subr.bf16.mxu1 %v13244_v33  ;;  %15315 = vst [vmem:[#allocation151_spill] sm:$0xff] %v13270_v38  ;;  %15316 = vst [vmem:[#allocation152_spill] sm:$0xff] %v13274_v11 }
 0x714   : > { %9891 = vmatpush1.bf16.msra.mxu0 %v13248_v20  ;;  %9923 = vmatpush1.bf16.msra.mxu1 %v13250_v54 }
 0x715   : > { %9925 = vmatprep.subr.bf16.mxu0 %v12551_v59  ;;  %9929 = vmatprep.subr.bf16.mxu1 %v12589_v30 }
 0x717   : > { %3306 = vmatmul.mubr.f32.vlgmr.msra.gmra.mrb[32].mxu0 %v15232_v4  ;;  %3377 = vmatmul.mubr.f32.vlgmr.msra.gmra.mrb[32].mxu1 %v15232_v4 }
 0x71d   : > { %9927 = vmatpush3.bf16.xpose.msra.mxu0 %v12551_v59  ;;  %9931 = vmatpush3.bf16.xpose.msra.mxu1 %v12589_v30 }
 0x71e   : > { %9933 = vmatprep.subr.bf16.mxu0 %v12557_v45  ;;  %9937 = vmatprep.subr.bf16.mxu1 %v12610_v47 }
 0x727   : > { %v2701_v25 = vpop.f32.mrb[16].mxu0 }
 0x728   : > { %v2861_v36 = vadd.f32 %v2701_v25, %v13270_v38  ;;  %v2703_v55 = vpop.f32.mrb[17].mxu0 }
 0x729   : > { %v2862_v40 = vadd.f32 %v2703_v55, %v13274_v11 }
 0x72a   : > { %v8988_v30 = vmul.f32 -1.442695, %v2861_v36 }
 0x72b   : > { %v8996_v59 = vmul.f32 -1.442695, %v2862_v40  ;;  %v2707_v54 = vpop.f32.mrb[18].mxu0 }
 0x72c   : > { %10915 = vpow2.f32 %v8988_v30  ;;  %v2865_v20 = vadd.f32 %v2707_v54, %v13270_v38  ;;  %v2709_v33 = vpop.f32.mrb[19].mxu0  ;;  %v13285_v30 = vrot.slane %v862_v8, %v15042_v31 }
 0x72d   : > { %10917 = vpow2.f32 %v8996_v59  ;;  %v2866_v9 = vadd.f32 %v2709_v33, %v13274_v11  ;;  %v13290_v59 = vrot.slane %v862_v8, %v15045_v32 }
 0x72e   : > { %v8989_v44 = vmul.f32 -1.442695, %v2865_v20  ;;  %15317 = vst [vmem:[#allocation153_spill] sm:$0xff] %v13285_v30 }
 0x72f   : > { %v8997_v48 = vmul.f32 -1.442695, %v2866_v9  ;;  %v2713_v25 = vpop.f32.mrb[20].mxu0  ;;  %15318 = vst [vmem:[#allocation154_spill] sm:$0xff] %v13290_v59 }
 0x730   : > { %10919 = vpow2.f32 %v8989_v44  ;;  %v2869_v55 = vadd.f32 %v2713_v25, %v13270_v38  ;;  %v2715_v36 = vpop.f32.mrb[21].mxu0 }
 0x731   : > { %10921 = vpow2.f32 %v8997_v48  ;;  %v2870_v54 = vadd.f32 %v2715_v36, %v13274_v11 }
 0x732   : > { %v8990_v33 = vmul.f32 -1.442695, %v2869_v55 }
 0x733   : > { %v8998_v40 = vmul.f32 -1.442695, %v2870_v54  ;;  %v2719_v20 = vpop.f32.mrb[22].mxu0  ;;  %v2814_v9 = vpop.f32.mrb[16].mxu1 }
 0x734   : > { %10923 = vpow2.f32 %v8990_v33  ;;  %v2873_v44 = vadd.f32 %v2719_v20, %v13270_v38  ;;  %v2863_v25 = vadd.f32 %v2814_v9, %v13285_v30  ;;  %v2721_v46 = vpop.f32.mrb[23].mxu0  ;;  %v2816_v34 = vpop.f32.mrb[17].mxu1 }
 0x735   : > { %10925 = vpow2.f32 %v8998_v40  ;;  %v2874_v48 = vadd.f32 %v2721_v46, %v13274_v11  ;;  %v2864_v36 = vadd.f32 %v2816_v34, %v13290_v59 }
 0x736   : > { %v10916_v31 = vpop.eup %10915  ;;  %v8991_v7 = vmul.f32 -1.442695, %v2873_v44  ;;  %10927 = vtanh.f32 %v2863_v25 }
 0x737   : > { %v10918_v8 = vpop.eup %10917  ;;  %v2917_v32 = vadd.f32 1.0, %v10916_v31  ;;  %v8999_v55 = vmul.f32 -1.442695, %v2874_v48  ;;  %v2725_v54 = vpop.f32.mrb[24].mxu0  ;;  %v9004_v33 = vmul.f32 -1.442695, %v2864_v36 }
 0x738   : > { %v2965_v51 = vadd.f32 1.0, %v10918_v8  ;;  %10929 = vpow2.f32 %v8991_v7  ;;  %v2877_v20 = vadd.f32 %v2725_v54, %v13270_v38  ;;  %v2820_v9 = vpop.f32.mrb[18].mxu1  ;;  %v2727_v52 = vpop.f32.mrb[25].mxu0 }
 0x739   : > { %10931 = vrcp.f32 %v2917_v32  ;;  %v2822_v40 = vpop.f32.mrb[19].mxu1  ;;  %v2878_v31 = vadd.f32 %v2727_v52, %v13274_v11  ;;  %v2867_v7 = vadd.f32 %v2820_v9, %v13285_v30 }
 0x73a   : > { %v10920_v13 = vpop.eup %10919  ;;  %10933 = vrcp.f32 %v2965_v51  ;;  %v8992_v44 = vmul.f32 -1.442695, %v2877_v20  ;;  %v2868_v36 = vadd.f32 %v2822_v40, %v13290_v59 }
 0x73b   : > { %v10922_v46 = vpop.eup %10921  ;;  %v2918_v34 = vadd.f32 1.0, %v10920_v13  ;;  %10935 = vpow2.f32 %v8999_v55  ;;  %v2731_v25 = vpop.f32.mrb[26].mxu0  ;;  %v9000_v55 = vmul.f32 -1.442695, %v2878_v31 }
 0x73c   : > { %v2826_v48 = vpop.f32.mrb[20].mxu1  ;;  %v2966_v43 = vadd.f32 1.0, %v10922_v46  ;;  %10937 = vpow2.f32 %v9004_v33  ;;  %v2733_v8 = vpop.f32.mrb[27].mxu0  ;;  %v2881_v51 = vadd.f32 %v2731_v25, %v13270_v38  ;;  %v9005_v39 = vmul.f32 -1.442695, %v2868_v36 }
 0x73d   : > { %v2828_v54 = vpop.f32.mrb[21].mxu1  ;;  %10939 = vrcp.f32 %v2918_v34  ;;  %v2882_v25 = vadd.f32 %v2733_v8, %v13274_v11 }
 0x73e   : > { %v10924_v32 = vpop.eup %10923  ;;  %10941 = vrcp.f32 %v2966_v43  ;;  %v8993_v63 = vmul.f32 -1.442695, %v2881_v51  ;;  %v2871_v43 = vadd.f32 %v2826_v48, %v13285_v30 }
 0x73f   : > { %v10926_v13 = vpop.eup %10925  ;;  %10943 = vpow2.f32 %v8992_v44  ;;  %v2737_v20 = vpop.f32.mrb[28].mxu0  ;;  %v2919_v9 = vadd.f32 1.0, %v10924_v32  ;;  %v9001_v42 = vmul.f32 -1.442695, %v2882_v25 }
 0x740   : > { %v2967_v52 = vadd.f32 1.0, %v10926_v13  ;;  %10945 = vtanh.f32 %v2867_v7  ;;  %v2832_v46 = vpop.f32.mrb[22].mxu1  ;;  %v2739_v33 = vpop.f32.mrb[29].mxu0  ;;  %v2885_v48 = vadd.f32 %v2737_v20, %v13270_v38 }
 0x741   : > { %v10928_v10 = vpop.eup %10927  ;;  %v2834_v37 = vpop.f32.mrb[23].mxu1 }
 0x742   : > { %v10930_v40 = vpop.eup %10929  ;;  %10947 = vrcp.f32 %v2967_v52 }
 0x743   : > { %v10932_v34 = vpop.eup %10931  ;;  %10949 = vpow2.f32 %v9000_v55  ;;  %v2743_v44 = vpop.f32.mrb[30].mxu0  ;;  %v2920_v7 = vadd.f32 1.0, %v10930_v40 }
 0x744   : > { %v13303_v31 = vpop.f32.mrb[24].mxu1  ;;  %v10934_v13 = vpop.eup %10933  ;;  %v3053_v36 = vmul.f32 %v10932_v34, %v10928_v10  ;;  %10951 = vpow2.f32 %v9005_v39  ;;  %v2872_v34 = vadd.f32 %v2828_v54, %v13290_v59 }
 0x745   : > { %v13305_v29 = vpop.f32.mrb[31].mxu0  ;;  %v13307_v32 = vpop.f32.mrb[25].mxu1  ;;  %v3045_v52 = vmul.f32 0.0, %v10934_v13  ;;  %10953 = vrcp.f32 %v2919_v9 }
 0x746   : > { %v10936_v60 = vpop.eup %10935  ;;  %10955 = vpow2.f32 %v8993_v63 }
 0x747   : > { %v10938_v51 = vpop.eup %10937  ;;  %v13310_v8 = vadd.f32 %v3053_v36, %v3045_v52  ;;  %10957 = vtanh.f32 %v2871_v43  ;;  %v13312_v40 = vpop.f32.mrb[26].mxu1  ;;  %v2968_v39 = vadd.f32 1.0, %v10936_v60  ;;  %v8994_v36 = vmul.f32 -1.442695, %v2885_v48 }
 0x748   : > { %v10940_v55 = vpop.eup %10939  ;;  %v3021_v62 = vadd.f32 1.0, %v10938_v51  ;;  %10959 = vrcp.f32 %v2920_v7  ;;  %v2846_v56 = vpop.f32.mrb[27].mxu1  ;;  %v9006_v51 = vmul.f32 -1.442695, %v2872_v34  ;;  %v2886_v60 = vadd.f32 %v2739_v33, %v13274_v11 }
 0x749   : > { %15319 = vst [vmem:[#allocation155_spill] sm:$0xff] %v13310_v8  ;;  %v10942_v10 = vpop.eup %10941  ;;  %10961 = vtanh.f32 %v13310_v8  ;;  %v2876_v48 = vadd.f32 %v2834_v37, %v13290_v59  ;;  %v2889_v34 = vadd.f32 %v2743_v44, %v13270_v38  ;;  %v2890_v44 = vadd.f32 %v13305_v29, %v13274_v11 }
 0x74a   : > { %v10944_v13 = vpop.eup %10943  ;;  %v3046_v9 = vmul.f32 0.0, %v10942_v10  ;;  %10963 = vrcp.f32 %v3021_v62  ;;  %v2875_v62 = vadd.f32 %v2832_v46, %v13285_v30 }
 0x74b   : > { %v10946_v63 = vpop.eup %10945  ;;  %v2921_v20 = vadd.f32 1.0, %v10944_v13  ;;  %10965 = vpow2.f32 %v9001_v42  ;;  %v13316_v43 = vpop.f32.mrb[28].mxu1  ;;  %v9007_v37 = vmul.f32 -1.442695, %v2876_v48 }
 0x74c   : > { %v3054_v52 = vmul.f32 %v10946_v63, %v10940_v55  ;;  %v10948_v25 = vpop.eup %10947  ;;  %10967 = vrcp.f32 %v2968_v39  ;;  %v13319_v7 = vpop.f32.mrb[29].mxu1 }
 0x74d   : > { %v10950_v54 = vpop.eup %10949  ;;  %10969 = vrcp.f32 %v2921_v20  ;;  %v3047_v63 = vmul.f32 0.0, %v10948_v25 }
 0x74e   : > { %v13321_v10 = vadd.f32 %v3054_v52, %v3046_v9  ;;  %v10952_v8 = vpop.eup %10951  ;;  %10971 = vpow2.f32 %v8994_v36  ;;  %v2969_v55 = vadd.f32 1.0, %v10950_v54  ;;  %v9002_v9 = vmul.f32 -1.442695, %v2886_v60 }
 0x74f   : > { %v10954_v42 = vpop.eup %10953  ;;  %v3022_v39 = vadd.f32 1.0, %v10952_v8  ;;  %v13327_v33 = vpop.f32.mrb[30].mxu1  ;;  %v8995_v54 = vmul.f32 -1.442695, %v2889_v34  ;;  %v2880_v60 = vadd.f32 %v13307_v32, %v13290_v59 }
 0x750   : > { %15320 = vst [vmem:[#allocation156_spill] sm:$0xff] %v13321_v10  ;;  %10973 = vtanh.f32 %v13321_v10  ;;  %v10956_v13 = vpop.eup %10955  ;;  %v2858_v20 = vpop.f32.mrb[31].mxu1 }
 0x751   : > { %10975 = vpow2.f32 %v9006_v51  ;;  %v10958_v52 = vpop.eup %10957  ;;  %v2922_v36 = vadd.f32 1.0, %v10956_v13  ;;  %v2879_v51 = vadd.f32 %v13303_v31, %v13285_v30  ;;  %v9003_v31 = vmul.f32 -1.442695, %v2890_v44 }
 0x752   : > { %10977 = vrcp.f32 %v3022_v39  ;;  %v10960_v46 = vpop.eup %10959  ;;  %v3055_v6 = vmul.f32 %v10958_v52, %v10954_v42 }
 0x753   : > { %10979 = vtanh.f32 %v2875_v62  ;;  %v10962_v27 = vpop.eup %10961 }
 0x754   : > { %10981 = vrcp.f32 %v2969_v55  ;;  %v10964_v8 = vpop.eup %10963  ;;  %v13329_v10 = vadd.f32 %v3055_v6, %v3047_v63  ;;  %v2884_v6 = vadd.f32 %v2846_v56, %v13290_v59  ;;  %v2883_v56 = vadd.f32 %v13312_v40, %v13285_v30 }
 0x755   : > { %10983 = vpow2.f32 %v9002_v9  ;;  %v10966_v25 = vpop.eup %10965  ;;  %v13337_v62 = vmul.f32 %v10964_v8, %v10962_v27  ;;  %v9008_v27 = vmul.f32 -1.442695, %v2880_v60  ;;  %v2888_v60 = vadd.f32 %v13319_v7, %v13290_v59 }
 0x756   : > { %15321 = vst [vmem:[#allocation157_spill] sm:$0xff] %v13329_v10  ;;  %10985 = vrcp.f32 %v2922_v36  ;;  %v10968_v48 = vpop.eup %10967  ;;  %v2970_v42 = vadd.f32 1.0, %v10966_v25  ;;  %v9009_v36 = vmul.f32 -1.442695, %v2884_v6 }
 0x757   : > { %10987 = vpow2.f32 %v9007_v37  ;;  %v10970_v55 = vpop.eup %10969  ;;  %v13342_v29 = vadd.f32 %v13337_v62, %v12757_v17  ;;  %v3048_v52 = vmul.f32 0.0, %v10968_v48  ;;  %v9010_v7 = vmul.f32 -1.442695, %v2888_v60 }
 0x758   : > { %10989 = vpow2.f32 %v8995_v54  ;;  %v10972_v39 = vpop.eup %10971  ;;  %v2887_v54 = vadd.f32 %v13316_v43, %v13285_v30  ;;  %v2892_v43 = vadd.f32 %v2858_v20, %v13290_v59 }
 0x759   : > { %10991 = vtanh.f32 %v13329_v10  ;;  %v2923_v13 = vadd.f32 1.0, %v10972_v39  ;;  %v3448_v32 = vmul.f32 %v13342_v29, %v13342_v29 }
 0x75a   : > { %v10974_v34 = vpop.eup %10973  ;;  %10993 = vtanh.f32 %v2879_v51  ;;  %v9011_v20 = vmul.f32 -1.442695, %v2892_v43 }
 0x75b   : > { %v10976_v63 = vpop.eup %10975  ;;  %10995 = vrcp.f32 %v2970_v42  ;;  %3456 = vadd.xlane.f32.xlu0 %v3448_v32 }
 0x75c   : > { %v10978_v9 = vpop.eup %10977  ;;  %10997 = vrcp.f32 %v2923_v13  ;;  %v3023_v25 = vadd.f32 1.0, %v10976_v63  ;;  %v2891_v63 = vadd.f32 %v13327_v33, %v13285_v30 }
 0x75d   : > { %v10980_v37 = vpop.eup %10979  ;;  %10999 = vpow2.f32 %v9003_v31  ;;  %v13351_v8 = vmul.f32 %v10978_v9, %v10974_v34 }
 0x75e   : > { %v10982_v44 = vpop.eup %10981  ;;  %v3056_v51 = vmul.f32 %v10980_v37, %v10960_v46  ;;  %11001 = vpow2.f32 %v9008_v27 }
 0x75f   : > { %v10984_v40 = vpop.eup %10983  ;;  %11003 = vtanh.f32 %v2883_v56  ;;  %v13357_v48 = vadd.f32 %v12755_v0, %v13351_v8  ;;  %v3049_v27 = vmul.f32 0.0, %v10982_v44 }
 0x760   : > { %v10986_v42 = vpop.eup %10985  ;;  %v13359_v6 = vadd.f32 %v3056_v51, %v3048_v52  ;;  %v2971_v39 = vadd.f32 1.0, %v10984_v40  ;;  %11005 = vpow2.f32 %v9009_v36 }
 0x761   : > { %v10988_v31 = vpop.eup %10987  ;;  %11007 = vtanh.f32 %v2887_v54  ;;  %v3449_v46 = vmul.f32 %v13357_v48, %v13357_v48 }
 0x762   : > { %15322 = vst [vmem:[#allocation158_spill] sm:$0xff] %v13359_v6  ;;  %v10990_v34 = vpop.eup %10989  ;;  %11009 = vrcp.f32 %v3023_v25  ;;  %v3024_v51 = vadd.f32 1.0, %v10988_v31 }
 0x763   : > { %v10992_v13 = vpop.eup %10991  ;;  %11011 = vrcp.f32 %v2971_v39  ;;  %v2924_v32 = vadd.f32 1.0, %v10990_v34  ;;  %3458 = vadd.xlane.f32.xlu1 %v3449_v46 }
 0x764   : > { %v10994_v56 = vpop.eup %10993  ;;  %11013 = vtanh.f32 %v13359_v6 }
 0x765   : > { %v10996_v9 = vpop.eup %10995  ;;  %11015 = vrcp.f32 %v2924_v32  ;;  %v3057_v52 = vmul.f32 %v10994_v56, %v10970_v55 }
 0x766   : > { %v10998_v36 = vpop.eup %10997  ;;  %11017 = vpow2.f32 %v9010_v7  ;;  %v3050_v25 = vmul.f32 0.0, %v10996_v9 }
 0x767   : > { %v11000_v37 = vpop.eup %10999  ;;  %v13367_v54 = vadd.f32 %v3057_v52, %v3049_v27  ;;  %11019 = vtanh.f32 %v2891_v63 }
 0x768   : > { %v11002_v44 = vpop.eup %11001  ;;  %v2972_v60 = vadd.f32 1.0, %v11000_v37  ;;  %11021 = vpow2.f32 %v9011_v20 }
 0x769   : > { %15323 = vst [vmem:[#allocation159_spill] sm:$0xff] %v13367_v54  ;;  %v11004_v33 = vpop.eup %11003  ;;  %11023 = vtanh.f32 %v13367_v54  ;;  %v3025_v40 = vadd.f32 1.0, %v11002_v44 }
 0x76a   : > { %v11006_v39 = vpop.eup %11005  ;;  %11025 = vrcp.f32 %v2972_v60  ;;  %v3058_v43 = vmul.f32 %v11004_v33, %v10986_v42 }
 0x76b   : > { %v11008_v46 = vpop.eup %11007  ;;  %11027 = vrcp.f32 %v3025_v40  ;;  %v3026_v55 = vadd.f32 1.0, %v11006_v39 }
 0x76c   : > { %v11010_v34 = vpop.eup %11009  ;;  %11029 = vrcp.f32 %v3024_v51  ;;  %v13370_v7 = vadd.f32 %v3058_v43, %v3050_v25  ;;  %v3059_v27 = vmul.f32 %v11008_v46, %v10998_v36 }
 0x76d   : > { %v11012_v32 = vpop.eup %11011  ;;  %11031 = vrcp.f32 %v3026_v55  ;;  %v13378_v43 = vmul.f32 %v11010_v34, %v10992_v13 }
 0x76e   : > { %15324 = vst [vmem:[#allocation160_spill] sm:$0xff] %v13370_v7  ;;  %v11014_v31 = vpop.eup %11013  ;;  %v3051_v63 = vmul.f32 0.0, %v11012_v32  ;;  %11033 = vtanh.f32 %v13370_v7 }
 0x76f   : > { %v11016_v56 = vpop.eup %11015  ;;  %v13395_v13 = vadd.f32 %v13378_v43, %v12769_v23 }
 0x770   : > { %v11018_v20 = vpop.eup %11017  ;;  %v13373_v9 = vadd.f32 %v3059_v27, %v3051_v63 }
 0x771   : > { %v11020_v52 = vpop.eup %11019  ;;  %v3027_v42 = vadd.f32 1.0, %v11018_v20 }
 0x772   : > { %15325 = vst [vmem:[#allocation161_spill] sm:$0xff] %v13373_v9  ;;  %v11022_v37 = vpop.eup %11021  ;;  %11035 = vtanh.f32 %v13373_v9  ;;  %v3060_v44 = vmul.f32 %v11020_v52, %v11016_v56 }
 0x773   : > { %v11024_v51 = vpop.eup %11023  ;;  %11037 = vrcp.f32 %v3027_v42  ;;  %v3028_v36 = vadd.f32 1.0, %v11022_v37 }
 0x774   : > { %v11026_v25 = vpop.eup %11025 }
 0x775   : > { %v11028_v60 = vpop.eup %11027  ;;  %v3052_v33 = vmul.f32 0.0, %v11026_v25  ;;  %11039 = vrcp.f32 %v3028_v36 }
 0x776   : > { %v11030_v40 = vpop.eup %11029  ;;  %v13376_v39 = vmul.f32 %v11028_v60, %v11024_v51 }
 0x777   : > { %v11032_v46 = vpop.eup %11031  ;;  %v13380_v55 = vadd.f32 %v3060_v44, %v3052_v33  ;;  %v13389_v56 = vmul.f32 %v11030_v40, %v11014_v31  ;;  %v3450_v44 = vmul.f32 %v13395_v13, %v13395_v13 }
 0x778   : > { %15326 = vst [vmem:[#allocation162_spill] sm:$0xff] %v13376_v39  ;;  %v11034_v27 = vpop.eup %11033  ;;  %v13384_v32 = vadd.f32 %v13376_v39, %v12763_v19 }
 0x779   : > { %15327 = vst [vmem:[#allocation163_spill] sm:$0xff] %v13380_v55  ;;  %11041 = vtanh.f32 %v13380_v55  ;;  %v13387_v63 = vmul.f32 %v11034_v27, %v11032_v46  ;;  %15329 = vst [vmem:[#allocation165_spill] sm:$0xff] %v13389_v56  ;;  %v13405_v31 = vadd.f32 %v12767_v22, %v13389_v56 }
 0x77a   : > { %v3452_v20 = vmul.f32 %v13384_v32, %v13384_v32 }
 0x77b   : > { %15328 = vst [vmem:[#allocation164_spill] sm:$0xff] %v13387_v63  ;;  %v13399_v34 = vadd.f32 %v12761_v18, %v13387_v63  ;;  %v3451_v36 = vmul.f32 %v13405_v31, %v13405_v31 }
 0x77c   : > { %v11036_v52 = vpop.eup %11035  ;;  %3464 = vadd.xlane.f32.xlu0 %v3452_v20 }
 0x77d   : > { %v11038_v42 = vpop.eup %11037  ;;  %v3453_v37 = vmul.f32 %v13399_v34, %v13399_v34 }
 0x77e   : > { %v13409_v51 = vmul.f32 %v11038_v42, %v11036_v52  ;;  %v13427_v52 = vld [vmem:[#allocation14] sm:$0xf]  ;;  %v15332_v42 = vsub.s32 0, %v13260_v12 }
 0x77f   : > { %3466 = vadd.xlane.f32.xlu1 %v3453_v37  ;;  %v11040_v60 = vpop.eup %11039 }
 0x780   : > { %15330 = vst [vmem:[#allocation166_spill] sm:$0xff] %v13409_v51  ;;  %3460 = vadd.xlane.f32.xlu0 %v3450_v44  ;;  %v13413_v25 = vadd.f32 %v13409_v51, %v12775_v3  ;;  %v13432_v37 = vrot.slane %v13427_v52, %v15332_v42 }
 0x782   : > { %v3454_v33 = vmul.f32 %v13413_v25, %v13413_v25  ;;  %15333 = vst [vmem:[#allocation168_spill] sm:$0xff] %v13432_v37 }
 0x783   : > { %v11042_v40 = vpop.eup %11041  ;;  %3462 = vadd.xlane.f32.xlu1 %v3451_v36  ;;  %v15334_v36 = vsub.s32 1, %v13260_v12 }
 0x784   : > { %3468 = vadd.xlane.f32.xlu0 %v3454_v33  ;;  %v13419_v46 = vmul.f32 %v11042_v40, %v11040_v60 }
 0x785   : > { %v13437_v60 = vrot.slane %v13427_v52, %v15334_v36  ;;  %v15336_v36 = vsub.s32 2, %v13260_v12 }
 0x786   : > { %15331 = vst [vmem:[#allocation167_spill] sm:$0xff] %v13419_v46  ;;  %v13423_v27 = vadd.f32 %v12773_v28, %v13419_v46 }
 0x787   : > { %15335 = vst [vmem:[#allocation169_spill] sm:$0xff] %v13437_v60  ;;  %v13446_v59 = vrot.slane %v13427_v52, %v15336_v36 }
 0x788   : > { %v3455_v20 = vmul.f32 %v13423_v27, %v13423_v27 }
 0x789   : > { %15337 = vst [vmem:[#allocation170_spill] sm:$0xff] %v13446_v59 }
 0x78a   : > { %3470 = vadd.xlane.f32.xlu1 %v3455_v20 }
 0x7e8   : > { %v3457_v44 = vpop.xlane.xlu0 %3456 }
 0x7e9   : > { %11043 = vrsqrt.f32 %v3457_v44  ;;  %vm3474_vm15 = vcmp.eq.f32.partialorder %v3457_v44, inf  ;;  %vm3476_vm2 = vcmp.eq.f32.partialorder %v3457_v44, 0.0 }
 0x7ea   : > { %v3307_v33 = vpop.f32.mrb[32].mxu0  ;;  %v3378_v40 = vpop.f32.mrb[32].mxu1 }
 0x7eb   : > { %v3383_v55 = vadd.f32 %v3307_v33, %v13432_v37  ;;  %v3309_v9 = vpop.f32.mrb[33].mxu0  ;;  %v13440_v20 = vpop.f32.mrb[33].mxu1  ;;  %v3477_v33 = vand.u32 2147483648, %v3457_v44 }
 0x7ec   : > { %v3384_v7 = vadd.f32 %v3309_v9, %v13437_v60  ;;  %v3385_v9 = vadd.f32 %v3378_v40, %v13446_v59 }
 0x7ed   : > { %v9012_v54 = vmul.f32 -1.442695, %v3383_v55 }
 0x7ee   : > { %v9013_v6 = vmul.f32 -1.442695, %v3384_v7 }
 0x7ef   : > { %11045 = vpow2.f32 %v9012_v54 }
 0x7f0   : > { %v3459_v42 = vpop.xlane.xlu1 %3458  ;;  %11047 = vpow2.f32 %v9013_v6 }
 0x7f1   : > { %11049 = vrsqrt.f32 %v3459_v42  ;;  %vm3481_vm3 = vcmp.eq.f32.partialorder %v3459_v42, inf  ;;  %vm3483_vm4 = vcmp.eq.f32.partialorder %v3459_v42, 0.0 }
 0x7f3   : > { %v11044_v10 = vpop.eup %11043 }
 0x7f4   : > { %v3473_v30 = vmul.f32 %v11044_v10, %v3457_v44  ;;  %v3484_v10 = vand.u32 2147483648, %v3459_v42 }
 0x7f6   : > { %v3475_v37 = vsel %vm3474_vm15, %v3457_v44, %v3473_v30 }
 0x7f7   : > { %v3478_v11 = vsel %vm3476_vm2, %v3477_v33, %v3475_v37 }
 0x7f8   : > { %v3528_v55 = vadd.f32 1e-08, %v3478_v11 }
 0x7f9   : > { %v11046_v7 = vpop.eup %11045 }
 0x7fa   : > { %v11048_v54 = vpop.eup %11047  ;;  %11051 = vrcp.f32 %v3528_v55  ;;  %v3390_v6 = vadd.f32 1.0, %v11046_v7 }
 0x7fb   : > { %v11050_v60 = vpop.eup %11049  ;;  %11053 = vtanh.f32 %v3385_v9  ;;  %v3396_v38 = vadd.f32 1.0, %v11048_v54 }
 0x7fc   : > { %11055 = vrcp.f32 %v3390_v6  ;;  %v3480_v46 = vmul.f32 %v11050_v60, %v3459_v42 }
 0x7fd   : > { %11057 = vrcp.f32 %v3396_v38 }
 0x7fe   : > { %v3482_v36 = vsel %vm3481_vm3, %v3459_v42, %v3480_v46 }
 0x7ff   : > { %v3485_v30 = vsel %vm3483_vm4, %v3484_v10, %v3482_v36 }
 0x800   : > { %v3529_v44 = vadd.f32 1e-08, %v3485_v30 }
 0x802   : > { %11059 = vrcp.f32 %v3529_v44 }
 0x804   : > { %v11052_v37 = vpop.eup %11051 }
 0x805   : > { %v11054_v40 = vpop.eup %11053  ;;  %v3544_v11 = vmul.f32 %v11052_v37, %v13342_v29 }
 0x806   : > { %v11056_v33 = vpop.eup %11055 }
 0x807   : > { %v11058_v55 = vpop.eup %11057  ;;  %v3407_v7 = vmul.f32 %v11056_v33, %v11054_v40  ;;  %9392 = vmatprep.mubr.f32.mxu0 %v3544_v11 }
 0x808   : > { %v3406_v9 = vmul.f32 0.0, %v11058_v55 }
 0x809   : > { %v3465_v54 = vpop.xlane.xlu0 %3464 }
 0x80a   : > { %11061 = vrsqrt.f32 %v3465_v54  ;;  %v13450_v60 = vadd.f32 %v3407_v7, %v3406_v9  ;;  %vm3502_vm5 = vcmp.eq.f32.partialorder %v3465_v54, inf  ;;  %v3505_v44 = vand.u32 2147483648, %v3465_v54 }
 0x80b   : > { %vm3504_vm7 = vcmp.eq.f32.partialorder %v3465_v54, 0.0 }
 0x80c   : > { %15338 = vst [vmem:[#allocation171_spill] sm:$0xff] %v13450_v60  ;;  %v3467_v38 = vpop.xlane.xlu1 %3466  ;;  %v11060_v6 = vpop.eup %11059 }
 0x80d   : > { %v3461_v46 = vpop.xlane.xlu0 %3460  ;;  %v3545_v42 = vmul.f32 %v11060_v6, %v13357_v48  ;;  %vm3509_vm8 = vcmp.eq.f32.partialorder %v3467_v38, inf  ;;  %vm3511_vm9 = vcmp.eq.f32.partialorder %v3467_v38, 0.0 }
 0x80e   : > { %11063 = vrsqrt.f32 %v3461_v46  ;;  %vm3488_vm10 = vcmp.eq.f32.partialorder %v3461_v46, inf  ;;  %v3491_v9 = vand.u32 2147483648, %v3461_v46  ;;  %vm3490_vm15 = vcmp.eq.f32.partialorder %v3461_v46, 0.0 }
 0x80f   : > { %11065 = vrsqrt.f32 %v3467_v38  ;;  %9393 = vmatmul.mubr.f32.vlgmr.msra.gmra.mrb[34].mxu0 %v3545_v42  ;;  %v3512_v42 = vand.u32 2147483648, %v3467_v38 }
 0x810   : > { %v3463_v10 = vpop.xlane.xlu1 %3462  ;;  %9935 = vmatpush3.bf16.xpose.msra.mxu0 %v12557_v45 }
 0x811   : > { %11067 = vrsqrt.f32 %v3463_v10  ;;  %v3469_v36 = vpop.xlane.xlu0 %3468  ;;  %9941 = vmatprep.subr.bf16.mxu0 %v12601_v21  ;;  %vm3495_vm2 = vcmp.eq.f32.partialorder %v3463_v10, inf  ;;  %vm3497_vm3 = vcmp.eq.f32.partialorder %v3463_v10, 0.0 }
 0x812   : > { %11069 = vrsqrt.f32 %v3469_v36  ;;  %vm3516_vm4 = vcmp.eq.f32.partialorder %v3469_v36, inf }
 0x814   : > { %v11062_v29 = vpop.eup %11061 }
 0x815   : > { %v3501_v30 = vmul.f32 %v11062_v29, %v3465_v54 }
 0x817   : > { %v3503_v37 = vsel %vm3502_vm5, %v3465_v54, %v3501_v30  ;;  %v3471_v40 = vpop.xlane.xlu1 %3470  ;;  %vm3518_vm5 = vcmp.eq.f32.partialorder %v3469_v36, 0.0 }
 0x818   : > { %v11064_v11 = vpop.eup %11063  ;;  %v3506_v33 = vsel %vm3504_vm7, %v3505_v44, %v3503_v37  ;;  %11071 = vrsqrt.f32 %v3471_v40  ;;  %vm3523_vm7 = vcmp.eq.f32.partialorder %v3471_v40, inf }
 0x819   : > { %v11066_v48 = vpop.eup %11065  ;;  %v3532_v55 = vadd.f32 1e-08, %v3506_v33  ;;  %v3487_v7 = vmul.f32 %v11064_v11, %v3461_v46  ;;  %v3498_v11 = vand.u32 2147483648, %v3463_v10 }
 0x81a   : > { %v3508_v6 = vmul.f32 %v11066_v48, %v3467_v38  ;;  %v3519_v48 = vand.u32 2147483648, %v3469_v36 }
 0x81b   : > { %v11068_v59 = vpop.eup %11067  ;;  %11073 = vrcp.f32 %v3532_v55  ;;  %v3489_v29 = vsel %vm3488_vm10, %v3461_v46, %v3487_v7 }
 0x81c   : > { %v11070_v30 = vpop.eup %11069  ;;  %v3492_v54 = vsel %vm3490_vm15, %v3491_v9, %v3489_v29  ;;  %v3510_v45 = vsel %vm3509_vm8, %v3467_v38, %v3508_v6  ;;  %v3494_v51 = vmul.f32 %v11068_v59, %v3463_v10  ;;  %vm3525_vm8 = vcmp.eq.f32.partialorder %v3471_v40, 0.0 }
 0x81d   : > { %v3530_v44 = vadd.f32 1e-08, %v3492_v54  ;;  %v3513_v37 = vsel %vm3511_vm9, %v3512_v42, %v3510_v45  ;;  %v3515_v33 = vmul.f32 %v11070_v30, %v3469_v36  ;;  %v3526_v45 = vand.u32 2147483648, %v3471_v40 }
 0x81e   : > { %v3533_v63 = vadd.f32 1e-08, %v3513_v37  ;;  %v3496_v39 = vsel %vm3495_vm2, %v3463_v10, %v3494_v51 }
 0x81f   : > { %11075 = vrcp.f32 %v3530_v44  ;;  %v3499_v56 = vsel %vm3497_vm3, %v3498_v11, %v3496_v39  ;;  %v3517_v55 = vsel %vm3516_vm4, %v3469_v36, %v3515_v33 }
 0x820   : > { %11077 = vrcp.f32 %v3533_v63  ;;  %v3531_v46 = vadd.f32 1e-08, %v3499_v56  ;;  %v3520_v7 = vsel %vm3518_vm5, %v3519_v48, %v3517_v55 }
 0x821   : > { %v3534_v9 = vadd.f32 1e-08, %v3520_v7 }
 0x822   : > { %v11072_v6 = vpop.eup %11071  ;;  %11079 = vrcp.f32 %v3531_v46 }
 0x823   : > { %11081 = vrcp.f32 %v3534_v9  ;;  %v3522_v59 = vmul.f32 %v11072_v6, %v3471_v40 }
 0x825   : > { %v11074_v38 = vpop.eup %11073  ;;  %v3524_v42 = vsel %vm3523_vm7, %v3471_v40, %v3522_v59 }
 0x826   : > { %v3527_v51 = vsel %vm3525_vm8, %v3526_v45, %v3524_v42  ;;  %v3548_v10 = vmul.f32 %v11074_v38, %v13384_v32 }
 0x827   : > { %v3535_v29 = vadd.f32 1e-08, %v3527_v51 }
 0x828   : > { %9406 = vmatprep.mubr.f32.mxu0 %v3548_v10 }
 0x829   : > { %v11076_v39 = vpop.eup %11075  ;;  %11083 = vrcp.f32 %v3535_v29 }
 0x82a   : > { %v11078_v63 = vpop.eup %11077  ;;  %v3546_v56 = vmul.f32 %v11076_v39, %v13395_v13 }
 0x82b   : > { %v3549_v36 = vmul.f32 %v11078_v63, %v13399_v34  ;;  %v15339_v34 = vsub.s32 3, %v13260_v12 }
 0x82c   : > { %v11080_v30 = vpop.eup %11079  ;;  %9399 = vmatprep.mubr.f32.mxu1 %v3546_v56 }
 0x82d   : > { %v11082_v54 = vpop.eup %11081  ;;  %9407 = vmatmul.mubr.f32.vlgmr.msra.gmra.mrb[36].mxu0 %v3549_v36  ;;  %v3547_v44 = vmul.f32 %v11080_v30, %v13405_v31  ;;  %v13471_v31 = vrot.slane %v13427_v52, %v15339_v34  ;;  %v11988_v52 = vmov 1966171168   ;;  %v11603_v34 = vld [vmem:[%s12359_s17] sm:$0x1] }
 0x82e   : > { %v3550_v40 = vmul.f32 %v11082_v54, %v13413_v25  ;;  %9943 = vmatpush3.bf16.msra.mxu0 %v12601_v21  ;;  %v3413_v7 = vunpack.c.l.s4 %v11988_v52  ;;  %v4327_v52 = vmul.f32 %v12767_v22, %v12767_v22 }
 0x82f   : > { %9400 = vmatmul.mubr.f32.vlgmr.msra.gmra.mrb[34].mxu1 %v3547_v44  ;;  %9949 = vmatprep.subr.bf16.mxu0 %v12615_v49  ;;  %15340 = vst [vmem:[#allocation172_spill] sm:$0xff] %v13471_v31  ;;  %v3386_v25 = vadd.f32 %v13440_v20, %v13471_v31 }
 0x830   : > { %9939 = vmatpush3.bf16.xpose.msra.mxu1 %v12610_v47  ;;  %9413 = vmatprep.mubr.f32.mxu1 %v3550_v40  ;;  %v3414_v20 = vunpack.c.0.s8 %v3413_v7 }
 0x831   : > { %9945 = vmatprep.subr.bf16.mxu1 %v12619_v50  ;;  %v9014_v37 = vmul.f32 -1.442695, %v3386_v25 }
 0x832   : > { %v13497_v56 = vsub.s32 %v3414_v20, %v13260_v12 }
 0x833   : > { %v11084_v32 = vpop.eup %11083  ;;  %11085 = vpow2.f32 %v9014_v37  ;;  %v4329_v37 = vmul.f32 %v12761_v18, %v12761_v18 }
 0x834   : > { %v3551_v13 = vmul.f32 %v11084_v32, %v13423_v27  ;;  %11087 = vtanh.f32 %v13450_v60  ;;  %15342 = vst [vmem:[#allocation174_spill] sm:$0xff] %v13497_v56  ;;  %v4325_v32 = vmul.f32 %v12755_v0, %v12755_v0 }
 0x837   : > { %9414 = vmatmul.mubr.f32.vlgmr.msra.gmra.mrb[36].mxu1 %v3551_v13  ;;  %v4324_v13 = vmul.f32 %v12757_v17, %v12757_v17 }
 0x838   : > { %9947 = vmatpush3.bf16.msra.mxu1 %v12619_v50 }
 0x839   : > { %9953 = vmatprep.subr.bf16.mxu1 %v12630_v2 }
 0x83d   : > { %v11086_v55 = vpop.eup %11085 }
 0x83e   : > { %v3403_v46 = vadd.f32 1.0, %v11086_v55  ;;  %v11088_v6 = vpop.eup %11087  ;;  %v4326_v55 = vmul.f32 %v12769_v23, %v12769_v23 }
 0x840   : > { %11089 = vrcp.f32 %v3403_v46 }
 0x84a   : > { %v11090_v51 = vpop.eup %11089 }
 0x84b   : > { %v13494_v63 = vmul.f32 %v11090_v51, %v11088_v6 }
 0x84d   : > { %15341 = vst [vmem:[#allocation173_spill] sm:$0xff] %v13494_v63  ;;  %v13501_v36 = vrot.slane %v13494_v63, %v13497_v56 }
 0x84f   : > { %v3426_v12 = vrot.slane %v13501_v36, %v13497_v56 }
 0x851   : > { %v13518_v25 = vadd.f32 %v11603_v34, %v3426_v12  ;;  %v4330_v34 = vmul.f32 %v12775_v3, %v12775_v3 }
 0x8e2   : > { %v9394_v11 = vpop.f32.mrb[34].mxu0 }
 0x8e3   : > { %v3618_v33 = vpop.f32.mrb[35].mxu0  ;;  %v3855_v48 = vsel %vm1318_vm0, %v9394_v11, -inf }
 0x8e4   : > { %3856 = vmax.xlane.f32.xlu1 %v3855_v48  ;;  %v3852_v27 = vsel %vm1318_vm0, %v3618_v33, -inf  ;;  %v4328_v48 = vmul.f32 %v12763_v19, %v12763_v19 }
 0x8e5   : > { %3853 = vmax.xlane.f32.xlu0 %v3852_v27  ;;  %v4268_v27 = vmul.f32 %v13518_v25, %v13518_v25 }
 0x8e7   : > { %v4272_v46 = vsel %vm1739_vm1, %v4268_v27, 0.0 }
 0x900   : > { %v13478_v9 = vpop.f32.mrb[36].mxu0 }
 0x901   : > { %v13480_v59 = vpop.f32.mrb[37].mxu0  ;;  %v3867_v45 = vsel %vm1318_vm0, %v13478_v9, -inf }
 0x902   : > { %3868 = vmax.xlane.f32.xlu1 %v3867_v45  ;;  %v3864_v38 = vsel %vm1318_vm0, %v13480_v59, -inf  ;;  %v13486_v42 = vpop.f32.mrb[34].mxu1 }
 0x903   : > { %3865 = vmax.xlane.f32.xlu0 %v3864_v38  ;;  %v13488_v10 = vpop.f32.mrb[35].mxu1  ;;  %v3861_v29 = vsel %vm1318_vm0, %v13486_v42, -inf }
 0x904   : > { %v3858_v39 = vsel %vm1318_vm0, %v13488_v10, -inf }
 0x906   : > { %3862 = vmax.xlane.f32.xlu1 %v3861_v29  ;;  %v3434_v29 = vcombine.high %v3426_v12, %v3426_v12 }
 0x907   : > { %3859 = vmax.xlane.f32.xlu0 %v3858_v39  ;;  %v11604_v39 = vld [vmem:[%s12359_s17 + $0x2] sm:$0x1] }
 0x90a   : > { %v13503_v30 = vpop.f32.mrb[36].mxu1 }
 0x90b   : > { %v13505_v54 = vpop.f32.mrb[37].mxu1  ;;  %v3873_v44 = vsel %vm1318_vm0, %v13503_v30, -inf }
 0x90c   : > { %3874 = vmax.xlane.f32.xlu1 %v3873_v44  ;;  %v3870_v40 = vsel %vm1318_vm0, %v13505_v54, -inf  ;;  %v13532_v44 = vadd.f32 %v11604_v39, %v3434_v29 }
 0x90d   : > { %3871 = vmax.xlane.f32.xlu0 %v3870_v40 }
 0x910   : > { %4334 = vadd.xlane.f32.xlu1 %v4325_v32 }
 0x911   : > { %4332 = vadd.xlane.f32.xlu0 %v4324_v13 }
 0x914   : > { %4342 = vadd.xlane.f32.xlu1 %v4329_v37 }
 0x915   : > { %4340 = vadd.xlane.f32.xlu0 %v4328_v48 }
 0x918   : > { %4336 = vadd.xlane.f32.xlu1 %v4326_v55 }
 0x919   : > { %4273 = vadd.xlane.f32.xlu0 %v4272_v46 }
 0x91d   : > { %4338 = vadd.xlane.f32.xlu0 %v4327_v52 }
 0x971   : > { %v3857_v7 = vpop.xlane.xlu1 %3856 }
 0x972   : > { %v3877_v20 = vsub.f32 %v9394_v11, %v3857_v7  ;;  %v3854_v6 = vpop.xlane.xlu0 %3853  ;;  %v4270_v11 = vmul.f32 %v13532_v44, %v13532_v44 }
 0x973   : > { %v3876_v45 = vsub.f32 %v3618_v33, %v3854_v6 }
 0x974   : > { %v3886_v38 = vmul.f32 1.442695, %v3877_v20  ;;  %v4278_v12 = vsel %vm1739_vm1, %v4270_v11, 0.0 }
 0x975   : > { %v3884_v51 = vmul.f32 1.442695, %v3876_v45 }
 0x976   : > { %11091 = vpow2.f32 %v3886_v38  ;;  %v3419_v38 = vcombine.high %v13501_v36, %v13501_v36 }
 0x977   : > { %11093 = vpow2.f32 %v3884_v51 }
 0x978   : > { %v3433_v39 = vrot.slane %v3419_v38, %v13497_v56 }
 0x980   : > { %v13534_v40 = vpop.eup %11091 }
 0x981   : > { %v13536_v32 = vpop.eup %11093  ;;  %v3903_v13 = vsel %vm1318_vm0, %v13534_v40, 0.0 }
 0x982   : > { %3904 = vadd.xlane.f32.xlu1 %v3903_v13  ;;  %v3900_v33 = vsel %vm1318_vm0, %v13536_v32, 0.0 }
 0x983   : > { %3901 = vadd.xlane.f32.xlu0 %v3900_v33 }
 0x986   : > { %4279 = vadd.xlane.f32.xlu1 %v4278_v12 }
 0x987   : > { %4344 = vadd.xlane.f32.xlu0 %v4330_v34 }
 0x98f   : > { %v3869_v37 = vpop.xlane.xlu1 %3868 }
 0x990   : > { %v3881_v48 = vsub.f32 %v13478_v9, %v3869_v37  ;;  %v3866_v27 = vpop.xlane.xlu0 %3865 }
 0x991   : > { %v3880_v55 = vsub.f32 %v13480_v59, %v3866_v27 }
 0x992   : > { %v3894_v46 = vmul.f32 1.442695, %v3881_v48  ;;  %v11605_v48 = vld [vmem:[%s12359_s17 + $0x1] sm:$0x1] }
 0x993   : > { %v3892_v52 = vmul.f32 1.442695, %v3880_v55  ;;  %v3863_v7 = vpop.xlane.xlu1 %3862  ;;  %v13570_v27 = vadd.f32 %v11605_v48, %v3433_v39 }
 0x994   : > { %11095 = vpow2.f32 %v3894_v46  ;;  %v3879_v20 = vsub.f32 %v13486_v42, %v3863_v7  ;;  %v3860_v6 = vpop.xlane.xlu0 %3859  ;;  %v11606_v46 = vld [vmem:[%s12359_s17 + $0x3] sm:$0x1] }
 0x995   : > { %11097 = vpow2.f32 %v3892_v52  ;;  %v3878_v45 = vsub.f32 %v13488_v10, %v3860_v6  ;;  %v3435_v10 = vcombine.high %v3433_v39, %v3433_v39  ;;  %v4331_v6 = vmul.f32 %v12773_v28, %v12773_v28 }
 0x996   : > { %v3890_v51 = vmul.f32 1.442695, %v3879_v20  ;;  %v4269_v38 = vmul.f32 %v13570_v27, %v13570_v27 }
 0x997   : > { %v3888_v29 = vmul.f32 1.442695, %v3878_v45  ;;  %v13574_v52 = vadd.f32 %v11606_v46, %v3435_v10 }
 0x999   : > { %11099 = vpow2.f32 %v3888_v29  ;;  %v3875_v9 = vpop.xlane.xlu1 %3874 }
 0x99a   : > { %v3883_v59 = vsub.f32 %v13503_v30, %v3875_v9  ;;  %v3872_v13 = vpop.xlane.xlu0 %3871  ;;  %11101 = vpow2.f32 %v3890_v51  ;;  %v4271_v9 = vmul.f32 %v13574_v52, %v13574_v52 }
 0x99b   : > { %v3882_v42 = vsub.f32 %v13505_v54, %v3872_v13 }
 0x99c   : > { %v3898_v11 = vmul.f32 1.442695, %v3883_v59 }
 0x99d   : > { %v3896_v33 = vmul.f32 1.442695, %v3882_v42  ;;  %v13556_v12 = vpop.xlane.xlu1 %4334  ;;  %v4275_v42 = vsel %vm1739_vm1, %v4269_v38, 0.0 }
 0x99e   : > { %v13558_v36 = vpop.eup %11095  ;;  %11103 = vpow2.f32 %v3898_v11  ;;  %v13560_v34 = vpop.xlane.xlu0 %4332  ;;  %vm4357_vm9 = vcmp.eq.f32.partialorder %v13556_v12, inf  ;;  %vm4359_vm10 = vcmp.eq.f32.partialorder %v13556_v12, 0.0 }
 0x99f   : > { %v13562_v37 = vpop.eup %11097  ;;  %11105 = vpow2.f32 %v3896_v33  ;;  %v3915_v30 = vsel %vm1318_vm0, %v13558_v36, 0.0  ;;  %v4281_v33 = vsel %vm1739_vm1, %v4271_v9, 0.0  ;;  %vm4350_vm15 = vcmp.eq.f32.partialorder %v13560_v34, inf }
 0x9a0   : > { %11107 = vrsqrt.f32 %v13556_v12  ;;  %v3912_v54 = vsel %vm1318_vm0, %v13562_v37, 0.0  ;;  %3916 = vadd.xlane.f32.xlu1 %v3915_v30  ;;  %v4360_v30 = vand.u32 2147483648, %v13556_v12  ;;  %vm4352_vm2 = vcmp.eq.f32.partialorder %v13560_v34, 0.0 }
 0x9a1   : > { %11109 = vrsqrt.f32 %v13560_v34  ;;  %3913 = vadd.xlane.f32.xlu0 %v3912_v54  ;;  %v4343_v55 = vpop.xlane.xlu1 %4342  ;;  %v4353_v9 = vand.u32 2147483648, %v13560_v34 }
 0x9a2   : > { %11111 = vrsqrt.f32 %v4343_v55  ;;  %v4341_v7 = vpop.xlane.xlu0 %4340  ;;  %vm4385_vm3 = vcmp.eq.f32.partialorder %v4343_v55, inf  ;;  %vm4387_vm4 = vcmp.eq.f32.partialorder %v4343_v55, 0.0  ;;  %v4388_v31 = vand.u32 2147483648, %v4343_v55 }
 0x9a3   : > { %v13576_v20 = vpop.eup %11099  ;;  %11113 = vrsqrt.f32 %v4341_v7  ;;  %vm4378_vm5 = vcmp.eq.f32.partialorder %v4341_v7, inf  ;;  %vm4380_vm7 = vcmp.eq.f32.partialorder %v4341_v7, 0.0 }
 0x9a4   : > { %v3906_v45 = vsel %vm1318_vm0, %v13576_v20, 0.0  ;;  %v13584_v51 = vpop.eup %11101  ;;  %4346 = vadd.xlane.f32.xlu1 %v4331_v6 }
 0x9a5   : > { %3907 = vadd.xlane.f32.xlu0 %v3906_v45  ;;  %v4337_v29 = vpop.xlane.xlu1 %4336  ;;  %v3909_v13 = vsel %vm1318_vm0, %v13584_v51, 0.0 }
 0x9a6   : > { %11115 = vrsqrt.f32 %v4337_v29  ;;  %v13588_v39 = vpop.xlane.xlu0 %4273  ;;  %vm4364_vm8 = vcmp.eq.f32.partialorder %v4337_v29, inf }
 0x9a8   : > { %v13590_v59 = vpop.eup %11103  ;;  %3910 = vadd.xlane.f32.xlu1 %v3909_v13 }
 0x9a9   : > { %v13595_v11 = vpop.eup %11105  ;;  %4276 = vadd.xlane.f32.xlu0 %v4275_v42 }
 0x9aa   : > { %v11108_v10 = vpop.eup %11107  ;;  %v4339_v54 = vpop.xlane.xlu0 %4338  ;;  %v3918_v48 = vsel %vm1318_vm0, %v13595_v11, 0.0 }
 0x9ab   : > { %v11110_v46 = vpop.eup %11109  ;;  %v4356_v6 = vmul.f32 %v11108_v10, %v13556_v12  ;;  %11117 = vrsqrt.f32 %v4339_v54 }
 0x9ac   : > { %v11112_v45 = vpop.eup %11111  ;;  %v4349_v38 = vmul.f32 %v11110_v46, %v13560_v34  ;;  %4282 = vadd.xlane.f32.xlu1 %v4281_v33 }
 0x9ad   : > { %v11114_v13 = vpop.eup %11113  ;;  %v4358_v42 = vsel %vm4357_vm9, %v13556_v12, %v4356_v6  ;;  %v4384_v56 = vmul.f32 %v11112_v45, %v4343_v55  ;;  %3919 = vadd.xlane.f32.xlu0 %v3918_v48  ;;  %v4381_v6 = vand.u32 2147483648, %v4341_v7  ;;  %v3921_v12 = vsel %vm1318_vm0, %v13590_v59, 0.0 }
 0x9ae   : > { %v4361_v10 = vsel %vm4359_vm10, %v4360_v30, %v4358_v42  ;;  %v4351_v46 = vsel %vm4350_vm15, %v13560_v34, %v4349_v38  ;;  %v4377_v50 = vmul.f32 %v11114_v13, %v4341_v7  ;;  %v4367_v34 = vand.u32 2147483648, %v4337_v29 }
 0x9af   : > { %v4405_v21 = vadd.f32 1e-08, %v4361_v10  ;;  %v4354_v60 = vsel %vm4352_vm2, %v4353_v9, %v4351_v46  ;;  %v4386_v47 = vsel %vm4385_vm3, %v4343_v55, %v4384_v56  ;;  %vm4366_vm9 = vcmp.eq.f32.partialorder %v4337_v29, 0.0 }
 0x9b0   : > { %v11116_v45 = vpop.eup %11115  ;;  %v4404_v63 = vadd.f32 1e-08, %v4354_v60  ;;  %v4389_v33 = vsel %vm4387_vm4, %v4388_v31, %v4386_v47  ;;  %v4379_v48 = vsel %vm4378_vm5, %v4341_v7, %v4377_v50  ;;  %3922 = vadd.xlane.f32.xlu1 %v3921_v12  ;;  %vm4371_vm10 = vcmp.eq.f32.partialorder %v4339_v54, inf }
 0x9b1   : > { %11119 = vrcp.f32 %v4405_v21  ;;  %v4409_v30 = vadd.f32 1e-08, %v4389_v33  ;;  %v4382_v42 = vsel %vm4380_vm7, %v4381_v6, %v4379_v48  ;;  %v4363_v38 = vmul.f32 %v11116_v45, %v4337_v29 }
 0x9b2   : > { %11121 = vrcp.f32 %v4404_v63  ;;  %v4408_v13 = vadd.f32 1e-08, %v4382_v42  ;;  %v4374_v31 = vand.u32 2147483648, %v4339_v54  ;;  %vm4373_vm15 = vcmp.eq.f32.partialorder %v4339_v54, 0.0 }
 0x9b3   : > { %11123 = vrcp.f32 %v4409_v30  ;;  %v4365_v56 = vsel %vm4364_vm8, %v4337_v29, %v4363_v38  ;;  %vm4286_vm2 = vcmp.eq.f32.partialorder %v13588_v39, inf  ;;  %vm4288_vm3 = vcmp.eq.f32.partialorder %v13588_v39, 0.0 }
 0x9b4   : > { %11125 = vrcp.f32 %v4408_v13  ;;  %v4368_v60 = vsel %vm4366_vm9, %v4367_v34, %v4365_v56 }
 0x9b5   : > { %v11118_v55 = vpop.eup %11117  ;;  %v4406_v47 = vadd.f32 1e-08, %v4368_v60 }
 0x9b6   : > { %v4370_v50 = vmul.f32 %v11118_v55, %v4339_v54 }
 0x9b7   : > { %11127 = vrcp.f32 %v4406_v47 }
 0x9b8   : > { %v4372_v7 = vsel %vm4371_vm10, %v4339_v54, %v4370_v50 }
 0x9b9   : > { %v4375_v21 = vsel %vm4373_vm15, %v4374_v31, %v4372_v7 }
 0x9ba   : > { %v4407_v9 = vadd.f32 1e-08, %v4375_v21  ;;  %v15343_v21 = vmov 0.0|0.0  }
 0x9bb   : > { %v11120_v10 = vpop.eup %11119 }
 0x9bc   : > { %v11122_v63 = vpop.eup %11121  ;;  %11129 = vrcp.f32 %v4407_v9  ;;  %v13622_v46 = vmul.f32 %v11120_v10, %v12755_v0 }
 0x9bd   : > { %v11124_v6 = vpop.eup %11123  ;;  %v13625_v29 = vmul.f32 %v11122_v63, %v12757_v17 }
 0x9be   : > { %v11126_v45 = vpop.eup %11125  ;;  %v13628_v33 = vmul.f32 %v11124_v6, %v12761_v18 }
 0x9bf   : > { %v13633_v48 = vmul.f32 %v11126_v45, %v12763_v19 }
 0x9c1   : > { %v11128_v30 = vpop.eup %11127 }
 0x9c2   : > { %v13638_v38 = vmul.f32 %v11128_v30, %v12769_v23 }
 0x9c6   : > { %v11130_v42 = vpop.eup %11129 }
 0x9c7   : > { %v13641_v13 = vmul.f32 %v11130_v42, %v12767_v22 }
 0xa0f   : > { %v3905_v56 = vpop.xlane.xlu1 %3904 }
 0xa10   : > { %11131 = vrcp.f32 %v3905_v56  ;;  %v3902_v60 = vpop.xlane.xlu0 %3901 }
 0xa11   : > { %11133 = vrcp.f32 %v3902_v60 }
 0xa12   : > { %11135 = vrsqrt.f32 %v13588_v39 }
 0xa13   : > { %v4280_v7 = vpop.xlane.xlu1 %4279 }
 0xa14   : > { %v4345_v9 = vpop.xlane.xlu0 %4344  ;;  %11137 = vrsqrt.f32 %v4280_v7  ;;  %vm4300_vm4 = vcmp.eq.f32.partialorder %v4280_v7, inf  ;;  %vm4302_vm7 = vcmp.eq.f32.partialorder %v4280_v7, 0.0 }
 0xa15   : > { %11139 = vrsqrt.f32 %v4345_v9  ;;  %vm4392_vm5 = vcmp.eq.f32.partialorder %v4345_v9, inf  ;;  %vm4394_vm8 = vcmp.eq.f32.partialorder %v4345_v9, 0.0 }
 0xa1a   : > { %v11132_v55 = vpop.eup %11131 }
 0xa1b   : > { %v11134_v47 = vpop.eup %11133  ;;  %v3933_v31 = vmul.f32 %v11132_v55, %v13534_v40  ;;  %v4289_v40 = vand.u32 2147483648, %v13588_v39 }
 0xa1c   : > { %v3932_v50 = vmul.f32 %v11134_v47, %v13536_v32  ;;  %v11136_v10 = vpop.eup %11135 }
 0xa1d   : > { %v4285_v63 = vmul.f32 %v11136_v10, %v13588_v39 }
 0xa1e   : > { %9420 = vmatprep.mubr.msk.f32.mxu0 %vm1318_vm0, %v3932_v50  ;;  %v11138_v30 = vpop.eup %11137 }
 0xa1f   : > { %9421 = vmatmul.mubr.msk.f32.vlgmr.msra.gmra.mrb[38].mxu0 %vm1318_vm0, %v3933_v31  ;;  %v4287_v32 = vsel %vm4286_vm2, %v13588_v39, %v4285_v63  ;;  %v11140_v56 = vpop.eup %11139  ;;  %v4299_v55 = vmul.f32 %v11138_v30, %v4280_v7  ;;  %v4303_v39 = vand.u32 2147483648, %v4280_v7 }
 0xa20   : > { %9951 = vmatpush3.bf16.msra.mxu0 %v12615_v49  ;;  %v4290_v42 = vsel %vm4288_vm3, %v4289_v40, %v4287_v32  ;;  %v4391_v31 = vmul.f32 %v11140_v56, %v4345_v9 }
 0xa21   : > { %9956 = vmatprep.subr.bf16.mxu0 %v15343_v21  ;;  %v4312_v60 = vadd.f32 1e-08, %v4290_v42  ;;  %v4301_v10 = vsel %vm4300_vm4, %v4280_v7, %v4299_v55 }
 0xa22   : > { %v4393_v32 = vsel %vm4392_vm5, %v4345_v9, %v4391_v31 }
 0xa2d   : > { %v3917_v6 = vpop.xlane.xlu1 %3916 }
 0xa2e   : > { %v3914_v45 = vpop.xlane.xlu0 %3913  ;;  %11141 = vrcp.f32 %v3917_v6  ;;  %v4304_v6 = vsel %vm4302_vm7, %v4303_v39, %v4301_v10 }
 0xa2f   : > { %11143 = vrcp.f32 %v3914_v45  ;;  %v4395_v45 = vand.u32 2147483648, %v4345_v9 }
 0xa31   : > { %v4347_v47 = vpop.xlane.xlu1 %4346  ;;  %v4396_v56 = vsel %vm4394_vm8, %v4395_v45, %v4393_v32 }
 0xa32   : > { %v3908_v50 = vpop.xlane.xlu0 %3907  ;;  %11145 = vrsqrt.f32 %v4347_v47  ;;  %v4410_v7 = vadd.f32 1e-08, %v4396_v56  ;;  %vm4399_vm9 = vcmp.eq.f32.partialorder %v4347_v47, inf  ;;  %v4402_v39 = vand.u32 2147483648, %v4347_v47 }
 0xa33   : > { %11147 = vrcp.f32 %v3908_v50  ;;  %v4314_v50 = vadd.f32 1e-08, %v4304_v6  ;;  %vm4401_vm10 = vcmp.eq.f32.partialorder %v4347_v47, 0.0 }
 0xa34   : > { %11149 = vrcp.f32 %v4312_v60 }
 0xa35   : > { %v3911_v63 = vpop.xlane.xlu1 %3910 }
 0xa36   : > { %v4277_v34 = vpop.xlane.xlu0 %4276  ;;  %11151 = vrcp.f32 %v3911_v63 }
 0xa37   : > { %11153 = vrsqrt.f32 %v4277_v34  ;;  %vm4293_vm15 = vcmp.eq.f32.partialorder %v4277_v34, inf  ;;  %vm4295_vm2 = vcmp.eq.f32.partialorder %v4277_v34, 0.0 }
 0xa38   : > { %v11142_v40 = vpop.eup %11141 }
 0xa39   : > { %v11144_v30 = vpop.eup %11143  ;;  %v4283_v42 = vpop.xlane.xlu1 %4282  ;;  %v3937_v54 = vmul.f32 %v11142_v40, %v13558_v36  ;;  %v15344_v36 = vpack.c.bf16 %v13622_v46, %v13625_v29 }
 0xa3a   : > { %v3920_v12 = vpop.xlane.xlu0 %3919  ;;  %11155 = vrsqrt.f32 %v4283_v42  ;;  %v3936_v60 = vmul.f32 %v11144_v30, %v13562_v37  ;;  %vm4307_vm3 = vcmp.eq.f32.partialorder %v4283_v42, inf  ;;  %vm4309_vm4 = vcmp.eq.f32.partialorder %v4283_v42, 0.0 }
 0xa3b   : > { %11157 = vrcp.f32 %v3920_v12 }
 0xa3c   : > { %v11146_v55 = vpop.eup %11145  ;;  %9434 = vmatprep.mubr.msk.f32.mxu0 %vm1318_vm0, %v3936_v60 }
 0xa3d   : > { %v11148_v63 = vpop.eup %11147  ;;  %v4398_v31 = vmul.f32 %v11146_v55, %v4347_v47  ;;  %v3923_v10 = vpop.xlane.xlu1 %3922  ;;  %9435 = vmatmul.mubr.msk.f32.vlgmr.msra.gmra.mrb[40].mxu0 %vm1318_vm0, %v3937_v54 }
 0xa3e   : > { %11159 = vrcp.f32 %v3923_v10  ;;  %v3934_v9 = vmul.f32 %v11148_v63, %v13576_v20  ;;  %v11150_v32 = vpop.eup %11149  ;;  %9958 = vmatpush3.bf16.xpose.msra.mxu0 %v15344_v36  ;;  %9448 = vmatprep.mubr.msk.f32.mxu0 %vm11986_vm6, %v15232_v4 }
 0xa3f   : > { %11161 = vrcp.f32 %v4314_v50  ;;  %v4400_v12 = vsel %vm4399_vm9, %v4347_v47, %v4398_v31  ;;  %9962 = vmatprep.subr.bf16.mxu0 %v15343_v21  ;;  %v4296_v47 = vand.u32 2147483648, %v4277_v34  ;;  %v4320_v30 = vmul.f32 %v11150_v32, %v13518_v25 }
 0xa40   : > { %v11152_v37 = vpop.eup %11151  ;;  %v4403_v40 = vsel %vm4401_vm10, %v4402_v39, %v4400_v12  ;;  %9427 = vmatprep.mubr.msk.f32.mxu1 %vm1318_vm0, %v3934_v9  ;;  %11163 = vrcp.f32 %v4410_v7  ;;  %v15347_v12 = vpack.c.bf16 %v12755_v0, %v12757_v17  ;;  %v15348_v17 = vpack.c.bf16 %v12767_v22, %v12769_v23  ;;  %v15384_v22 = vld [vmem:[#allocation68_spill] sm:$0xff] }
 0xa41   : > { %v11154_v54 = vpop.eup %11153  ;;  %v4411_v20 = vadd.f32 1e-08, %v4403_v40  ;;  %v3935_v6 = vmul.f32 %v11152_v37, %v13584_v51  ;;  %v4310_v51 = vand.u32 2147483648, %v4283_v42  ;;  %v15386_v40 = vld [vmem:[#allocation73_spill] sm:$0xff] }
 0xa42   : > { %v4292_v45 = vmul.f32 %v11154_v54, %v4277_v34 }
 0xa43   : > { %11165 = vrcp.f32 %v4411_v20  ;;  %9428 = vmatmul.mubr.msk.f32.vlgmr.msra.gmra.mrb[38].mxu1 %vm1318_vm0, %v3935_v6  ;;  %v15385_v6 = vld [vmem:[#allocation71_spill] sm:$0xff] }
 0xa44   : > { %v11156_v46 = vpop.eup %11155  ;;  %v4294_v29 = vsel %vm4293_vm15, %v4277_v34, %v4292_v45  ;;  %9955 = vmatpush3.bf16.msra.mxu1 %v12630_v2  ;;  %v15345_v34 = vpack.c.bf16 %v13628_v33, %v13633_v48 }
 0xa45   : > { %v11158_v56 = vpop.eup %11157  ;;  %v4297_v50 = vsel %vm4295_vm2, %v4296_v47, %v4294_v29  ;;  %v4306_v60 = vmul.f32 %v11156_v46, %v4283_v42  ;;  %9959 = vmatprep.subr.bf16.mxu1 %v15343_v21  ;;  %9449 = vmatmul.mubr.f32.vlgmr.msra.gmra.mrb[42].mxu0 %v4320_v30 }
 0xa46   : > { %v4313_v55 = vadd.f32 1e-08, %v4297_v50  ;;  %v3938_v63 = vmul.f32 %v11158_v56, %v13595_v11  ;;  %9964 = vmatpush3.bf16.xpose.msra.mxu0 %v15345_v34  ;;  %9462 = vmatprep.mubr.msk.f32.mxu0 %vm11986_vm6, %v15232_v4  ;;  %v15383_v56 = vld [vmem:[#allocation66_spill] sm:$0xff] }
 0xa47   : > { %v4308_v7 = vsel %vm4307_vm3, %v4283_v42, %v4306_v60  ;;  %9968 = vmatprep.subr.bf16.mxu0 %v15343_v21  ;;  %v15346_v42 = vpack.c.bf16 %v13641_v13, %v13638_v38 }
 0xa48   : > { %v11160_v25 = vpop.eup %11159  ;;  %11167 = vrcp.f32 %v4313_v55  ;;  %v4311_v31 = vsel %vm4309_vm4, %v4310_v51, %v4308_v7  ;;  %9441 = vmatprep.mubr.msk.f32.mxu1 %vm1318_vm0, %v3938_v63 }
 0xa49   : > { %v11162_v10 = vpop.eup %11161  ;;  %v3939_v39 = vmul.f32 %v11160_v25, %v13590_v59  ;;  %v4315_v11 = vadd.f32 1e-08, %v4311_v31 }
 0xa4a   : > { %v11164_v9 = vpop.eup %11163  ;;  %v4322_v33 = vmul.f32 %v11162_v10, %v13532_v44 }
 0xa4b   : > { %9442 = vmatmul.mubr.msk.f32.vlgmr.msra.gmra.mrb[40].mxu1 %vm1318_vm0, %v3939_v39  ;;  %11169 = vrcp.f32 %v4315_v11  ;;  %v4426_v59 = vmul.f32 %v11164_v9, %v12775_v3 }
 0xa4c   : > { %9455 = vmatprep.mubr.msk.f32.mxu1 %vm11986_vm6, %v15232_v4 }
 0xa4d   : > { %v11166_v48 = vpop.eup %11165  ;;  %9961 = vmatpush3.bf16.xpose.msra.mxu1 %v15346_v42  ;;  %9463 = vmatmul.mubr.f32.vlgmr.msra.gmra.mrb[44].mxu0 %v4322_v33 }
 0xa4e   : > { %9965 = vmatprep.subr.bf16.mxu1 %v15343_v21  ;;  %v4427_v32 = vmul.f32 %v11166_v48, %v12773_v28  ;;  %9970 = vmatpush3.bf16.msra.mxu0 %v15347_v12 }
 0xa4f   : > { %9476 = vmatprep.mubr.msk.f32.mxu0 %vm11986_vm6, %v15232_v4  ;;  %9974 = vmatprep.subr.bf16.mxu0 %v15343_v21 }
 0xa50   : > { %v9966_v44 = vpack.c.bf16 %v4427_v32, %v4426_v59 }
 0xa52   : > { %v11168_v38 = vpop.eup %11167 }
 0xa53   : > { %v4321_v13 = vmul.f32 %v11168_v38, %v13570_v27 }
 0xa55   : > { %9456 = vmatmul.mubr.f32.vlgmr.msra.gmra.mrb[42].mxu1 %v4321_v13  ;;  %v11170_v36 = vpop.eup %11169 }
 0xa56   : > { %9967 = vmatpush3.bf16.xpose.msra.mxu1 %v9966_v44  ;;  %9469 = vmatprep.mubr.msk.f32.mxu1 %vm11986_vm6, %v15232_v4  ;;  %v4323_v0 = vmul.f32 %v11170_v36, %v13574_v52 }
 0xa57   : > { %9971 = vmatprep.subr.bf16.mxu1 %v15343_v21 }
 0xa5d   : > { %9470 = vmatmul.mubr.f32.vlgmr.msra.gmra.mrb[44].mxu1 %v4323_v0 }
 0xa5e   : > { %9973 = vmatpush3.bf16.msra.mxu1 %v15348_v17  ;;  %9483 = vmatprep.mubr.msk.f32.mxu1 %vm11986_vm6, %v15232_v4 }
 0xa5f   : > { %9977 = vmatprep.subr.bf16.mxu1 %v15343_v21 }
 0xaf2   : > { %v13710_v27 = vpop.f32.mrb[38].mxu0 }
 0xaf3   : > { %v13712_v37 = vpop.f32.mrb[39].mxu0 }
 0xb10   : > { %v13716_v54 = vpop.f32.mrb[40].mxu0 }
 0xb11   : > { %v13718_v52 = vpop.f32.mrb[41].mxu0 }
 0xb16   : > { %v13722_v23 = vpop.f32.mrb[38].mxu1 }
 0xb17   : > { %v13724_v20 = vpop.f32.mrb[39].mxu1 }
 0xb18   : > { %v4494_v45 = vpop.f32.mrb[42].mxu0 }
 0xb19   : > { %v9450_v47 = vpop.f32.mrb[43].mxu0  ;;  %v4708_v46 = vsel %vm2072_vm11, %v4494_v45, -inf }
 0xb1a   : > { %4709 = vmax.xlane.f32.xlu0 %v4708_v46 }
 0xb1e   : > { %v13729_v29 = vpop.f32.mrb[40].mxu1 }
 0xb1f   : > { %v13731_v30 = vpop.f32.mrb[41].mxu1 }
 0xb20   : > { %v4634_v50 = vpop.f32.mrb[44].mxu0 }
 0xb21   : > { %v9464_v60 = vpop.f32.mrb[45].mxu0  ;;  %v4714_v55 = vsel %vm2072_vm11, %v4634_v50, -inf }
 0xb22   : > { %4715 = vmax.xlane.f32.xlu1 %v4714_v55 }
 0xb28   : > { %v4564_v51 = vpop.f32.mrb[42].mxu1 }
 0xb29   : > { %v9457_v63 = vpop.f32.mrb[43].mxu1  ;;  %v4711_v7 = vsel %vm2072_vm11, %v4564_v51, -inf }
 0xb2a   : > { %4712 = vmax.xlane.f32.xlu0 %v4711_v7  ;;  %v15349_v7 = vpack.c.bf16 %v12761_v18, %v12763_v19 }
 0xb30   : > { %v4704_v34 = vpop.f32.mrb[44].mxu1 }
 0xb31   : > { %v9471_v25 = vpop.f32.mrb[45].mxu1  ;;  %v4717_v31 = vsel %vm2072_vm11, %v4704_v34, -inf }
 0xb32   : > { %4718 = vmax.xlane.f32.xlu1 %v4717_v31 }
 0xba7   : > { %v4710_v10 = vpop.xlane.xlu0 %4709 }
 0xba8   : > { %v4720_v39 = vsub.f32 %v4494_v45, %v4710_v10 }
 0xbaa   : > { %v4724_v11 = vmul.f32 1.442695, %v4720_v39  ;;  %v15350_v39 = vpack.c.bf16 %v12773_v28, %v12775_v3  ;;  %v15351_v28 = vld [vmem:[#allocation37_spill] sm:$0xff]  ;;  %v15352_v3 = vld [vmem:[#allocation36_spill] sm:$0xff] }
 0xbac   : > { %11171 = vpow2.f32 %v4724_v11 }
 0xbaf   : > { %v4716_v9 = vpop.xlane.xlu1 %4715 }
 0xbb0   : > { %v4722_v33 = vsub.f32 %v4634_v50, %v4716_v9 }
 0xbb2   : > { %v4728_v48 = vmul.f32 1.442695, %v4722_v33  ;;  %v15353_v33 = vld [vmem:[#allocation39_spill] sm:$0xff] }
 0xbb4   : > { %11173 = vpow2.f32 %v4728_v48  ;;  %v15354_v48 = vld [vmem:[#allocation38_spill] sm:$0xff] }
 0xbb6   : > { %v11172_v42 = vpop.eup %11171 }
 0xbb7   : > { %v4713_v59 = vpop.xlane.xlu0 %4712  ;;  %v4732_v32 = vsel %vm2072_vm11, %v11172_v42, 0.0 }
 0xbb8   : > { %v4721_v12 = vsub.f32 %v4564_v51, %v4713_v59  ;;  %4733 = vadd.xlane.f32.xlu0 %v4732_v32  ;;  %v15356_v59 = vld [vmem:[#allocation40_spill] sm:$0xff]  ;;  %v15357_v32 = vld [vmem:[#allocation43_spill] sm:$0xff] }
 0xbba   : > { %v4726_v44 = vmul.f32 1.442695, %v4721_v12  ;;  %v15358_v12 = vld [vmem:[#allocation42_spill] sm:$0xff] }
 0xbbc   : > { %11175 = vpow2.f32 %v4726_v44  ;;  %v15359_v44 = vld [vmem:[#allocation45_spill] sm:$0xff] }
 0xbbe   : > { %v11174_v38 = vpop.eup %11173 }
 0xbbf   : > { %v4719_v13 = vpop.xlane.xlu1 %4718  ;;  %v4738_v0 = vsel %vm2072_vm11, %v11174_v38, 0.0 }
 0xbc0   : > { %v4723_v36 = vsub.f32 %v4704_v34, %v4719_v13  ;;  %4739 = vadd.xlane.f32.xlu1 %v4738_v0  ;;  %v15361_v13 = vld [vmem:[#allocation47_spill] sm:$0xff]  ;;  %v15363_v0 = vld [vmem:[#allocation50_spill] sm:$0xff] }
 0xbc2   : > { %v4730_v17 = vmul.f32 1.442695, %v4723_v36  ;;  %v15362_v36 = vld [vmem:[#allocation46_spill] sm:$0xff] }
 0xbc4   : > { %11177 = vpow2.f32 %v4730_v17  ;;  %v15364_v17 = vld [vmem:[#allocation48_spill] sm:$0xff] }
 0xbc6   : > { %v11176_v45 = vpop.eup %11175 }
 0xbc7   : > { %v4735_v47 = vsel %vm2072_vm11, %v11176_v45, 0.0 }
 0xbc8   : > { %4736 = vadd.xlane.f32.xlu0 %v4735_v47  ;;  %v15366_v47 = vld [vmem:[#allocation49_spill] sm:$0xff] }
 0xbce   : > { %v11178_v46 = vpop.eup %11177 }
 0xbcf   : > { %v4741_v50 = vsel %vm2072_vm11, %v11178_v46, 0.0 }
 0xbd0   : > { %4742 = vadd.xlane.f32.xlu1 %v4741_v50  ;;  %v15368_v50 = vld [vmem:[#allocation51_spill] sm:$0xff] }
 0xc45   : > { %v4734_v60 = vpop.xlane.xlu0 %4733 }
 0xc46   : > { %11179 = vrcp.f32 %v4734_v60  ;;  %v15369_v60 = vld [vmem:[#allocation56_spill] sm:$0xff] }
 0xc4d   : > { %v4740_v55 = vpop.xlane.xlu1 %4739 }
 0xc4e   : > { %11181 = vrcp.f32 %v4740_v55  ;;  %v15370_v55 = vld [vmem:[#allocation53_spill] sm:$0xff] }
 0xc50   : > { %v11180_v51 = vpop.eup %11179 }
 0xc51   : > { %v4748_v63 = vmul.f32 %v11180_v51, %v11172_v42  ;;  %v15355_v42 = vld [vmem:[#allocation41_spill] sm:$0xff]  ;;  %v15371_v51 = vld [vmem:[#allocation58_spill] sm:$0xff] }
 0xc53   : > { %9477 = vmatmul.mubr.msk.f32.vlgmr.msra.gmra.mrb[46].mxu0 %vm1318_vm0, %v4748_v63  ;;  %v15372_v63 = vld [vmem:[#allocation55_spill] sm:$0xff] }
 0xc54   : > { %9976 = vmatpush3.bf16.msra.mxu0 %v15349_v7  ;;  %9490 = vmatprep.mubr.msk.f32.mxu0 %vm11986_vm6, %v15232_v4  ;;  %v15373_v7 = vld [vmem:[#allocation60_spill] sm:$0xff] }
 0xc55   : > { %v4737_v34 = vpop.xlane.xlu0 %4736  ;;  %9981 = vmatprep.subr.bf16.mxu0 %v12790_v15 }
 0xc56   : > { %11183 = vrcp.f32 %v4737_v34  ;;  %v15374_v34 = vld [vmem:[#allocation57_spill] sm:$0xff] }
 0xc58   : > { %v11182_v25 = vpop.eup %11181 }
 0xc59   : > { %v4750_v31 = vmul.f32 %v11182_v25, %v11174_v38  ;;  %v15360_v38 = vld [vmem:[#allocation44_spill] sm:$0xff]  ;;  %v15375_v25 = vld [vmem:[#allocation61_spill] sm:$0xff] }
 0xc5b   : > { %9491 = vmatmul.mubr.msk.f32.vlgmr.msra.gmra.mrb[48].mxu0 %vm1318_vm0, %v4750_v31  ;;  %v15376_v31 = vld [vmem:[#allocation59_spill] sm:$0xff] }
 0xc5c   : > { %9983 = vmatpush1.bf16.msra.mxu0 %v12797_v35  ;;  %5108 = vmatprep.mubr.f32.mxu0 %v15232_v4 }
 0xc5d   : > { %v4743_v10 = vpop.xlane.xlu1 %4742  ;;  %9985 = vmatprep.subr.bf16.mxu0 %v12799_v24 }
 0xc5e   : > { %11185 = vrcp.f32 %v4743_v10  ;;  %v15377_v10 = vld [vmem:[#allocation63_spill] sm:$0xff] }
 0xc60   : > { %v11184_v18 = vpop.eup %11183  ;;  %9987 = vmatpush1.bf16.msra.mxu0 %v12803_v1 }
 0xc61   : > { %v4749_v19 = vmul.f32 %v11184_v18, %v11176_v45  ;;  %9989 = vmatprep.subr.bf16.mxu0 %v12807_v5  ;;  %v15365_v45 = vld [vmem:[#allocation52_spill] sm:$0xff]  ;;  %v15378_v18 = vld [vmem:[#allocation65_spill] sm:$0xff] }
 0xc63   : > { %9484 = vmatmul.mubr.msk.f32.vlgmr.msra.gmra.mrb[46].mxu1 %vm1318_vm0, %v4749_v19  ;;  %v15379_v19 = vld [vmem:[#allocation62_spill] sm:$0xff] }
 0xc64   : > { %9979 = vmatpush3.bf16.msra.mxu1 %v15350_v39  ;;  %9497 = vmatprep.mubr.msk.f32.mxu1 %vm11986_vm6, %v15232_v4  ;;  %v15380_v39 = vld [vmem:[#allocation64_spill] sm:$0xff] }
 0xc65   : > { %9991 = vmatpush1.bf16.msra.mxu0 %v12814_v58  ;;  %10013 = vmatprep.subr.bf16.mxu1 %v12809_v57 }
 0xc66   : > { %9993 = vmatprep.subr.bf16.mxu0 %v12819_v61 }
 0xc68   : > { %v11186_v11 = vpop.eup %11185 }
 0xc69   : > { %v4751_v9 = vmul.f32 %v11186_v11, %v11178_v46  ;;  %9995 = vmatpush1.bf16.msra.mxu0 %v12823_v14  ;;  %v15367_v46 = vld [vmem:[#allocation54_spill] sm:$0xff]  ;;  %v15381_v11 = vld [vmem:[#allocation67_spill] sm:$0xff] }
 0xc6a   : > { %9997 = vmatprep.subr.bf16.mxu0 %v12829_v26 }
 0xc6b   : > { %9498 = vmatmul.mubr.msk.f32.vlgmr.msra.gmra.mrb[48].mxu1 %vm1318_vm0, %v4751_v9  ;;  %v15382_v9 = vld [vmem:[#allocation69_spill] sm:$0xff] }
 0xc6c   : > { %10015 = vmatpush1.bf16.msra.mxu1 %v12825_v53  ;;  %5221 = vmatprep.mubr.f32.mxu1 %v15232_v4 }
 0xc6d   : > { %9999 = vmatpush1.bf16.msra.mxu0 %v12836_v41  ;;  %10017 = vmatprep.subr.bf16.mxu1 %v12831_v16 }
 0xc6e   : > { %10001 = vmatprep.subr.bf16.mxu0 %v15351_v28 }
 0xc70   : > { %10019 = vmatpush1.bf16.msra.mxu1 %v15352_v3 }
 0xc71   : > { %10003 = vmatpush1.bf16.msra.mxu0 %v15353_v33  ;;  %10021 = vmatprep.subr.bf16.mxu1 %v15354_v48 }
 0xc72   : > { %10005 = vmatprep.subr.bf16.mxu0 %v15355_v42 }
 0xc74   : > { %10023 = vmatpush1.bf16.msra.mxu1 %v15356_v59 }
 0xc75   : > { %10007 = vmatpush1.bf16.msra.mxu0 %v15357_v32  ;;  %10025 = vmatprep.subr.bf16.mxu1 %v15358_v12 }
 0xc76   : > { %10009 = vmatprep.subr.bf16.mxu0 %v15359_v44 }
 0xc78   : > { %10027 = vmatpush1.bf16.msra.mxu1 %v15360_v38 }
 0xc79   : > { %10011 = vmatpush1.bf16.msra.mxu0 %v15361_v13  ;;  %10029 = vmatprep.subr.bf16.mxu1 %v15362_v36  ;;  %v15480_v36 = vld [vmem:[#allocation155_spill] sm:$0xff] }
 0xc7a   : > { %10045 = vmatprep.subr.bf16.mxu0 %v15363_v0 }
 0xc7c   : > { %5109 = vmatmul.mubr.f32.vlgmr.msra.gmra.mrb[50].mxu0 %v13712_v37  ;;  %10031 = vmatpush1.bf16.msra.mxu1 %v15364_v17 }
 0xc7d   : > { %10047 = vmatpush1.bf16.msra.mxu0 %v15365_v45  ;;  %5114 = vmatprep.mubr.f32.mxu0 %v15232_v4 }
 0xc7e   : > { %10033 = vmatprep.subr.bf16.mxu1 %v15366_v47  ;;  %10049 = vmatprep.subr.bf16.mxu0 %v15367_v46 }
 0xc80   : > { %5115 = vmatmul.mubr.f32.gmra.mrb[52].mxu0 %v13710_v27  ;;  %10035 = vmatpush1.bf16.msra.mxu1 %v15368_v50 }
 0xc81   : > { %10051 = vmatpush1.bf16.msra.mxu0 %v15369_v60  ;;  %5120 = vmatprep.mubr.f32.mxu0 %v15232_v4 }
 0xc82   : > { %10037 = vmatprep.subr.bf16.mxu1 %v15370_v55  ;;  %10053 = vmatprep.subr.bf16.mxu0 %v15371_v51 }
 0xc84   : > { %5121 = vmatmul.mubr.f32.gmra.mrb[54].mxu0 %v13724_v20  ;;  %10039 = vmatpush1.bf16.msra.mxu1 %v15372_v63  ;;  %v15478_v63 = vld [vmem:[#allocation153_spill] sm:$0xff] }
 0xc85   : > { %10055 = vmatpush1.bf16.msra.mxu0 %v15373_v7  ;;  %5126 = vmatprep.mubr.f32.mxu0 %v15232_v4  ;;  %v15421_v7 = vld [vmem:[#allocation107_spill] sm:$0xff] }
 0xc86   : > { %10041 = vmatprep.subr.bf16.mxu1 %v15374_v34  ;;  %10057 = vmatprep.subr.bf16.mxu0 %v15375_v25  ;;  %v15409_v25 = vld [vmem:[#allocation89_spill] sm:$0xff] }
 0xc88   : > { %5127 = vmatmul.mubr.f32.gmra.mrb[56].mxu0 %v13722_v23  ;;  %10043 = vmatpush1.bf16.msra.mxu1 %v15376_v31 }
 0xc89   : > { %10059 = vmatpush1.bf16.msra.mxu0 %v15377_v10  ;;  %5132 = vmatprep.mubr.f32.mxu0 %v15232_v4  ;;  %v15391_v10 = vld [vmem:[#allocation74_spill] sm:$0xff] }
 0xc8a   : > { %10061 = vmatprep.subr.bf16.mxu0 %v15378_v18  ;;  %10077 = vmatprep.subr.bf16.mxu1 %v15379_v19  ;;  %v15389_v18 = vld [vmem:[#allocation75_spill] sm:$0xff] }
 0xc8b   : > { %5222 = vmatmul.mubr.f32.vlgmr.msra.gmra.mrb[50].mxu1 %v13712_v37 }
 0xc8c   : > { %5133 = vmatmul.mubr.f32.gmra.mrb[58].mxu0 %v13718_v52  ;;  %10079 = vmatpush1.bf16.msra.mxu1 %v15380_v39 }
 0xc8d   : > { %10063 = vmatpush1.bf16.msra.mxu0 %v15381_v11  ;;  %5138 = vmatprep.mubr.f32.mxu0 %v15232_v4  ;;  %v15387_v11 = vld [vmem:[#allocation70_spill] sm:$0xff] }
 0xc8e   : > { %5227 = vmatprep.mubr.f32.mxu1 %v15232_v4  ;;  %10065 = vmatprep.subr.bf16.mxu0 %v15382_v9  ;;  %v15388_v9 = vld [vmem:[#allocation72_spill] sm:$0xff] }
 0xc8f   : > { %5228 = vmatmul.mubr.f32.gmra.mrb[52].mxu1 %v13710_v27  ;;  %10081 = vmatprep.subr.bf16.mxu1 %v15383_v56 }
 0xc90   : > { %5139 = vmatmul.mubr.f32.gmra.mrb[60].mxu0 %v13716_v54  ;;  %10083 = vmatpush1.bf16.msra.mxu1 %v15384_v22  ;;  %v15416_v22 = vld [vmem:[#allocation103_spill] sm:$0xff] }
 0xc91   : > { %10067 = vmatpush1.bf16.msra.mxu0 %v15385_v6  ;;  %5144 = vmatprep.mubr.f32.mxu0 %v15232_v4  ;;  %v15390_v6 = vld [vmem:[#allocation77_spill] sm:$0xff] }
 0xc92   : > { %5233 = vmatprep.mubr.f32.mxu1 %v15232_v4  ;;  %10069 = vmatprep.subr.bf16.mxu0 %v15386_v40  ;;  %v15392_v40 = vld [vmem:[#allocation76_spill] sm:$0xff] }
 0xc93   : > { %5234 = vmatmul.mubr.f32.gmra.mrb[54].mxu1 %v13724_v20  ;;  %10085 = vmatprep.subr.bf16.mxu1 %v15387_v11  ;;  %v15393_v11 = vld [vmem:[#allocation79_spill] sm:$0xff] }
 0xc94   : > { %5145 = vmatmul.mubr.f32.gmra.mrb[62].mxu0 %v13731_v30  ;;  %10087 = vmatpush1.bf16.msra.mxu1 %v15388_v9  ;;  %v15395_v9 = vld [vmem:[#allocation82_spill] sm:$0xff] }
 0xc95   : > { %10071 = vmatpush1.bf16.msra.mxu0 %v15389_v18  ;;  %5150 = vmatprep.mubr.f32.mxu0 %v15232_v4  ;;  %v15394_v18 = vld [vmem:[#allocation78_spill] sm:$0xff] }
 0xc96   : > { %5239 = vmatprep.mubr.f32.mxu1 %v15232_v4  ;;  %10073 = vmatprep.subr.bf16.mxu0 %v15390_v6  ;;  %v15396_v6 = vld [vmem:[#allocation80_spill] sm:$0xff] }
 0xc97   : > { %5240 = vmatmul.mubr.f32.gmra.mrb[56].mxu1 %v13722_v23  ;;  %10089 = vmatprep.subr.bf16.mxu1 %v15391_v10  ;;  %v15399_v10 = vld [vmem:[#allocation88_spill] sm:$0xff] }
 0xc98   : > { %5151 = vmatmul.mubr.f32.gmra.mrb[64].mxu0 %v13729_v29  ;;  %10091 = vmatpush1.bf16.msra.mxu1 %v15392_v40  ;;  %v15397_v40 = vld [vmem:[#allocation81_spill] sm:$0xff] }
 0xc99   : > { %10075 = vmatpush1.bf16.msra.mxu0 %v15393_v11  ;;  %5245 = vmatprep.mubr.f32.mxu1 %v15232_v4  ;;  %v15398_v11 = vld [vmem:[#allocation85_spill] sm:$0xff] }
 0xc9a   : > { %5334 = vmatprep.mubr.f32.mxu0 %v15232_v4  ;;  %10093 = vmatprep.subr.bf16.mxu1 %v15394_v18  ;;  %v15400_v18 = vld [vmem:[#allocation83_spill] sm:$0xff] }
 0xc9b   : > { %5246 = vmatmul.mubr.f32.gmra.mrb[58].mxu1 %v13718_v52  ;;  %10109 = vmatprep.subr.bf16.mxu0 %v15395_v9  ;;  %v15401_v9 = vld [vmem:[#allocation84_spill] sm:$0xff] }
 0xc9c   : > { %5335 = vmatmul.mubr.f32.vlgmr.msra.gmra.mrb[50].mxu0 %v13337_v62  ;;  %10095 = vmatpush1.bf16.msra.mxu1 %v15396_v6  ;;  %v15402_v6 = vld [vmem:[#allocation91_spill] sm:$0xff] }
 0xc9d   : > { %5251 = vmatprep.mubr.f32.mxu1 %v15232_v4  ;;  %5340 = vmatprep.mubr.f32.mxu0 %v15232_v4 }
 0xc9e   : > { %10097 = vmatprep.subr.bf16.mxu1 %v15397_v40  ;;  %10111 = vmatpush1.bf16.msra.mxu0 %v15398_v11  ;;  %v15403_v40 = vld [vmem:[#allocation93_spill] sm:$0xff]  ;;  %v15404_v11 = vld [vmem:[#allocation86_spill] sm:$0xff] }
 0xc9f   : > { %5252 = vmatmul.mubr.f32.gmra.mrb[60].mxu1 %v13716_v54  ;;  %10113 = vmatprep.subr.bf16.mxu0 %v15399_v10  ;;  %v15405_v10 = vld [vmem:[#allocation87_spill] sm:$0xff] }
 0xca0   : > { %5341 = vmatmul.mubr.f32.gmra.mrb[52].mxu0 %v13351_v8  ;;  %10099 = vmatpush1.bf16.msra.mxu1 %v15400_v18  ;;  %v15406_v18 = vld [vmem:[#allocation95_spill] sm:$0xff] }
 0xca1   : > { %5257 = vmatprep.mubr.f32.mxu1 %v15232_v4  ;;  %5346 = vmatprep.mubr.f32.mxu0 %v15232_v4 }
 0xca2   : > { %10101 = vmatprep.subr.bf16.mxu1 %v15401_v9  ;;  %10115 = vmatpush1.bf16.msra.mxu0 %v15402_v6  ;;  %v15407_v9 = vld [vmem:[#allocation97_spill] sm:$0xff] }
 0xca3   : > { %5258 = vmatmul.mubr.f32.gmra.mrb[62].mxu1 %v13731_v30  ;;  %10117 = vmatprep.subr.bf16.mxu0 %v15403_v40  ;;  %v15408_v6 = vld [vmem:[#allocation165_spill] sm:$0xff]  ;;  %v15410_v40 = vld [vmem:[#allocation90_spill] sm:$0xff] }
 0xca4   : > { %5347 = vmatmul.mubr.f32.gmra.mrb[54].mxu0 %v13378_v43  ;;  %10103 = vmatpush1.bf16.msra.mxu1 %v15404_v11  ;;  %v15411_v11 = vld [vmem:[#allocation99_spill] sm:$0xff] }
 0xca5   : > { %5263 = vmatprep.mubr.f32.mxu1 %v15232_v4  ;;  %5352 = vmatprep.mubr.f32.mxu0 %v15232_v4 }
 0xca6   : > { %10105 = vmatprep.subr.bf16.mxu1 %v15405_v10  ;;  %10119 = vmatpush1.bf16.msra.mxu0 %v15406_v18  ;;  %v15412_v10 = vld [vmem:[#allocation101_spill] sm:$0xff]  ;;  %v15413_v18 = vld [vmem:[#allocation162_spill] sm:$0xff] }
 0xca7   : > { %5264 = vmatmul.mubr.f32.gmra.mrb[64].mxu1 %v13729_v29  ;;  %10121 = vmatprep.subr.bf16.mxu0 %v15407_v9  ;;  %v15414_v9 = vld [vmem:[#allocation92_spill] sm:$0xff] }
 0xca8   : > { %5353 = vmatmul.mubr.f32.gmra.mrb[56].mxu0 %v15408_v6  ;;  %10107 = vmatpush1.bf16.msra.mxu1 %v15409_v25  ;;  %v15415_v25 = vld [vmem:[#allocation94_spill] sm:$0xff] }
 0xca9   : > { %5358 = vmatprep.mubr.f32.mxu0 %v15232_v4  ;;  %5447 = vmatprep.mubr.f32.mxu1 %v15232_v4 }
 0xcaa   : > { %10141 = vmatprep.subr.bf16.mxu1 %v15410_v40  ;;  %10123 = vmatpush1.bf16.msra.mxu0 %v15411_v11  ;;  %v15417_v40 = vld [vmem:[#allocation105_spill] sm:$0xff]  ;;  %v15418_v11 = vld [vmem:[#allocation164_spill] sm:$0xff] }
 0xcab   : > { %5448 = vmatmul.mubr.f32.vlgmr.msra.gmra.mrb[50].mxu1 %v13337_v62  ;;  %10125 = vmatprep.subr.bf16.mxu0 %v15412_v10  ;;  %v15419_v62 = vld [vmem:[#allocation96_spill] sm:$0xff]  ;;  %v15420_v10 = vld [vmem:[#allocation98_spill] sm:$0xff] }
 0xcac   : > { %5359 = vmatmul.mubr.f32.gmra.mrb[58].mxu0 %v15413_v18  ;;  %5453 = vmatprep.mubr.f32.mxu1 %v15232_v4 }
 0xcad   : > { %5364 = vmatprep.mubr.f32.mxu0 %v15232_v4  ;;  %10143 = vmatpush1.bf16.msra.mxu1 %v15414_v9  ;;  %v15426_v9 = vld [vmem:[#allocation111_spill] sm:$0xff] }
 0xcae   : > { %10145 = vmatprep.subr.bf16.mxu1 %v15415_v25  ;;  %10127 = vmatpush1.bf16.msra.mxu0 %v15416_v22  ;;  %v15422_v25 = vld [vmem:[#allocation110_spill] sm:$0xff] }
 0xcaf   : > { %5454 = vmatmul.mubr.f32.gmra.mrb[52].mxu1 %v13351_v8  ;;  %10129 = vmatprep.subr.bf16.mxu0 %v15417_v40  ;;  %v15423_v22 = vld [vmem:[#allocation166_spill] sm:$0xff]  ;;  %v15424_v8 = vld [vmem:[#allocation100_spill] sm:$0xff] }
 0xcb0   : > { %5365 = vmatmul.mubr.f32.gmra.mrb[60].mxu0 %v15418_v11  ;;  %5459 = vmatprep.mubr.f32.mxu1 %v15232_v4  ;;  %v15425_v40 = vld [vmem:[#allocation102_spill] sm:$0xff] }
 0xcb1   : > { %5370 = vmatprep.mubr.f32.mxu0 %v15232_v4  ;;  %10147 = vmatpush1.bf16.msra.mxu1 %v15419_v62  ;;  %v15431_v62 = vld [vmem:[#allocation116_spill] sm:$0xff] }
 0xcb2   : > { %10149 = vmatprep.subr.bf16.mxu1 %v15420_v10  ;;  %10131 = vmatpush1.bf16.msra.mxu0 %v15421_v7  ;;  %v15427_v10 = vld [vmem:[#allocation113_spill] sm:$0xff]  ;;  %v15428_v7 = vld [vmem:[#allocation167_spill] sm:$0xff] }
 0xcb3   : > { %5460 = vmatmul.mubr.f32.gmra.mrb[54].mxu1 %v13378_v43  ;;  %10133 = vmatprep.subr.bf16.mxu0 %v15422_v25  ;;  %v15429_v43 = vld [vmem:[#allocation104_spill] sm:$0xff]  ;;  %v15430_v25 = vld [vmem:[#allocation106_spill] sm:$0xff] }
 0xcb4   : > { %5371 = vmatmul.mubr.f32.gmra.mrb[62].mxu0 %v15423_v22  ;;  %5465 = vmatprep.mubr.f32.mxu1 %v15232_v4 }
 0xcb5   : > { %5376 = vmatprep.mubr.f32.mxu0 %v15232_v4  ;;  %10151 = vmatpush1.bf16.msra.mxu1 %v15424_v8 }
 0xcb6   : > { %10153 = vmatprep.subr.bf16.mxu1 %v15425_v40  ;;  %10135 = vmatpush1.bf16.msra.mxu0 %v15426_v9  ;;  %v15432_v40 = vld [vmem:[#allocation118_spill] sm:$0xff]  ;;  %v15435_v9 = vld [vmem:[#allocation112_spill] sm:$0xff] }
 0xcb7   : > { %5466 = vmatmul.mubr.f32.gmra.mrb[56].mxu1 %v15408_v6  ;;  %10137 = vmatprep.subr.bf16.mxu0 %v15427_v10  ;;  %v15433_v6 = vld [vmem:[#allocation108_spill] sm:$0xff]  ;;  %v15434_v10 = vld [vmem:[#allocation109_spill] sm:$0xff] }
 0xcb8   : > { %5377 = vmatmul.mubr.f32.gmra.mrb[64].mxu0 %v15428_v7  ;;  %5471 = vmatprep.mubr.f32.mxu1 %v15232_v4 }
 0xcb9   : > { %10155 = vmatpush1.bf16.msra.mxu1 %v15429_v43  ;;  %5795 = vmatprep.mubr.f32.mxu0 %v15232_v4  ;;  %v15436_v43 = vld [vmem:[#allocation114_spill] sm:$0xff] }
 0xcba   : > { %10157 = vmatprep.subr.bf16.mxu1 %v15430_v25  ;;  %10139 = vmatpush1.bf16.msra.mxu0 %v15431_v62  ;;  %v15439_v62 = vld [vmem:[#allocation119_spill] sm:$0xff] }
 0xcbb   : > { %5472 = vmatmul.mubr.f32.gmra.mrb[58].mxu1 %v15413_v18  ;;  %10173 = vmatprep.subr.bf16.mxu0 %v15432_v40  ;;  %v15437_v18 = vld [vmem:[#allocation115_spill] sm:$0xff]  ;;  %v15438_v40 = vld [vmem:[#allocation117_spill] sm:$0xff] }
 0xcbc   : > { %5477 = vmatprep.mubr.f32.mxu1 %v15232_v4 }
 0xcbd   : > { %10159 = vmatpush1.bf16.msra.mxu1 %v15433_v6 }
 0xcbe   : > { %10161 = vmatprep.subr.bf16.mxu1 %v15434_v10 }
 0xcbf   : > { %5478 = vmatmul.mubr.f32.gmra.mrb[60].mxu1 %v15418_v11  ;;  %v15440_v11 = vld [vmem:[#allocation120_spill] sm:$0xff] }
 0xcc0   : > { %5483 = vmatprep.mubr.f32.mxu1 %v15232_v4 }
 0xcc1   : > { %10163 = vmatpush1.bf16.msra.mxu1 %v15435_v9 }
 0xcc2   : > { %10165 = vmatprep.subr.bf16.mxu1 %v15436_v43 }
 0xcc3   : > { %5484 = vmatmul.mubr.f32.gmra.mrb[62].mxu1 %v15423_v22 }
 0xcc4   : > { %5489 = vmatprep.mubr.f32.mxu1 %v15232_v4 }
 0xcc5   : > { %10167 = vmatpush1.bf16.msra.mxu1 %v15437_v18 }
 0xcc6   : > { %10169 = vmatprep.subr.bf16.mxu1 %v15438_v40 }
 0xcc7   : > { %5490 = vmatmul.mubr.f32.gmra.mrb[64].mxu1 %v15428_v7 }
 0xcc8   : > { %5866 = vmatprep.mubr.f32.mxu1 %v15232_v4 }
 0xcc9   : > { %10171 = vmatpush1.bf16.msra.mxu1 %v15439_v62 }
 0xcca   : > { %10205 = vmatprep.subr.bf16.mxu1 %v15440_v11  ;;  %v15441_v11 = vld [vmem:[#allocation121_spill] sm:$0xff] }
 0xd26   : > { %v4821_v10 = vpop.f32.mrb[46].mxu0 }
 0xd27   : > { %v9478_v9 = vpop.f32.mrb[47].mxu0 }
 0xd28   : > { %v15442_v9 = vld [vmem:[#allocation122_spill] sm:$0xff] }
 0xd2e   : > { %v4967_v6 = vpop.f32.mrb[48].mxu0 }
 0xd2f   : > { %v9492_v43 = vpop.f32.mrb[49].mxu0  ;;  %v5726_v56 = vrot.slane %v4967_v6, 6  ;;  %v15452_v6 = vld [vmem:[#allocation132_spill] sm:$0xff] }
 0xd30   : > { %v15443_v43 = vld [vmem:[#allocation123_spill] sm:$0xff] }
 0xd36   : > { %v4894_v25 = vpop.f32.mrb[46].mxu1 }
 0xd37   : > { %v5724_v22 = vrot.slane %v4894_v25, 7  ;;  %v9485_v8 = vpop.f32.mrb[47].mxu1  ;;  %v15444_v25 = vld [vmem:[#allocation124_spill] sm:$0xff] }
 0xd38   : > { %v15451_v8 = vld [vmem:[#allocation131_spill] sm:$0xff] }
 0xd39   : > { %v5725_v18 = vsel %vm3090_vm12, %v5724_v22, %v4821_v10  ;;  %v15447_v10 = vld [vmem:[#allocation127_spill] sm:$0xff]  ;;  %v15454_v22 = vld [vmem:[#allocation134_spill] sm:$0xff] }
 0xd3a   : > { %v5727_v40 = vsel %vm3093_vm13, %v5726_v56, %v5725_v18  ;;  %v15445_v56 = vld [vmem:[#allocation125_spill] sm:$0xff] }
 0xd3b   : > { %v15453_v18 = vld [vmem:[#allocation133_spill] sm:$0xff] }
 0xd3e   : > { %v5040_v51 = vpop.f32.mrb[48].mxu1 }
 0xd3f   : > { %v5728_v7 = vrot.slane %v5040_v51, 5  ;;  %v9499_v39 = vpop.f32.mrb[49].mxu1  ;;  %v15446_v51 = vld [vmem:[#allocation126_spill] sm:$0xff] }
 0xd40   : > { %v15450_v39 = vld [vmem:[#allocation130_spill] sm:$0xff] }
 0xd41   : > { %v5729_v60 = vsel %vm3096_vm14, %v5728_v7, %v5727_v40  ;;  %v15448_v40 = vld [vmem:[#allocation128_spill] sm:$0xff]  ;;  %v15455_v7 = vld [vmem:[#allocation135_spill] sm:$0xff] }
 0xd42   : > { %5796 = vmatmul.mubr.f32.vlgmr.msra.gmra.mrb[66].mxu0 %v5729_v60  ;;  %5867 = vmatmul.mubr.f32.vlgmr.msra.gmra.mrb[66].mxu1 %v5729_v60  ;;  %v15449_v60 = vld [vmem:[#allocation129_spill] sm:$0xff] }
 0xd43   : > { %10175 = vmatpush1.bf16.msra.mxu0 %v15441_v11  ;;  %10207 = vmatpush1.bf16.msra.mxu1 %v15442_v9 }
 0xd44   : > { %10177 = vmatprep.subr.bf16.mxu0 %v15443_v43  ;;  %10209 = vmatprep.subr.bf16.mxu1 %v15444_v25 }
 0xd45   : > { %5937 = vmatprep.mubr.f32.mxu0 %v15232_v4  ;;  %6008 = vmatprep.mubr.f32.mxu1 %v15232_v4 }
 0xd47   : > { %10179 = vmatpush1.bf16.msra.mxu0 %v15445_v56  ;;  %10211 = vmatpush1.bf16.msra.mxu1 %v15446_v51  ;;  %v15456_v56 = vld [vmem:[#allocation136_spill] sm:$0xff]  ;;  %v15457_v51 = vld [vmem:[#allocation137_spill] sm:$0xff] }
 0xd48   : > { %10181 = vmatprep.subr.bf16.mxu0 %v15447_v10  ;;  %10213 = vmatprep.subr.bf16.mxu1 %v15448_v40  ;;  %v15458_v10 = vld [vmem:[#allocation138_spill] sm:$0xff]  ;;  %v15459_v40 = vld [vmem:[#allocation139_spill] sm:$0xff] }
 0xd4b   : > { %10183 = vmatpush1.bf16.msra.mxu0 %v15449_v60  ;;  %10215 = vmatpush1.bf16.msra.mxu1 %v15450_v39  ;;  %v15460_v60 = vld [vmem:[#allocation140_spill] sm:$0xff]  ;;  %v15461_v39 = vld [vmem:[#allocation141_spill] sm:$0xff] }
 0xd4c   : > { %10185 = vmatprep.subr.bf16.mxu0 %v15451_v8  ;;  %10217 = vmatprep.subr.bf16.mxu1 %v15452_v6  ;;  %v15462_v8 = vld [vmem:[#allocation142_spill] sm:$0xff]  ;;  %v15463_v6 = vld [vmem:[#allocation143_spill] sm:$0xff] }
 0xd4f   : > { %10187 = vmatpush1.bf16.msra.mxu0 %v15453_v18  ;;  %10219 = vmatpush1.bf16.msra.mxu1 %v15454_v22  ;;  %v15464_v18 = vld [vmem:[#allocation144_spill] sm:$0xff]  ;;  %v15465_v22 = vld [vmem:[#allocation145_spill] sm:$0xff] }
 0xd50   : > { %10189 = vmatprep.subr.bf16.mxu0 %v15455_v7  ;;  %10221 = vmatprep.subr.bf16.mxu1 %v15456_v56  ;;  %v15466_v7 = vld [vmem:[#allocation146_spill] sm:$0xff]  ;;  %v15467_v56 = vld [vmem:[#allocation147_spill] sm:$0xff] }
 0xd53   : > { %10191 = vmatpush1.bf16.msra.mxu0 %v15457_v51  ;;  %10223 = vmatpush1.bf16.msra.mxu1 %v15458_v10  ;;  %v15468_v51 = vld [vmem:[#allocation148_spill] sm:$0xff]  ;;  %v15469_v10 = vld [vmem:[#allocation149_spill] sm:$0xff] }
 0xd54   : > { %10193 = vmatprep.subr.bf16.mxu0 %v15459_v40  ;;  %10225 = vmatprep.subr.bf16.mxu1 %v15460_v60  ;;  %v15470_v40 = vld [vmem:[#allocation150_spill] sm:$0xff]  ;;  %v15471_v60 = vld [vmem:[#allocation27_spill] sm:$0xff] }
 0xd57   : > { %10195 = vmatpush1.bf16.msra.mxu0 %v15461_v39  ;;  %10227 = vmatpush1.bf16.msra.mxu1 %v15462_v8  ;;  %v15472_v39 = vld [vmem:[#allocation29_spill] sm:$0xff] }
 0xd58   : > { %10197 = vmatprep.subr.bf16.mxu0 %v15463_v6  ;;  %10229 = vmatprep.subr.bf16.mxu1 %v15464_v18  ;;  %v15473_v8 = vld [vmem:[#allocation173_spill] sm:$0xff]  ;;  %v15477_v18 = vld [vmem:[#allocation152_spill] sm:$0xff] }
 0xd5b   : > { %10199 = vmatpush1.bf16.msra.mxu0 %v15465_v22  ;;  %10231 = vmatpush1.bf16.msra.mxu1 %v15466_v7  ;;  %v15474_v7 = vld [vmem:[#allocation28_spill] sm:$0xff] }
 0xd5c   : > { %10201 = vmatprep.subr.bf16.mxu0 %v15467_v56  ;;  %10233 = vmatprep.subr.bf16.mxu1 %v15468_v51  ;;  %v15475_v56 = vld [vmem:[#allocation31_spill] sm:$0xff] }
 0xd5f   : > { %10203 = vmatpush1.bf16.msra.mxu0 %v15469_v10  ;;  %10235 = vmatpush1.bf16.msra.mxu1 %v15470_v40  ;;  %v15476_v10 = vld [vmem:[#allocation151_spill] sm:$0xff] }
 0xd60   : > { %10237 = vmatprep.subr.bf16.mxu0 %v15471_v60  ;;  %10241 = vmatprep.subr.bf16.mxu1 %v15472_v39 }
 0xd62   : > { %5938 = vmatmul.mubr.f32.vlgmr.msra.gmra.mrb[66].mxu0 %v15473_v8  ;;  %6009 = vmatmul.mubr.f32.vlgmr.msra.gmra.mrb[66].mxu1 %v15473_v8 }
 0xd68   : > { %10239 = vmatpush3.bf16.xpose.msra.mxu0 %v15471_v60  ;;  %10243 = vmatpush3.bf16.xpose.msra.mxu1 %v15472_v39 }
 0xd69   : > { %10245 = vmatprep.subr.bf16.mxu0 %v15474_v7  ;;  %10249 = vmatprep.subr.bf16.mxu1 %v15475_v56 }
 0xd6f   : > { %v5336_v51 = vpop.f32.mrb[50].mxu0 }
 0xd70   : > { %v5496_v22 = vadd.f32 %v5336_v51, %v15476_v10  ;;  %v5338_v40 = vpop.f32.mrb[51].mxu0 }
 0xd71   : > { %v5497_v6 = vadd.f32 %v5338_v40, %v15477_v18 }
 0xd72   : > { %v9027_v25 = vmul.f32 -1.442695, %v5496_v22 }
 0xd73   : > { %v9035_v43 = vmul.f32 -1.442695, %v5497_v6  ;;  %v5342_v9 = vpop.f32.mrb[52].mxu0 }
 0xd74   : > { %11187 = vpow2.f32 %v9027_v25  ;;  %v5500_v8 = vadd.f32 %v5342_v9, %v15476_v10  ;;  %v5344_v11 = vpop.f32.mrb[53].mxu0 }
 0xd75   : > { %11189 = vpow2.f32 %v9035_v43  ;;  %v5501_v60 = vadd.f32 %v5344_v11, %v15477_v18 }
 0xd76   : > { %v9028_v39 = vmul.f32 -1.442695, %v5500_v8 }
 0xd77   : > { %v9036_v62 = vmul.f32 -1.442695, %v5501_v60  ;;  %v5348_v19 = vpop.f32.mrb[54].mxu0 }
 0xd78   : > { %11191 = vpow2.f32 %v9028_v39  ;;  %v5504_v46 = vadd.f32 %v5348_v19, %v15476_v10  ;;  %v5350_v51 = vpop.f32.mrb[55].mxu0 }
 0xd79   : > { %11193 = vpow2.f32 %v9036_v62  ;;  %v5505_v40 = vadd.f32 %v5350_v51, %v15477_v18 }
 0xd7a   : > { %v9029_v22 = vmul.f32 -1.442695, %v5504_v46 }
 0xd7b   : > { %v9037_v6 = vmul.f32 -1.442695, %v5505_v40  ;;  %v5354_v31 = vpop.f32.mrb[56].mxu0 }
 0xd7c   : > { %11195 = vpow2.f32 %v9029_v22  ;;  %v5508_v9 = vadd.f32 %v5354_v31, %v15476_v10  ;;  %v5356_v25 = vpop.f32.mrb[57].mxu0 }
 0xd7d   : > { %11197 = vpow2.f32 %v9037_v6  ;;  %v5509_v11 = vadd.f32 %v5356_v25, %v15477_v18 }
 0xd7e   : > { %v11188_v43 = vpop.eup %11187  ;;  %v9030_v8 = vmul.f32 -1.442695, %v5508_v9  ;;  %v5449_v60 = vpop.f32.mrb[50].mxu1 }
 0xd7f   : > { %v11190_v39 = vpop.eup %11189  ;;  %v5552_v45 = vadd.f32 1.0, %v11188_v43  ;;  %v9038_v19 = vmul.f32 -1.442695, %v5509_v11  ;;  %v5360_v34 = vpop.f32.mrb[58].mxu0  ;;  %v5498_v43 = vadd.f32 %v5449_v60, %v15478_v63  ;;  %v15479_v11 = vld [vmem:[#allocation154_spill] sm:$0xff] }
 0xd80   : > { %v5451_v62 = vpop.f32.mrb[51].mxu1  ;;  %v5600_v0 = vadd.f32 1.0, %v11190_v39  ;;  %11199 = vpow2.f32 %v9030_v8  ;;  %v5512_v46 = vadd.f32 %v5360_v34, %v15476_v10  ;;  %v5362_v51 = vpop.f32.mrb[59].mxu0 }
 0xd81   : > { %11201 = vrcp.f32 %v5552_v45  ;;  %v5513_v31 = vadd.f32 %v5362_v51, %v15477_v18  ;;  %v5499_v13 = vadd.f32 %v5451_v62, %v15479_v11 }
 0xd82   : > { %v11192_v40 = vpop.eup %11191  ;;  %11203 = vrcp.f32 %v5600_v0  ;;  %v9031_v22 = vmul.f32 -1.442695, %v5512_v46  ;;  %v5455_v6 = vpop.f32.mrb[52].mxu1 }
 0xd83   : > { %v11194_v25 = vpop.eup %11193  ;;  %v5553_v9 = vadd.f32 1.0, %v11192_v40  ;;  %11205 = vpow2.f32 %v9038_v19  ;;  %v5366_v55 = vpop.f32.mrb[60].mxu0  ;;  %v9039_v34 = vmul.f32 -1.442695, %v5513_v31  ;;  %v9043_v19 = vmul.f32 -1.442695, %v5499_v13 }
 0xd84   : > { %v5457_v39 = vpop.f32.mrb[53].mxu1  ;;  %v5601_v8 = vadd.f32 1.0, %v11194_v25  ;;  %11207 = vpow2.f32 %v9031_v22  ;;  %v5516_v45 = vadd.f32 %v5366_v55, %v15476_v10  ;;  %v5368_v44 = vpop.f32.mrb[61].mxu0  ;;  %v5502_v55 = vadd.f32 %v5455_v6, %v15478_v63 }
 0xd85   : > { %11209 = vrcp.f32 %v5553_v9  ;;  %v5517_v60 = vadd.f32 %v5368_v44, %v15477_v18  ;;  %v5503_v9 = vadd.f32 %v5457_v39, %v15479_v11 }
 0xd86   : > { %v11196_v51 = vpop.eup %11195  ;;  %11211 = vrcp.f32 %v5601_v8  ;;  %v5461_v0 = vpop.f32.mrb[54].mxu1  ;;  %v9032_v25 = vmul.f32 -1.442695, %v5516_v45 }
 0xd87   : > { %v11198_v46 = vpop.eup %11197  ;;  %v5554_v50 = vadd.f32 1.0, %v11196_v51  ;;  %11213 = vtanh.f32 %v5498_v43  ;;  %v5372_v40 = vpop.f32.mrb[62].mxu0  ;;  %v9040_v13 = vmul.f32 -1.442695, %v5517_v60  ;;  %v9044_v6 = vmul.f32 -1.442695, %v5503_v9 }
 0xd88   : > { %v5463_v62 = vpop.f32.mrb[55].mxu1  ;;  %v5602_v32 = vadd.f32 1.0, %v11198_v46  ;;  %11215 = vpow2.f32 %v9039_v34  ;;  %v5374_v22 = vpop.f32.mrb[63].mxu0  ;;  %v5520_v44 = vadd.f32 %v5372_v40, %v15476_v10 }
 0xd89   : > { %11217 = vrcp.f32 %v5554_v50  ;;  %v5521_v60 = vadd.f32 %v5374_v22, %v15477_v18  ;;  %v5507_v9 = vadd.f32 %v5463_v62, %v15479_v11 }
 0xd8a   : > { %v11200_v31 = vpop.eup %11199  ;;  %11219 = vrcp.f32 %v5602_v32  ;;  %v13979_v8 = vpop.f32.mrb[56].mxu1 }
 0xd8b   : > { %v11202_v51 = vpop.eup %11201  ;;  %v5555_v43 = vadd.f32 1.0, %v11200_v31  ;;  %11221 = vpow2.f32 %v9043_v19  ;;  %v5378_v47 = vpop.f32.mrb[64].mxu0  ;;  %v9033_v19 = vmul.f32 -1.442695, %v5520_v44  ;;  %v9041_v22 = vmul.f32 -1.442695, %v5521_v60 }
 0xd8c   : > { %v5469_v46 = vpop.f32.mrb[57].mxu1  ;;  %v11204_v34 = vpop.eup %11203  ;;  %11223 = vpow2.f32 %v9032_v25  ;;  %v5506_v25 = vadd.f32 %v5461_v0, %v15478_v63  ;;  %v9045_v62 = vmul.f32 -1.442695, %v5507_v9  ;;  %v5510_v9 = vadd.f32 %v13979_v8, %v15478_v63 }
 0xd8d   : > { %v5380_v45 = vpop.f32.mrb[65].mxu0  ;;  %v11206_v50 = vpop.eup %11205  ;;  %11225 = vrcp.f32 %v5555_v43  ;;  %v5680_v28 = vmul.f32 %v11204_v34, %v15480_v36 }
 0xd8e   : > { %v11208_v32 = vpop.eup %11207  ;;  %v5603_v42 = vadd.f32 1.0, %v11206_v50  ;;  %11227 = vtanh.f32 %v5502_v55  ;;  %v13982_v39 = vpop.f32.mrb[58].mxu1 }
 0xd8f   : > { %v11210_v17 = vpop.eup %11209  ;;  %v5556_v33 = vadd.f32 1.0, %v11208_v32  ;;  %11229 = vpow2.f32 %v9040_v13  ;;  %v5475_v40 = vpop.f32.mrb[59].mxu1  ;;  %v5524_v32 = vadd.f32 %v5378_v47, %v15476_v10  ;;  %v5511_v10 = vadd.f32 %v5469_v46, %v15479_v11 }
 0xd90   : > { %v11212_v31 = vpop.eup %11211  ;;  %11231 = vrcp.f32 %v5603_v42 }
 0xd91   : > { %v11214_v43 = vpop.eup %11213  ;;  %11233 = vrcp.f32 %v5556_v33  ;;  %v9034_v47 = vmul.f32 -1.442695, %v5524_v32  ;;  %v9046_v46 = vmul.f32 -1.442695, %v5511_v10 }
 0xd92   : > { %v11216_v50 = vpop.eup %11215  ;;  %v5688_v55 = vmul.f32 %v11214_v43, %v11202_v51  ;;  %11235 = vpow2.f32 %v9044_v6  ;;  %v13988_v38 = vpop.f32.mrb[60].mxu1 }
 0xd93   : > { %v11218_v13 = vpop.eup %11217  ;;  %v5604_v44 = vadd.f32 1.0, %v11216_v50  ;;  %11237 = vpow2.f32 %v9033_v19  ;;  %v5481_v41 = vpop.f32.mrb[61].mxu1  ;;  %v15482_v19 = vld [vmem:[#allocation156_spill] sm:$0xff] }
 0xd94   : > { %v11220_v36 = vpop.eup %11219  ;;  %v13991_v42 = vadd.f32 %v5688_v55, %v5680_v28  ;;  %11239 = vtanh.f32 %v5506_v25  ;;  %v5681_v60 = vmul.f32 %v11212_v31, %v15482_v19  ;;  %v5519_v10 = vadd.f32 %v5481_v41, %v15479_v11 }
 0xd95   : > { %v11222_v0 = vpop.eup %11221  ;;  %11241 = vrcp.f32 %v5604_v44  ;;  %v5525_v44 = vadd.f32 %v5380_v45, %v15477_v18  ;;  %v15484_v45 = vld [vmem:[#allocation157_spill] sm:$0xff] }
 0xd96   : > { %15481 = vst [vmem:[#allocation36_spill] sm:$0xff] %v13991_v42  ;;  %v11224_v33 = vpop.eup %11223  ;;  %11243 = vtanh.f32 %v13991_v42  ;;  %v5656_v51 = vadd.f32 1.0, %v11222_v0  ;;  %v13994_v34 = vpop.f32.mrb[62].mxu1  ;;  %v5682_v19 = vmul.f32 %v11220_v36, %v15484_v45  ;;  %v5514_v36 = vadd.f32 %v13982_v39, %v15478_v63 }
 0xd97   : > { %v13996_v6 = vpop.eup %11225  ;;  %v5557_v43 = vadd.f32 1.0, %v11224_v33  ;;  %11245 = vpow2.f32 %v9041_v22  ;;  %v5487_v50 = vpop.f32.mrb[63].mxu1  ;;  %v5518_v39 = vadd.f32 %v13988_v38, %v15478_v63 }
 0xd98   : > { %v11228_v28 = vpop.eup %11227  ;;  %11247 = vrcp.f32 %v5656_v51  ;;  %v5523_v45 = vadd.f32 %v5487_v50, %v15479_v11  ;;  %v5522_v50 = vadd.f32 %v13994_v34, %v15478_v63 }
 0xd99   : > { %v11230_v25 = vpop.eup %11229  ;;  %11249 = vrcp.f32 %v5557_v43  ;;  %v5689_v55 = vmul.f32 %v11228_v28, %v11210_v17  ;;  %v9042_v43 = vmul.f32 -1.442695, %v5525_v44 }
 0xd9a   : > { %v11232_v42 = vpop.eup %11231  ;;  %v5605_v0 = vadd.f32 1.0, %v11230_v25  ;;  %11251 = vpow2.f32 %v9045_v62  ;;  %v14003_v31 = vpop.f32.mrb[64].mxu1  ;;  %v5515_v25 = vadd.f32 %v5475_v40, %v15479_v11  ;;  %v9049_v38 = vmul.f32 -1.442695, %v5523_v45 }
 0xd9b   : > { %v14005_v22 = vpop.eup %11233  ;;  %v14007_v32 = vadd.f32 %v5689_v55, %v5681_v60  ;;  %11253 = vpow2.f32 %v9034_v47  ;;  %v5493_v33 = vpop.f32.mrb[65].mxu1  ;;  %v5526_v45 = vadd.f32 %v14003_v31, %v15478_v63 }
 0xd9c   : > { %v11236_v51 = vpop.eup %11235  ;;  %11255 = vrcp.f32 %v5605_v0 }
 0xd9d   : > { %15483 = vst [vmem:[#allocation38_spill] sm:$0xff] %v14007_v32  ;;  %v11238_v17 = vpop.eup %11237  ;;  %11257 = vtanh.f32 %v14007_v32  ;;  %v5657_v62 = vadd.f32 1.0, %v11236_v51 }
 0xd9e   : > { %v11240_v8 = vpop.eup %11239  ;;  %v5558_v28 = vadd.f32 1.0, %v11238_v17  ;;  %11259 = vtanh.f32 %v5510_v9  ;;  %v9047_v17 = vmul.f32 -1.442695, %v5515_v25  ;;  %v15487_v25 = vld [vmem:[#allocation158_spill] sm:$0xff] }
 0xd9f   : > { %v11242_v18 = vpop.eup %11241  ;;  %11261 = vrcp.f32 %v5657_v62  ;;  %v5690_v60 = vmul.f32 %v11240_v8, %v11218_v13 }
 0xda0   : > { %v11244_v47 = vpop.eup %11243  ;;  %11263 = vrcp.f32 %v5558_v28  ;;  %v9048_v28 = vmul.f32 -1.442695, %v5519_v10 }
 0xda1   : > { %v11246_v55 = vpop.eup %11245  ;;  %v14012_v0 = vadd.f32 %v5690_v60, %v5682_v19  ;;  %11265 = vpow2.f32 %v9042_v43  ;;  %v5683_v60 = vmul.f32 %v11232_v42, %v15487_v25 }
 0xda2   : > { %v11248_v51 = vpop.eup %11247  ;;  %v5606_v44 = vadd.f32 1.0, %v11246_v55  ;;  %11267 = vpow2.f32 %v9046_v46 }
 0xda3   : > { %15485 = vst [vmem:[#allocation165_spill] sm:$0xff] %v14012_v0  ;;  %v14017_v9 = vpop.eup %11249  ;;  %11269 = vtanh.f32 %v14012_v0  ;;  %v14020_v40 = vmul.f32 %v11248_v51, %v11244_v47  ;;  %v15506_v0 = vld [vmem:[#allocation170_spill] sm:$0xff] }
 0xda4   : > { %v11252_v13 = vpop.eup %11251  ;;  %11271 = vrcp.f32 %v5606_v44  ;;  %v5527_v44 = vadd.f32 %v5493_v33, %v15479_v11 }
 0xda5   : > { %15486 = vst [vmem:[#allocation162_spill] sm:$0xff] %v14020_v40  ;;  %v11254_v19 = vpop.eup %11253  ;;  %v5658_v62 = vadd.f32 1.0, %v11252_v13  ;;  %11273 = vtanh.f32 %v5514_v36  ;;  %v14027_v43 = vadd.f32 %v14020_v40, %v13712_v37 }
 0xda6   : > { %v11256_v41 = vpop.eup %11255  ;;  %v5559_v8 = vadd.f32 1.0, %v11254_v19  ;;  %11275 = vpow2.f32 %v9047_v17 }
 0xda7   : > { %v11258_v46 = vpop.eup %11257  ;;  %11277 = vrcp.f32 %v5658_v62  ;;  %v6080_v47 = vmul.f32 %v14027_v43, %v14027_v43 }
 0xda8   : > { %v11260_v55 = vpop.eup %11259  ;;  %11279 = vrcp.f32 %v5559_v8 }
 0xda9   : > { %v11262_v36 = vpop.eup %11261  ;;  %v5691_v51 = vmul.f32 %v11260_v55, %v13996_v6  ;;  %11281 = vtanh.f32 %v5518_v39  ;;  %6088 = vadd.xlane.f32.xlu0 %v6080_v47  ;;  %v9050_v39 = vmul.f32 -1.442695, %v5527_v44 }
 0xdaa   : > { %v11264_v17 = vpop.eup %11263  ;;  %11283 = vpow2.f32 %v9048_v28  ;;  %v14036_v42 = vmul.f32 %v11262_v36, %v11258_v46  ;;  %v15490_v28 = vld [vmem:[#allocation159_spill] sm:$0xff]  ;;  %v15491_v36 = vld [vmem:[#allocation160_spill] sm:$0xff] }
 0xdab   : > { %v11266_v10 = vpop.eup %11265  ;;  %v14038_v13 = vadd.f32 %v5691_v51, %v5683_v60  ;;  %11285 = vtanh.f32 %v5522_v50  ;;  %v5684_v46 = vmul.f32 %v11242_v18, %v15490_v28  ;;  %v5685_v51 = vmul.f32 %v11256_v41, %v15491_v36 }
 0xdac   : > { %15488 = vst [vmem:[#allocation164_spill] sm:$0xff] %v14036_v42  ;;  %v11268_v34 = vpop.eup %11267  ;;  %v5607_v19 = vadd.f32 1.0, %v11266_v10  ;;  %11287 = vpow2.f32 %v9049_v38  ;;  %v14044_v6 = vadd.f32 %v13710_v27, %v14036_v42 }
 0xdad   : > { %15489 = vst [vmem:[#allocation166_spill] sm:$0xff] %v14038_v13  ;;  %v11270_v33 = vpop.eup %11269  ;;  %11289 = vtanh.f32 %v14038_v13  ;;  %v5659_v62 = vadd.f32 1.0, %v11268_v34 }
 0xdae   : > { %v11272_v8 = vpop.eup %11271  ;;  %11291 = vrcp.f32 %v5607_v19  ;;  %v6081_v25 = vmul.f32 %v14044_v6, %v14044_v6  ;;  %v15494_v19 = vld [vmem:[#allocation161_spill] sm:$0xff] }
 0xdaf   : > { %v11274_v60 = vpop.eup %11273  ;;  %11293 = vrcp.f32 %v5659_v62  ;;  %v5686_v62 = vmul.f32 %v11272_v8, %v15494_v19 }
 0xdb0   : > { %v11276_v50 = vpop.eup %11275  ;;  %v5692_v31 = vmul.f32 %v11274_v60, %v14005_v22  ;;  %11295 = vtanh.f32 %v5526_v45  ;;  %6090 = vadd.xlane.f32.xlu1 %v6081_v25 }
 0xdb1   : > { %v11278_v47 = vpop.eup %11277  ;;  %v5660_v55 = vadd.f32 1.0, %v11276_v50  ;;  %11297 = vpow2.f32 %v9050_v39 }
 0xdb2   : > { %v11280_v38 = vpop.eup %11279  ;;  %v14052_v44 = vadd.f32 %v5692_v31, %v5684_v46  ;;  %v14054_v18 = vmul.f32 %v11278_v47, %v11270_v33  ;;  %v15497_v47 = vld [vmem:[#allocation163_spill] sm:$0xff] }
 0xdb3   : > { %v11282_v10 = vpop.eup %11281  ;;  %11299 = vrcp.f32 %v5660_v55 }
 0xdb4   : > { %15492 = vst [vmem:[#allocation167_spill] sm:$0xff] %v14052_v44  ;;  %15493 = vst [vmem:[#allocation27_spill] sm:$0xff] %v14054_v18  ;;  %v11284_v34 = vpop.eup %11283  ;;  %11301 = vtanh.f32 %v14052_v44  ;;  %v5693_v22 = vmul.f32 %v11282_v10, %v14017_v9  ;;  %v14061_v45 = vadd.f32 %v14054_v18, %v13724_v20 }
 0xdb5   : > { %v11286_v39 = vpop.eup %11285  ;;  %v5661_v28 = vadd.f32 1.0, %v11284_v34 }
 0xdb6   : > { %v11288_v41 = vpop.eup %11287  ;;  %v14063_v46 = vadd.f32 %v5693_v22, %v5685_v51  ;;  %v5694_v33 = vmul.f32 %v11286_v39, %v11264_v17  ;;  %v6082_v25 = vmul.f32 %v14061_v45, %v14061_v45 }
 0xdb7   : > { %v11290_v60 = vpop.eup %11289  ;;  %11303 = vrcp.f32 %v5661_v28  ;;  %v5662_v8 = vadd.f32 1.0, %v11288_v41 }
 0xdb8   : > { %15495 = vst [vmem:[#allocation29_spill] sm:$0xff] %v14063_v46  ;;  %v11292_v50 = vpop.eup %11291  ;;  %11305 = vtanh.f32 %v14063_v46  ;;  %v14068_v9 = vadd.f32 %v5694_v33, %v5686_v62  ;;  %6092 = vadd.xlane.f32.xlu0 %v6082_v25 }
 0xdb9   : > { %v11294_v31 = vpop.eup %11293  ;;  %v5687_v55 = vmul.f32 %v11292_v50, %v15497_v47  ;;  %11307 = vrcp.f32 %v5662_v8 }
 0xdba   : > { %15496 = vst [vmem:[#allocation173_spill] sm:$0xff] %v14068_v9  ;;  %v11296_v36 = vpop.eup %11295  ;;  %11309 = vtanh.f32 %v14068_v9  ;;  %v14072_v17 = vmul.f32 %v11294_v31, %v11290_v60 }
 0xdbb   : > { %v11298_v51 = vpop.eup %11297  ;;  %v5695_v10 = vmul.f32 %v11296_v36, %v11280_v38 }
 0xdbc   : > { %15498 = vst [vmem:[#allocation28_spill] sm:$0xff] %v14072_v17  ;;  %v5663_v34 = vadd.f32 1.0, %v11298_v51  ;;  %v14076_v19 = vadd.f32 %v13722_v23, %v14072_v17 }
 0xdbd   : > { %v11300_v22 = vpop.eup %11299  ;;  %v14078_v62 = vadd.f32 %v5695_v10, %v5687_v55 }
 0xdbe   : > { %v11302_v39 = vpop.eup %11301  ;;  %11311 = vrcp.f32 %v5663_v34  ;;  %v6083_v28 = vmul.f32 %v14076_v19, %v14076_v19 }
 0xdbf   : > { %15499 = vst [vmem:[#allocation31_spill] sm:$0xff] %v14078_v62  ;;  %11313 = vtanh.f32 %v14078_v62  ;;  %v14083_v41 = vmul.f32 %v11302_v39, %v11300_v22 }
 0xdc0   : > { %6094 = vadd.xlane.f32.xlu1 %v6083_v28 }
 0xdc1   : > { %15500 = vst [vmem:[#allocation155_spill] sm:$0xff] %v14083_v41  ;;  %v11304_v33 = vpop.eup %11303  ;;  %v14087_v38 = vadd.f32 %v14083_v41, %v13718_v52 }
 0xdc2   : > { %v11306_v25 = vpop.eup %11305 }
 0xdc3   : > { %v11308_v60 = vpop.eup %11307  ;;  %v6084_v8 = vmul.f32 %v14087_v38, %v14087_v38  ;;  %v14091_v50 = vmul.f32 %v11306_v25, %v11304_v33 }
 0xdc4   : > { %v11310_v31 = vpop.eup %11309 }
 0xdc5   : > { %15501 = vst [vmem:[#allocation156_spill] sm:$0xff] %v14091_v50  ;;  %6096 = vadd.xlane.f32.xlu0 %v6084_v8  ;;  %v14095_v47 = vadd.f32 %v13716_v54, %v14091_v50  ;;  %v14097_v55 = vmul.f32 %v11310_v31, %v11308_v60  ;;  %v15504_v31 = vld [vmem:[#allocation168_spill] sm:$0xff] }
 0xdc7   : > { %15502 = vst [vmem:[#allocation157_spill] sm:$0xff] %v14097_v55  ;;  %v6085_v36 = vmul.f32 %v14095_v47, %v14095_v47  ;;  %v14103_v51 = vadd.f32 %v14097_v55, %v13731_v30 }
 0xdc8   : > { %v11312_v10 = vpop.eup %11311 }
 0xdc9   : > { %v11314_v34 = vpop.eup %11313  ;;  %6098 = vadd.xlane.f32.xlu1 %v6085_v36  ;;  %v6086_v22 = vmul.f32 %v14103_v51, %v14103_v51 }
 0xdca   : > { %v14107_v39 = vmul.f32 %v11314_v34, %v11312_v10  ;;  %v15505_v34 = vld [vmem:[#allocation169_spill] sm:$0xff] }
 0xdcb   : > { %6100 = vadd.xlane.f32.xlu0 %v6086_v22 }
 0xdcc   : > { %15503 = vst [vmem:[#allocation158_spill] sm:$0xff] %v14107_v39  ;;  %v14111_v28 = vadd.f32 %v13729_v29, %v14107_v39 }
 0xdce   : > { %v6087_v33 = vmul.f32 %v14111_v28, %v14111_v28 }
 0xdd0   : > { %6102 = vadd.xlane.f32.xlu1 %v6087_v33 }
 0xe35   : > { %v5939_v25 = vpop.f32.mrb[66].mxu0  ;;  %v6010_v60 = vpop.f32.mrb[66].mxu1 }
 0xe36   : > { %v6089_v8 = vpop.xlane.xlu0 %6088  ;;  %v6015_v62 = vadd.f32 %v5939_v25, %v15504_v31  ;;  %v5941_v36 = vpop.f32.mrb[67].mxu0  ;;  %v6017_v33 = vadd.f32 %v6010_v60, %v15506_v0 }
 0xe37   : > { %11315 = vrsqrt.f32 %v6089_v8  ;;  %v14116_v9 = vpop.f32.mrb[67].mxu1  ;;  %v6016_v22 = vadd.f32 %v5941_v36, %v15505_v34  ;;  %vm6106_vm5 = vcmp.eq.f32.partialorder %v6089_v8, inf  ;;  %v6109_v11 = vand.u32 2147483648, %v6089_v8 }
 0xe38   : > { %v9051_v10 = vmul.f32 -1.442695, %v6015_v62  ;;  %vm6108_vm7 = vcmp.eq.f32.partialorder %v6089_v8, 0.0 }
 0xe39   : > { %v9052_v46 = vmul.f32 -1.442695, %v6016_v22 }
 0xe3a   : > { %11317 = vpow2.f32 %v9051_v10 }
 0xe3b   : > { %11319 = vpow2.f32 %v9052_v46 }
 0xe3d   : > { %v6091_v44 = vpop.xlane.xlu1 %6090 }
 0xe3e   : > { %11321 = vrsqrt.f32 %v6091_v44  ;;  %vm6113_vm8 = vcmp.eq.f32.partialorder %v6091_v44, inf  ;;  %vm6115_vm9 = vcmp.eq.f32.partialorder %v6091_v44, 0.0 }
 0xe3f   : > { %11323 = vtanh.f32 %v6017_v33 }
 0xe41   : > { %v11316_v13 = vpop.eup %11315 }
 0xe42   : > { %v6105_v32 = vmul.f32 %v11316_v13, %v6089_v8  ;;  %v6116_v13 = vand.u32 2147483648, %v6091_v44 }
 0xe44   : > { %v11318_v63 = vpop.eup %11317  ;;  %v6107_v25 = vsel %vm6106_vm5, %v6089_v8, %v6105_v32 }
 0xe45   : > { %v6110_v31 = vsel %vm6108_vm7, %v6109_v11, %v6107_v25  ;;  %v6022_v39 = vadd.f32 1.0, %v11318_v63  ;;  %v6093_v62 = vpop.xlane.xlu0 %6092  ;;  %v11320_v55 = vpop.eup %11319 }
 0xe46   : > { %v6160_v36 = vadd.f32 1e-08, %v6110_v31  ;;  %11325 = vrsqrt.f32 %v6093_v62  ;;  %v6028_v46 = vadd.f32 1.0, %v11320_v55  ;;  %vm6120_vm10 = vcmp.eq.f32.partialorder %v6093_v62, inf }
 0xe47   : > { %11327 = vrcp.f32 %v6022_v39  ;;  %v6123_v55 = vand.u32 2147483648, %v6093_v62  ;;  %vm6122_vm15 = vcmp.eq.f32.partialorder %v6093_v62, 0.0 }
 0xe48   : > { %v11322_v10 = vpop.eup %11321  ;;  %11329 = vrcp.f32 %v6160_v36 }
 0xe49   : > { %v6112_v22 = vmul.f32 %v11322_v10, %v6091_v44  ;;  %11331 = vrcp.f32 %v6028_v46  ;;  %v11324_v63 = vpop.eup %11323 }
 0xe4b   : > { %v6114_v60 = vsel %vm6113_vm8, %v6091_v44, %v6112_v22  ;;  %v15507_v22 = vld [vmem:[#allocation171_spill] sm:$0xff] }
 0xe4c   : > { %v6117_v0 = vsel %vm6115_vm9, %v6116_v13, %v6114_v60 }
 0xe4d   : > { %v6161_v32 = vadd.f32 1e-08, %v6117_v0  ;;  %v6095_v8 = vpop.xlane.xlu1 %6094 }
 0xe4e   : > { %11333 = vrsqrt.f32 %v6095_v8  ;;  %vm6127_vm2 = vcmp.eq.f32.partialorder %v6095_v8, inf  ;;  %vm6129_vm3 = vcmp.eq.f32.partialorder %v6095_v8, 0.0 }
 0xe4f   : > { %11335 = vrcp.f32 %v6161_v32 }
 0xe50   : > { %v11326_v11 = vpop.eup %11325 }
 0xe51   : > { %v11328_v33 = vpop.eup %11327  ;;  %v6119_v31 = vmul.f32 %v11326_v11, %v6093_v62 }
 0xe52   : > { %v11330_v25 = vpop.eup %11329  ;;  %v6039_v39 = vmul.f32 %v11328_v33, %v11324_v63  ;;  %v6097_v36 = vpop.xlane.xlu0 %6096 }
 0xe53   : > { %v11332_v10 = vpop.eup %11331  ;;  %v6121_v46 = vsel %vm6120_vm10, %v6093_v62, %v6119_v31  ;;  %11337 = vrsqrt.f32 %v6097_v36  ;;  %v6176_v0 = vmul.f32 %v11330_v25, %v14027_v43  ;;  %v6130_v31 = vand.u32 2147483648, %v6095_v8 }
 0xe54   : > { %v6038_v44 = vmul.f32 %v11332_v10, %v15507_v22  ;;  %v6124_v13 = vsel %vm6122_vm15, %v6123_v55, %v6121_v46  ;;  %v15509_v22 = vld [vmem:[#allocation30_spill] sm:$0xff]  ;;  %vm6134_vm4 = vcmp.eq.f32.partialorder %v6097_v36, inf  ;;  %vm6136_vm5 = vcmp.eq.f32.partialorder %v6097_v36, 0.0 }
 0xe55   : > { %v6162_v60 = vadd.f32 1e-08, %v6124_v13  ;;  %9504 = vmatprep.mubr.f32.mxu0 %v6176_v0 }
 0xe56   : > { %v14122_v34 = vadd.f32 %v6039_v39, %v6038_v44  ;;  %v6099_v32 = vpop.xlane.xlu1 %6098  ;;  %v6137_v44 = vand.u32 2147483648, %v6097_v36 }
 0xe57   : > { %11339 = vrcp.f32 %v6162_v60  ;;  %vm6141_vm7 = vcmp.eq.f32.partialorder %v6099_v32, inf  ;;  %vm6143_vm8 = vcmp.eq.f32.partialorder %v6099_v32, 0.0 }
 0xe58   : > { %15508 = vst [vmem:[#allocation159_spill] sm:$0xff] %v14122_v34  ;;  %v11334_v11 = vpop.eup %11333  ;;  %v6101_v63 = vpop.xlane.xlu0 %6100  ;;  %11341 = vrsqrt.f32 %v6099_v32 }
 0xe59   : > { %v11336_v33 = vpop.eup %11335  ;;  %v6126_v50 = vmul.f32 %v11334_v11, %v6095_v8  ;;  %11343 = vrsqrt.f32 %v6101_v63  ;;  %vm6148_vm9 = vcmp.eq.f32.partialorder %v6101_v63, inf  ;;  %vm6150_vm10 = vcmp.eq.f32.partialorder %v6101_v63, 0.0 }
 0xe5a   : > { %v6177_v62 = vmul.f32 %v11336_v33, %v14044_v6 }
 0xe5b   : > { %v6128_v10 = vsel %vm6127_vm2, %v6095_v8, %v6126_v50 }
 0xe5c   : > { %v6131_v55 = vsel %vm6129_vm3, %v6130_v31, %v6128_v10  ;;  %9505 = vmatmul.mubr.f32.vlgmr.msra.gmra.mrb[68].mxu0 %v6177_v62  ;;  %v6151_v10 = vand.u32 2147483648, %v6101_v63 }
 0xe5d   : > { %v11338_v43 = vpop.eup %11337  ;;  %v6163_v25 = vadd.f32 1e-08, %v6131_v55  ;;  %v6103_v39 = vpop.xlane.xlu1 %6102  ;;  %10247 = vmatpush3.bf16.xpose.msra.mxu0 %v15474_v7  ;;  %v6144_v7 = vand.u32 2147483648, %v6099_v32 }
 0xe5e   : > { %v6133_v46 = vmul.f32 %v11338_v43, %v6097_v36  ;;  %11345 = vrsqrt.f32 %v6103_v39  ;;  %10253 = vmatprep.subr.bf16.mxu0 %v15509_v22  ;;  %vm6155_vm15 = vcmp.eq.f32.partialorder %v6103_v39, inf  ;;  %vm6157_vm2 = vcmp.eq.f32.partialorder %v6103_v39, 0.0 }
 0xe5f   : > { %11347 = vrcp.f32 %v6163_v25 }
 0xe60   : > { %v6135_v13 = vsel %vm6134_vm4, %v6097_v36, %v6133_v46 }
 0xe61   : > { %v11340_v0 = vpop.eup %11339  ;;  %v6138_v6 = vsel %vm6136_vm5, %v6137_v44, %v6135_v13 }
 0xe62   : > { %v6164_v50 = vadd.f32 1e-08, %v6138_v6  ;;  %v6178_v8 = vmul.f32 %v11340_v0, %v14061_v45  ;;  %v11342_v60 = vpop.eup %11341  ;;  %v6158_v0 = vand.u32 2147483648, %v6103_v39 }
 0xe63   : > { %v11344_v11 = vpop.eup %11343  ;;  %v6140_v33 = vmul.f32 %v11342_v60, %v6099_v32  ;;  %v15510_v60 = vld [vmem:[#allocation32_spill] sm:$0xff] }
 0xe64   : > { %11349 = vrcp.f32 %v6164_v50  ;;  %9511 = vmatprep.mubr.f32.mxu1 %v6178_v8  ;;  %v6147_v31 = vmul.f32 %v11344_v11, %v6101_v63 }
 0xe65   : > { %v6142_v62 = vsel %vm6141_vm7, %v6099_v32, %v6140_v33 }
 0xe66   : > { %v6145_v55 = vsel %vm6143_vm8, %v6144_v7, %v6142_v62  ;;  %v6149_v43 = vsel %vm6148_vm9, %v6101_v63, %v6147_v31 }
 0xe67   : > { %v6165_v25 = vadd.f32 1e-08, %v6145_v55  ;;  %v6152_v46 = vsel %vm6150_vm10, %v6151_v10, %v6149_v43 }
 0xe68   : > { %v11346_v36 = vpop.eup %11345  ;;  %v6166_v45 = vadd.f32 1e-08, %v6152_v46 }
 0xe69   : > { %v11348_v44 = vpop.eup %11347  ;;  %v6154_v13 = vmul.f32 %v11346_v36, %v6103_v39  ;;  %11351 = vrcp.f32 %v6165_v25 }
 0xe6a   : > { %v6179_v6 = vmul.f32 %v11348_v44, %v14076_v19  ;;  %11353 = vrcp.f32 %v6166_v45 }
 0xe6b   : > { %v6156_v50 = vsel %vm6155_vm15, %v6103_v39, %v6154_v13 }
 0xe6c   : > { %v6159_v32 = vsel %vm6157_vm2, %v6158_v0, %v6156_v50  ;;  %9512 = vmatmul.mubr.f32.vlgmr.msra.gmra.mrb[68].mxu1 %v6179_v6 }
 0xe6d   : > { %v6167_v8 = vadd.f32 1e-08, %v6159_v32  ;;  %10251 = vmatpush3.bf16.xpose.msra.mxu1 %v15475_v56 }
 0xe6e   : > { %v11350_v63 = vpop.eup %11349  ;;  %10257 = vmatprep.subr.bf16.mxu1 %v15510_v60 }
 0xe6f   : > { %11355 = vrcp.f32 %v6167_v8  ;;  %v6180_v11 = vmul.f32 %v11350_v63, %v14087_v38  ;;  %v15511_v38 = vld [vmem:[#allocation172_spill] sm:$0xff] }
 0xe70   : > { %v6018_v62 = vadd.f32 %v14116_v9, %v15511_v38 }
 0xe71   : > { %9518 = vmatprep.mubr.f32.mxu0 %v6180_v11 }
 0xe73   : > { %v11352_v33 = vpop.eup %11351 }
 0xe74   : > { %v11354_v7 = vpop.eup %11353  ;;  %v6181_v31 = vmul.f32 %v11352_v33, %v14095_v47  ;;  %v6957_v33 = vmul.f32 %v13710_v27, %v13710_v27 }
 0xe75   : > { %v6182_v19 = vmul.f32 %v11354_v7, %v14103_v51  ;;  %v9053_v51 = vmul.f32 -1.442695, %v6018_v62  ;;  %v6956_v7 = vmul.f32 %v13712_v37, %v13712_v37 }
 0xe76   : > { %9519 = vmatmul.mubr.f32.vlgmr.msra.gmra.mrb[70].mxu0 %v6181_v31  ;;  %v15513_v31 = vld [vmem:[#allocation174_spill] sm:$0xff] }
 0xe77   : > { %9525 = vmatprep.mubr.f32.mxu1 %v6182_v19  ;;  %10255 = vmatpush3.bf16.msra.mxu0 %v15509_v22  ;;  %11357 = vpow2.f32 %v9053_v51 }
 0xe78   : > { %10261 = vmatprep.subr.bf16.mxu0 %v12615_v49  ;;  %11359 = vtanh.f32 %v14122_v34 }
 0xe79   : > { %v11356_v39 = vpop.eup %11355 }
 0xe7a   : > { %v6183_v56 = vmul.f32 %v11356_v39, %v14111_v28  ;;  %v6959_v39 = vmul.f32 %v13722_v23, %v13722_v23 }
 0xe7c   : > { %9526 = vmatmul.mubr.f32.vlgmr.msra.gmra.mrb[70].mxu1 %v6183_v56  ;;  %v6958_v56 = vmul.f32 %v13724_v20, %v13724_v20 }
 0xe7d   : > { %10259 = vmatpush3.bf16.msra.mxu1 %v15510_v60 }
 0xe7e   : > { %10265 = vmatprep.subr.bf16.mxu1 %v12630_v2 }
 0xe81   : > { %v11358_v55 = vpop.eup %11357 }
 0xe82   : > { %v6035_v25 = vadd.f32 1.0, %v11358_v55  ;;  %v11360_v6 = vpop.eup %11359  ;;  %v11607_v55 = vld [vmem:[%s12359_s17] sm:$0x1] }
 0xe84   : > { %11361 = vrcp.f32 %v6035_v25 }
 0xe8e   : > { %v11362_v50 = vpop.eup %11361 }
 0xe8f   : > { %v14172_v60 = vmul.f32 %v11362_v50, %v11360_v6  ;;  %v11608_v6 = vld [vmem:[%s12359_s17 + $0x1] sm:$0x1] }
 0xe91   : > { %15512 = vst [vmem:[#allocation160_spill] sm:$0xff] %v14172_v60  ;;  %v6050_v19 = vrot.slane %v14172_v60, %v15513_v31 }
 0xe93   : > { %v6058_v62 = vrot.slane %v6050_v19, %v15513_v31  ;;  %v6051_v51 = vcombine.high %v6050_v19, %v6050_v19 }
 0xe95   : > { %v14195_v25 = vrot.slane %v6051_v51, %v15513_v31 }
 0xe97   : > { %v14205_v50 = vadd.f32 %v11608_v6, %v14195_v25 }
 0xf2f   : > { %v14141_v47 = vpop.f32.mrb[68].mxu0 }
 0xf30   : > { %v14143_v10 = vpop.f32.mrb[69].mxu0  ;;  %v6487_v22 = vsel %vm1318_vm0, %v14141_v47, -inf }
 0xf31   : > { %6488 = vmax.xlane.f32.xlu1 %v6487_v22  ;;  %v6484_v28 = vsel %vm1318_vm0, %v14143_v10, -inf  ;;  %v6961_v22 = vmul.f32 %v13716_v54, %v13716_v54 }
 0xf32   : > { %6485 = vmax.xlane.f32.xlu0 %v6484_v28  ;;  %v6960_v28 = vmul.f32 %v13718_v52, %v13718_v52 }
 0xf3f   : > { %v14149_v43 = vpop.f32.mrb[68].mxu1 }
 0xf40   : > { %v14151_v36 = vpop.f32.mrb[69].mxu1  ;;  %v6493_v9 = vsel %vm1318_vm0, %v14149_v43, -inf }
 0xf41   : > { %6494 = vmax.xlane.f32.xlu1 %v6493_v9  ;;  %v6490_v46 = vsel %vm1318_vm0, %v14151_v36, -inf  ;;  %v14192_v9 = vadd.f32 %v11607_v55, %v6058_v62 }
 0xf42   : > { %6491 = vmax.xlane.f32.xlu0 %v6490_v46  ;;  %v6962_v46 = vmul.f32 %v13731_v30, %v13731_v30 }
 0xf49   : > { %v14158_v44 = vpop.f32.mrb[70].mxu0 }
 0xf4a   : > { %v14160_v45 = vpop.f32.mrb[71].mxu0  ;;  %v6499_v13 = vsel %vm1318_vm0, %v14158_v44, -inf }
 0xf4b   : > { %6500 = vmax.xlane.f32.xlu1 %v6499_v13  ;;  %v6496_v0 = vsel %vm1318_vm0, %v14160_v45, -inf  ;;  %v6963_v13 = vmul.f32 %v13729_v29, %v13729_v29 }
 0xf4c   : > { %6497 = vmax.xlane.f32.xlu0 %v6496_v0  ;;  %v6900_v0 = vmul.f32 %v14192_v9, %v14192_v9 }
 0xf4f   : > { %v14166_v32 = vpop.f32.mrb[70].mxu1 }
 0xf50   : > { %v14168_v8 = vpop.f32.mrb[71].mxu1  ;;  %v6505_v63 = vsel %vm1318_vm0, %v14166_v32, -inf }
 0xf51   : > { %6506 = vmax.xlane.f32.xlu1 %v6505_v63  ;;  %v6502_v11 = vsel %vm1318_vm0, %v14168_v8, -inf  ;;  %v6904_v63 = vsel %vm1739_vm1, %v6900_v0, 0.0 }
 0xf52   : > { %6503 = vmax.xlane.f32.xlu0 %v6502_v11  ;;  %v6901_v11 = vmul.f32 %v14205_v50, %v14205_v50 }
 0xf55   : > { %6966 = vadd.xlane.f32.xlu1 %v6957_v33  ;;  %v6907_v33 = vsel %vm1739_vm1, %v6901_v11, 0.0 }
 0xf56   : > { %6964 = vadd.xlane.f32.xlu0 %v6956_v7 }
 0xf59   : > { %6970 = vadd.xlane.f32.xlu1 %v6959_v39 }
 0xf5a   : > { %6968 = vadd.xlane.f32.xlu0 %v6958_v56 }
 0xf5d   : > { %6974 = vadd.xlane.f32.xlu1 %v6961_v22 }
 0xf5e   : > { %6972 = vadd.xlane.f32.xlu0 %v6960_v28 }
 0xf61   : > { %6976 = vadd.xlane.f32.xlu1 %v6962_v46 }
 0xf62   : > { %6978 = vadd.xlane.f32.xlu0 %v6963_v13 }
 0xf65   : > { %6905 = vadd.xlane.f32.xlu1 %v6904_v63 }
 0xf69   : > { %6908 = vadd.xlane.f32.xlu1 %v6907_v33 }
 0xfbe   : > { %v6489_v7 = vpop.xlane.xlu1 %6488 }
 0xfbf   : > { %v6509_v19 = vsub.f32 %v14141_v47, %v6489_v7  ;;  %v6486_v39 = vpop.xlane.xlu0 %6485 }
 0xfc0   : > { %v6508_v56 = vsub.f32 %v14143_v10, %v6486_v39  ;;  %v6066_v39 = vcombine.high %v6058_v62, %v6058_v62 }
 0xfc1   : > { %v6518_v51 = vmul.f32 1.442695, %v6509_v19 }
 0xfc2   : > { %v6516_v22 = vmul.f32 1.442695, %v6508_v56 }
 0xfc3   : > { %11363 = vpow2.f32 %v6518_v51 }
 0xfc4   : > { %11365 = vpow2.f32 %v6516_v22 }
 0xfcd   : > { %v14213_v28 = vpop.eup %11363 }
 0xfce   : > { %v14215_v55 = vpop.eup %11365  ;;  %v6495_v46 = vpop.xlane.xlu1 %6494  ;;  %v6535_v13 = vsel %vm1318_vm0, %v14213_v28, 0.0 }
 0xfcf   : > { %v6511_v0 = vsub.f32 %v14149_v43, %v6495_v46  ;;  %v6492_v6 = vpop.xlane.xlu0 %6491  ;;  %6536 = vadd.xlane.f32.xlu1 %v6535_v13  ;;  %v6532_v47 = vsel %vm1318_vm0, %v14215_v55, 0.0  ;;  %v11609_v13 = vld [vmem:[%s12359_s17 + $0x2] sm:$0x1] }
 0xfd0   : > { %v6510_v10 = vsub.f32 %v14151_v36, %v6492_v6  ;;  %6533 = vadd.xlane.f32.xlu0 %v6532_v47 }
 0xfd1   : > { %v6522_v63 = vmul.f32 1.442695, %v6511_v0  ;;  %v14230_v0 = vadd.f32 %v11609_v13, %v6066_v39 }
 0xfd2   : > { %v6520_v11 = vmul.f32 1.442695, %v6510_v10 }
 0xfd3   : > { %11367 = vpow2.f32 %v6522_v63 }
 0xfd4   : > { %11369 = vpow2.f32 %v6520_v11 }
 0xfd8   : > { %v6501_v33 = vpop.xlane.xlu1 %6500 }
 0xfd9   : > { %v6513_v7 = vsub.f32 %v14158_v44, %v6501_v33  ;;  %v6498_v19 = vpop.xlane.xlu0 %6497  ;;  %v6067_v44 = vcombine.high %v14195_v25, %v14195_v25 }
 0xfda   : > { %v6512_v43 = vsub.f32 %v14160_v45, %v6498_v19  ;;  %v11610_v19 = vld [vmem:[%s12359_s17 + $0x3] sm:$0x1] }
 0xfdb   : > { %v6526_v56 = vmul.f32 1.442695, %v6513_v7  ;;  %v6902_v7 = vmul.f32 %v14230_v0, %v14230_v0  ;;  %v14243_v25 = vadd.f32 %v11610_v19, %v6067_v44 }
 0xfdc   : > { %v6524_v22 = vmul.f32 1.442695, %v6512_v43 }
 0xfdd   : > { %v14225_v51 = vpop.eup %11367  ;;  %11371 = vpow2.f32 %v6526_v56  ;;  %v6903_v43 = vmul.f32 %v14243_v25, %v14243_v25 }
 0xfde   : > { %v6507_v46 = vpop.xlane.xlu1 %6506  ;;  %v6541_v36 = vsel %vm1318_vm0, %v14225_v51, 0.0  ;;  %v14234_v6 = vpop.eup %11369  ;;  %11373 = vpow2.f32 %v6524_v22 }
 0xfdf   : > { %v6515_v45 = vsub.f32 %v14166_v32, %v6507_v46  ;;  %v6504_v62 = vpop.xlane.xlu0 %6503  ;;  %6542 = vadd.xlane.f32.xlu0 %v6541_v36  ;;  %v6538_v33 = vsel %vm1318_vm0, %v14234_v6, 0.0  ;;  %v6913_v44 = vsel %vm1739_vm1, %v6903_v43, 0.0 }
 0xfe0   : > { %v6514_v47 = vsub.f32 %v14168_v8, %v6504_v62  ;;  %v6910_v8 = vsel %vm1739_vm1, %v6902_v7, 0.0 }
 0xfe1   : > { %v6530_v10 = vmul.f32 1.442695, %v6515_v45 }
 0xfe2   : > { %v6528_v63 = vmul.f32 1.442695, %v6514_v47  ;;  %v6967_v11 = vpop.xlane.xlu1 %6966 }
 0xfe3   : > { %11375 = vpow2.f32 %v6530_v10  ;;  %v6965_v39 = vpop.xlane.xlu0 %6964  ;;  %6539 = vadd.xlane.f32.xlu0 %v6538_v33  ;;  %vm6989_vm3 = vcmp.eq.f32.partialorder %v6967_v11, inf  ;;  %vm6991_vm4 = vcmp.eq.f32.partialorder %v6967_v11, 0.0 }
 0xfe4   : > { %11377 = vpow2.f32 %v6528_v63  ;;  %v6992_v63 = vand.u32 2147483648, %v6967_v11  ;;  %vm6982_vm1 = vcmp.eq.f32.partialorder %v6965_v39, inf  ;;  %vm6984_vm5 = vcmp.eq.f32.partialorder %v6965_v39, 0.0 }
 0xfe5   : > { %11379 = vrsqrt.f32 %v6967_v11 }
 0xfe6   : > { %11381 = vrsqrt.f32 %v6965_v39  ;;  %v6971_v32 = vpop.xlane.xlu1 %6970 }
 0xfe7   : > { %11383 = vrsqrt.f32 %v6971_v32  ;;  %v6969_v56 = vpop.xlane.xlu0 %6968  ;;  %6911 = vadd.xlane.f32.xlu0 %v6910_v8  ;;  %v14248_v22 = vpop.eup %11371  ;;  %vm7003_vm7 = vcmp.eq.f32.partialorder %v6971_v32, inf  ;;  %vm7005_vm8 = vcmp.eq.f32.partialorder %v6971_v32, 0.0  ;;  %v7006_v34 = vand.u32 2147483648, %v6971_v32 }
 0xfe8   : > { %11385 = vrsqrt.f32 %v6969_v56  ;;  %v6547_v46 = vsel %vm1318_vm0, %v14248_v22, 0.0  ;;  %v14252_v36 = vpop.eup %11373  ;;  %vm6996_vm9 = vcmp.eq.f32.partialorder %v6969_v56, inf  ;;  %vm6998_vm10 = vcmp.eq.f32.partialorder %v6969_v56, 0.0 }
 0xfe9   : > { %6548 = vadd.xlane.f32.xlu1 %v6547_v46  ;;  %v6544_v47 = vsel %vm1318_vm0, %v14252_v36, 0.0  ;;  %v6999_v40 = vand.u32 2147483648, %v6969_v56 }
 0xfea   : > { %v14254_v13 = vpop.xlane.xlu1 %6974 }
 0xfeb   : > { %11387 = vrsqrt.f32 %v14254_v13  ;;  %v14258_v45 = vpop.xlane.xlu0 %6972  ;;  %6914 = vadd.xlane.f32.xlu0 %v6913_v44  ;;  %v6985_v44 = vand.u32 2147483648, %v6965_v39  ;;  %vm7017_vm15 = vcmp.eq.f32.partialorder %v14254_v13, inf  ;;  %vm7019_vm2 = vcmp.eq.f32.partialorder %v14254_v13, 0.0 }
 0xfec   : > { %11389 = vrsqrt.f32 %v14258_v45 }
 0xfed   : > { %v14261_v62 = vpop.eup %11375  ;;  %6545 = vadd.xlane.f32.xlu1 %v6544_v47 }
 0xfee   : > { %v14265_v10 = vpop.eup %11377  ;;  %v14267_v33 = vpop.xlane.xlu1 %6976  ;;  %v6553_v8 = vsel %vm1318_vm0, %v14261_v62, 0.0 }
 0xfef   : > { %v11380_v7 = vpop.eup %11379  ;;  %11391 = vrsqrt.f32 %v14267_v33  ;;  %v14270_v19 = vpop.xlane.xlu0 %6978  ;;  %v6550_v38 = vsel %vm1318_vm0, %v14265_v10, 0.0 }
 0xff0   : > { %v11382_v43 = vpop.eup %11381  ;;  %v6988_v46 = vmul.f32 %v11380_v7, %v6967_v11  ;;  %11393 = vrsqrt.f32 %v14270_v19  ;;  %6551 = vadd.xlane.f32.xlu0 %v6550_v38 }
 0xff1   : > { %v11384_v31 = vpop.eup %11383  ;;  %v6981_v47 = vmul.f32 %v11382_v43, %v6965_v39  ;;  %6554 = vadd.xlane.f32.xlu1 %v6553_v8  ;;  %v7027_v8 = vand.u32 2147483648, %v14267_v33 }
 0xff2   : > { %v11386_v60 = vpop.eup %11385  ;;  %v6990_v41 = vsel %vm6989_vm3, %v6967_v11, %v6988_v46  ;;  %v7002_v17 = vmul.f32 %v11384_v31, %v6971_v32  ;;  %vm7010_vm3 = vcmp.eq.f32.partialorder %v14258_v45, inf }
 0xff3   : > { %v6993_v7 = vsel %vm6991_vm4, %v6992_v63, %v6990_v41  ;;  %v6983_v18 = vsel %vm6982_vm1, %v6965_v39, %v6981_v47  ;;  %v6995_v42 = vmul.f32 %v11386_v60, %v6969_v56  ;;  %vm7012_vm4 = vcmp.eq.f32.partialorder %v14258_v45, 0.0 }
 0xff4   : > { %v7037_v43 = vadd.f32 1e-08, %v6993_v7  ;;  %v6986_v12 = vsel %vm6984_vm5, %v6985_v44, %v6983_v18  ;;  %v7004_v26 = vsel %vm7003_vm7, %v6971_v32, %v7002_v17  ;;  %v7020_v17 = vand.u32 2147483648, %v14254_v13 }
 0xff5   : > { %v11388_v59 = vpop.eup %11387  ;;  %v7036_v46 = vadd.f32 1e-08, %v6986_v12  ;;  %v7007_v31 = vsel %vm7005_vm8, %v7006_v34, %v7004_v26  ;;  %v6997_v14 = vsel %vm6996_vm9, %v6969_v56, %v6995_v42  ;;  %v7013_v12 = vand.u32 2147483648, %v14258_v45 }
 0xff6   : > { %v11390_v38 = vpop.eup %11389  ;;  %11395 = vrcp.f32 %v7037_v43  ;;  %v7039_v41 = vadd.f32 1e-08, %v7007_v31  ;;  %v7000_v60 = vsel %vm6998_vm10, %v6999_v40, %v6997_v14  ;;  %v7016_v11 = vmul.f32 %v11388_v59, %v14254_v13 }
 0xff7   : > { %11397 = vrcp.f32 %v7036_v46  ;;  %v7038_v18 = vadd.f32 1e-08, %v7000_v60  ;;  %v7009_v39 = vmul.f32 %v11390_v38, %v14258_v45  ;;  %vm7024_vm1 = vcmp.eq.f32.partialorder %v14267_v33, inf }
 0xff8   : > { %11399 = vrcp.f32 %v7039_v41  ;;  %v7018_v26 = vsel %vm7017_vm15, %v14254_v13, %v7016_v11  ;;  %vm7026_vm5 = vcmp.eq.f32.partialorder %v14267_v33, 0.0  ;;  %vm7031_vm7 = vcmp.eq.f32.partialorder %v14270_v19, inf }
 0xff9   : > { %v11392_v42 = vpop.eup %11391  ;;  %11401 = vrcp.f32 %v7038_v18  ;;  %v7021_v14 = vsel %vm7019_vm2, %v7020_v17, %v7018_v26  ;;  %v7011_v59 = vsel %vm7010_vm3, %v14258_v45, %v7009_v39  ;;  %v7034_v45 = vand.u32 2147483648, %v14270_v19 }
 0xffa   : > { %v11394_v40 = vpop.eup %11393  ;;  %v7041_v34 = vadd.f32 1e-08, %v7021_v14  ;;  %v7014_v32 = vsel %vm7012_vm4, %v7013_v12, %v7011_v59  ;;  %v7023_v56 = vmul.f32 %v11392_v42, %v14267_v33  ;;  %vm7033_vm8 = vcmp.eq.f32.partialorder %v14270_v19, 0.0 }
 0xffb   : > { %v7040_v63 = vadd.f32 1e-08, %v7014_v32  ;;  %v7030_v44 = vmul.f32 %v11394_v40, %v14270_v19 }
 0xffc   : > { %11403 = vrcp.f32 %v7041_v34  ;;  %v7025_v13 = vsel %vm7024_vm1, %v14267_v33, %v7023_v56 }
 0xffd   : > { %11405 = vrcp.f32 %v7040_v63  ;;  %v7028_v47 = vsel %vm7026_vm5, %v7027_v8, %v7025_v13  ;;  %v7032_v7 = vsel %vm7031_vm7, %v14270_v19, %v7030_v44  ;;  %v6906_v44 = vpop.xlane.xlu1 %6905 }
 0xffe   : > { %v7042_v43 = vadd.f32 1e-08, %v7028_v47  ;;  %v7035_v46 = vsel %vm7033_vm8, %v7034_v45, %v7032_v7  ;;  %vm6918_vm9 = vcmp.eq.f32.partialorder %v6906_v44, inf  ;;  %vm6920_vm10 = vcmp.eq.f32.partialorder %v6906_v44, 0.0 }
 0xfff   : > { %v7043_v31 = vadd.f32 1e-08, %v7035_v46 }
0x1000   : > { %v11396_v38 = vpop.eup %11395  ;;  %11407 = vrcp.f32 %v7042_v43 }
0x1001   : > { %v11398_v41 = vpop.eup %11397  ;;  %11409 = vrcp.f32 %v7043_v31  ;;  %v14309_v60 = vmul.f32 %v11396_v38, %v13710_v27  ;;  %v6909_v13 = vpop.xlane.xlu1 %6908 }
0x1002   : > { %v11400_v33 = vpop.eup %11399  ;;  %v14312_v11 = vmul.f32 %v11398_v41, %v13712_v37  ;;  %vm6925_vm15 = vcmp.eq.f32.partialorder %v6909_v13, inf  ;;  %vm6927_vm2 = vcmp.eq.f32.partialorder %v6909_v13, 0.0 }
0x1003   : > { %v11402_v18 = vpop.eup %11401  ;;  %v14315_v17 = vmul.f32 %v11400_v33, %v13722_v23 }
0x1004   : > { %v10269_v19 = vpack.c.bf16 %v14309_v60, %v14312_v11  ;;  %v14320_v39 = vmul.f32 %v11402_v18, %v13724_v20 }
0x1006   : > { %v11404_v26 = vpop.eup %11403  ;;  %v10272_v12 = vpack.c.bf16 %v14315_v17, %v14320_v39 }
0x1007   : > { %v11406_v42 = vpop.eup %11405  ;;  %v14325_v14 = vmul.f32 %v11404_v26, %v13716_v54 }
0x1008   : > { %v14328_v59 = vmul.f32 %v11406_v42, %v13718_v52 }
0x100a   : > { %v11408_v40 = vpop.eup %11407 }
0x100b   : > { %v11410_v32 = vpop.eup %11409  ;;  %v14333_v56 = vmul.f32 %v11408_v40, %v13731_v30 }
0x100c   : > { %v14336_v63 = vmul.f32 %v11410_v32, %v13729_v29 }
0x105c   : > { %v6537_v45 = vpop.xlane.xlu1 %6536 }
0x105d   : > { %11411 = vrcp.f32 %v6537_v45  ;;  %v6534_v47 = vpop.xlane.xlu0 %6533  ;;  %v6921_v45 = vand.u32 2147483648, %v6906_v44 }
0x105e   : > { %11413 = vrcp.f32 %v6534_v47 }
0x105f   : > { %11415 = vrsqrt.f32 %v6906_v44 }
0x1060   : > { %11417 = vrsqrt.f32 %v6909_v13 }
0x1067   : > { %v11412_v7 = vpop.eup %11411 }
0x1068   : > { %v11414_v43 = vpop.eup %11413  ;;  %v6565_v31 = vmul.f32 %v11412_v7, %v14213_v28 }
0x1069   : > { %v6564_v46 = vmul.f32 %v11414_v43, %v14215_v55  ;;  %v11416_v33 = vpop.eup %11415 }
0x106a   : > { %v6917_v26 = vmul.f32 %v11416_v33, %v6906_v44  ;;  %v11418_v55 = vpop.eup %11417 }
0x106b   : > { %9532 = vmatprep.mubr.msk.f32.mxu0 %vm1318_vm0, %v6564_v46  ;;  %v6924_v47 = vmul.f32 %v11418_v55, %v6909_v13 }
0x106c   : > { %v6543_v38 = vpop.xlane.xlu0 %6542  ;;  %9533 = vmatmul.mubr.msk.f32.vlgmr.msra.gmra.mrb[72].mxu0 %vm1318_vm0, %v6565_v31  ;;  %v6919_v40 = vsel %vm6918_vm9, %v6906_v44, %v6917_v26  ;;  %v6928_v26 = vand.u32 2147483648, %v6909_v13 }
0x106d   : > { %10263 = vmatpush3.bf16.msra.mxu0 %v12615_v49  ;;  %11419 = vrcp.f32 %v6543_v38  ;;  %v6922_v43 = vsel %vm6920_vm10, %v6921_v45, %v6919_v40  ;;  %v6926_v38 = vsel %vm6925_vm15, %v6909_v13, %v6924_v47 }
0x106e   : > { %10268 = vmatprep.subr.bf16.mxu0 %v15343_v21  ;;  %v6944_v33 = vadd.f32 1e-08, %v6922_v43  ;;  %v6929_v55 = vsel %vm6927_vm2, %v6928_v26, %v6926_v38 }
0x106f   : > { %v6945_v40 = vadd.f32 1e-08, %v6929_v55 }
0x1070   : > { %v6540_v41 = vpop.xlane.xlu0 %6539 }
0x1071   : > { %11421 = vrcp.f32 %v6540_v41 }
0x1074   : > { %v6912_v18 = vpop.xlane.xlu0 %6911 }
0x1075   : > { %11423 = vrsqrt.f32 %v6912_v18  ;;  %vm6932_vm3 = vcmp.eq.f32.partialorder %v6912_v18, inf  ;;  %vm6934_vm4 = vcmp.eq.f32.partialorder %v6912_v18, 0.0 }
0x1076   : > { %v6549_v42 = vpop.xlane.xlu1 %6548 }
0x1077   : > { %v11420_v32 = vpop.eup %11419 }
0x1078   : > { %v6915_v28 = vpop.xlane.xlu0 %6914  ;;  %v6567_v31 = vmul.f32 %v11420_v32, %v14225_v51 }
0x1079   : > { %11425 = vrsqrt.f32 %v6915_v28  ;;  %vm6939_vm1 = vcmp.eq.f32.partialorder %v6915_v28, inf  ;;  %vm6941_vm5 = vcmp.eq.f32.partialorder %v6915_v28, 0.0 }
0x107a   : > { %11427 = vrcp.f32 %v6549_v42  ;;  %v6546_v49 = vpop.xlane.xlu1 %6545 }
0x107b   : > { %v11422_v7 = vpop.eup %11421  ;;  %11429 = vrcp.f32 %v6546_v49  ;;  %v6942_v49 = vand.u32 2147483648, %v6915_v28 }
0x107c   : > { %v6566_v46 = vmul.f32 %v11422_v7, %v14234_v6  ;;  %v6935_v6 = vand.u32 2147483648, %v6912_v18 }
0x107d   : > { %v6552_v34 = vpop.xlane.xlu0 %6551 }
0x107e   : > { %9539 = vmatprep.mubr.msk.f32.mxu1 %vm1318_vm0, %v6566_v46  ;;  %v6555_v8 = vpop.xlane.xlu1 %6554 }
0x107f   : > { %v11424_v41 = vpop.eup %11423  ;;  %9540 = vmatmul.mubr.msk.f32.vlgmr.msra.gmra.mrb[72].mxu1 %vm1318_vm0, %v6567_v31  ;;  %11431 = vrcp.f32 %v6555_v8 }
0x1080   : > { %v6931_v44 = vmul.f32 %v11424_v41, %v6912_v18  ;;  %10267 = vmatpush3.bf16.msra.mxu1 %v12630_v2  ;;  %11433 = vrcp.f32 %v6552_v34 }
0x1081   : > { %10271 = vmatprep.subr.bf16.mxu1 %v15343_v21  ;;  %11435 = vrcp.f32 %v6944_v33 }
0x1082   : > { %v6933_v51 = vsel %vm6932_vm3, %v6912_v18, %v6931_v44  ;;  %11437 = vrcp.f32 %v6945_v40 }
0x1083   : > { %v11426_v42 = vpop.eup %11425  ;;  %v6936_v32 = vsel %vm6934_vm4, %v6935_v6, %v6933_v51 }
0x1084   : > { %v6938_v45 = vmul.f32 %v11426_v42, %v6915_v28  ;;  %v11428_v47 = vpop.eup %11427  ;;  %v6946_v8 = vadd.f32 1e-08, %v6936_v32 }
0x1085   : > { %v11430_v13 = vpop.eup %11429  ;;  %v6569_v34 = vmul.f32 %v11428_v47, %v14248_v22 }
0x1086   : > { %v6940_v7 = vsel %vm6939_vm1, %v6915_v28, %v6938_v45  ;;  %v6568_v2 = vmul.f32 %v11430_v13, %v14252_v36  ;;  %11439 = vrcp.f32 %v6946_v8 }
0x1087   : > { %v6943_v43 = vsel %vm6941_vm5, %v6942_v49, %v6940_v7 }
0x1088   : > { %9546 = vmatprep.mubr.msk.f32.mxu0 %vm1318_vm0, %v6568_v2  ;;  %v6947_v36 = vadd.f32 1e-08, %v6943_v43 }
0x1089   : > { %v11432_v46 = vpop.eup %11431  ;;  %9547 = vmatmul.mubr.msk.f32.vlgmr.msra.gmra.mrb[74].mxu0 %vm1318_vm0, %v6569_v34 }
0x108a   : > { %v11434_v18 = vpop.eup %11433  ;;  %10270 = vmatpush3.bf16.xpose.msra.mxu0 %v10269_v19  ;;  %9560 = vmatprep.mubr.msk.f32.mxu0 %vm11986_vm6, %v15232_v4  ;;  %v6571_v28 = vmul.f32 %v11432_v46, %v14261_v62  ;;  %11441 = vrcp.f32 %v6947_v36  ;;  %v15514_v62 = vpack.c.bf16 %v14325_v14, %v14328_v59 }
0x108b   : > { %v6570_v31 = vmul.f32 %v11434_v18, %v14265_v10  ;;  %10274 = vmatprep.subr.bf16.mxu0 %v15343_v21  ;;  %v11436_v22 = vpop.eup %11435 }
0x108c   : > { %v6952_v60 = vmul.f32 %v11436_v22, %v14192_v9  ;;  %v11438_v10 = vpop.eup %11437  ;;  %v15515_v9 = vpack.c.bf16 %v14336_v63, %v14333_v56 }
0x108d   : > { %9553 = vmatprep.mubr.msk.f32.mxu1 %vm1318_vm0, %v6570_v31  ;;  %v6953_v17 = vmul.f32 %v11438_v10, %v14205_v50 }
0x108e   : > { %9554 = vmatmul.mubr.msk.f32.vlgmr.msra.gmra.mrb[74].mxu1 %vm1318_vm0, %v6571_v28 }
0x108f   : > { %10273 = vmatpush3.bf16.xpose.msra.mxu1 %v10272_v12  ;;  %9567 = vmatprep.mubr.msk.f32.mxu1 %vm11986_vm6, %v15232_v4  ;;  %v15516_v12 = vpack.c.bf16 %v13710_v27, %v13712_v37 }
0x1090   : > { %10277 = vmatprep.subr.bf16.mxu1 %v15343_v21  ;;  %v11440_v11 = vpop.eup %11439 }
0x1091   : > { %9561 = vmatmul.mubr.f32.vlgmr.msra.gmra.mrb[76].mxu0 %v6952_v60  ;;  %v6954_v19 = vmul.f32 %v11440_v11, %v14230_v0  ;;  %v15517_v0 = vpack.c.bf16 %v13722_v23, %v13724_v20 }
0x1092   : > { %10276 = vmatpush3.bf16.xpose.msra.mxu0 %v15514_v62  ;;  %9574 = vmatprep.mubr.msk.f32.mxu0 %vm11986_vm6, %v15232_v4 }
0x1093   : > { %10280 = vmatprep.subr.bf16.mxu0 %v15343_v21 }
0x1094   : > { %v11442_v39 = vpop.eup %11441 }
0x1095   : > { %v6955_v50 = vmul.f32 %v11442_v39, %v14243_v25 }
0x1096   : > { %9568 = vmatmul.mubr.f32.vlgmr.msra.gmra.mrb[76].mxu1 %v6953_v17 }
0x1097   : > { %10279 = vmatpush3.bf16.xpose.msra.mxu1 %v15515_v9  ;;  %9581 = vmatprep.mubr.msk.f32.mxu1 %vm11986_vm6, %v15232_v4 }
0x1098   : > { %10283 = vmatprep.subr.bf16.mxu1 %v15343_v21 }
0x1099   : > { %9575 = vmatmul.mubr.f32.vlgmr.msra.gmra.mrb[78].mxu0 %v6954_v19 }
0x109a   : > { %10282 = vmatpush3.bf16.msra.mxu0 %v15516_v12  ;;  %9588 = vmatprep.mubr.msk.f32.mxu0 %vm11986_vm6, %v15232_v4 }
0x109b   : > { %10286 = vmatprep.subr.bf16.mxu0 %v15343_v21 }
0x109e   : > { %9582 = vmatmul.mubr.f32.vlgmr.msra.gmra.mrb[78].mxu1 %v6955_v50 }
0x109f   : > { %10285 = vmatpush3.bf16.msra.mxu1 %v15517_v0  ;;  %9595 = vmatprep.mubr.msk.f32.mxu1 %vm11986_vm6, %v15232_v4  ;;  %v15518_v0 = vpack.c.bf16 %v13716_v54, %v13718_v52  ;;  %v15528_v52 = vld [vmem:[#allocation39_spill] sm:$0xff] }
0x10a0   : > { %10289 = vmatprep.subr.bf16.mxu1 %v15343_v21 }
0x113f   : > { %v14400_v14 = vpop.f32.mrb[72].mxu0 }
0x1140   : > { %v14402_v27 = vpop.f32.mrb[73].mxu0 }
0x1152   : > { %v14404_v37 = vpop.f32.mrb[72].mxu1 }
0x1153   : > { %v14406_v59 = vpop.f32.mrb[73].mxu1 }
0x115c   : > { %v14408_v56 = vpop.f32.mrb[74].mxu0 }
0x115d   : > { %v14410_v25 = vpop.f32.mrb[75].mxu0 }
0x1161   : > { %v14412_v63 = vpop.f32.mrb[74].mxu1 }
0x1162   : > { %v14414_v23 = vpop.f32.mrb[75].mxu1 }
0x1164   : > { %v7126_v20 = vpop.f32.mrb[76].mxu0 }
0x1165   : > { %v9562_v38 = vpop.f32.mrb[77].mxu0  ;;  %v7340_v21 = vsel %vm2072_vm11, %v7126_v20, -inf }
0x1166   : > { %7341 = vmax.xlane.f32.xlu0 %v7340_v21 }
0x1169   : > { %v7196_v41 = vpop.f32.mrb[76].mxu1 }
0x116a   : > { %v9569_v33 = vpop.f32.mrb[77].mxu1  ;;  %v7343_v26 = vsel %vm2072_vm11, %v7196_v41, -inf }
0x116b   : > { %7344 = vmax.xlane.f32.xlu1 %v7343_v26  ;;  %v15519_v33 = vpack.c.bf16 %v13729_v29, %v13731_v30  ;;  %v15530_v29 = vld [vmem:[#allocation41_spill] sm:$0xff] }
0x116c   : > { %v7266_v44 = vpop.f32.mrb[78].mxu0  ;;  %v15531_v30 = vld [vmem:[#allocation49_spill] sm:$0xff] }
0x116d   : > { %v9576_v55 = vpop.f32.mrb[79].mxu0  ;;  %v7346_v51 = vsel %vm2072_vm11, %v7266_v44, -inf  ;;  %v15534_v26 = vld [vmem:[#allocation45_spill] sm:$0xff] }
0x116e   : > { %7347 = vmax.xlane.f32.xlu0 %v7346_v51  ;;  %v15536_v55 = vld [vmem:[#allocation47_spill] sm:$0xff] }
0x116f   : > { %v15537_v51 = vld [vmem:[#allocation55_spill] sm:$0xff] }
0x1171   : > { %v7336_v6 = vpop.f32.mrb[78].mxu1 }
0x1172   : > { %v9583_v42 = vpop.f32.mrb[79].mxu1  ;;  %v7349_v40 = vsel %vm2072_vm11, %v7336_v6, -inf }
0x1173   : > { %7350 = vmax.xlane.f32.xlu1 %v7349_v40  ;;  %v15539_v42 = vld [vmem:[#allocation57_spill] sm:$0xff]  ;;  %v15540_v40 = vld [vmem:[#allocation52_spill] sm:$0xff] }
0x11f3   : > { %v7342_v32 = vpop.xlane.xlu0 %7341 }
0x11f4   : > { %v7352_v45 = vsub.f32 %v7126_v20, %v7342_v32  ;;  %v15541_v32 = vld [vmem:[#allocation59_spill] sm:$0xff] }
0x11f6   : > { %v7356_v47 = vmul.f32 1.442695, %v7352_v45  ;;  %v15542_v45 = vld [vmem:[#allocation54_spill] sm:$0xff] }
0x11f8   : > { %11443 = vpow2.f32 %v7356_v47  ;;  %v7345_v13 = vpop.xlane.xlu1 %7344  ;;  %v15543_v47 = vld [vmem:[#allocation62_spill] sm:$0xff] }
0x11f9   : > { %v7353_v7 = vsub.f32 %v7196_v41, %v7345_v13  ;;  %v15544_v13 = vld [vmem:[#allocation56_spill] sm:$0xff] }
0x11fb   : > { %v7358_v8 = vmul.f32 1.442695, %v7353_v7  ;;  %v7348_v49 = vpop.xlane.xlu0 %7347  ;;  %v15545_v7 = vld [vmem:[#allocation64_spill] sm:$0xff] }
0x11fc   : > { %v7354_v2 = vsub.f32 %v7266_v44, %v7348_v49  ;;  %v15535_v44 = vld [vmem:[#allocation53_spill] sm:$0xff]  ;;  %v15547_v49 = vld [vmem:[#allocation66_spill] sm:$0xff] }
0x11fd   : > { %11445 = vpow2.f32 %v7358_v8  ;;  %v15546_v8 = vld [vmem:[#allocation58_spill] sm:$0xff] }
0x11fe   : > { %v7360_v34 = vmul.f32 1.442695, %v7354_v2  ;;  %v15548_v2 = vld [vmem:[#allocation60_spill] sm:$0xff] }
0x1200   : > { %11447 = vpow2.f32 %v7360_v34  ;;  %v7351_v43 = vpop.xlane.xlu1 %7350  ;;  %v15549_v34 = vld [vmem:[#allocation68_spill] sm:$0xff] }
0x1201   : > { %v7355_v46 = vsub.f32 %v7336_v6, %v7351_v43  ;;  %v15538_v6 = vld [vmem:[#allocation50_spill] sm:$0xff] }
0x1202   : > { %v11444_v18 = vpop.eup %11443  ;;  %v15551_v43 = vld [vmem:[#allocation70_spill] sm:$0xff] }
0x1203   : > { %v7362_v36 = vmul.f32 1.442695, %v7355_v46  ;;  %v7364_v31 = vsel %vm2072_vm11, %v11444_v18, 0.0  ;;  %v15552_v46 = vld [vmem:[#allocation63_spill] sm:$0xff] }
0x1204   : > { %7365 = vadd.xlane.f32.xlu0 %v7364_v31  ;;  %v15556_v31 = vld [vmem:[#allocation67_spill] sm:$0xff] }
0x1205   : > { %11449 = vpow2.f32 %v7362_v36  ;;  %v15555_v36 = vld [vmem:[#allocation74_spill] sm:$0xff] }
0x1207   : > { %v11446_v22 = vpop.eup %11445 }
0x1208   : > { %v7367_v28 = vsel %vm2072_vm11, %v11446_v22, 0.0 }
0x1209   : > { %7368 = vadd.xlane.f32.xlu1 %v7367_v28  ;;  %v15559_v28 = vld [vmem:[#allocation78_spill] sm:$0xff] }
0x120a   : > { %v11448_v60 = vpop.eup %11447 }
0x120b   : > { %v7370_v10 = vsel %vm2072_vm11, %v11448_v60, 0.0 }
0x120c   : > { %7371 = vadd.xlane.f32.xlu0 %v7370_v10  ;;  %v15561_v10 = vld [vmem:[#allocation80_spill] sm:$0xff] }
0x120f   : > { %v11450_v62 = vpop.eup %11449 }
0x1210   : > { %v7373_v11 = vsel %vm2072_vm11, %v11450_v62, 0.0 }
0x1211   : > { %7374 = vadd.xlane.f32.xlu1 %v7373_v11  ;;  %v15564_v11 = vld [vmem:[#allocation75_spill] sm:$0xff] }
0x1291   : > { %v7366_v17 = vpop.xlane.xlu0 %7365 }
0x1292   : > { %11451 = vrcp.f32 %v7366_v17  ;;  %v15565_v17 = vld [vmem:[#allocation83_spill] sm:$0xff] }
0x1296   : > { %v7369_v9 = vpop.xlane.xlu1 %7368 }
0x1297   : > { %11453 = vrcp.f32 %v7369_v9  ;;  %v15567_v9 = vld [vmem:[#allocation84_spill] sm:$0xff] }
0x1299   : > { %v7372_v19 = vpop.xlane.xlu0 %7371 }
0x129a   : > { %11455 = vrcp.f32 %v7372_v19  ;;  %v15568_v19 = vld [vmem:[#allocation79_spill] sm:$0xff] }
0x129c   : > { %v11452_v39 = vpop.eup %11451 }
0x129d   : > { %v7380_v12 = vmul.f32 %v11452_v39, %v11444_v18  ;;  %v15553_v18 = vld [vmem:[#allocation72_spill] sm:$0xff]  ;;  %v15569_v39 = vld [vmem:[#allocation86_spill] sm:$0xff] }
0x129e   : > { %v7375_v50 = vpop.xlane.xlu1 %7374 }
0x129f   : > { %11457 = vrcp.f32 %v7375_v50  ;;  %9589 = vmatmul.mubr.msk.f32.vlgmr.msra.gmra.mrb[80].mxu0 %vm1318_vm0, %v7380_v12  ;;  %v15571_v12 = vld [vmem:[#allocation162_spill] sm:$0xff] }
0x12a0   : > { %10288 = vmatpush3.bf16.msra.mxu0 %v15518_v0  ;;  %9602 = vmatprep.mubr.msk.f32.mxu0 %vm11986_vm6, %v15232_v4  ;;  %v15572_v50 = vld [vmem:[#allocation82_spill] sm:$0xff]  ;;  %v15573_v0 = vld [vmem:[#allocation89_spill] sm:$0xff] }
0x12a1   : > { %v11454_v20 = vpop.eup %11453  ;;  %10293 = vmatprep.subr.bf16.mxu0 %v12790_v15 }
0x12a2   : > { %v7381_v38 = vmul.f32 %v11454_v20, %v11446_v22  ;;  %v15557_v22 = vld [vmem:[#allocation76_spill] sm:$0xff]  ;;  %v15575_v20 = vld [vmem:[#allocation85_spill] sm:$0xff] }
0x12a4   : > { %v11456_v21 = vpop.eup %11455  ;;  %9596 = vmatmul.mubr.msk.f32.vlgmr.msra.gmra.mrb[80].mxu1 %vm1318_vm0, %v7381_v38  ;;  %v15576_v38 = vld [vmem:[#allocation164_spill] sm:$0xff] }
0x12a5   : > { %v7382_v41 = vmul.f32 %v11456_v21, %v11448_v60  ;;  %10291 = vmatpush3.bf16.msra.mxu1 %v15519_v33  ;;  %9609 = vmatprep.mubr.msk.f32.mxu1 %vm11986_vm6, %v15232_v4  ;;  %v15560_v60 = vld [vmem:[#allocation71_spill] sm:$0xff]  ;;  %v15577_v21 = vld [vmem:[#allocation88_spill] sm:$0xff] }
0x12a6   : > { %10325 = vmatprep.subr.bf16.mxu1 %v12809_v57  ;;  %v15523_v57 = vld [vmem:[#allocation42_spill] sm:$0xff]  ;;  %v15580_v33 = vld [vmem:[#allocation91_spill] sm:$0xff] }
0x12a7   : > { %9603 = vmatmul.mubr.msk.f32.vlgmr.msra.gmra.mrb[82].mxu0 %vm1318_vm0, %v7382_v41  ;;  %v15579_v41 = vld [vmem:[#allocation94_spill] sm:$0xff] }
0x12a8   : > { %10295 = vmatpush1.bf16.msra.mxu0 %v12797_v35  ;;  %7740 = vmatprep.mubr.f32.mxu0 %v15232_v4  ;;  %v15520_v35 = vld [vmem:[#allocation33_spill] sm:$0xff] }
0x12a9   : > { %v11458_v15 = vpop.eup %11457  ;;  %10297 = vmatprep.subr.bf16.mxu0 %v12799_v24  ;;  %v15521_v24 = vld [vmem:[#allocation40_spill] sm:$0xff] }
0x12aa   : > { %v7383_v54 = vmul.f32 %v11458_v15, %v11450_v62  ;;  %v15563_v62 = vld [vmem:[#allocation81_spill] sm:$0xff]  ;;  %v15581_v15 = vld [vmem:[#allocation27_spill] sm:$0xff] }
0x12ac   : > { %10299 = vmatpush1.bf16.msra.mxu0 %v12803_v1  ;;  %9610 = vmatmul.mubr.msk.f32.vlgmr.msra.gmra.mrb[82].mxu1 %vm1318_vm0, %v7383_v54  ;;  %v15522_v1 = vld [vmem:[#allocation34_spill] sm:$0xff]  ;;  %v15582_v54 = vld [vmem:[#allocation93_spill] sm:$0xff] }
0x12ad   : > { %10327 = vmatpush1.bf16.msra.mxu1 %v12825_v53  ;;  %10301 = vmatprep.subr.bf16.mxu0 %v12807_v5  ;;  %v15524_v5 = vld [vmem:[#allocation35_spill] sm:$0xff]  ;;  %v15525_v53 = vld [vmem:[#allocation44_spill] sm:$0xff] }
0x12ae   : > { %10329 = vmatprep.subr.bf16.mxu1 %v12831_v16  ;;  %7853 = vmatprep.mubr.f32.mxu1 %v15232_v4  ;;  %v15526_v16 = vld [vmem:[#allocation37_spill] sm:$0xff] }
0x12b0   : > { %10303 = vmatpush1.bf16.msra.mxu0 %v12814_v58  ;;  %v15527_v58 = vld [vmem:[#allocation46_spill] sm:$0xff] }
0x12b1   : > { %10331 = vmatpush1.bf16.msra.mxu1 %v15352_v3  ;;  %10305 = vmatprep.subr.bf16.mxu0 %v12819_v61  ;;  %v15529_v61 = vld [vmem:[#allocation48_spill] sm:$0xff]  ;;  %v15532_v3 = vld [vmem:[#allocation43_spill] sm:$0xff] }
0x12b2   : > { %10333 = vmatprep.subr.bf16.mxu1 %v15354_v48  ;;  %v15533_v48 = vld [vmem:[#allocation51_spill] sm:$0xff] }
0x12b4   : > { %10307 = vmatpush1.bf16.msra.mxu0 %v15520_v35  ;;  %v15583_v35 = vld [vmem:[#allocation96_spill] sm:$0xff] }
0x12b5   : > { %10335 = vmatpush1.bf16.msra.mxu1 %v15521_v24  ;;  %10309 = vmatprep.subr.bf16.mxu0 %v15522_v1  ;;  %v15584_v24 = vld [vmem:[#allocation98_spill] sm:$0xff]  ;;  %v15585_v1 = vld [vmem:[#allocation95_spill] sm:$0xff] }
0x12b6   : > { %10337 = vmatprep.subr.bf16.mxu1 %v15523_v57  ;;  %v15586_v57 = vld [vmem:[#allocation28_spill] sm:$0xff] }
0x12b8   : > { %10311 = vmatpush1.bf16.msra.mxu0 %v15524_v5  ;;  %v15587_v5 = vld [vmem:[#allocation97_spill] sm:$0xff] }
0x12b9   : > { %10339 = vmatpush1.bf16.msra.mxu1 %v15525_v53  ;;  %10313 = vmatprep.subr.bf16.mxu0 %v15526_v16  ;;  %v15588_v53 = vld [vmem:[#allocation100_spill] sm:$0xff]  ;;  %v15589_v16 = vld [vmem:[#allocation102_spill] sm:$0xff] }
0x12ba   : > { %10341 = vmatprep.subr.bf16.mxu1 %v15527_v58  ;;  %v15590_v58 = vld [vmem:[#allocation99_spill] sm:$0xff] }
0x12bc   : > { %10315 = vmatpush1.bf16.msra.mxu0 %v15528_v52  ;;  %v15591_v52 = vld [vmem:[#allocation155_spill] sm:$0xff] }
0x12bd   : > { %10343 = vmatpush1.bf16.msra.mxu1 %v15529_v61  ;;  %10317 = vmatprep.subr.bf16.mxu0 %v15530_v29  ;;  %v15592_v61 = vld [vmem:[#allocation101_spill] sm:$0xff]  ;;  %v15593_v29 = vld [vmem:[#allocation104_spill] sm:$0xff] }
0x12be   : > { %10345 = vmatprep.subr.bf16.mxu1 %v15531_v30  ;;  %v15594_v30 = vld [vmem:[#allocation106_spill] sm:$0xff] }
0x12c0   : > { %10319 = vmatpush1.bf16.msra.mxu0 %v15532_v3  ;;  %v15595_v3 = vld [vmem:[#allocation103_spill] sm:$0xff] }
0x12c1   : > { %10347 = vmatpush1.bf16.msra.mxu1 %v15533_v48  ;;  %10321 = vmatprep.subr.bf16.mxu0 %v15534_v26  ;;  %v15596_v48 = vld [vmem:[#allocation156_spill] sm:$0xff]  ;;  %v15597_v26 = vld [vmem:[#allocation105_spill] sm:$0xff] }
0x12c2   : > { %10349 = vmatprep.subr.bf16.mxu1 %v15535_v44  ;;  %v15598_v44 = vld [vmem:[#allocation108_spill] sm:$0xff] }
0x12c4   : > { %10323 = vmatpush1.bf16.msra.mxu0 %v15536_v55  ;;  %v15599_v55 = vld [vmem:[#allocation109_spill] sm:$0xff] }
0x12c5   : > { %10351 = vmatpush1.bf16.msra.mxu1 %v15537_v51  ;;  %10357 = vmatprep.subr.bf16.mxu0 %v15538_v6  ;;  %v15600_v51 = vld [vmem:[#allocation107_spill] sm:$0xff]  ;;  %v15601_v6 = vld [vmem:[#allocation157_spill] sm:$0xff] }
0x12c6   : > { %10353 = vmatprep.subr.bf16.mxu1 %v15539_v42  ;;  %v15602_v42 = vld [vmem:[#allocation110_spill] sm:$0xff] }
0x12c7   : > { %7741 = vmatmul.mubr.f32.vlgmr.msra.gmra.mrb[84].mxu0 %v14402_v27 }
0x12c8   : > { %10359 = vmatpush1.bf16.msra.mxu0 %v15540_v40  ;;  %7746 = vmatprep.mubr.f32.mxu0 %v15232_v4  ;;  %v15603_v40 = vld [vmem:[#allocation112_spill] sm:$0xff] }
0x12c9   : > { %10355 = vmatpush1.bf16.msra.mxu1 %v15541_v32  ;;  %10361 = vmatprep.subr.bf16.mxu0 %v15542_v45  ;;  %v15604_v32 = vld [vmem:[#allocation114_spill] sm:$0xff]  ;;  %v15605_v45 = vld [vmem:[#allocation111_spill] sm:$0xff] }
0x12ca   : > { %10389 = vmatprep.subr.bf16.mxu1 %v15543_v47  ;;  %v15606_v47 = vld [vmem:[#allocation158_spill] sm:$0xff] }
0x12cb   : > { %7747 = vmatmul.mubr.f32.gmra.mrb[86].mxu0 %v14400_v14 }
0x12cc   : > { %7854 = vmatmul.mubr.f32.vlgmr.msra.gmra.mrb[84].mxu1 %v14402_v27  ;;  %10363 = vmatpush1.bf16.msra.mxu0 %v15544_v13  ;;  %v15550_v27 = vld [vmem:[#allocation61_spill] sm:$0xff] }
0x12cd   : > { %10391 = vmatpush1.bf16.msra.mxu1 %v15545_v7  ;;  %7752 = vmatprep.mubr.f32.mxu0 %v15232_v4  ;;  %v15607_v13 = vld [vmem:[#allocation113_spill] sm:$0xff]  ;;  %v15608_v7 = vld [vmem:[#allocation115_spill] sm:$0xff] }
0x12ce   : > { %7859 = vmatprep.mubr.f32.mxu1 %v15232_v4  ;;  %10365 = vmatprep.subr.bf16.mxu0 %v15546_v8  ;;  %v15609_v8 = vld [vmem:[#allocation117_spill] sm:$0xff] }
0x12cf   : > { %7753 = vmatmul.mubr.f32.gmra.mrb[88].mxu0 %v14406_v59  ;;  %10393 = vmatprep.subr.bf16.mxu1 %v15547_v49  ;;  %v15610_v49 = vld [vmem:[#allocation116_spill] sm:$0xff] }
0x12d0   : > { %7860 = vmatmul.mubr.f32.gmra.mrb[86].mxu1 %v14400_v14  ;;  %10367 = vmatpush1.bf16.msra.mxu0 %v15548_v2  ;;  %v15554_v14 = vld [vmem:[#allocation65_spill] sm:$0xff]  ;;  %v15611_v2 = vld [vmem:[#allocation118_spill] sm:$0xff] }
0x12d1   : > { %10395 = vmatpush1.bf16.msra.mxu1 %v15549_v34  ;;  %7758 = vmatprep.mubr.f32.mxu0 %v15232_v4  ;;  %v15612_v34 = vld [vmem:[#allocation119_spill] sm:$0xff] }
0x12d2   : > { %7865 = vmatprep.mubr.f32.mxu1 %v15232_v4  ;;  %10369 = vmatprep.subr.bf16.mxu0 %v15550_v27  ;;  %v15613_v27 = vld [vmem:[#allocation120_spill] sm:$0xff] }
0x12d3   : > { %7759 = vmatmul.mubr.f32.gmra.mrb[90].mxu0 %v14404_v37  ;;  %10397 = vmatprep.subr.bf16.mxu1 %v15551_v43 }
0x12d4   : > { %7866 = vmatmul.mubr.f32.gmra.mrb[88].mxu1 %v14406_v59  ;;  %10371 = vmatpush1.bf16.msra.mxu0 %v15552_v46  ;;  %v15558_v59 = vld [vmem:[#allocation69_spill] sm:$0xff] }
0x12d5   : > { %10399 = vmatpush1.bf16.msra.mxu1 %v15553_v18  ;;  %7764 = vmatprep.mubr.f32.mxu0 %v15232_v4 }
0x12d6   : > { %7871 = vmatprep.mubr.f32.mxu1 %v15232_v4  ;;  %10373 = vmatprep.subr.bf16.mxu0 %v15554_v14 }
0x12d7   : > { %7765 = vmatmul.mubr.f32.gmra.mrb[92].mxu0 %v14410_v25  ;;  %10401 = vmatprep.subr.bf16.mxu1 %v15555_v36 }
0x12d8   : > { %7872 = vmatmul.mubr.f32.gmra.mrb[90].mxu1 %v14404_v37  ;;  %10375 = vmatpush1.bf16.msra.mxu0 %v15556_v31  ;;  %v15562_v37 = vld [vmem:[#allocation73_spill] sm:$0xff] }
0x12d9   : > { %10403 = vmatpush1.bf16.msra.mxu1 %v15557_v22  ;;  %7770 = vmatprep.mubr.f32.mxu0 %v15232_v4 }
0x12da   : > { %7877 = vmatprep.mubr.f32.mxu1 %v15232_v4  ;;  %10377 = vmatprep.subr.bf16.mxu0 %v15558_v59 }
0x12db   : > { %7771 = vmatmul.mubr.f32.gmra.mrb[94].mxu0 %v14408_v56  ;;  %10405 = vmatprep.subr.bf16.mxu1 %v15559_v28 }
0x12dc   : > { %7878 = vmatmul.mubr.f32.gmra.mrb[92].mxu1 %v14410_v25  ;;  %10379 = vmatpush1.bf16.msra.mxu0 %v15560_v60  ;;  %v15566_v25 = vld [vmem:[#allocation77_spill] sm:$0xff] }
0x12dd   : > { %10407 = vmatpush1.bf16.msra.mxu1 %v15561_v10  ;;  %7776 = vmatprep.mubr.f32.mxu0 %v15232_v4 }
0x12de   : > { %7883 = vmatprep.mubr.f32.mxu1 %v15232_v4  ;;  %10381 = vmatprep.subr.bf16.mxu0 %v15562_v37 }
0x12df   : > { %7777 = vmatmul.mubr.f32.gmra.mrb[96].mxu0 %v14414_v23  ;;  %10409 = vmatprep.subr.bf16.mxu1 %v15563_v62 }
0x12e0   : > { %7884 = vmatmul.mubr.f32.gmra.mrb[94].mxu1 %v14408_v56  ;;  %10383 = vmatpush1.bf16.msra.mxu0 %v15564_v11  ;;  %v15570_v56 = vld [vmem:[#allocation87_spill] sm:$0xff] }
0x12e1   : > { %10411 = vmatpush1.bf16.msra.mxu1 %v15565_v17  ;;  %7782 = vmatprep.mubr.f32.mxu0 %v15232_v4  ;;  %v15614_v17 = vld [vmem:[#allocation121_spill] sm:$0xff] }
0x12e2   : > { %7889 = vmatprep.mubr.f32.mxu1 %v15232_v4  ;;  %10385 = vmatprep.subr.bf16.mxu0 %v15566_v25  ;;  %v15615_v25 = vld [vmem:[#allocation122_spill] sm:$0xff] }
0x12e3   : > { %7783 = vmatmul.mubr.f32.gmra.mrb[98].mxu0 %v14412_v63  ;;  %10413 = vmatprep.subr.bf16.mxu1 %v15567_v9  ;;  %v15616_v9 = vld [vmem:[#allocation123_spill] sm:$0xff] }
0x12e4   : > { %7890 = vmatmul.mubr.f32.gmra.mrb[96].mxu1 %v14414_v23  ;;  %10387 = vmatpush1.bf16.msra.mxu0 %v15568_v19  ;;  %v15574_v23 = vld [vmem:[#allocation90_spill] sm:$0xff]  ;;  %v15617_v19 = vld [vmem:[#allocation124_spill] sm:$0xff] }
0x12e5   : > { %10415 = vmatpush1.bf16.msra.mxu1 %v15569_v39  ;;  %7966 = vmatprep.mubr.f32.mxu0 %v15232_v4  ;;  %v15618_v39 = vld [vmem:[#allocation125_spill] sm:$0xff] }
0x12e6   : > { %7895 = vmatprep.mubr.f32.mxu1 %v15232_v4  ;;  %10417 = vmatprep.subr.bf16.mxu1 %v15570_v56  ;;  %v15619_v56 = vld [vmem:[#allocation126_spill] sm:$0xff] }
0x12e7   : > { %7967 = vmatmul.mubr.f32.vlgmr.msra.gmra.mrb[84].mxu0 %v15571_v12  ;;  %10421 = vmatprep.subr.bf16.mxu0 %v15572_v50  ;;  %v15621_v50 = vld [vmem:[#allocation128_spill] sm:$0xff] }
0x12e8   : > { %7896 = vmatmul.mubr.f32.gmra.mrb[98].mxu1 %v14412_v63  ;;  %7972 = vmatprep.mubr.f32.mxu0 %v15232_v4  ;;  %v15578_v63 = vld [vmem:[#allocation92_spill] sm:$0xff] }
0x12e9   : > { %10419 = vmatpush1.bf16.msra.mxu1 %v15573_v0  ;;  %8079 = vmatprep.mubr.f32.mxu1 %v15232_v4  ;;  %v15622_v0 = vld [vmem:[#allocation129_spill] sm:$0xff] }
0x12ea   : > { %10453 = vmatprep.subr.bf16.mxu1 %v15574_v23  ;;  %10423 = vmatpush1.bf16.msra.mxu0 %v15575_v20  ;;  %v15623_v23 = vld [vmem:[#allocation130_spill] sm:$0xff]  ;;  %v15624_v20 = vld [vmem:[#allocation131_spill] sm:$0xff] }
0x12eb   : > { %7973 = vmatmul.mubr.f32.gmra.mrb[86].mxu0 %v15576_v38  ;;  %10425 = vmatprep.subr.bf16.mxu0 %v15577_v21  ;;  %v15626_v21 = vld [vmem:[#allocation133_spill] sm:$0xff] }
0x12ec   : > { %8080 = vmatmul.mubr.f32.vlgmr.msra.gmra.mrb[84].mxu1 %v15571_v12  ;;  %7978 = vmatprep.mubr.f32.mxu0 %v15232_v4  ;;  %v15620_v12 = vld [vmem:[#allocation127_spill] sm:$0xff] }
0x12ed   : > { %8085 = vmatprep.mubr.f32.mxu1 %v15232_v4  ;;  %10455 = vmatpush1.bf16.msra.mxu1 %v15578_v63  ;;  %v15627_v63 = vld [vmem:[#allocation134_spill] sm:$0xff] }
0x12ee   : > { %10457 = vmatprep.subr.bf16.mxu1 %v15579_v41  ;;  %10427 = vmatpush1.bf16.msra.mxu0 %v15580_v33  ;;  %v15629_v41 = vld [vmem:[#allocation136_spill] sm:$0xff]  ;;  %v15630_v33 = vld [vmem:[#allocation137_spill] sm:$0xff] }
0x12ef   : > { %7979 = vmatmul.mubr.f32.gmra.mrb[88].mxu0 %v15581_v15  ;;  %10429 = vmatprep.subr.bf16.mxu0 %v15582_v54  ;;  %v15632_v54 = vld [vmem:[#allocation139_spill] sm:$0xff] }
0x12f0   : > { %8086 = vmatmul.mubr.f32.gmra.mrb[86].mxu1 %v15576_v38  ;;  %7984 = vmatprep.mubr.f32.mxu0 %v15232_v4  ;;  %v15625_v38 = vld [vmem:[#allocation132_spill] sm:$0xff] }
0x12f1   : > { %8091 = vmatprep.mubr.f32.mxu1 %v15232_v4  ;;  %10459 = vmatpush1.bf16.msra.mxu1 %v15583_v35  ;;  %v15633_v35 = vld [vmem:[#allocation140_spill] sm:$0xff] }
0x12f2   : > { %10461 = vmatprep.subr.bf16.mxu1 %v15584_v24  ;;  %10431 = vmatpush1.bf16.msra.mxu0 %v15585_v1  ;;  %v15634_v24 = vld [vmem:[#allocation141_spill] sm:$0xff]  ;;  %v15635_v1 = vld [vmem:[#allocation142_spill] sm:$0xff] }
0x12f3   : > { %7985 = vmatmul.mubr.f32.gmra.mrb[90].mxu0 %v15586_v57  ;;  %10433 = vmatprep.subr.bf16.mxu0 %v15587_v5  ;;  %v15637_v5 = vld [vmem:[#allocation144_spill] sm:$0xff] }
0x12f4   : > { %8092 = vmatmul.mubr.f32.gmra.mrb[88].mxu1 %v15581_v15  ;;  %7990 = vmatprep.mubr.f32.mxu0 %v15232_v4  ;;  %v15631_v15 = vld [vmem:[#allocation138_spill] sm:$0xff] }
0x12f5   : > { %8097 = vmatprep.mubr.f32.mxu1 %v15232_v4  ;;  %10463 = vmatpush1.bf16.msra.mxu1 %v15588_v53  ;;  %v15638_v53 = vld [vmem:[#allocation145_spill] sm:$0xff] }
0x12f6   : > { %10465 = vmatprep.subr.bf16.mxu1 %v15589_v16  ;;  %10435 = vmatpush1.bf16.msra.mxu0 %v15590_v58  ;;  %v15639_v16 = vld [vmem:[#allocation146_spill] sm:$0xff]  ;;  %v15640_v58 = vld [vmem:[#allocation147_spill] sm:$0xff] }
0x12f7   : > { %7991 = vmatmul.mubr.f32.gmra.mrb[92].mxu0 %v15591_v52  ;;  %10437 = vmatprep.subr.bf16.mxu0 %v15592_v61  ;;  %v15642_v61 = vld [vmem:[#allocation149_spill] sm:$0xff] }
0x12f8   : > { %8098 = vmatmul.mubr.f32.gmra.mrb[90].mxu1 %v15586_v57  ;;  %7996 = vmatprep.mubr.f32.mxu0 %v15232_v4  ;;  %v15636_v57 = vld [vmem:[#allocation143_spill] sm:$0xff] }
0x12f9   : > { %8103 = vmatprep.mubr.f32.mxu1 %v15232_v4  ;;  %10467 = vmatpush1.bf16.msra.mxu1 %v15593_v29  ;;  %v15643_v29 = vld [vmem:[#allocation150_spill] sm:$0xff] }
0x12fa   : > { %10469 = vmatprep.subr.bf16.mxu1 %v15594_v30  ;;  %10439 = vmatpush1.bf16.msra.mxu0 %v15595_v3  ;;  %v15644_v30 = vld [vmem:[#allocation160_spill] sm:$0xff] }
0x12fb   : > { %7997 = vmatmul.mubr.f32.gmra.mrb[94].mxu0 %v15596_v48  ;;  %10441 = vmatprep.subr.bf16.mxu0 %v15597_v26 }
0x12fc   : > { %8104 = vmatmul.mubr.f32.gmra.mrb[92].mxu1 %v15591_v52  ;;  %8002 = vmatprep.mubr.f32.mxu0 %v15232_v4  ;;  %v15641_v52 = vld [vmem:[#allocation148_spill] sm:$0xff] }
0x12fd   : > { %8109 = vmatprep.mubr.f32.mxu1 %v15232_v4  ;;  %10471 = vmatpush1.bf16.msra.mxu1 %v15598_v44 }
0x12fe   : > { %10473 = vmatprep.subr.bf16.mxu1 %v15599_v55  ;;  %10443 = vmatpush1.bf16.msra.mxu0 %v15600_v51  ;;  %v15646_v55 = vld [vmem:[#allocation152_spill] sm:$0xff] }
0x12ff   : > { %8003 = vmatmul.mubr.f32.gmra.mrb[96].mxu0 %v15601_v6  ;;  %10445 = vmatprep.subr.bf16.mxu0 %v15602_v42 }
0x1300   : > { %8110 = vmatmul.mubr.f32.gmra.mrb[94].mxu1 %v15596_v48  ;;  %8008 = vmatprep.mubr.f32.mxu0 %v15232_v4  ;;  %v15645_v48 = vld [vmem:[#allocation151_spill] sm:$0xff] }
0x1301   : > { %8115 = vmatprep.mubr.f32.mxu1 %v15232_v4  ;;  %10475 = vmatpush1.bf16.msra.mxu1 %v15603_v40 }
0x1302   : > { %10477 = vmatprep.subr.bf16.mxu1 %v15604_v32  ;;  %10447 = vmatpush1.bf16.msra.mxu0 %v15605_v45 }
0x1303   : > { %8009 = vmatmul.mubr.f32.gmra.mrb[98].mxu0 %v15606_v47  ;;  %10449 = vmatprep.subr.bf16.mxu0 %v15607_v13 }
0x1304   : > { %8116 = vmatmul.mubr.f32.gmra.mrb[96].mxu1 %v15601_v6  ;;  %8427 = vmatprep.mubr.f32.mxu0 %v15232_v4 }
0x1305   : > { %8121 = vmatprep.mubr.f32.mxu1 %v15232_v4  ;;  %10479 = vmatpush1.bf16.msra.mxu1 %v15608_v7  ;;  %v15647_v7 = vld [vmem:[#allocation153_spill] sm:$0xff] }
0x1306   : > { %10481 = vmatprep.subr.bf16.mxu1 %v15609_v8  ;;  %10451 = vmatpush1.bf16.msra.mxu0 %v15610_v49 }
0x1307   : > { %10485 = vmatprep.subr.bf16.mxu0 %v15611_v2 }
0x1308   : > { %8122 = vmatmul.mubr.f32.gmra.mrb[98].mxu1 %v15606_v47 }
0x1309   : > { %10483 = vmatpush1.bf16.msra.mxu1 %v15612_v34  ;;  %8498 = vmatprep.mubr.f32.mxu1 %v15232_v4  ;;  %v15648_v34 = vld [vmem:[#allocation154_spill] sm:$0xff] }
0x130a   : > { %10517 = vmatprep.subr.bf16.mxu1 %v15613_v27 }
0x1372   : > { %v7453_v43 = vpop.f32.mrb[80].mxu0 }
0x1373   : > { %v9590_v46 = vpop.f32.mrb[81].mxu0 }
0x1377   : > { %v7526_v18 = vpop.f32.mrb[80].mxu1 }
0x1378   : > { %v8356_v14 = vrot.slane %v7526_v18, 7  ;;  %v9597_v36 = vpop.f32.mrb[81].mxu1 }
0x137a   : > { %v8357_v31 = vsel %vm3090_vm12, %v8356_v14, %v7453_v43  ;;  %v7599_v22 = vpop.f32.mrb[82].mxu0 }
0x137b   : > { %v8358_v59 = vrot.slane %v7599_v22, 6  ;;  %v9604_v28 = vpop.f32.mrb[83].mxu0 }
0x137d   : > { %v8359_v60 = vsel %vm3093_vm13, %v8358_v59, %v8357_v31 }
0x137f   : > { %v7672_v10 = vpop.f32.mrb[82].mxu1 }
0x1380   : > { %v8360_v37 = vrot.slane %v7672_v10, 5  ;;  %v9611_v62 = vpop.f32.mrb[83].mxu1 }
0x1382   : > { %v8361_v11 = vsel %vm3096_vm14, %v8360_v37, %v8359_v60 }
0x1383   : > { %8428 = vmatmul.mubr.f32.vlgmr.msra.gmra.mrb[100].mxu0 %v8361_v11  ;;  %8499 = vmatmul.mubr.f32.vlgmr.msra.gmra.mrb[100].mxu1 %v8361_v11 }
0x1384   : > { %10487 = vmatpush1.bf16.msra.mxu0 %v15614_v17  ;;  %10519 = vmatpush1.bf16.msra.mxu1 %v15615_v25 }
0x1385   : > { %10489 = vmatprep.subr.bf16.mxu0 %v15616_v9  ;;  %10521 = vmatprep.subr.bf16.mxu1 %v15617_v19 }
0x1386   : > { %8569 = vmatprep.mubr.f32.mxu0 %v15232_v4  ;;  %8640 = vmatprep.mubr.f32.mxu1 %v15232_v4  ;;  %v15628_v4 = vld [vmem:[#allocation135_spill] sm:$0xff] }
0x1388   : > { %10491 = vmatpush1.bf16.msra.mxu0 %v15618_v39  ;;  %10523 = vmatpush1.bf16.msra.mxu1 %v15619_v56 }
0x1389   : > { %10493 = vmatprep.subr.bf16.mxu0 %v15620_v12  ;;  %10525 = vmatprep.subr.bf16.mxu1 %v15621_v50 }
0x138c   : > { %10495 = vmatpush1.bf16.msra.mxu0 %v15622_v0  ;;  %10527 = vmatpush1.bf16.msra.mxu1 %v15623_v23 }
0x138d   : > { %10497 = vmatprep.subr.bf16.mxu0 %v15624_v20  ;;  %10529 = vmatprep.subr.bf16.mxu1 %v15625_v38 }
0x1390   : > { %10499 = vmatpush1.bf16.msra.mxu0 %v15626_v21  ;;  %10531 = vmatpush1.bf16.msra.mxu1 %v15627_v63 }
0x1391   : > { %10501 = vmatprep.subr.bf16.mxu0 %v15628_v4  ;;  %10533 = vmatprep.subr.bf16.mxu1 %v15629_v41 }
0x1394   : > { %10503 = vmatpush1.bf16.msra.mxu0 %v15630_v33  ;;  %10535 = vmatpush1.bf16.msra.mxu1 %v15631_v15 }
0x1395   : > { %10505 = vmatprep.subr.bf16.mxu0 %v15632_v54  ;;  %10537 = vmatprep.subr.bf16.mxu1 %v15633_v35 }
0x1398   : > { %10507 = vmatpush1.bf16.msra.mxu0 %v15634_v24  ;;  %10539 = vmatpush1.bf16.msra.mxu1 %v15635_v1 }
0x1399   : > { %10509 = vmatprep.subr.bf16.mxu0 %v15636_v57  ;;  %10541 = vmatprep.subr.bf16.mxu1 %v15637_v5 }
0x139c   : > { %10511 = vmatpush1.bf16.msra.mxu0 %v15638_v53  ;;  %10543 = vmatpush1.bf16.msra.mxu1 %v15639_v16 }
0x139d   : > { %10513 = vmatprep.subr.bf16.mxu0 %v15640_v58  ;;  %10545 = vmatprep.subr.bf16.mxu1 %v15641_v52 }
0x13a0   : > { %10515 = vmatpush1.bf16.msra.mxu0 %v15642_v61  ;;  %10547 = vmatpush1.bf16.msra.mxu1 %v15643_v29 }
0x13a3   : > { %8570 = vmatmul.mubr.f32.vlgmr.msra.gmra.mrb[100].mxu0 %v15644_v30  ;;  %8641 = vmatmul.mubr.f32.vlgmr.msra.gmra.mrb[100].mxu1 %v15644_v30 }
0x13ba   : > { %v7968_v3 = vpop.f32.mrb[84].mxu0 }
0x13bb   : > { %v8128_v26 = vadd.f32 %v7968_v3, %v15645_v48  ;;  %v7970_v44 = vpop.f32.mrb[85].mxu0 }
0x13bc   : > { %v8129_v51 = vadd.f32 %v7970_v44, %v15646_v55 }
0x13bd   : > { %v9066_v6 = vmul.f32 -1.442695, %v8128_v26 }
0x13be   : > { %v9074_v42 = vmul.f32 -1.442695, %v8129_v51  ;;  %v7974_v40 = vpop.f32.mrb[86].mxu0 }
0x13bf   : > { %11459 = vpow2.f32 %v9066_v6  ;;  %v8132_v32 = vadd.f32 %v7974_v40, %v15645_v48  ;;  %v7976_v45 = vpop.f32.mrb[87].mxu0  ;;  %v8081_v47 = vpop.f32.mrb[84].mxu1 }
0x13c0   : > { %11461 = vpow2.f32 %v9074_v42  ;;  %v8133_v13 = vadd.f32 %v7976_v45, %v15646_v55  ;;  %v8130_v8 = vadd.f32 %v8081_v47, %v15647_v7  ;;  %v8083_v49 = vpop.f32.mrb[85].mxu1 }
0x13c1   : > { %v9067_v2 = vmul.f32 -1.442695, %v8132_v32  ;;  %v8131_v27 = vadd.f32 %v8083_v49, %v15648_v34 }
0x13c2   : > { %v9075_v43 = vmul.f32 -1.442695, %v8133_v13  ;;  %11463 = vtanh.f32 %v8130_v8  ;;  %v7980_v46 = vpop.f32.mrb[88].mxu0 }
0x13c3   : > { %11465 = vpow2.f32 %v9067_v2  ;;  %v9082_v18 = vmul.f32 -1.442695, %v8131_v27  ;;  %v8136_v14 = vadd.f32 %v7980_v46, %v15645_v48  ;;  %v7982_v36 = vpop.f32.mrb[89].mxu0  ;;  %v8087_v31 = vpop.f32.mrb[86].mxu1 }
0x13c4   : > { %11467 = vpow2.f32 %v9075_v43  ;;  %v8137_v22 = vadd.f32 %v7982_v36, %v15646_v55  ;;  %v8134_v59 = vadd.f32 %v8087_v31, %v15647_v7  ;;  %v8089_v28 = vpop.f32.mrb[87].mxu1 }
0x13c5   : > { %11469 = vpow2.f32 %v9082_v18  ;;  %v9068_v60 = vmul.f32 -1.442695, %v8136_v14  ;;  %v8135_v10 = vadd.f32 %v8089_v28, %v15648_v34 }
0x13c6   : > { %v9076_v37 = vmul.f32 -1.442695, %v8137_v22  ;;  %11471 = vtanh.f32 %v8134_v59  ;;  %v7986_v62 = vpop.f32.mrb[90].mxu0 }
0x13c7   : > { %11473 = vpow2.f32 %v9068_v60  ;;  %v9083_v11 = vmul.f32 -1.442695, %v8135_v10  ;;  %v8140_v17 = vadd.f32 %v7986_v62, %v15645_v48  ;;  %v7988_v25 = vpop.f32.mrb[91].mxu0  ;;  %v8093_v9 = vpop.f32.mrb[88].mxu1 }
0x13c8   : > { %11475 = vpow2.f32 %v9076_v37  ;;  %v8141_v19 = vadd.f32 %v7988_v25, %v15646_v55  ;;  %v8138_v39 = vadd.f32 %v8093_v9, %v15647_v7  ;;  %v8095_v56 = vpop.f32.mrb[89].mxu1 }
0x13c9   : > { %v11460_v12 = vpop.eup %11459  ;;  %11477 = vpow2.f32 %v9083_v11  ;;  %v9069_v50 = vmul.f32 -1.442695, %v8140_v17  ;;  %v8139_v0 = vadd.f32 %v8095_v56, %v15648_v34  ;;  %v15649_v11 = vld [vmem:[#allocation36_spill] sm:$0xff] }
0x13ca   : > { %v11462_v23 = vpop.eup %11461  ;;  %v8184_v20 = vadd.f32 1.0, %v11460_v12  ;;  %v9077_v38 = vmul.f32 -1.442695, %v8141_v19  ;;  %11479 = vtanh.f32 %v8138_v39  ;;  %v7992_v21 = vpop.f32.mrb[92].mxu0 }
0x13cb   : > { %v8232_v63 = vadd.f32 1.0, %v11462_v23  ;;  %11481 = vpow2.f32 %v9069_v50  ;;  %v9084_v4 = vmul.f32 -1.442695, %v8139_v0  ;;  %v8144_v41 = vadd.f32 %v7992_v21, %v15645_v48  ;;  %v7994_v33 = vpop.f32.mrb[93].mxu0  ;;  %v8099_v15 = vpop.f32.mrb[90].mxu1 }
0x13cc   : > { %v11464_v54 = vpop.eup %11463  ;;  %11483 = vrcp.f32 %v8184_v20  ;;  %v8101_v35 = vpop.f32.mrb[91].mxu1  ;;  %v8145_v52 = vadd.f32 %v7994_v33, %v15646_v55  ;;  %v8142_v46 = vadd.f32 %v8099_v15, %v15647_v7 }
0x13cd   : > { %v11466_v24 = vpop.eup %11465  ;;  %11485 = vrcp.f32 %v8232_v63  ;;  %v9070_v58 = vmul.f32 -1.442695, %v8144_v41  ;;  %v8143_v42 = vadd.f32 %v8101_v35, %v15648_v34 }
0x13ce   : > { %v11468_v1 = vpop.eup %11467  ;;  %v8185_v57 = vadd.f32 1.0, %v11466_v24  ;;  %11487 = vpow2.f32 %v9077_v38  ;;  %v7998_v5 = vpop.f32.mrb[94].mxu0  ;;  %v9078_v47 = vmul.f32 -1.442695, %v8145_v52  ;;  %v15651_v52 = vld [vmem:[#allocation165_spill] sm:$0xff] }
0x13cf   : > { %v11470_v53 = vpop.eup %11469  ;;  %v8233_v16 = vadd.f32 1.0, %v11468_v1  ;;  %11489 = vpow2.f32 %v9084_v4  ;;  %v8000_v61 = vpop.f32.mrb[95].mxu0  ;;  %v9085_v36 = vmul.f32 -1.442695, %v8143_v42  ;;  %v8148_v31 = vadd.f32 %v7998_v5, %v15645_v48  ;;  %v15650_v4 = vld [vmem:[#allocation38_spill] sm:$0xff] }
0x13d0   : > { %v8105_v29 = vpop.f32.mrb[92].mxu1  ;;  %v11472_v30 = vpop.eup %11471  ;;  %11491 = vrcp.f32 %v8185_v57  ;;  %v8288_v3 = vadd.f32 1.0, %v11470_v53  ;;  %v8149_v60 = vadd.f32 %v8000_v61, %v15646_v55 }
0x13d1   : > { %v8107_v26 = vpop.f32.mrb[93].mxu1  ;;  %v11474_v44 = vpop.eup %11473  ;;  %11493 = vrcp.f32 %v8233_v16  ;;  %v9071_v50 = vmul.f32 -1.442695, %v8148_v31 }
0x13d2   : > { %v11476_v51 = vpop.eup %11475  ;;  %11495 = vrcp.f32 %v8288_v3  ;;  %v8186_v6 = vadd.f32 1.0, %v11474_v44  ;;  %v8004_v40 = vpop.f32.mrb[96].mxu0  ;;  %v9079_v20 = vmul.f32 -1.442695, %v8149_v60  ;;  %v8147_v38 = vadd.f32 %v8107_v26, %v15648_v34  ;;  %v11611_v60 = vld [vmem:[%s12369_s27] sm:$0xff] }
0x13d3   : > { %v11478_v32 = vpop.eup %11477  ;;  %v8234_v45 = vadd.f32 1.0, %v11476_v51  ;;  %11497 = vpow2.f32 %v9070_v58  ;;  %v8006_v13 = vpop.f32.mrb[97].mxu0  ;;  %v8152_v57 = vadd.f32 %v8004_v40, %v15645_v48 }
0x13d4   : > { %v14656_v8 = vpop.f32.mrb[94].mxu1  ;;  %v11480_v49 = vpop.eup %11479  ;;  %11499 = vrcp.f32 %v8186_v6  ;;  %v8289_v2 = vadd.f32 1.0, %v11478_v32  ;;  %v9086_v16 = vmul.f32 -1.442695, %v8147_v38 }
0x13d5   : > { %v14658_v27 = vpop.f32.mrb[95].mxu1  ;;  %v11482_v43 = vpop.eup %11481  ;;  %11501 = vrcp.f32 %v8234_v45  ;;  %v9072_v51 = vmul.f32 -1.442695, %v8152_v57 }
0x13d6   : > { %v11484_v18 = vpop.eup %11483  ;;  %11503 = vrcp.f32 %v8289_v2  ;;  %v8187_v14 = vadd.f32 1.0, %v11482_v43  ;;  %v14662_v22 = vpop.f32.mrb[98].mxu0  ;;  %v15652_v43 = vld [vmem:[#allocation166_spill] sm:$0xff] }
0x13d7   : > { %v11486_v59 = vpop.eup %11485  ;;  %v8320_v28 = vmul.f32 %v11484_v18, %v11464_v54  ;;  %11505 = vpow2.f32 %v9078_v47  ;;  %v14665_v10 = vpop.f32.mrb[99].mxu0  ;;  %v8146_v54 = vadd.f32 %v8105_v29, %v15647_v7  ;;  %v8156_v18 = vadd.f32 %v14662_v22, %v15645_v48 }
0x13d8   : > { %v14667_v37 = vpop.f32.mrb[96].mxu1  ;;  %v11488_v62 = vpop.eup %11487  ;;  %v8312_v17 = vmul.f32 %v11486_v59, %v15649_v11  ;;  %11507 = vrcp.f32 %v8187_v14  ;;  %v8157_v31 = vadd.f32 %v14665_v10, %v15646_v55 }
0x13d9   : > { %v14670_v25 = vpop.f32.mrb[97].mxu1  ;;  %v11490_v9 = vpop.eup %11489  ;;  %v8235_v19 = vadd.f32 1.0, %v11488_v62  ;;  %11509 = vtanh.f32 %v8142_v46  ;;  %v9073_v22 = vmul.f32 -1.442695, %v8156_v18 }
0x13da   : > { %v11492_v39 = vpop.eup %11491  ;;  %v8328_v56 = vadd.f32 %v8320_v28, %v8312_v17  ;;  %v8290_v12 = vadd.f32 1.0, %v11490_v9  ;;  %11511 = vpow2.f32 %v9085_v36  ;;  %v8155_v9 = vadd.f32 %v14670_v25, %v15648_v34 }
0x13db   : > { %v11494_v0 = vpop.eup %11493  ;;  %v8321_v23 = vmul.f32 %v11492_v39, %v11472_v30  ;;  %11513 = vrcp.f32 %v8235_v19  ;;  %v14673_v21 = vpop.f32.mrb[98].mxu1  ;;  %v8153_v30 = vadd.f32 %v8006_v13, %v15646_v55  ;;  %v8150_v13 = vadd.f32 %v14656_v8, %v15647_v7 }
0x13dc   : > { %v11496_v63 = vpop.eup %11495  ;;  %v8313_v41 = vmul.f32 %v11494_v0, %v15650_v4  ;;  %11515 = vtanh.f32 %v8328_v56  ;;  %v14676_v33 = vpop.f32.mrb[99].mxu1  ;;  %v9081_v10 = vmul.f32 -1.442695, %v8157_v31  ;;  %v8154_v25 = vadd.f32 %v14667_v37, %v15647_v7 }
0x13dd   : > { %v11498_v15 = vpop.eup %11497  ;;  %11517 = vrcp.f32 %v8290_v12  ;;  %v9080_v32 = vmul.f32 -1.442695, %v8153_v30  ;;  %v11612_v12 = vld [vmem:[%s12369_s27 + $0x8] sm:$0xff]  ;;  %v9088_v38 = vmul.f32 -1.442695, %v8155_v9  ;;  %v8159_v37 = vadd.f32 %v14676_v33, %v15648_v34 }
0x13de   : > { %v11500_v35 = vpop.eup %11499  ;;  %v8329_v24 = vadd.f32 %v8321_v23, %v8313_v41  ;;  %v8188_v1 = vadd.f32 1.0, %v11498_v15  ;;  %11519 = vpow2.f32 %v9071_v50  ;;  %v15653_v15 = vld [vmem:[#allocation167_spill] sm:$0xff] }
0x13df   : > { %v11502_v5 = vpop.eup %11501  ;;  %v8322_v53 = vmul.f32 %v11500_v35, %v11480_v49  ;;  %11521 = vpow2.f32 %v9079_v20  ;;  %v8151_v49 = vadd.f32 %v14658_v27, %v15648_v34 }
0x13e0   : > { %v11504_v58 = vpop.eup %11503  ;;  %v8314_v61 = vmul.f32 %v11502_v5, %v15651_v52  ;;  %11523 = vtanh.f32 %v8329_v24  ;;  %v11613_v24 = vld [vmem:[%s12369_s27 + $0x10] sm:$0xff] }
0x13e1   : > { %v11506_v3 = vpop.eup %11505  ;;  %11525 = vrcp.f32 %v8188_v1  ;;  %v9087_v11 = vmul.f32 -1.442695, %v8151_v49 }
0x13e2   : > { %v11508_v26 = vpop.eup %11507  ;;  %v8330_v29 = vadd.f32 %v8322_v53, %v8314_v61  ;;  %v8236_v44 = vadd.f32 1.0, %v11506_v3  ;;  %11527 = vtanh.f32 %v8146_v54  ;;  %v8158_v61 = vadd.f32 %v14673_v21, %v15647_v7 }
0x13e3   : > { %v11510_v6 = vpop.eup %11509  ;;  %11529 = vpow2.f32 %v9086_v16 }
0x13e4   : > { %v11512_v42 = vpop.eup %11511  ;;  %11531 = vtanh.f32 %v8330_v29  ;;  %v8323_v40 = vmul.f32 %v11510_v6, %v11508_v26  ;;  %v9089_v26 = vmul.f32 -1.442695, %v8159_v37  ;;  %v15654_v6 = vld [vmem:[#allocation29_spill] sm:$0xff] }
0x13e5   : > { %v11514_v45 = vpop.eup %11513  ;;  %11533 = vrcp.f32 %v8236_v44  ;;  %v8291_v47 = vadd.f32 1.0, %v11512_v42  ;;  %v11614_v44 = vld [vmem:[%s12369_s27 + $0x18] sm:$0xff] }
0x13e6   : > { %v11516_v2 = vpop.eup %11515  ;;  %v8315_v46 = vmul.f32 %v11514_v45, %v15652_v43  ;;  %11535 = vpow2.f32 %v9072_v51 }
0x13e7   : > { %v11518_v14 = vpop.eup %11517  ;;  %v8344_v36 = vmul.f32 %v11516_v2, %v11496_v63  ;;  %11537 = vrcp.f32 %v8291_v47 }
0x13e8   : > { %v11520_v59 = vpop.eup %11519  ;;  %v8331_v28 = vadd.f32 %v8323_v40, %v8315_v46  ;;  %11539 = vpow2.f32 %v9080_v32 }
0x13e9   : > { %v11522_v8 = vpop.eup %11521  ;;  %v8712_v27 = vadd.f32 %v11611_v60, %v8344_v36  ;;  %v8189_v62 = vadd.f32 1.0, %v11520_v59  ;;  %11541 = vtanh.f32 %v8150_v13  ;;  %v15655_v59 = vld [vmem:[#allocation173_spill] sm:$0xff] }
0x13ea   : > { %v11524_v17 = vpop.eup %11523  ;;  %11543 = vtanh.f32 %v8331_v28  ;;  %v8237_v48 = vadd.f32 1.0, %v11522_v8  ;;  %v11615_v8 = vld [vmem:[%s12369_s27 + $0x20] sm:$0xff] }
0x13eb   : > { %v11526_v19 = vpop.eup %11525  ;;  %8720 = vst [vmem:[%s14696_s22] sm:$0xff] %v8712_v27  ;;  %v8345_v55 = vmul.f32 %v11524_v17, %v11504_v58  ;;  %11545 = vrcp.f32 %v8189_v62 }
0x13ec   : > { %v11528_v39 = vpop.eup %11527  ;;  %11547 = vrcp.f32 %v8237_v48 }
0x13ed   : > { %v11530_v56 = vpop.eup %11529  ;;  %v8713_v50 = vadd.f32 %v11612_v12, %v8345_v55  ;;  %v8324_v0 = vmul.f32 %v11528_v39, %v11526_v19  ;;  %11549 = vpow2.f32 %v9087_v11  ;;  %v11616_v39 = vld [vmem:[%s12369_s27 + $0x28] sm:$0xff]  ;;  %v15656_v12 = vld [vmem:[#allocation31_spill] sm:$0xff] }
0x13ee   : > { %v11532_v23 = vpop.eup %11531  ;;  %v8292_v20 = vadd.f32 1.0, %v11530_v56  ;;  %11551 = vpow2.f32 %v9073_v22 }
0x13ef   : > { %v11534_v63 = vpop.eup %11533  ;;  %8721 = vst [vmem:[%s14696_s22 + $0x8] sm:$0xff] %v8713_v50  ;;  %v8346_v4 = vmul.f32 %v11532_v23, %v11518_v14  ;;  %11553 = vpow2.f32 %v9081_v10 }
0x13f0   : > { %v11536_v41 = vpop.eup %11535  ;;  %v8316_v54 = vmul.f32 %v11534_v63, %v15653_v15  ;;  %11555 = vrcp.f32 %v8292_v20 }
0x13f1   : > { %v11538_v35 = vpop.eup %11537  ;;  %v8714_v1 = vadd.f32 %v11613_v24, %v8346_v4  ;;  %v8190_v57 = vadd.f32 1.0, %v11536_v41  ;;  %11557 = vtanh.f32 %v8154_v25 }
0x13f2   : > { %v11540_v5 = vpop.eup %11539  ;;  %v8332_v53 = vadd.f32 %v8324_v0, %v8316_v54  ;;  %11559 = vpow2.f32 %v9088_v38  ;;  %v11617_v38 = vld [vmem:[%s12369_s27 + $0x30] sm:$0xff]  ;;  %v11618_v54 = vld [vmem:[%s12369_s27 + $0x38] sm:$0xff] }
0x13f3   : > { %v11542_v16 = vpop.eup %11541  ;;  %8722 = vst [vmem:[%s14696_s22 + $0x10] sm:$0xff] %v8714_v1  ;;  %11561 = vrcp.f32 %v8190_v57  ;;  %v8238_v58 = vadd.f32 1.0, %v11540_v5 }
0x13f4   : > { %v11544_v52 = vpop.eup %11543  ;;  %11563 = vtanh.f32 %v8332_v53 }
0x13f5   : > { %v11546_v30 = vpop.eup %11545  ;;  %v8347_v3 = vmul.f32 %v11544_v52, %v11538_v35  ;;  %11565 = vrcp.f32 %v8238_v58 }
0x13f6   : > { %v11548_v29 = vpop.eup %11547  ;;  %v8325_v34 = vmul.f32 %v11546_v30, %v11542_v16  ;;  %11567 = vtanh.f32 %v8158_v61 }
0x13f7   : > { %v11550_v33 = vpop.eup %11549  ;;  %v8715_v51 = vadd.f32 %v11614_v44, %v8347_v3  ;;  %v8317_v42 = vmul.f32 %v11548_v29, %v15654_v6  ;;  %11569 = vpow2.f32 %v9089_v26 }
0x13f8   : > { %v11552_v40 = vpop.eup %11551  ;;  %v8293_v32 = vadd.f32 1.0, %v11550_v33 }
0x13f9   : > { %v11554_v45 = vpop.eup %11553  ;;  %8723 = vst [vmem:[%s14696_s22 + $0x18] sm:$0xff] %v8715_v51  ;;  %v8333_v47 = vadd.f32 %v8325_v34, %v8317_v42  ;;  %v8191_v13 = vadd.f32 1.0, %v11552_v40 }
0x13fa   : > { %v11556_v7 = vpop.eup %11555  ;;  %11571 = vrcp.f32 %v8293_v32  ;;  %v8239_v21 = vadd.f32 1.0, %v11554_v45 }
0x13fb   : > { %v11558_v49 = vpop.eup %11557  ;;  %11573 = vtanh.f32 %v8333_v47 }
0x13fc   : > { %v11560_v2 = vpop.eup %11559  ;;  %11575 = vrcp.f32 %v8191_v13 }
0x13fd   : > { %v11562_v43 = vpop.eup %11561  ;;  %11577 = vrcp.f32 %v8239_v21  ;;  %v8294_v31 = vadd.f32 1.0, %v11560_v2 }
0x13fe   : > { %v11564_v46 = vpop.eup %11563  ;;  %v8326_v18 = vmul.f32 %v11562_v43, %v11558_v49 }
0x13ff   : > { %v11566_v14 = vpop.eup %11565  ;;  %v8348_v36 = vmul.f32 %v11564_v46, %v11556_v7  ;;  %11579 = vrcp.f32 %v8294_v31 }
0x1400   : > { %v8318_v28 = vmul.f32 %v11566_v14, %v15655_v59  ;;  %v11568_v27 = vpop.eup %11567 }
0x1401   : > { %v8716_v60 = vadd.f32 %v11615_v8, %v8348_v36  ;;  %v11570_v11 = vpop.eup %11569 }
0x1402   : > { %v8334_v62 = vadd.f32 %v8326_v18, %v8318_v28  ;;  %v8295_v10 = vadd.f32 1.0, %v11570_v11 }
0x1403   : > { %8724 = vst [vmem:[%s14696_s22 + $0x20] sm:$0xff] %v8716_v60 }
0x1404   : > { %v11572_v17 = vpop.eup %11571  ;;  %11581 = vtanh.f32 %v8334_v62 }
0x1405   : > { %v11574_v48 = vpop.eup %11573  ;;  %11583 = vrcp.f32 %v8295_v10 }
0x1406   : > { %v11576_v22 = vpop.eup %11575  ;;  %v8349_v9 = vmul.f32 %v11574_v48, %v11572_v17 }
0x1407   : > { %v11578_v19 = vpop.eup %11577  ;;  %v8327_v55 = vmul.f32 %v11576_v22, %v11568_v27 }
0x1408   : > { %v8717_v56 = vadd.f32 %v11616_v39, %v8349_v9  ;;  %v8319_v50 = vmul.f32 %v11578_v19, %v15656_v12 }
0x1409   : > { %v11580_v25 = vpop.eup %11579 }
0x140a   : > { %8725 = vst [vmem:[%s14696_s22 + $0x28] sm:$0xff] %v8717_v56  ;;  %v8335_v0 = vadd.f32 %v8327_v55, %v8319_v50 }
0x140c   : > { %11585 = vtanh.f32 %v8335_v0 }
0x140e   : > { %v11582_v23 = vpop.eup %11581 }
0x140f   : > { %v8350_v20 = vmul.f32 %v11582_v23, %v11580_v25  ;;  %v11584_v4 = vpop.eup %11583 }
0x1411   : > { %v8718_v63 = vadd.f32 %v11617_v38, %v8350_v20 }
0x1413   : > { %8726 = vst [vmem:[%s14696_s22 + $0x30] sm:$0xff] %v8718_v63 }
0x1416   : > { %v11586_v41 = vpop.eup %11585 }
0x1417   : > { %v8351_v15 = vmul.f32 %v11586_v41, %v11584_v4 }
0x1419   : > { %v8719_v35 = vadd.f32 %v11618_v54, %v8351_v15 }
0x141b   : > { %8727 = vst [vmem:[%s14696_s22 + $0x38] sm:$0xff] %v8719_v35 }
0x141c   : > { %11864 = shalt.err (!%p11861_p0)
}
0x141d   : > { %s11865_s2 = scalar_lea.hbm %s14728_s0, 1024  ;;  %s11869_s16 = scalar_lea.hbm %s14829_s9, 2048 }
0x141e   : > { %p11866_p12 = scmp.ne.s32.totalorder %s14728_s0, %s11865_s2  ;;  %p11870_p3 = scmp.lt.u32.totalorder %s14728_s0, %s14829_s9 }
0x141f   : > { %p11871_p6 = scmp.lt.u32.totalorder %s11869_s16, %s11865_s2  ;;  %p11873_p4 = scmp.lt.u32.totalorder %s11865_s2, %s14728_s0 }
0x1420   : > { %p11867_p13 = pnand %p11866_p12, %p15657_p10 }
0x1421   : > { %p11872_p2 = por %p11871_p6, %p11870_p3 }
0x1422   : > { %p11868_p1 = pneg %p11867_p13 }
0x1423   : > { %p11874_p5 = por %p11873_p4, %p11872_p2 }
0x1425   : > { %p11875_p7 = pnand %p11874_p5, %p11868_p1 }
0x1427   : > { %11878 = shalt.err (!%p11875_p7)
}
0x1428   : > { %s11990_s18 = smov 128   ;;  %s11991_s23 = smov 8   ;;  %v15658_v57 = vld [vmem:[#allocation168_spill] sm:$0xff]  ;;  %v15659_v16 = vld [vmem:[#allocation169_spill] sm:$0xff]  ;;  %v15661_v29 = vld [vmem:[#allocation170_spill] sm:$0xff] }
0x1429   : > { %10685 = dma.vmem_to_hbm [thread:$0]  (%p15657_p10), %s14730_s25, 1024, %s14728_s0, %s8734_s4, %s11990_s18, %s11990_s18, %s11991_s23   ;;  %v15660_v30 = vld [vmem:[#allocation172_spill] sm:$0xff]  ;;  %v15662_v7 = vld [vmem:[#allocation159_spill] sm:$0xff]  ;;  %v15663_v18 = vld [vmem:[#allocation174_spill] sm:$0xff] }
0x142a   : > { %v11619_v8 = vld [vmem:[%s12359_s17] sm:$0x1]  ;;  %s9105_s25 = sshll.u32 %s12066_s15, 6  ;;  %s478_s13 = scalar_lea.vmem [#allocation16], %s8966_s14  ;;  %v11620_v62 = vld [vmem:[%s12359_s17 + $0x1] sm:$0x1] }
0x142b   : > { %s8747_s0 = sshll.u32 %s478_s13, 4  ;;  %v11621_v17 = vld [vmem:[%s12359_s17 + $0x2] sm:$0x1]  ;;  %s15664_s20 = sld [smem:[#allocation181_spill]]  ;;  %v11622_v22 = vld [vmem:[%s12359_s17 + $0x3] sm:$0x1]  ;;  %s14775_s0 = int_to_ptr.vmem [resolvable:$true] %s8747_s0 }
0x142c   : > { %s8729_s15 = scalar_lea.sflag [#allocation4], %s12353_s29  ;;  %s11879_s14 = scalar_lea.vmem %s14775_s0, 64 }
0x142d   : > { %p11880_p9 = scmp.ne.s32.totalorder %s14775_s0, %s11879_s14  ;;  %s11992_s28 = smov [#allocation16]  }
0x142e   : > { %s11883_s2 = sshll.u32 %s11992_s28, 4  ;;  %s11884_s2 = int_to_ptr.vmem [resolvable:$false] %s11883_s2 }
0x142f   : > { %p11881_p8 = pnand %p11880_p9, %p15657_p10  ;;  %s11885_s3 = scalar_lea.vmem %s11884_s2, 128 }
0x1430   : > { %p11886_p0 = scmp.lt.s32.totalorder %s14775_s0, %s11884_s2  ;;  %p11887_p12 = scmp.lt.s32.totalorder %s11885_s3, %s11879_s14 }
0x1431   : > { %s14773_s6 = scalar_lea.hbm %s15664_s20, %s9105_s25  ;;  %p11882_p11 = pneg %p11881_p8 }
0x1432   : > { %p11888_p13 = por %p11887_p12, %p11886_p0 }
0x1434   : > { %p11889_p1 = pnand %p11888_p13, %p11882_p11 }
0x1476   : > { %v8571_v24 = vpop.f32.mrb[100].mxu0  ;;  %v8642_v1 = vpop.f32.mrb[100].mxu1 }
0x1477   : > { %v8647_v37 = vadd.f32 %v8571_v24, %v15658_v57  ;;  %v8573_v5 = vpop.f32.mrb[101].mxu0  ;;  %v8644_v53 = vpop.f32.mrb[101].mxu1  ;;  %v8649_v34 = vadd.f32 %v8642_v1, %v15661_v29 }
0x1478   : > { %v8648_v58 = vadd.f32 %v8573_v5, %v15659_v16  ;;  %v8650_v3 = vadd.f32 %v8644_v53, %v15660_v30 }
0x1479   : > { %v9090_v52 = vmul.f32 -1.442695, %v8647_v37 }
0x147a   : > { %v9091_v61 = vmul.f32 -1.442695, %v8648_v58  ;;  %v9092_v26 = vmul.f32 -1.442695, %v8650_v3 }
0x147b   : > { %11587 = vpow2.f32 %v9090_v52 }
0x147c   : > { %11589 = vpow2.f32 %v9091_v61 }
0x147d   : > { %11591 = vpow2.f32 %v9092_v26 }
0x147e   : > { %11593 = vtanh.f32 %v8649_v34 }
0x1485   : > { %v11588_v33 = vpop.eup %11587 }
0x1486   : > { %v11590_v44 = vpop.eup %11589  ;;  %v8654_v51 = vadd.f32 1.0, %v11588_v33 }
0x1487   : > { %v8660_v6 = vadd.f32 1.0, %v11590_v44  ;;  %v11592_v42 = vpop.eup %11591 }
0x1488   : > { %11595 = vrcp.f32 %v8654_v51  ;;  %v11594_v40 = vpop.eup %11593  ;;  %v8667_v13 = vadd.f32 1.0, %v11592_v42 }
0x1489   : > { %11597 = vrcp.f32 %v8660_v6 }
0x148a   : > { %11599 = vrcp.f32 %v8667_v13 }
0x1492   : > { %v11596_v32 = vpop.eup %11595 }
0x1493   : > { %v11598_v45 = vpop.eup %11597  ;;  %v8671_v47 = vmul.f32 %v11596_v32, %v11594_v40 }
0x1494   : > { %v8670_v21 = vmul.f32 %v11598_v45, %v15662_v7  ;;  %v11600_v2 = vpop.eup %11599 }
0x1496   : > { %v8672_v49 = vadd.f32 %v8671_v47, %v8670_v21 }
0x1498   : > { %11601 = vtanh.f32 %v8672_v49 }
0x14a2   : > { %v11602_v43 = vpop.eup %11601 }
0x14a3   : > { %v8674_v46 = vmul.f32 %v11602_v43, %v11600_v2 }
0x14a5   : > { %v8682_v14 = vrot.slane %v8674_v46, %v15663_v18 }
0x14a7   : > { %v8683_v36 = vcombine.high %v8682_v14, %v8682_v14  ;;  %v8690_v31 = vrot.slane %v8682_v14, %v15663_v18 }
0x14a9   : > { %v8697_v59 = vrot.slane %v8683_v36, %v15663_v18  ;;  %v8698_v28 = vcombine.high %v8690_v31, %v8690_v31  ;;  %v8704_v60 = vadd.f32 %v11619_v8, %v8690_v31 }
0x14ab   : > { %v8699_v27 = vcombine.high %v8697_v59, %v8697_v59  ;;  %v8705_v11 = vadd.f32 %v11620_v62, %v8697_v59  ;;  %v8706_v48 = vadd.f32 %v11621_v17, %v8698_v28  ;;  %8708 = vst [vmem:[%s478_s13] sm:$0x1] %v8704_v60 }
0x14ad   : > { %v8707_v9 = vadd.f32 %v11622_v22, %v8699_v27  ;;  %8709 = vst [vmem:[%s478_s13 + $0x1] sm:$0x1] %v8705_v11  ;;  %8710 = vst [vmem:[%s478_s13 + $0x2] sm:$0x1] %v8706_v48 }
0x14af   : > { %8711 = vst [vmem:[%s478_s13 + $0x3] sm:$0x1] %v8707_v9 }
0x14b0   : > { %11892 = shalt.err (!%p11889_p1)
}
0x14b1   : > { %s11893_s17 = scalar_lea.hbm %s14773_s6, 64  ;;  %s11897_s27 = scalar_lea.hbm %s15664_s20, 128 }
0x14b2   : > { %p11894_p3 = scmp.ne.s32.totalorder %s14773_s6, %s11893_s17  ;;  %p11898_p4 = scmp.lt.u32.totalorder %s14773_s6, %s15664_s20 }
0x14b3   : > { %p11899_p5 = scmp.lt.u32.totalorder %s11897_s27, %s11893_s17  ;;  %p11901_p9 = scmp.lt.u32.totalorder %s11893_s17, %s14773_s6 }
0x14b4   : > { %p11895_p6 = pnand %p11894_p3, %p15657_p10 }
0x14b5   : > { %p11900_p7 = por %p11899_p5, %p11898_p4 }
0x14b6   : > { %p11896_p2 = pneg %p11895_p6 }
0x14b7   : > { %p11902_p8 = por %p11901_p9, %p11900_p7 }
0x14b9   : > { %p11903_p11 = pnand %p11902_p8, %p11896_p2 }
0x14bb   : > { %11906 = shalt.err (!%p11903_p11)
}
0x14bc   : > { %s11993_s23 = smov 16   ;;  %s11994_s25 = smov 1  }
0x14bd   : > { %10684 = dma.vmem_to_hbm [thread:$0]  (%p15657_p10), %s14775_s0, 64, %s14773_s6, %s8729_s15, %s11993_s23, %s11993_s23, %s11994_s25  }
0x14be PF: > { %s8779_s13 = sand.u32 1, %s11957_s30   ;;  %p15665_p0 = scmp.ne.s32.totalorder %s15177_s26, 0 }
0x14bf   : > { %p15666_p12 = scmp.ge.s32.totalorder %s11969_s12, 2  ;;  %s8780_s4 = scalar_lea.sflag [#allocation4], %s8779_s13 }
0x14c1   : > { %p10715_p13 = pnand %p15666_p12, %p15665_p0 }
0x14c3   : > { %11948 = dma.done.wait (!%p10715_p13), %s8780_s4, 64  }
0x14c4   : > { %11950 = vsyncadd (!%p10715_p13), %s8780_s4, 4294967232  ;;  %s8789_s8 = scalar_lea.sflag [#allocation18], %s8779_s13 }
0x14c5   : > { %11952 = dma.done.wait (!%p10715_p13), %s8789_s8, 1024  }
0x14c6   : > { %11954 = vsyncadd (!%p10715_p13), %s8789_s8, 4294966272  ;;  %p32_p10 = scmp.ge.s32.totalorder %s12233_s19, 4   ;;  %s15667_s30 = smov %s11961_s10 }
0x14c7   : > { %s15668_s10 = smov %s11965_s11  ;;  %s15669_s11 = smov %s12244_s21 }
0x14c8   : > { %s15670_s12 = smov %s12233_s19  ;;  %34 = sbr.rel (!%p32_p10) target bundleno = 20 (0x14), region = 151 }
0x14cf   :  { %8794 = vsyncpa [#allocation3], 1 }
0x14d0   :  { %8796 = vsyncpa [#allocation3 + $0x1], 1 }
0x14d1   :  { %8797 = vsyncpa [#allocation6], 1 }
0x14d2   :  { %8799 = vsyncpa [#allocation6 + $0x1], 1 }
0x14d3   :  { %8800 = vsyncpa [#allocation9], 1 }
0x14d4   :  { %8801 = vsyncpa [#allocation12], 1 }
0x14d5   :  { %8802 = vsyncpa [#allocation15], 1 }
0x14d6   :  { %8803 = vsyncpa [#allocation4], 1 }
0x14d7   :  { %8805 = vsyncpa [#allocation4 + $0x1], 1 }
0x14d8   :  { %8806 = vsyncpa [#allocation18], 1 }
0x14d9   :  { %8808 = vsyncpa [#allocation18 + $0x1], 1 }

</bundles_post_ra>
